<compile_context>
chip_gen: v6e
topology: v6e:2x2x1
jax: 0.10.0
libtpu: 0.0.40
codegen_flags: <defaults>
</compile_context>

<pallas_src>
import numpy as np
import jax
import jax.numpy as jnp
from jax.experimental import pallas as pl
from jax.experimental.pallas import tpu as pltpu


# ---------------------------------------------------------------------------
# Constant 0/1 gather tensors (conv taps + pad=1 + pool grouping), built once.
# ---------------------------------------------------------------------------

def _gather_tensor(hw):
    """(9, hw*hw, hw*hw) 0/1 tensor G[t, s, q].

    G[t, s, q] = 1 iff input pixel s (row-major on the hw x hw grid) is the
    tap-t source (t = 3*di + dj, pad=1) of the conv output pixel whose
    pool-grouped slot is q = pool_pos * (hw/2)^2 + pool_window.  Ordering the
    output pool-position-major makes the 2x2 max-pool an elementwise max of
    four lane-aligned slices inside the kernel.
    """
    half = hw // 2
    G = np.zeros((9, hw * hw, hw * hw), np.float32)
    for oy in range(hw):
        for ox in range(hw):
            q = ((oy % 2) * 2 + (ox % 2)) * half * half + (oy // 2) * half + (ox // 2)
            for di in range(3):
                for dj in range(3):
                    sy, sx = oy + di - 1, ox + dj - 1
                    if 0 <= sy < hw and 0 <= sx < hw:
                        G[di * 3 + dj, sy * hw + sx, q] = 1.0
    return G


_G1 = _gather_tensor(16)   # conv1: 16x16 spatial, (9, 256, 256)
_G2 = _gather_tensor(8)    # conv2:  8x8  spatial, (9,  64,  64)


# ---------------------------------------------------------------------------
# Parameters & one-time packing (folding, bf16 casts, padding, bias tiling)
# ---------------------------------------------------------------------------

def init_params(key):
    k1, k2, k3, k4, k5 = jax.random.split(key, 5)
    return {
        "conv1_w": 0.1 * jax.random.normal(k1, (3, 3, 2, 16), jnp.float32),
        "conv1_b": 0.01 * jax.random.normal(k4, (16,), jnp.float32),
        "conv2_w": 0.1 * jax.random.normal(k2, (3, 3, 16, 32), jnp.float32),
        "conv2_b": 0.01 * jax.random.normal(k5, (32,), jnp.float32),
        # fc_w rows are in NHWC-flatten order (h, w, c) of the (4,4,32) feature map.
        "fc_w": 0.05 * jax.random.normal(k3, (32 * 4 * 4, 64), jnp.float32),
        "fc_b": jnp.zeros((64,), jnp.float32),
    }


def pack_params(params):
    """One-time packing: fold conv taps/pad/pool-grouping into dense weights."""
    # conv1: rows = NCHW-flattened raw sample (ci*256 + pixel), cols = pool-grouped
    # output (pool_pos*1024 + pool_window*16 + co).
    w1r = params["conv1_w"].reshape(9, 2, 16)                    # (t, ci, co)
    w1f = jnp.einsum("tsq,tic->isqc", jnp.asarray(_G1), w1r).reshape(512, 4096)
    # conv2: rows = conv1 pooled activation lanes (pixel*16 + ci), cols =
    # pool-grouped output (pool_pos*512 + pool_window*32 + co).
    w2r = params["conv2_w"].reshape(9, 16, 32)                   # (t, ci, co)
    w2f = jnp.einsum("tpq,tic->piqc", jnp.asarray(_G2), w2r).reshape(1024, 2048)
    return {
        "w1f": w1f.astype(jnp.bfloat16),                                  # (512, 4096)
        "b1":  jnp.tile(params["conv1_b"], 64).reshape(1, 1024).astype(jnp.float32),
        "w2f": w2f.astype(jnp.bfloat16),                                  # (1024, 2048)
        "b2":  jnp.tile(params["conv2_b"], 16).reshape(1, 512).astype(jnp.float32),
        "w3":  jnp.pad(params["fc_w"], ((0, 0), (0, 64))).astype(jnp.bfloat16),  # (512, 128)
        "b3":  jnp.pad(params["fc_b"], (0, 64)).reshape(1, 128).astype(jnp.float32),
    }


# ---------------------------------------------------------------------------
# Fused Pallas kernel: three batched GEMMs + lane-aligned pooling, all in VMEM
# ---------------------------------------------------------------------------

def protonet_kernel(x_ref, w1_ref, b1_ref, w2_ref, b2_ref, w3_ref, b3_ref, o_ref):
    # x_ref: (B, 512) f32 = B raw NCHW-flattened DVS samples (2x16x16).
    x = x_ref[...].astype(jnp.bfloat16)

    # block 1: conv(2->16, pad=1) + 2x2 maxpool + bias + relu  (one GEMM)
    h1 = jnp.dot(x, w1_ref[...], preferred_element_type=jnp.float32)      # (B, 4096)
    m1 = jnp.maximum(jnp.maximum(h1[:, 0:1024], h1[:, 1024:2048]),
                     jnp.maximum(h1[:, 2048:3072], h1[:, 3072:4096]))     # (B, 1024)
    c1 = jnp.maximum(m1 + b1_ref[...], 0.0).astype(jnp.bfloat16)

    # block 2: conv(16->32, pad=1) + 2x2 maxpool + bias + relu  (one GEMM)
    h2 = jnp.dot(c1, w2_ref[...], preferred_element_type=jnp.float32)     # (B, 2048)
    m2 = jnp.maximum(jnp.maximum(h2[:, 0:512], h2[:, 512:1024]),
                     jnp.maximum(h2[:, 1024:1536], h2[:, 1536:2048]))     # (B, 512)
    c2 = jnp.maximum(m2 + b2_ref[...], 0.0).astype(jnp.bfloat16)

    # fc: (B, 512) @ (512, 128-padded) + bias  (one GEMM, lane-dense store)
    o_ref[...] = b3_ref[...] + jnp.dot(c2, w3_ref[...],
                                       preferred_element_type=jnp.float32)


# ---------------------------------------------------------------------------
# Forward wrapper (jitted): only reshape/pad the input, call the kernel, slice
# ---------------------------------------------------------------------------

def protonet_forward(packed, x_nchw, *, block_batch=8):
    """ProtoNet.forward(x): (N,2,16,16) NCHW -> (N,64) embeddings."""
    N = x_nchw.shape[0]
    BB = block_batch
    n_pad = ((N + BB - 1) // BB) * BB
    x = x_nchw.reshape(N, 512).astype(jnp.float32)   # NCHW flatten (ci, y, x)
    if n_pad != N:
        x = jnp.pad(x, ((0, n_pad - N), (0, 0)))

    flops = 2 * n_pad * (512 * 4096 + 1024 * 2048 + 512 * 128)
    bytes_accessed = (2 * (512 * 4096 + 1024 * 2048 + 512 * 128)   # bf16 weights
                      + 4 * (1024 + 512 + 128)                     # f32 bias tiles
                      + 4 * n_pad * (512 + 128))                   # f32 in + out

    out = pl.pallas_call(
        protonet_kernel,
        grid=(n_pad // BB,),
        in_specs=[
            pl.BlockSpec((BB, 512), lambda n: (n, 0)),       # raw samples
            pl.BlockSpec((512, 4096), lambda n: (0, 0)),     # folded conv1
            pl.BlockSpec((1, 1024), lambda n: (0, 0)),       # conv1 bias (tiled)
            pl.BlockSpec((1024, 2048), lambda n: (0, 0)),    # folded conv2
            pl.BlockSpec((1, 512), lambda n: (0, 0)),        # conv2 bias (tiled)
            pl.BlockSpec((512, 128), lambda n: (0, 0)),      # fc w (padded)
            pl.BlockSpec((1, 128), lambda n: (0, 0)),        # fc b (padded)
        ],
        out_specs=pl.BlockSpec((BB, 128), lambda n: (n, 0)),  # lane-dense (128)
        out_shape=jax.ShapeDtypeStruct((n_pad, 128), jnp.float32),
        compiler_params=pltpu.CompilerParams(
            dimension_semantics=("parallel",),        # v7x: both TCs when grid >= 2
            vmem_limit_bytes=40 * 1024 * 1024),       # double-buffered weights ~16.5 MiB
        cost_estimate=pl.CostEstimate(flops=flops, transcendentals=0,
                                      bytes_accessed=bytes_accessed),
    )(x, packed["w1f"], packed["b1"], packed["w2f"], packed["b2"],
      packed["w3"], packed["b3"])

    return out[:N, :64]


# ---------------------------------------------------------------------------
# Pure-JAX f32 reference (same feature extractor) for a sanity check
# ---------------------------------------------------------------------------

def _reference_forward(params, x_nchw):
    h = jnp.transpose(x_nchw, (0, 2, 3, 1))
    for wk, bk in (("conv1_w", "conv1_b"), ("conv2_w", "conv2_b")):
        h = jax.lax.conv_general_dilated(
            h, params[wk], window_strides=(1, 1), padding="SAME",
            dimension_numbers=("NHWC", "HWIO", "NHWC"))
        h = jnp.maximum(h + params[bk], 0.0)
        h = jax.lax.reduce_window(h, -jnp.inf, jax.lax.max,
                                  (1, 2, 2, 1), (1, 2, 2, 1), "VALID")
    h = h.reshape(h.shape[0], -1)
    return h @ params["fc_w"] + params["fc_b"]


if __name__ == "__main__":
    key = jax.random.PRNGKey(0)
    kx, kp = jax.random.split(key)
    # DVS-style input: batch=2, 2 polarity channels, 16x16 spatial (NCHW)
    x = jax.random.normal(kx, (2, 2, 16, 16), jnp.float32)
    params = init_params(kp)
    packed = pack_params(params)          # one-time packing, NOT per forward call

    fwd = jax.jit(protonet_forward, static_argnames=("block_batch",))
    emb = jax.block_until_ready(fwd(packed, x))

    assert emb.shape == (2, 64)
    assert bool(jnp.all(jnp.isfinite(emb)))
    ref = _reference_forward(params, x)
    err = float(jnp.max(jnp.abs(emb - ref)))
    assert bool(jnp.allclose(emb, ref, atol=5e-2, rtol=5e-2)), err
    print("KERNEL_OK")
</pallas_src>

<mosaic_0001>
module attributes {stable_mosaic.version = 11 : i64} {
  func.func @protonet_kernel(%arg0: i32, %arg1: memref<8x512xf32, #tpu.memory_space<vmem>>, %arg2: memref<512x4096xbf16, #tpu.memory_space<vmem>>, %arg3: memref<1x1024xf32, #tpu.memory_space<vmem>>, %arg4: memref<1024x2048xbf16, #tpu.memory_space<vmem>>, %arg5: memref<1x512xf32, #tpu.memory_space<vmem>>, %arg6: memref<512x128xbf16, #tpu.memory_space<vmem>>, %arg7: memref<1x128xf32, #tpu.memory_space<vmem>>, %arg8: memref<8x128xf32, #tpu.memory_space<vmem>>) attributes {dimension_semantics = [#tpu.dimension_semantics<parallel>], iteration_bounds = array<i64: 1>, scalar_prefetch = 0 : i64, scratch_operands = 0 : i64, tpu.core_type = #tpu.core_type<tc>, window_params = [{transform_indices = @transform_0, window_bounds = array<i64: 8, 512>}, {pipeline_mode = #tpu.pipeline_mode<synchronous>, transform_indices = @transform_1, window_bounds = array<i64: 512, 4096>}, {pipeline_mode = #tpu.pipeline_mode<synchronous>, transform_indices = @transform_2, window_bounds = array<i64: 1, 1024>}, {pipeline_mode = #tpu.pipeline_mode<synchronous>, transform_indices = @transform_3, window_bounds = array<i64: 1024, 2048>}, {pipeline_mode = #tpu.pipeline_mode<synchronous>, transform_indices = @transform_4, window_bounds = array<i64: 1, 512>}, {pipeline_mode = #tpu.pipeline_mode<synchronous>, transform_indices = @transform_5, window_bounds = array<i64: 512, 128>}, {pipeline_mode = #tpu.pipeline_mode<synchronous>, transform_indices = @transform_6, window_bounds = array<i64: 1, 128>}, {transform_indices = @transform_7, window_bounds = array<i64: 8, 128>}]} {
    %c0 = arith.constant 0 : index
    %c0_0 = arith.constant 0 : index
    %0 = vector.load %arg1[%c0, %c0_0] : memref<8x512xf32, #tpu.memory_space<vmem>>, vector<8x512xf32>
    %1 = arith.truncf %0 : vector<8x512xf32> to vector<8x512xbf16>
    %c0_1 = arith.constant 0 : index
    %c0_2 = arith.constant 0 : index
    %2 = vector.load %arg2[%c0_1, %c0_2] : memref<512x4096xbf16, #tpu.memory_space<vmem>>, vector<512x4096xbf16>
    %cst = arith.constant dense<0.000000e+00> : vector<8x4096xf32>
    %3 = tpu.matmul %1, %2, %cst {dimension_numbers = #tpu.dot_dimension_numbers<[1], [0], [0], [1], [0, 0, 1, 1], [], []>} : vector<8x512xbf16>, vector<512x4096xbf16>, vector<8x4096xf32> -> vector<8x4096xf32>
    %4 = vector.extract_strided_slice %3 {offsets = [0, 0], sizes = [8, 1024], strides = [1, 1]} : vector<8x4096xf32> to vector<8x1024xf32>
    %5 = vector.extract_strided_slice %3 {offsets = [0, 1024], sizes = [8, 1024], strides = [1, 1]} : vector<8x4096xf32> to vector<8x1024xf32>
    %6 = arith.maximumf %4, %5 : vector<8x1024xf32>
    %7 = vector.extract_strided_slice %3 {offsets = [0, 2048], sizes = [8, 1024], strides = [1, 1]} : vector<8x4096xf32> to vector<8x1024xf32>
    %8 = vector.extract_strided_slice %3 {offsets = [0, 3072], sizes = [8, 1024], strides = [1, 1]} : vector<8x4096xf32> to vector<8x1024xf32>
    %9 = arith.maximumf %7, %8 : vector<8x1024xf32>
    %10 = arith.maximumf %6, %9 : vector<8x1024xf32>
    %c0_3 = arith.constant 0 : index
    %c0_4 = arith.constant 0 : index
    %11 = vector.load %arg3[%c0_3, %c0_4] : memref<1x1024xf32, #tpu.memory_space<vmem>>, vector<1x1024xf32>
    %12 = vector.broadcast %11 : vector<1x1024xf32> to vector<8x1024xf32>
    %13 = arith.addf %10, %12 : vector<8x1024xf32>
    %cst_5 = arith.constant 0.000000e+00 : f32
    %14 = vector.broadcast %cst_5 : f32 to vector<8x1024xf32>
    %15 = arith.maximumf %13, %14 : vector<8x1024xf32>
    %16 = arith.truncf %15 : vector<8x1024xf32> to vector<8x1024xbf16>
    %c0_6 = arith.constant 0 : index
    %c0_7 = arith.constant 0 : index
    %17 = vector.load %arg4[%c0_6, %c0_7] : memref<1024x2048xbf16, #tpu.memory_space<vmem>>, vector<1024x2048xbf16>
    %cst_8 = arith.constant dense<0.000000e+00> : vector<8x2048xf32>
    %18 = tpu.matmul %16, %17, %cst_8 {dimension_numbers = #tpu.dot_dimension_numbers<[1], [0], [0], [1], [0, 0, 1, 1], [], []>} : vector<8x1024xbf16>, vector<1024x2048xbf16>, vector<8x2048xf32> -> vector<8x2048xf32>
    %19 = vector.extract_strided_slice %18 {offsets = [0, 0], sizes = [8, 512], strides = [1, 1]} : vector<8x2048xf32> to vector<8x512xf32>
    %20 = vector.extract_strided_slice %18 {offsets = [0, 512], sizes = [8, 512], strides = [1, 1]} : vector<8x2048xf32> to vector<8x512xf32>
    %21 = arith.maximumf %19, %20 : vector<8x512xf32>
    %22 = vector.extract_strided_slice %18 {offsets = [0, 1024], sizes = [8, 512], strides = [1, 1]} : vector<8x2048xf32> to vector<8x512xf32>
    %23 = vector.extract_strided_slice %18 {offsets = [0, 1536], sizes = [8, 512], strides = [1, 1]} : vector<8x2048xf32> to vector<8x512xf32>
    %24 = arith.maximumf %22, %23 : vector<8x512xf32>
    %25 = arith.maximumf %21, %24 : vector<8x512xf32>
    %c0_9 = arith.constant 0 : index
    %c0_10 = arith.constant 0 : index
    %26 = vector.load %arg5[%c0_9, %c0_10] : memref<1x512xf32, #tpu.memory_space<vmem>>, vector<1x512xf32>
    %27 = vector.broadcast %26 : vector<1x512xf32> to vector<8x512xf32>
    %28 = arith.addf %25, %27 : vector<8x512xf32>
    %cst_11 = arith.constant 0.000000e+00 : f32
    %29 = vector.broadcast %cst_11 : f32 to vector<8x512xf32>
    %30 = arith.maximumf %28, %29 : vector<8x512xf32>
    %31 = arith.truncf %30 : vector<8x512xf32> to vector<8x512xbf16>
    %c0_12 = arith.constant 0 : index
    %c0_13 = arith.constant 0 : index
    %32 = vector.load %arg7[%c0_12, %c0_13] : memref<1x128xf32, #tpu.memory_space<vmem>>, vector<1x128xf32>
    %c0_14 = arith.constant 0 : index
    %c0_15 = arith.constant 0 : index
    %33 = vector.load %arg6[%c0_14, %c0_15] : memref<512x128xbf16, #tpu.memory_space<vmem>>, vector<512x128xbf16>
    %cst_16 = arith.constant dense<0.000000e+00> : vector<8x128xf32>
    %34 = tpu.matmul %31, %33, %cst_16 {dimension_numbers = #tpu.dot_dimension_numbers<[1], [0], [0], [1], [0, 0, 1, 1], [], []>} : vector<8x512xbf16>, vector<512x128xbf16>, vector<8x128xf32> -> vector<8x128xf32>
    %35 = vector.broadcast %32 : vector<1x128xf32> to vector<8x128xf32>
    %36 = arith.addf %35, %34 : vector<8x128xf32>
    %c0_17 = arith.constant 0 : index
    %c0_18 = arith.constant 0 : index
    %37 = vector.load %arg8[%c0_17, %c0_18] : memref<8x128xf32, #tpu.memory_space<vmem>>, vector<8x128xf32>
    tpu.vector_store %arg8[%c0_17, %c0_18], %36 {strides = array<i32>} : memref<8x128xf32, #tpu.memory_space<vmem>>, vector<8x128xf32>,
    return
  }
  func.func @transform_0(%arg0: i32) -> (i32, i32) {
    %c0_i32 = arith.constant 0 : i32
    %c0_i32_0 = arith.constant 0 : i32
    return %arg0, %c0_i32 : i32, i32
  }
  func.func @transform_1(%arg0: i32) -> (i32, i32) {
    %c0_i32 = arith.constant 0 : i32
    %c0_i32_0 = arith.constant 0 : i32
    %c0_i32_1 = arith.constant 0 : i32
    return %c0_i32, %c0_i32_0 : i32, i32
  }
  func.func @transform_2(%arg0: i32) -> (i32, i32) {
    %c0_i32 = arith.constant 0 : i32
    %c0_i32_0 = arith.constant 0 : i32
    %c0_i32_1 = arith.constant 0 : i32
    return %c0_i32, %c0_i32_0 : i32, i32
  }
  func.func @transform_3(%arg0: i32) -> (i32, i32) {
    %c0_i32 = arith.constant 0 : i32
    %c0_i32_0 = arith.constant 0 : i32
    %c0_i32_1 = arith.constant 0 : i32
    return %c0_i32, %c0_i32_0 : i32, i32
  }
  func.func @transform_4(%arg0: i32) -> (i32, i32) {
    %c0_i32 = arith.constant 0 : i32
    %c0_i32_0 = arith.constant 0 : i32
    %c0_i32_1 = arith.constant 0 : i32
    return %c0_i32, %c0_i32_0 : i32, i32
  }
  func.func @transform_5(%arg0: i32) -> (i32, i32) {
    %c0_i32 = arith.constant 0 : i32
    %c0_i32_0 = arith.constant 0 : i32
    %c0_i32_1 = arith.constant 0 : i32
    return %c0_i32, %c0_i32_0 : i32, i32
  }
  func.func @transform_6(%arg0: i32) -> (i32, i32) {
    %c0_i32 = arith.constant 0 : i32
    %c0_i32_0 = arith.constant 0 : i32
    %c0_i32_1 = arith.constant 0 : i32
    return %c0_i32, %c0_i32_0 : i32, i32
  }
  func.func @transform_7(%arg0: i32) -> (i32, i32) {
    %c0_i32 = arith.constant 0 : i32
    %c0_i32_0 = arith.constant 0 : i32
    return %arg0, %c0_i32 : i32, i32
  }
}

</mosaic_0001>

<bundles_post_ra>
// kernel: protonet_forward.1
= control target key start
LH: loop header
LB: loop body
LE: loop exit
PB: predicated region body
PF: predicated region fallthrough
CT: control target
= control target key end

     0   :  { %12 = vsyncpa [#allocation3], 0  ;;  %s18331_s0 = inlined_call_operand.vmem [shape: f32[8,512], index: 0, kind: input, shape index: {}]   ;;  %s18332_s1 = inlined_call_operand.hbm [shape: bf16[512,4096], index: 1, kind: input, shape index: {}]   ;;  %s18333_s2 = inlined_call_operand.hbm [shape: f32[1,1024], index: 2, kind: input, shape index: {}]   ;;  %s18334_s3 = inlined_call_operand.hbm [shape: bf16[1024,2048], index: 3, kind: input, shape index: {}]   ;;  %s18335_s4 = inlined_call_operand.hbm [shape: f32[1,512], index: 4, kind: input, shape index: {}]   ;;  %s18336_s5 = inlined_call_operand.hbm [shape: bf16[512,128], index: 5, kind: input, shape index: {}]   ;;  %s18337_s6 = inlined_call_operand.hbm [shape: f32[1,128], index: 6, kind: input, shape index: {}]   ;;  %s18338_s7 = inlined_call_operand.vmem [shape: f32[8,128], index: 7, kind: output, shape index: {}]  }
   0x1   :  { %13 = vsyncpa [#allocation5], 0 }
   0x2   :  { %14 = vsyncpa [#allocation8], 0 }
   0x3   :  { %15 = vsyncpa [#allocation11], 0  ;;  %s17809_s24 = smov [#allocation4]   ;;  %s17810_s26 = smov [#allocation7]  }
   0x4   :  { %s36_s25 = sshll.u32 %s17809_s24, 4  ;;  %s58_s27 = sshll.u32 %s17810_s26, 4  ;;  %s37_s25 = int_to_ptr.vmem [resolvable:$true] %s36_s25  ;;  %s59_s27 = int_to_ptr.vmem [resolvable:$true] %s58_s27 }
   0x5   :  { %s17689_s28 = scalar_lea.vmem %s37_s25, 128  ;;  %p17694_p1 = scmp.lt.s32.totalorder %s37_s25, %s37_s25 }
   0x6   :  { %p17690_p0 = scmp.ne.s32.totalorder %s37_s25, %s17689_s28  ;;  %p17695_p2 = scmp.lt.s32.totalorder %s17689_s28, %s17689_s28 }
   0x8   :  { %p17696_p3 = por %p17695_p2, %p17694_p1 }
   0xa   :  { %p17697_p4 = pnand %p17696_p3, %p17690_p0 }
   0xc   :  { %17700 = shalt.err (!%p17697_p4)
}
   0xd   :  { %39 = dma.hbm_to_vmem [thread:$0]  %s18333_s2, 128, %s37_s25, [#allocation5]  }
   0xe   :  { %s17709_s8 = scalar_lea.vmem %s59_s27, 64  ;;  %p17714_p6 = scmp.lt.s32.totalorder %s59_s27, %s59_s27 }
   0xf   :  { %p17710_p5 = scmp.ne.s32.totalorder %s59_s27, %s17709_s8  ;;  %p17715_p7 = scmp.lt.s32.totalorder %s17709_s8, %s17709_s8 }
  0x11   :  { %p17716_p8 = por %p17715_p7, %p17714_p6 }
  0x13   :  { %p17717_p9 = pnand %p17716_p8, %p17710_p5 }
  0x15   :  { %17720 = shalt.err (!%p17717_p9)
}
  0x16   :  { %61 = dma.hbm_to_vmem [thread:$0]  %s18335_s4, 64, %s59_s27, [#allocation8]  }
  0x17   :  { %s17811_s11 = smov [#allocation2]  }
  0x18   :  { %s23_s12 = sshll.u32 %s17811_s11, 4  ;;  %s24_s12 = int_to_ptr.vmem [resolvable:$true] %s23_s12 }
  0x19   :  { %s17729_s13 = scalar_lea.vmem %s24_s12, 131072  ;;  %p17734_p11 = scmp.lt.s32.totalorder %s24_s12, %s24_s12 }
  0x1a   :  { %p17730_p10 = scmp.ne.s32.totalorder %s24_s12, %s17729_s13  ;;  %p17735_p12 = scmp.lt.s32.totalorder %s17729_s13, %s17729_s13 }
  0x1c   :  { %p17736_p13 = por %p17735_p12, %p17734_p11 }
  0x1e   :  { %p17737_p0 = pnand %p17736_p13, %p17730_p10 }
  0x20   :  { %17740 = shalt.err (!%p17737_p0)
}
  0x21   :  { %s17812_s2 = smov 2048   ;;  %s17813_s14 = smov 128  }
  0x22   :  { %29 = dma.hbm_to_vmem [thread:$0]  %s18332_s1, 131072, %s24_s12, [#allocation3], %s17812_s2, %s17812_s2, %s17813_s14  }
  0x23   :  { %s17814_s17 = smov [#allocation6]  }
  0x24   :  { %s45_s18 = sshll.u32 %s17814_s17, 4  ;;  %s46_s18 = int_to_ptr.vmem [resolvable:$true] %s45_s18 }
  0x25   :  { %s17749_s4 = scalar_lea.vmem %s46_s18, 131072  ;;  %p17754_p2 = scmp.lt.s32.totalorder %s46_s18, %s46_s18 }
  0x26   :  { %p17750_p1 = scmp.ne.s32.totalorder %s46_s18, %s17749_s4  ;;  %p17755_p3 = scmp.lt.s32.totalorder %s17749_s4, %s17749_s4 }
  0x28   :  { %p17756_p4 = por %p17755_p3, %p17754_p2 }
  0x2a   :  { %p17757_p5 = pnand %p17756_p4, %p17750_p1 }
  0x2c   :  { %17760 = shalt.err (!%p17757_p5)
}
  0x2d   :  { %s17815_s19 = smov 1024   ;;  %s17816_s20 = smov 64  }
  0x2e   :  { %51 = dma.hbm_to_vmem [thread:$0]  %s18334_s3, 131072, %s46_s18, [#allocation5], %s17815_s19, %s17815_s19, %s17816_s20  }
  0x2f   :  { %s17817_s23 = smov [#allocation9]   ;;  %s17818_s1 = smov [#allocation10]  }
  0x30   :  { %s67_s24 = sshll.u32 %s17817_s23, 4  ;;  %s80_s25 = sshll.u32 %s17818_s1, 4  ;;  %s68_s24 = int_to_ptr.vmem [resolvable:$true] %s67_s24  ;;  %s81_s25 = int_to_ptr.vmem [resolvable:$true] %s80_s25 }
  0x31   :  { %s17769_s26 = scalar_lea.vmem %s68_s24, 4096  ;;  %p17774_p7 = scmp.lt.s32.totalorder %s68_s24, %s68_s24 }
  0x32   :  { %p17770_p6 = scmp.ne.s32.totalorder %s68_s24, %s17769_s26  ;;  %p17775_p8 = scmp.lt.s32.totalorder %s17769_s26, %s17769_s26 }
  0x34   :  { %p17776_p9 = por %p17775_p8, %p17774_p7 }
  0x36   :  { %p17777_p10 = pnand %p17776_p9, %p17770_p6 }
  0x38   :  { %17780 = shalt.err (!%p17777_p10)
}
  0x39   :  { %s17819_s27 = smov 4   ;;  %s17789_s30 = scalar_lea.vmem %s81_s25, 16 }
  0x3a   :  { %73 = dma.hbm_to_vmem [thread:$0]  %s18336_s5, 4096, %s68_s24, [#allocation8], %s17816_s20, %s17816_s20, %s17819_s27  }
  0x3b   :  { %p17790_p11 = scmp.ne.s32.totalorder %s81_s25, %s17789_s30  ;;  %s17793_s3 = scalar_lea.vmem %s81_s25, 32 }
  0x3c   :  { %p17794_p12 = scmp.lt.s32.totalorder %s81_s25, %s81_s25  ;;  %p17795_p13 = scmp.lt.s32.totalorder %s17793_s3, %s17789_s30 }
  0x3e   :  { %p17796_p0 = por %p17795_p13, %p17794_p12 }
  0x40   :  { %p17797_p1 = pnand %p17796_p0, %p17790_p11 }
  0x42   :  { %17800 = shalt.err (!%p17797_p1)
}
  0x43   :  { %83 = dma.hbm_to_vmem [thread:$0]  %s18337_s6, 16, %s81_s25, [#allocation11]  }
  0x44   :  { %17801 = dma.done.wait [#allocation3], 131072  }
  0x45   :  { %17802 = vsyncadd [#allocation3], 4294836224 }
  0x46   :  { %17803 = dma.done.wait [#allocation5], 131200  }
  0x47   :  { %17804 = vsyncadd [#allocation5], 4294836096 }
  0x48   :  { %17805 = dma.done.wait [#allocation8], 4160  }
  0x49   :  { %17806 = vsyncadd [#allocation8], 4294963136 }
  0x4a   :  { %17807 = dma.done.wait [#allocation11], 16  }
  0x4b   :  { %17808 = vsyncadd [#allocation11], 4294967280  ;;  %v335_v0 = vld [vmem:[#allocation2 + $0x700] sm:$0xff]  ;;  %v104_v53 = vld [vmem:[%s18331_s0 + $0x8] sm:$0xff] }
  0x4c   :  { %v351_v1 = vld [vmem:[#allocation2 + $0x780] sm:$0xff]  ;;  %v106_v54 = vld [vmem:[%s18331_s0 + $0x18] sm:$0xff]  ;;  %v17884_v58 = vpack.c.bf16 %v104_v53, %v104_v53 }
  0x4d   :  { %v847_v2 = vld [vmem:[#allocation2 + $0x1700] sm:$0xff]  ;;  %v15737_v3 = vcombine.high %v335_v0, %v351_v1  ;;  %v15736_v5 = vcombine.low %v335_v0, %v351_v1  ;;  %v17886_v59 = vpack.c.bf16 %v106_v54, %v106_v54 }
  0x4e   :  { %v863_v4 = vld [vmem:[#allocation2 + $0x1780] sm:$0xff]  ;;  %6287 = vmatprep.mubr.bf16.mxu0 %v17884_v58 }
  0x4f   :  { %v303_v6 = vld [vmem:[#allocation2 + $0x600] sm:$0xff]  ;;  %v16249_v8 = vcombine.high %v847_v2, %v863_v4  ;;  %v16248_v9 = vcombine.low %v847_v2, %v863_v4  ;;  %6255 = vmatprep.subr.bf16.mxu0 %v15737_v3  ;;  %6328 = vmatprep.mubr.bf16.mxu1 %v17886_v59 }
  0x50   :  { %v319_v7 = vld [vmem:[#allocation2 + $0x680] sm:$0xff]  ;;  %6256 = vmatpush1.bf16.msra.mxu0 %v15736_v5 }
  0x51   :  { %v15705_v10 = vcombine.high %v303_v6, %v319_v7  ;;  %v815_v11 = vld [vmem:[#allocation2 + $0x1600] sm:$0xff]  ;;  %6296 = vmatprep.subr.bf16.mxu1 %v16249_v8  ;;  %v15704_v18 = vcombine.low %v303_v6, %v319_v7 }
  0x52   :  { %v831_v12 = vld [vmem:[#allocation2 + $0x1680] sm:$0xff]  ;;  %6297 = vmatpush1.bf16.msra.mxu1 %v16248_v9 }
  0x53   :  { %v271_v13 = vld [vmem:[#allocation2 + $0x500] sm:$0xff]  ;;  %v16217_v14 = vcombine.high %v815_v11, %v831_v12  ;;  %6257 = vmatprep.subr.bf16.mxu0 %v15705_v10  ;;  %v16216_v19 = vcombine.low %v815_v11, %v831_v12 }
  0x54   :  { %v287_v15 = vld [vmem:[#allocation2 + $0x580] sm:$0xff]  ;;  %6258 = vmatpush1.bf16.msra.mxu0 %v15704_v18 }
  0x55   :  { %v783_v16 = vld [vmem:[#allocation2 + $0x1500] sm:$0xff]  ;;  %v15673_v20 = vcombine.high %v271_v13, %v287_v15  ;;  %6298 = vmatprep.subr.bf16.mxu1 %v16217_v14  ;;  %v15672_v26 = vcombine.low %v271_v13, %v287_v15 }
  0x56   :  { %v799_v17 = vld [vmem:[#allocation2 + $0x1580] sm:$0xff]  ;;  %6299 = vmatpush1.bf16.msra.mxu1 %v16216_v19 }
  0x57   :  { %v16185_v21 = vcombine.high %v783_v16, %v799_v17  ;;  %v239_v22 = vld [vmem:[#allocation2 + $0x400] sm:$0xff]  ;;  %6259 = vmatprep.subr.bf16.mxu0 %v15673_v20  ;;  %v16184_v27 = vcombine.low %v783_v16, %v799_v17 }
  0x58   :  { %v255_v23 = vld [vmem:[#allocation2 + $0x480] sm:$0xff]  ;;  %6260 = vmatpush1.bf16.msra.mxu0 %v15672_v26 }
  0x59   :  { %v751_v24 = vld [vmem:[#allocation2 + $0x1400] sm:$0xff]  ;;  %v15641_v28 = vcombine.high %v239_v22, %v255_v23  ;;  %6300 = vmatprep.subr.bf16.mxu1 %v16185_v21  ;;  %v15640_v34 = vcombine.low %v239_v22, %v255_v23 }
  0x5a   :  { %v767_v25 = vld [vmem:[#allocation2 + $0x1480] sm:$0xff]  ;;  %6301 = vmatpush1.bf16.msra.mxu1 %v16184_v27 }
  0x5b   :  { %v16153_v29 = vcombine.high %v751_v24, %v767_v25  ;;  %v207_v30 = vld [vmem:[#allocation2 + $0x300] sm:$0xff]  ;;  %6261 = vmatprep.subr.bf16.mxu0 %v15641_v28  ;;  %v16152_v35 = vcombine.low %v751_v24, %v767_v25 }
  0x5c   :  { %v223_v31 = vld [vmem:[#allocation2 + $0x380] sm:$0xff]  ;;  %6262 = vmatpush1.bf16.msra.mxu0 %v15640_v34 }
  0x5d   :  { %v719_v32 = vld [vmem:[#allocation2 + $0x1300] sm:$0xff]  ;;  %v15609_v36 = vcombine.high %v207_v30, %v223_v31  ;;  %6302 = vmatprep.subr.bf16.mxu1 %v16153_v29  ;;  %v15608_v42 = vcombine.low %v207_v30, %v223_v31 }
  0x5e   :  { %v735_v33 = vld [vmem:[#allocation2 + $0x1380] sm:$0xff]  ;;  %6303 = vmatpush1.bf16.msra.mxu1 %v16152_v35 }
  0x5f   :  { %v16121_v37 = vcombine.high %v719_v32, %v735_v33  ;;  %v175_v38 = vld [vmem:[#allocation2 + $0x200] sm:$0xff]  ;;  %6263 = vmatprep.subr.bf16.mxu0 %v15609_v36  ;;  %v16120_v43 = vcombine.low %v719_v32, %v735_v33 }
  0x60   :  { %v191_v39 = vld [vmem:[#allocation2 + $0x280] sm:$0xff]  ;;  %6264 = vmatpush1.bf16.msra.mxu0 %v15608_v42 }
  0x61   :  { %v687_v40 = vld [vmem:[#allocation2 + $0x1200] sm:$0xff]  ;;  %v15577_v44 = vcombine.high %v175_v38, %v191_v39  ;;  %6304 = vmatprep.subr.bf16.mxu1 %v16121_v37  ;;  %v15576_v50 = vcombine.low %v175_v38, %v191_v39 }
  0x62   :  { %v703_v41 = vld [vmem:[#allocation2 + $0x1280] sm:$0xff]  ;;  %6305 = vmatpush1.bf16.msra.mxu1 %v16120_v43 }
  0x63   :  { %v16089_v45 = vcombine.high %v687_v40, %v703_v41  ;;  %v143_v46 = vld [vmem:[#allocation2 + $0x100] sm:$0xff]  ;;  %6265 = vmatprep.subr.bf16.mxu0 %v15577_v44  ;;  %v16088_v51 = vcombine.low %v687_v40, %v703_v41 }
  0x64   :  { %v159_v47 = vld [vmem:[#allocation2 + $0x180] sm:$0xff]  ;;  %6266 = vmatpush1.bf16.msra.mxu0 %v15576_v50 }
  0x65   :  { %v655_v48 = vld [vmem:[#allocation2 + $0x1100] sm:$0xff]  ;;  %v15545_v52 = vcombine.high %v143_v46, %v159_v47  ;;  %6306 = vmatprep.subr.bf16.mxu1 %v16089_v45  ;;  %v15544_v62 = vcombine.low %v143_v46, %v159_v47 }
  0x66   :  { %v671_v49 = vld [vmem:[#allocation2 + $0x1180] sm:$0xff]  ;;  %6307 = vmatpush1.bf16.msra.mxu1 %v16088_v51 }
  0x67   :  { %v16057_v55 = vcombine.high %v655_v48, %v671_v49  ;;  %v111_v56 = vld [vmem:[#allocation2] sm:$0xff]  ;;  %6267 = vmatprep.subr.bf16.mxu0 %v15545_v52  ;;  %v16056_v63 = vcombine.low %v655_v48, %v671_v49 }
  0x68   :  { %v127_v57 = vld [vmem:[#allocation2 + $0x80] sm:$0xff]  ;;  %6268 = vmatpush1.bf16.msra.mxu0 %v15544_v62 }
  0x69   :  { %v623_v60 = vld [vmem:[#allocation2 + $0x1000] sm:$0xff]  ;;  %v15513_v0 = vcombine.high %v111_v56, %v127_v57  ;;  %6308 = vmatprep.subr.bf16.mxu1 %v16057_v55  ;;  %v15512_v6 = vcombine.low %v111_v56, %v127_v57 }
  0x6a   :  { %v639_v61 = vld [vmem:[#allocation2 + $0x1080] sm:$0xff]  ;;  %6309 = vmatpush1.bf16.msra.mxu1 %v16056_v63 }
  0x6b   :  { %v16025_v1 = vcombine.high %v623_v60, %v639_v61  ;;  %v591_v2 = vld [vmem:[#allocation2 + $0xf00] sm:$0xff]  ;;  %6269 = vmatprep.subr.bf16.mxu0 %v15513_v0  ;;  %v16024_v7 = vcombine.low %v623_v60, %v639_v61 }
  0x6c   :  { %v607_v3 = vld [vmem:[#allocation2 + $0xf80] sm:$0xff]  ;;  %6270 = vmatpush1.bf16.msra.mxu0 %v15512_v6  ;;  %v848_v6 = vld [vmem:[#allocation2 + $0x1708] sm:$0xff] }
  0x6d   :  { %v1103_v4 = vld [vmem:[#allocation2 + $0x1f00] sm:$0xff]  ;;  %v15993_v8 = vcombine.high %v591_v2, %v607_v3  ;;  %6310 = vmatprep.subr.bf16.mxu1 %v16025_v1  ;;  %v15992_v14 = vcombine.low %v591_v2, %v607_v3 }
  0x6e   :  { %v1119_v5 = vld [vmem:[#allocation2 + $0x1f80] sm:$0xff]  ;;  %6311 = vmatpush1.bf16.msra.mxu1 %v16024_v7  ;;  %v864_v7 = vld [vmem:[#allocation2 + $0x1788] sm:$0xff] }
  0x6f   :  { %v16505_v9 = vcombine.high %v1103_v4, %v1119_v5  ;;  %v559_v10 = vld [vmem:[#allocation2 + $0xe00] sm:$0xff]  ;;  %6271 = vmatprep.subr.bf16.mxu0 %v15993_v8  ;;  %v16504_v15 = vcombine.low %v1103_v4, %v1119_v5  ;;  %v336_v4 = vld [vmem:[#allocation2 + $0x708] sm:$0xff] }
  0x70   :  { %v575_v11 = vld [vmem:[#allocation2 + $0xe80] sm:$0xff]  ;;  %6272 = vmatpush2.bf16.msra.mxu0 %v15992_v14  ;;  %v352_v5 = vld [vmem:[#allocation2 + $0x788] sm:$0xff] }
  0x71   :  { %v1071_v12 = vld [vmem:[#allocation2 + $0x1e00] sm:$0xff]  ;;  %v15961_v16 = vcombine.high %v559_v10, %v575_v11  ;;  %6312 = vmatprep.subr.bf16.mxu1 %v16505_v9  ;;  %v15960_v22 = vcombine.low %v559_v10, %v575_v11  ;;  %v105_v11 = vld [vmem:[%s18331_s0 + $0x10] sm:$0xff]  ;;  %v304_v14 = vld [vmem:[#allocation2 + $0x608] sm:$0xff] }
  0x72   :  { %v1087_v13 = vld [vmem:[#allocation2 + $0x1e80] sm:$0xff]  ;;  %6313 = vmatpush2.bf16.msra.mxu1 %v16504_v15  ;;  %v320_v15 = vld [vmem:[#allocation2 + $0x688] sm:$0xff] }
  0x73   :  { %v16473_v17 = vcombine.high %v1071_v12, %v1087_v13  ;;  %v527_v18 = vld [vmem:[#allocation2 + $0xd00] sm:$0xff]  ;;  %6273 = vmatprep.subr.bf16.mxu0 %v15961_v16  ;;  %v16472_v23 = vcombine.low %v1071_v12, %v1087_v13  ;;  %v15739_v12 = vcombine.high %v336_v4, %v352_v5  ;;  %v16251_v13 = vcombine.high %v848_v6, %v864_v7 }
  0x74   :  { %v543_v19 = vld [vmem:[#allocation2 + $0xd80] sm:$0xff]  ;;  %6274 = vmatpush2.bf16.msra.mxu0 %v15960_v22  ;;  %v15707_v22 = vcombine.high %v304_v14, %v320_v15 }
  0x75   :  { %v1039_v20 = vld [vmem:[#allocation2 + $0x1d00] sm:$0xff]  ;;  %v15929_v24 = vcombine.high %v527_v18, %v543_v19  ;;  %6314 = vmatprep.subr.bf16.mxu1 %v16473_v17  ;;  %v15928_v30 = vcombine.low %v527_v18, %v543_v19  ;;  %v816_v17 = vld [vmem:[#allocation2 + $0x1608] sm:$0xff]  ;;  %v17898_v19 = vpack.c.bf16 %v105_v11, %v105_v11 }
  0x76   :  { %v1055_v21 = vld [vmem:[#allocation2 + $0x1d80] sm:$0xff]  ;;  %6315 = vmatpush2.bf16.msra.mxu1 %v16472_v23  ;;  %v832_v18 = vld [vmem:[#allocation2 + $0x1688] sm:$0xff] }
  0x77   :  { %v16441_v25 = vcombine.high %v1039_v20, %v1055_v21  ;;  %v495_v26 = vld [vmem:[#allocation2 + $0xc00] sm:$0xff]  ;;  %6275 = vmatprep.subr.bf16.mxu0 %v15929_v24  ;;  %v16440_v31 = vcombine.low %v1039_v20, %v1055_v21  ;;  %v15738_v20 = vcombine.low %v336_v4, %v352_v5  ;;  %v16250_v21 = vcombine.low %v848_v6, %v864_v7  ;;  %v272_v23 = vld [vmem:[#allocation2 + $0x508] sm:$0xff] }
  0x78   :  { %v511_v27 = vld [vmem:[#allocation2 + $0xc80] sm:$0xff]  ;;  %6276 = vmatpush2.bf16.msra.mxu0 %v15928_v30  ;;  %v288_v24 = vld [vmem:[#allocation2 + $0x588] sm:$0xff] }
  0x79   :  { %v1007_v28 = vld [vmem:[#allocation2 + $0x1c00] sm:$0xff]  ;;  %v15897_v32 = vcombine.high %v495_v26, %v511_v27  ;;  %6316 = vmatprep.subr.bf16.mxu1 %v16441_v25  ;;  %v15896_v38 = vcombine.low %v495_v26, %v511_v27  ;;  %v16219_v25 = vcombine.high %v816_v17, %v832_v18  ;;  %v784_v26 = vld [vmem:[#allocation2 + $0x1508] sm:$0xff]  ;;  %v15675_v30 = vcombine.high %v272_v23, %v288_v24 }
  0x7a   :  { %v1023_v29 = vld [vmem:[#allocation2 + $0x1c80] sm:$0xff]  ;;  %6317 = vmatpush2.bf16.msra.mxu1 %v16440_v31  ;;  %v800_v27 = vld [vmem:[#allocation2 + $0x1588] sm:$0xff] }
  0x7b   :  { %v16409_v33 = vcombine.high %v1007_v28, %v1023_v29  ;;  %v463_v34 = vld [vmem:[#allocation2 + $0xb00] sm:$0xff]  ;;  %6277 = vmatprep.subr.bf16.mxu0 %v15897_v32  ;;  %v16408_v39 = vcombine.low %v1007_v28, %v1023_v29  ;;  %v15706_v28 = vcombine.low %v304_v14, %v320_v15  ;;  %v16218_v29 = vcombine.low %v816_v17, %v832_v18  ;;  %v240_v31 = vld [vmem:[#allocation2 + $0x408] sm:$0xff] }
  0x7c   :  { %v479_v35 = vld [vmem:[#allocation2 + $0xb80] sm:$0xff]  ;;  %6278 = vmatpush2.bf16.msra.mxu0 %v15896_v38  ;;  %v256_v32 = vld [vmem:[#allocation2 + $0x488] sm:$0xff] }
  0x7d   :  { %v975_v36 = vld [vmem:[#allocation2 + $0x1b00] sm:$0xff]  ;;  %v15865_v40 = vcombine.high %v463_v34, %v479_v35  ;;  %6318 = vmatprep.subr.bf16.mxu1 %v16409_v33  ;;  %v15864_v46 = vcombine.low %v463_v34, %v479_v35  ;;  %v752_v33 = vld [vmem:[#allocation2 + $0x1408] sm:$0xff]  ;;  %v16187_v34 = vcombine.high %v784_v26, %v800_v27  ;;  %v15643_v38 = vcombine.high %v240_v31, %v256_v32 }
  0x7e   :  { %v991_v37 = vld [vmem:[#allocation2 + $0x1b80] sm:$0xff]  ;;  %6319 = vmatpush2.bf16.msra.mxu1 %v16408_v39  ;;  %v768_v35 = vld [vmem:[#allocation2 + $0x1488] sm:$0xff] }
  0x7f   :  { %v16377_v41 = vcombine.high %v975_v36, %v991_v37  ;;  %v431_v42 = vld [vmem:[#allocation2 + $0xa00] sm:$0xff]  ;;  %6279 = vmatprep.subr.bf16.mxu0 %v15865_v40  ;;  %v16376_v47 = vcombine.low %v975_v36, %v991_v37  ;;  %v15674_v36 = vcombine.low %v272_v23, %v288_v24  ;;  %v16186_v37 = vcombine.low %v784_v26, %v800_v27  ;;  %v208_v39 = vld [vmem:[#allocation2 + $0x308] sm:$0xff] }
  0x80   :  { %v447_v43 = vld [vmem:[#allocation2 + $0xa80] sm:$0xff]  ;;  %6280 = vmatpush2.bf16.msra.mxu0 %v15864_v46  ;;  %v224_v40 = vld [vmem:[#allocation2 + $0x388] sm:$0xff] }
  0x81   :  { %v943_v44 = vld [vmem:[#allocation2 + $0x1a00] sm:$0xff]  ;;  %v15833_v48 = vcombine.high %v431_v42, %v447_v43  ;;  %6320 = vmatprep.subr.bf16.mxu1 %v16377_v41  ;;  %v15832_v54 = vcombine.low %v431_v42, %v447_v43  ;;  %v720_v41 = vld [vmem:[#allocation2 + $0x1308] sm:$0xff]  ;;  %v16155_v42 = vcombine.high %v752_v33, %v768_v35  ;;  %v15611_v46 = vcombine.high %v208_v39, %v224_v40 }
  0x82   :  { %v959_v45 = vld [vmem:[#allocation2 + $0x1a80] sm:$0xff]  ;;  %6321 = vmatpush2.bf16.msra.mxu1 %v16376_v47  ;;  %v736_v43 = vld [vmem:[#allocation2 + $0x1388] sm:$0xff] }
  0x83   :  { %v16345_v49 = vcombine.high %v943_v44, %v959_v45  ;;  %v399_v50 = vld [vmem:[#allocation2 + $0x900] sm:$0xff]  ;;  %6281 = vmatprep.subr.bf16.mxu0 %v15833_v48  ;;  %v16344_v55 = vcombine.low %v943_v44, %v959_v45  ;;  %v15642_v44 = vcombine.low %v240_v31, %v256_v32  ;;  %v16154_v45 = vcombine.low %v752_v33, %v768_v35  ;;  %v176_v47 = vld [vmem:[#allocation2 + $0x208] sm:$0xff] }
  0x84   :  { %v415_v51 = vld [vmem:[#allocation2 + $0x980] sm:$0xff]  ;;  %6282 = vmatpush2.bf16.msra.mxu0 %v15832_v54  ;;  %v192_v48 = vld [vmem:[#allocation2 + $0x288] sm:$0xff] }
  0x85   :  { %v911_v52 = vld [vmem:[#allocation2 + $0x1900] sm:$0xff]  ;;  %v15801_v56 = vcombine.high %v399_v50, %v415_v51  ;;  %6322 = vmatprep.subr.bf16.mxu1 %v16345_v49  ;;  %v15800_v0 = vcombine.low %v399_v50, %v415_v51  ;;  %v688_v49 = vld [vmem:[#allocation2 + $0x1208] sm:$0xff]  ;;  %v16123_v50 = vcombine.high %v720_v41, %v736_v43  ;;  %v15579_v54 = vcombine.high %v176_v47, %v192_v48 }
  0x86   :  { %v927_v53 = vld [vmem:[#allocation2 + $0x1980] sm:$0xff]  ;;  %6323 = vmatpush2.bf16.msra.mxu1 %v16344_v55  ;;  %v704_v51 = vld [vmem:[#allocation2 + $0x1288] sm:$0xff] }
  0x87   :  { %v16313_v57 = vcombine.high %v911_v52, %v927_v53  ;;  %v367_v60 = vld [vmem:[#allocation2 + $0x800] sm:$0xff]  ;;  %6283 = vmatprep.subr.bf16.mxu0 %v15801_v56  ;;  %v16312_v1 = vcombine.low %v911_v52, %v927_v53  ;;  %v15610_v52 = vcombine.low %v208_v39, %v224_v40  ;;  %v16122_v53 = vcombine.low %v720_v41, %v736_v43  ;;  %v144_v55 = vld [vmem:[#allocation2 + $0x108] sm:$0xff] }
  0x88   :  { %v383_v61 = vld [vmem:[#allocation2 + $0x880] sm:$0xff]  ;;  %6284 = vmatpush2.bf16.msra.mxu0 %v15800_v0  ;;  %v160_v56 = vld [vmem:[#allocation2 + $0x188] sm:$0xff] }
  0x89   :  { %v879_v62 = vld [vmem:[#allocation2 + $0x1800] sm:$0xff]  ;;  %v15769_v2 = vcombine.high %v367_v60, %v383_v61  ;;  %6324 = vmatprep.subr.bf16.mxu1 %v16313_v57  ;;  %v15768_v8 = vcombine.low %v367_v60, %v383_v61  ;;  %v656_v57 = vld [vmem:[#allocation2 + $0x1108] sm:$0xff]  ;;  %v16091_v60 = vcombine.high %v688_v49, %v704_v51  ;;  %v15547_v0 = vcombine.high %v144_v55, %v160_v56 }
  0x8a   :  { %v895_v63 = vld [vmem:[#allocation2 + $0x1880] sm:$0xff]  ;;  %6325 = vmatpush2.bf16.msra.mxu1 %v16312_v1  ;;  %v672_v61 = vld [vmem:[#allocation2 + $0x1188] sm:$0xff]  ;;  %v15546_v6 = vcombine.low %v144_v55, %v160_v56 }
  0x8b   :  { %v16281_v3 = vcombine.high %v879_v62, %v895_v63  ;;  %v103_v9 = vld [vmem:[%s18331_s0] sm:$0xff]  ;;  %6285 = vmatprep.subr.bf16.mxu0 %v15769_v2  ;;  %v16280_v10 = vcombine.low %v879_v62, %v895_v63  ;;  %v15578_v62 = vcombine.low %v176_v47, %v192_v48  ;;  %v16090_v63 = vcombine.low %v688_v49, %v704_v51  ;;  %v112_v1 = vld [vmem:[#allocation2 + $0x8] sm:$0xff] }
  0x8c   :  { %v17896_v16 = vpack.c.bf16 %v103_v9, %v103_v9  ;;  %6286 = vmatpush2.bf16.msra.mxu0 %v15768_v8  ;;  %v128_v2 = vld [vmem:[#allocation2 + $0x88] sm:$0xff]  ;;  %v16059_v4 = vcombine.high %v656_v57, %v672_v61  ;;  %v16058_v7 = vcombine.low %v656_v57, %v672_v61 }
  0x8d   :  { %6326 = vmatprep.subr.bf16.mxu1 %v16281_v3  ;;  %6337 = vmatprep.subr.bf16.mxu0 %v15739_v12  ;;  %v624_v3 = vld [vmem:[#allocation2 + $0x1008] sm:$0xff]  ;;  %v15515_v8 = vcombine.high %v112_v1, %v128_v2  ;;  %v15514_v14 = vcombine.low %v112_v1, %v128_v2 }
  0x8e   :  { %6327 = vmatpush2.bf16.msra.mxu1 %v16280_v10  ;;  %v640_v5 = vld [vmem:[#allocation2 + $0x1088] sm:$0xff] }
  0x8f   :  { %6378 = vmatprep.subr.bf16.mxu1 %v16251_v13  ;;  %6288 = vmatmul.mubr.bf16.vlgmr.msra.gmra.mxu0 %v17896_v16  ;;  %v592_v9 = vld [vmem:[#allocation2 + $0xf08] sm:$0xff]  ;;  %v16027_v12 = vcombine.high %v624_v3, %v640_v5  ;;  %v16026_v15 = vcombine.low %v624_v3, %v640_v5 }
  0x90   :  { %6338 = vmatpush1.bf16.msra.mxu0 %v15738_v20  ;;  %6369 = vmatprep.mubr.bf16.mxu0 %v17884_v58  ;;  %v608_v10 = vld [vmem:[#allocation2 + $0xf88] sm:$0xff] }
  0x91   :  { %6329 = vmatmul.mubr.bf16.vlgmr.msra.gmra.mxu1 %v17898_v19  ;;  %6339 = vmatprep.subr.bf16.mxu0 %v15707_v22  ;;  %v1104_v11 = vld [vmem:[#allocation2 + $0x1f08] sm:$0xff]  ;;  %v15995_v17 = vcombine.high %v592_v9, %v608_v10  ;;  %v15994_v24 = vcombine.low %v592_v9, %v608_v10 }
  0x92   :  { %6379 = vmatpush1.bf16.msra.mxu1 %v16250_v21  ;;  %6410 = vmatprep.mubr.bf16.mxu1 %v17886_v59  ;;  %v1120_v13 = vld [vmem:[#allocation2 + $0x1f88] sm:$0xff] }
  0x93   :  { %6380 = vmatprep.subr.bf16.mxu1 %v16219_v25  ;;  %v560_v18 = vld [vmem:[#allocation2 + $0xe08] sm:$0xff]  ;;  %v16507_v22 = vcombine.high %v1104_v11, %v1120_v13  ;;  %v16506_v25 = vcombine.low %v1104_v11, %v1120_v13 }
  0x94   :  { %6340 = vmatpush1.bf16.msra.mxu0 %v15706_v28  ;;  %v576_v20 = vld [vmem:[#allocation2 + $0xe88] sm:$0xff] }
  0x95   :  { %6341 = vmatprep.subr.bf16.mxu0 %v15675_v30  ;;  %v1072_v21 = vld [vmem:[#allocation2 + $0x1e08] sm:$0xff]  ;;  %v15963_v26 = vcombine.high %v560_v18, %v576_v20  ;;  %v15962_v32 = vcombine.low %v560_v18, %v576_v20  ;;  %v865_v18 = vld [vmem:[#allocation2 + $0x1790] sm:$0xff] }
  0x96   :  { %6381 = vmatpush1.bf16.msra.mxu1 %v16218_v29  ;;  %v1088_v23 = vld [vmem:[#allocation2 + $0x1e88] sm:$0xff] }
  0x97   :  { %6382 = vmatprep.subr.bf16.mxu1 %v16187_v34  ;;  %v16475_v27 = vcombine.high %v1072_v21, %v1088_v23  ;;  %v528_v28 = vld [vmem:[#allocation2 + $0xd08] sm:$0xff]  ;;  %v16474_v33 = vcombine.low %v1072_v21, %v1088_v23 }
  0x98   :  { %6342 = vmatpush1.bf16.msra.mxu0 %v15674_v36  ;;  %v544_v29 = vld [vmem:[#allocation2 + $0xd88] sm:$0xff] }
  0x99   :  { %6343 = vmatprep.subr.bf16.mxu0 %v15643_v38  ;;  %v1040_v30 = vld [vmem:[#allocation2 + $0x1d08] sm:$0xff]  ;;  %v15931_v34 = vcombine.high %v528_v28, %v544_v29  ;;  %v15930_v40 = vcombine.low %v528_v28, %v544_v29 }
  0x9a   :  { %6383 = vmatpush1.bf16.msra.mxu1 %v16186_v37  ;;  %v1056_v31 = vld [vmem:[#allocation2 + $0x1d88] sm:$0xff] }
  0x9b   :  { %6384 = vmatprep.subr.bf16.mxu1 %v16155_v42  ;;  %v16443_v35 = vcombine.high %v1040_v30, %v1056_v31  ;;  %v496_v36 = vld [vmem:[#allocation2 + $0xc08] sm:$0xff]  ;;  %v16442_v41 = vcombine.low %v1040_v30, %v1056_v31 }
  0x9c   :  { %6344 = vmatpush1.bf16.msra.mxu0 %v15642_v44  ;;  %v512_v37 = vld [vmem:[#allocation2 + $0xc88] sm:$0xff] }
  0x9d   :  { %6345 = vmatprep.subr.bf16.mxu0 %v15611_v46  ;;  %v1008_v38 = vld [vmem:[#allocation2 + $0x1c08] sm:$0xff]  ;;  %v15899_v42 = vcombine.high %v496_v36, %v512_v37  ;;  %v15898_v48 = vcombine.low %v496_v36, %v512_v37 }
  0x9e   :  { %6385 = vmatpush1.bf16.msra.mxu1 %v16154_v45  ;;  %v1024_v39 = vld [vmem:[#allocation2 + $0x1c88] sm:$0xff] }
  0x9f   :  { %6386 = vmatprep.subr.bf16.mxu1 %v16123_v50  ;;  %v16411_v43 = vcombine.high %v1008_v38, %v1024_v39  ;;  %v464_v44 = vld [vmem:[#allocation2 + $0xb08] sm:$0xff]  ;;  %v16410_v49 = vcombine.low %v1008_v38, %v1024_v39 }
  0xa0   :  { %6346 = vmatpush1.bf16.msra.mxu0 %v15610_v52  ;;  %v480_v45 = vld [vmem:[#allocation2 + $0xb88] sm:$0xff] }
  0xa1   :  { %6347 = vmatprep.subr.bf16.mxu0 %v15579_v54  ;;  %v976_v46 = vld [vmem:[#allocation2 + $0x1b08] sm:$0xff]  ;;  %v15867_v50 = vcombine.high %v464_v44, %v480_v45  ;;  %v15866_v56 = vcombine.low %v464_v44, %v480_v45 }
  0xa2   :  { %6387 = vmatpush1.bf16.msra.mxu1 %v16122_v53  ;;  %v992_v47 = vld [vmem:[#allocation2 + $0x1b88] sm:$0xff] }
  0xa3   :  { %6388 = vmatprep.subr.bf16.mxu1 %v16091_v60  ;;  %v16379_v51 = vcombine.high %v976_v46, %v992_v47  ;;  %v432_v52 = vld [vmem:[#allocation2 + $0xa08] sm:$0xff]  ;;  %v16378_v57 = vcombine.low %v976_v46, %v992_v47 }
  0xa4   :  { %6348 = vmatpush1.bf16.msra.mxu0 %v15578_v62  ;;  %v448_v53 = vld [vmem:[#allocation2 + $0xa88] sm:$0xff] }
  0xa5   :  { %6349 = vmatprep.subr.bf16.mxu0 %v15547_v0  ;;  %v944_v54 = vld [vmem:[#allocation2 + $0x1a08] sm:$0xff]  ;;  %v15835_v60 = vcombine.high %v432_v52, %v448_v53  ;;  %v15834_v2 = vcombine.low %v432_v52, %v448_v53 }
  0xa6   :  { %6389 = vmatpush1.bf16.msra.mxu1 %v16090_v63  ;;  %v960_v55 = vld [vmem:[#allocation2 + $0x1a88] sm:$0xff] }
  0xa7   :  { %6390 = vmatprep.subr.bf16.mxu1 %v16059_v4  ;;  %v16347_v61 = vcombine.high %v944_v54, %v960_v55  ;;  %v400_v62 = vld [vmem:[#allocation2 + $0x908] sm:$0xff]  ;;  %v16346_v3 = vcombine.low %v944_v54, %v960_v55 }
  0xa8   :  { %6350 = vmatpush1.bf16.msra.mxu0 %v15546_v6  ;;  %v416_v63 = vld [vmem:[#allocation2 + $0x988] sm:$0xff] }
  0xa9   :  { %6351 = vmatprep.subr.bf16.mxu0 %v15515_v8  ;;  %v912_v0 = vld [vmem:[#allocation2 + $0x1908] sm:$0xff]  ;;  %v15803_v4 = vcombine.high %v400_v62, %v416_v63  ;;  %v15802_v10 = vcombine.low %v400_v62, %v416_v63 }
  0xaa   :  { %6391 = vmatpush1.bf16.msra.mxu1 %v16058_v7  ;;  %v928_v1 = vld [vmem:[#allocation2 + $0x1988] sm:$0xff] }
  0xab   :  { %6392 = vmatprep.subr.bf16.mxu1 %v16027_v12  ;;  %v16315_v5 = vcombine.high %v912_v0, %v928_v1  ;;  %v368_v6 = vld [vmem:[#allocation2 + $0x808] sm:$0xff]  ;;  %v16314_v11 = vcombine.low %v912_v0, %v928_v1 }
  0xac   :  { %6352 = vmatpush1.bf16.msra.mxu0 %v15514_v14  ;;  %v384_v7 = vld [vmem:[#allocation2 + $0x888] sm:$0xff]  ;;  %v337_v14 = vld [vmem:[#allocation2 + $0x710] sm:$0xff] }
  0xad   :  { %6353 = vmatprep.subr.bf16.mxu0 %v15995_v17  ;;  %v880_v8 = vld [vmem:[#allocation2 + $0x1808] sm:$0xff]  ;;  %v15771_v12 = vcombine.high %v368_v6, %v384_v7  ;;  %v849_v17 = vld [vmem:[#allocation2 + $0x1710] sm:$0xff]  ;;  %v15770_v20 = vcombine.low %v368_v6, %v384_v7 }
  0xae   :  { %6393 = vmatpush1.bf16.msra.mxu1 %v16026_v15  ;;  %v896_v9 = vld [vmem:[#allocation2 + $0x1888] sm:$0xff]  ;;  %v353_v15 = vld [vmem:[#allocation2 + $0x790] sm:$0xff]  ;;  %v16253_v23 = vcombine.high %v849_v17, %v865_v18  ;;  %v16252_v29 = vcombine.low %v849_v17, %v865_v18 }
  0xaf   :  { %6394 = vmatprep.subr.bf16.mxu1 %v16507_v22  ;;  %v16283_v13 = vcombine.high %v880_v8, %v896_v9  ;;  %v16282_v21 = vcombine.low %v880_v8, %v896_v9  ;;  %v15741_v22 = vcombine.high %v337_v14, %v353_v15  ;;  %v15740_v28 = vcombine.low %v337_v14, %v353_v15 }
  0xb0   :  { %6354 = vmatpush2.bf16.msra.mxu0 %v15994_v24  ;;  %v305_v24 = vld [vmem:[#allocation2 + $0x610] sm:$0xff] }
  0xb1   :  { %6355 = vmatprep.subr.bf16.mxu0 %v15963_v26  ;;  %v817_v26 = vld [vmem:[#allocation2 + $0x1610] sm:$0xff] }
  0xb2   :  { %6395 = vmatpush2.bf16.msra.mxu1 %v16506_v25  ;;  %v321_v25 = vld [vmem:[#allocation2 + $0x690] sm:$0xff] }
  0xb3   :  { %6396 = vmatprep.subr.bf16.mxu1 %v16475_v27  ;;  %v833_v27 = vld [vmem:[#allocation2 + $0x1690] sm:$0xff]  ;;  %v15709_v30 = vcombine.high %v305_v24, %v321_v25  ;;  %v15708_v36 = vcombine.low %v305_v24, %v321_v25 }
  0xb4   :  { %6356 = vmatpush2.bf16.msra.mxu0 %v15962_v32  ;;  %v16221_v31 = vcombine.high %v817_v26, %v833_v27  ;;  %v273_v32 = vld [vmem:[#allocation2 + $0x510] sm:$0xff]  ;;  %v16220_v37 = vcombine.low %v817_v26, %v833_v27 }
  0xb5   :  { %6357 = vmatprep.subr.bf16.mxu0 %v15931_v34  ;;  %v785_v34 = vld [vmem:[#allocation2 + $0x1510] sm:$0xff] }
  0xb6   :  { %6397 = vmatpush2.bf16.msra.mxu1 %v16474_v33  ;;  %v289_v33 = vld [vmem:[#allocation2 + $0x590] sm:$0xff] }
  0xb7   :  { %6398 = vmatprep.subr.bf16.mxu1 %v16443_v35  ;;  %v801_v35 = vld [vmem:[#allocation2 + $0x1590] sm:$0xff]  ;;  %v15677_v38 = vcombine.high %v273_v32, %v289_v33  ;;  %v15676_v44 = vcombine.low %v273_v32, %v289_v33 }
  0xb8   :  { %6358 = vmatpush2.bf16.msra.mxu0 %v15930_v40  ;;  %v16189_v39 = vcombine.high %v785_v34, %v801_v35  ;;  %v241_v40 = vld [vmem:[#allocation2 + $0x410] sm:$0xff]  ;;  %v16188_v45 = vcombine.low %v785_v34, %v801_v35 }
  0xb9   :  { %6359 = vmatprep.subr.bf16.mxu0 %v15899_v42  ;;  %v753_v42 = vld [vmem:[#allocation2 + $0x1410] sm:$0xff] }
  0xba   :  { %6399 = vmatpush2.bf16.msra.mxu1 %v16442_v41  ;;  %v257_v41 = vld [vmem:[#allocation2 + $0x490] sm:$0xff] }
  0xbb   :  { %6400 = vmatprep.subr.bf16.mxu1 %v16411_v43  ;;  %v769_v43 = vld [vmem:[#allocation2 + $0x1490] sm:$0xff]  ;;  %v15645_v46 = vcombine.high %v241_v40, %v257_v41  ;;  %v15644_v52 = vcombine.low %v241_v40, %v257_v41 }
  0xbc   :  { %6360 = vmatpush2.bf16.msra.mxu0 %v15898_v48  ;;  %v16157_v47 = vcombine.high %v753_v42, %v769_v43  ;;  %v209_v48 = vld [vmem:[#allocation2 + $0x310] sm:$0xff]  ;;  %v16156_v53 = vcombine.low %v753_v42, %v769_v43 }
  0xbd   :  { %6361 = vmatprep.subr.bf16.mxu0 %v15867_v50  ;;  %v721_v50 = vld [vmem:[#allocation2 + $0x1310] sm:$0xff] }
  0xbe   :  { %6401 = vmatpush2.bf16.msra.mxu1 %v16410_v49  ;;  %v225_v49 = vld [vmem:[#allocation2 + $0x390] sm:$0xff] }
  0xbf   :  { %6402 = vmatprep.subr.bf16.mxu1 %v16379_v51  ;;  %v737_v51 = vld [vmem:[#allocation2 + $0x1390] sm:$0xff]  ;;  %v15613_v54 = vcombine.high %v209_v48, %v225_v49  ;;  %v15612_v62 = vcombine.low %v209_v48, %v225_v49 }
  0xc0   :  { %6362 = vmatpush2.bf16.msra.mxu0 %v15866_v56  ;;  %v16125_v55 = vcombine.high %v721_v50, %v737_v51  ;;  %v177_v56 = vld [vmem:[#allocation2 + $0x210] sm:$0xff]  ;;  %v16124_v63 = vcombine.low %v721_v50, %v737_v51 }
  0xc1   :  { %6363 = vmatprep.subr.bf16.mxu0 %v15835_v60  ;;  %v689_v60 = vld [vmem:[#allocation2 + $0x1210] sm:$0xff] }
  0xc2   :  { %6403 = vmatpush2.bf16.msra.mxu1 %v16378_v57  ;;  %v193_v57 = vld [vmem:[#allocation2 + $0x290] sm:$0xff] }
  0xc3   :  { %6404 = vmatprep.subr.bf16.mxu1 %v16347_v61  ;;  %v705_v61 = vld [vmem:[#allocation2 + $0x1290] sm:$0xff]  ;;  %v15581_v0 = vcombine.high %v177_v56, %v193_v57  ;;  %v15580_v6 = vcombine.low %v177_v56, %v193_v57 }
  0xc4   :  { %6364 = vmatpush2.bf16.msra.mxu0 %v15834_v2  ;;  %v16093_v1 = vcombine.high %v689_v60, %v705_v61  ;;  %v145_v2 = vld [vmem:[#allocation2 + $0x110] sm:$0xff]  ;;  %v16092_v7 = vcombine.low %v689_v60, %v705_v61 }
  0xc5   :  { %6365 = vmatprep.subr.bf16.mxu0 %v15803_v4  ;;  %v657_v4 = vld [vmem:[#allocation2 + $0x1110] sm:$0xff] }
  0xc6   :  { %6405 = vmatpush2.bf16.msra.mxu1 %v16346_v3  ;;  %v161_v3 = vld [vmem:[#allocation2 + $0x190] sm:$0xff] }
  0xc7   :  { %6406 = vmatprep.subr.bf16.mxu1 %v16315_v5  ;;  %v673_v5 = vld [vmem:[#allocation2 + $0x1190] sm:$0xff]  ;;  %v15549_v8 = vcombine.high %v145_v2, %v161_v3  ;;  %v15548_v14 = vcombine.low %v145_v2, %v161_v3 }
  0xc8   :  { %6366 = vmatpush2.bf16.msra.mxu0 %v15802_v10  ;;  %v16061_v9 = vcombine.high %v657_v4, %v673_v5  ;;  %v113_v10 = vld [vmem:[#allocation2 + $0x10] sm:$0xff]  ;;  %v16060_v15 = vcombine.low %v657_v4, %v673_v5 }
  0xc9   :  { %6367 = vmatprep.subr.bf16.mxu0 %v15771_v12  ;;  %v625_v12 = vld [vmem:[#allocation2 + $0x1010] sm:$0xff] }
  0xca   :  { %6407 = vmatpush2.bf16.msra.mxu1 %v16314_v11  ;;  %v129_v11 = vld [vmem:[#allocation2 + $0x90] sm:$0xff] }
  0xcb   :  { %6408 = vmatprep.subr.bf16.mxu1 %v16283_v13  ;;  %v641_v13 = vld [vmem:[#allocation2 + $0x1090] sm:$0xff]  ;;  %v15517_v17 = vcombine.high %v113_v10, %v129_v11  ;;  %v15516_v24 = vcombine.low %v113_v10, %v129_v11 }
  0xcc   :  { %6368 = vmatpush2.bf16.msra.mxu0 %v15770_v20  ;;  %v16029_v18 = vcombine.high %v625_v12, %v641_v13  ;;  %v593_v20 = vld [vmem:[#allocation2 + $0xf10] sm:$0xff]  ;;  %v16028_v25 = vcombine.low %v625_v12, %v641_v13 }
  0xcd   :  { %6419 = vmatprep.subr.bf16.mxu0 %v15741_v22  ;;  %v1105_v22 = vld [vmem:[#allocation2 + $0x1f10] sm:$0xff] }
  0xce   :  { %6409 = vmatpush2.bf16.msra.mxu1 %v16282_v21  ;;  %v609_v21 = vld [vmem:[#allocation2 + $0xf90] sm:$0xff] }
  0xcf   :  { %6460 = vmatprep.subr.bf16.mxu1 %v16253_v23  ;;  %6370 = vmatmul.mubr.bf16.vlgmr.msra.gmra.mxu0 %v17896_v16  ;;  %v1121_v23 = vld [vmem:[#allocation2 + $0x1f90] sm:$0xff]  ;;  %v15997_v26 = vcombine.high %v593_v20, %v609_v21  ;;  %v15996_v32 = vcombine.low %v593_v20, %v609_v21 }
  0xd0   :  { %6420 = vmatpush1.bf16.msra.mxu0 %v15740_v28  ;;  %6451 = vmatprep.mubr.bf16.mxu0 %v17884_v58  ;;  %v16509_v27 = vcombine.high %v1105_v22, %v1121_v23  ;;  %v561_v28 = vld [vmem:[#allocation2 + $0xe10] sm:$0xff]  ;;  %v16508_v33 = vcombine.low %v1105_v22, %v1121_v23 }
  0xd1   :  { %6411 = vmatmul.mubr.bf16.vlgmr.msra.gmra.mxu1 %v17898_v19  ;;  %6421 = vmatprep.subr.bf16.mxu0 %v15709_v30  ;;  %v1073_v30 = vld [vmem:[#allocation2 + $0x1e10] sm:$0xff] }
  0xd2   :  { %6461 = vmatpush1.bf16.msra.mxu1 %v16252_v29  ;;  %6492 = vmatprep.mubr.bf16.mxu1 %v17886_v59  ;;  %v577_v29 = vld [vmem:[#allocation2 + $0xe90] sm:$0xff] }
  0xd3   :  { %6462 = vmatprep.subr.bf16.mxu1 %v16221_v31  ;;  %v1089_v31 = vld [vmem:[#allocation2 + $0x1e90] sm:$0xff]  ;;  %v15965_v34 = vcombine.high %v561_v28, %v577_v29  ;;  %v15964_v40 = vcombine.low %v561_v28, %v577_v29 }
  0xd4   :  { %6422 = vmatpush1.bf16.msra.mxu0 %v15708_v36  ;;  %v16477_v35 = vcombine.high %v1073_v30, %v1089_v31  ;;  %v529_v36 = vld [vmem:[#allocation2 + $0xd10] sm:$0xff]  ;;  %v16476_v41 = vcombine.low %v1073_v30, %v1089_v31 }
  0xd5   :  { %6423 = vmatprep.subr.bf16.mxu0 %v15677_v38  ;;  %v1041_v38 = vld [vmem:[#allocation2 + $0x1d10] sm:$0xff] }
  0xd6   :  { %6463 = vmatpush1.bf16.msra.mxu1 %v16220_v37  ;;  %v545_v37 = vld [vmem:[#allocation2 + $0xd90] sm:$0xff] }
  0xd7   :  { %6464 = vmatprep.subr.bf16.mxu1 %v16189_v39  ;;  %v1057_v39 = vld [vmem:[#allocation2 + $0x1d90] sm:$0xff]  ;;  %v15933_v42 = vcombine.high %v529_v36, %v545_v37  ;;  %v15932_v48 = vcombine.low %v529_v36, %v545_v37 }
  0xd8   :  { %6424 = vmatpush1.bf16.msra.mxu0 %v15676_v44  ;;  %v16445_v43 = vcombine.high %v1041_v38, %v1057_v39  ;;  %v497_v44 = vld [vmem:[#allocation2 + $0xc10] sm:$0xff]  ;;  %v16444_v49 = vcombine.low %v1041_v38, %v1057_v39 }
  0xd9   :  { %6425 = vmatprep.subr.bf16.mxu0 %v15645_v46  ;;  %v1009_v46 = vld [vmem:[#allocation2 + $0x1c10] sm:$0xff] }
  0xda   :  { %6465 = vmatpush1.bf16.msra.mxu1 %v16188_v45  ;;  %v513_v45 = vld [vmem:[#allocation2 + $0xc90] sm:$0xff] }
  0xdb   :  { %6466 = vmatprep.subr.bf16.mxu1 %v16157_v47  ;;  %v1025_v47 = vld [vmem:[#allocation2 + $0x1c90] sm:$0xff]  ;;  %v15901_v50 = vcombine.high %v497_v44, %v513_v45  ;;  %v15900_v56 = vcombine.low %v497_v44, %v513_v45 }
  0xdc   :  { %6426 = vmatpush1.bf16.msra.mxu0 %v15644_v52  ;;  %v16413_v51 = vcombine.high %v1009_v46, %v1025_v47  ;;  %v465_v52 = vld [vmem:[#allocation2 + $0xb10] sm:$0xff]  ;;  %v16412_v57 = vcombine.low %v1009_v46, %v1025_v47 }
  0xdd   :  { %6427 = vmatprep.subr.bf16.mxu0 %v15613_v54  ;;  %v977_v54 = vld [vmem:[#allocation2 + $0x1b10] sm:$0xff] }
  0xde   :  { %6467 = vmatpush1.bf16.msra.mxu1 %v16156_v53  ;;  %v481_v53 = vld [vmem:[#allocation2 + $0xb90] sm:$0xff] }
  0xdf   :  { %6468 = vmatprep.subr.bf16.mxu1 %v16125_v55  ;;  %v993_v55 = vld [vmem:[#allocation2 + $0x1b90] sm:$0xff]  ;;  %v15869_v60 = vcombine.high %v465_v52, %v481_v53  ;;  %v15868_v2 = vcombine.low %v465_v52, %v481_v53 }
  0xe0   :  { %6428 = vmatpush1.bf16.msra.mxu0 %v15612_v62  ;;  %v16381_v61 = vcombine.high %v977_v54, %v993_v55  ;;  %v433_v62 = vld [vmem:[#allocation2 + $0xa10] sm:$0xff]  ;;  %v16380_v3 = vcombine.low %v977_v54, %v993_v55 }
  0xe1   :  { %6429 = vmatprep.subr.bf16.mxu0 %v15581_v0  ;;  %v945_v0 = vld [vmem:[#allocation2 + $0x1a10] sm:$0xff] }
  0xe2   :  { %6469 = vmatpush1.bf16.msra.mxu1 %v16124_v63  ;;  %v449_v63 = vld [vmem:[#allocation2 + $0xa90] sm:$0xff] }
  0xe3   :  { %6470 = vmatprep.subr.bf16.mxu1 %v16093_v1  ;;  %v961_v1 = vld [vmem:[#allocation2 + $0x1a90] sm:$0xff]  ;;  %v15837_v4 = vcombine.high %v433_v62, %v449_v63  ;;  %v15836_v10 = vcombine.low %v433_v62, %v449_v63 }
  0xe4   :  { %6430 = vmatpush1.bf16.msra.mxu0 %v15580_v6  ;;  %v16349_v5 = vcombine.high %v945_v0, %v961_v1  ;;  %v401_v6 = vld [vmem:[#allocation2 + $0x910] sm:$0xff]  ;;  %v16348_v11 = vcombine.low %v945_v0, %v961_v1 }
  0xe5   :  { %6431 = vmatprep.subr.bf16.mxu0 %v15549_v8  ;;  %v913_v8 = vld [vmem:[#allocation2 + $0x1910] sm:$0xff] }
  0xe6   :  { %6471 = vmatpush1.bf16.msra.mxu1 %v16092_v7  ;;  %v417_v7 = vld [vmem:[#allocation2 + $0x990] sm:$0xff] }
  0xe7   :  { %6472 = vmatprep.subr.bf16.mxu1 %v16061_v9  ;;  %v929_v9 = vld [vmem:[#allocation2 + $0x1990] sm:$0xff]  ;;  %v15805_v12 = vcombine.high %v401_v6, %v417_v7  ;;  %v15804_v20 = vcombine.low %v401_v6, %v417_v7 }
  0xe8   :  { %6432 = vmatpush1.bf16.msra.mxu0 %v15548_v14  ;;  %v16317_v13 = vcombine.high %v913_v8, %v929_v9  ;;  %v369_v14 = vld [vmem:[#allocation2 + $0x810] sm:$0xff]  ;;  %v16316_v21 = vcombine.low %v913_v8, %v929_v9 }
  0xe9   :  { %6433 = vmatprep.subr.bf16.mxu0 %v15517_v17  ;;  %v881_v17 = vld [vmem:[#allocation2 + $0x1810] sm:$0xff] }
  0xea   :  { %6473 = vmatpush1.bf16.msra.mxu1 %v16060_v15  ;;  %v385_v15 = vld [vmem:[#allocation2 + $0x890] sm:$0xff] }
  0xeb   :  { %6474 = vmatprep.subr.bf16.mxu1 %v16029_v18  ;;  %v897_v18 = vld [vmem:[#allocation2 + $0x1890] sm:$0xff]  ;;  %v15773_v22 = vcombine.high %v369_v14, %v385_v15  ;;  %v15772_v28 = vcombine.low %v369_v14, %v385_v15 }
  0xec   :  { %6434 = vmatpush1.bf16.msra.mxu0 %v15516_v24  ;;  %v16285_v23 = vcombine.high %v881_v17, %v897_v18  ;;  %v338_v24 = vld [vmem:[#allocation2 + $0x718] sm:$0xff]  ;;  %v16284_v29 = vcombine.low %v881_v17, %v897_v18 }
  0xed   :  { %6435 = vmatprep.subr.bf16.mxu0 %v15997_v26  ;;  %v850_v26 = vld [vmem:[#allocation2 + $0x1718] sm:$0xff] }
  0xee   :  { %6475 = vmatpush1.bf16.msra.mxu1 %v16028_v25  ;;  %v354_v25 = vld [vmem:[#allocation2 + $0x798] sm:$0xff] }
  0xef   :  { %6476 = vmatprep.subr.bf16.mxu1 %v16509_v27  ;;  %v866_v27 = vld [vmem:[#allocation2 + $0x1798] sm:$0xff]  ;;  %v15743_v30 = vcombine.high %v338_v24, %v354_v25  ;;  %v15742_v36 = vcombine.low %v338_v24, %v354_v25 }
  0xf0   :  { %6436 = vmatpush2.bf16.msra.mxu0 %v15996_v32  ;;  %v16255_v31 = vcombine.high %v850_v26, %v866_v27  ;;  %v306_v32 = vld [vmem:[#allocation2 + $0x618] sm:$0xff]  ;;  %v16254_v37 = vcombine.low %v850_v26, %v866_v27 }
  0xf1   :  { %6437 = vmatprep.subr.bf16.mxu0 %v15965_v34  ;;  %v818_v34 = vld [vmem:[#allocation2 + $0x1618] sm:$0xff] }
  0xf2   :  { %6477 = vmatpush2.bf16.msra.mxu1 %v16508_v33  ;;  %v322_v33 = vld [vmem:[#allocation2 + $0x698] sm:$0xff] }
  0xf3   :  { %6478 = vmatprep.subr.bf16.mxu1 %v16477_v35  ;;  %v834_v35 = vld [vmem:[#allocation2 + $0x1698] sm:$0xff]  ;;  %v15711_v38 = vcombine.high %v306_v32, %v322_v33  ;;  %v15710_v44 = vcombine.low %v306_v32, %v322_v33 }
  0xf4   :  { %6438 = vmatpush2.bf16.msra.mxu0 %v15964_v40  ;;  %v16223_v39 = vcombine.high %v818_v34, %v834_v35  ;;  %v274_v40 = vld [vmem:[#allocation2 + $0x518] sm:$0xff]  ;;  %v16222_v45 = vcombine.low %v818_v34, %v834_v35 }
  0xf5   :  { %6439 = vmatprep.subr.bf16.mxu0 %v15933_v42  ;;  %v786_v42 = vld [vmem:[#allocation2 + $0x1518] sm:$0xff] }
  0xf6   :  { %6479 = vmatpush2.bf16.msra.mxu1 %v16476_v41  ;;  %v290_v41 = vld [vmem:[#allocation2 + $0x598] sm:$0xff] }
  0xf7   :  { %6480 = vmatprep.subr.bf16.mxu1 %v16445_v43  ;;  %v802_v43 = vld [vmem:[#allocation2 + $0x1598] sm:$0xff]  ;;  %v15679_v46 = vcombine.high %v274_v40, %v290_v41  ;;  %v15678_v52 = vcombine.low %v274_v40, %v290_v41 }
  0xf8   :  { %6440 = vmatpush2.bf16.msra.mxu0 %v15932_v48  ;;  %v16191_v47 = vcombine.high %v786_v42, %v802_v43  ;;  %v242_v48 = vld [vmem:[#allocation2 + $0x418] sm:$0xff]  ;;  %v16190_v53 = vcombine.low %v786_v42, %v802_v43 }
  0xf9   :  { %6441 = vmatprep.subr.bf16.mxu0 %v15901_v50  ;;  %v754_v50 = vld [vmem:[#allocation2 + $0x1418] sm:$0xff] }
  0xfa   :  { %6481 = vmatpush2.bf16.msra.mxu1 %v16444_v49  ;;  %v258_v49 = vld [vmem:[#allocation2 + $0x498] sm:$0xff] }
  0xfb   :  { %6482 = vmatprep.subr.bf16.mxu1 %v16413_v51  ;;  %v770_v51 = vld [vmem:[#allocation2 + $0x1498] sm:$0xff]  ;;  %v15647_v54 = vcombine.high %v242_v48, %v258_v49  ;;  %v15646_v62 = vcombine.low %v242_v48, %v258_v49 }
  0xfc   :  { %6442 = vmatpush2.bf16.msra.mxu0 %v15900_v56  ;;  %v16159_v55 = vcombine.high %v754_v50, %v770_v51  ;;  %v210_v56 = vld [vmem:[#allocation2 + $0x318] sm:$0xff]  ;;  %v16158_v63 = vcombine.low %v754_v50, %v770_v51 }
  0xfd   :  { %6443 = vmatprep.subr.bf16.mxu0 %v15869_v60  ;;  %v722_v60 = vld [vmem:[#allocation2 + $0x1318] sm:$0xff] }
  0xfe   :  { %6483 = vmatpush2.bf16.msra.mxu1 %v16412_v57  ;;  %v226_v57 = vld [vmem:[#allocation2 + $0x398] sm:$0xff] }
  0xff   :  { %6484 = vmatprep.subr.bf16.mxu1 %v16381_v61  ;;  %v738_v61 = vld [vmem:[#allocation2 + $0x1398] sm:$0xff]  ;;  %v15615_v0 = vcombine.high %v210_v56, %v226_v57  ;;  %v15614_v6 = vcombine.low %v210_v56, %v226_v57 }
 0x100   :  { %6444 = vmatpush2.bf16.msra.mxu0 %v15868_v2  ;;  %v16127_v1 = vcombine.high %v722_v60, %v738_v61  ;;  %v178_v2 = vld [vmem:[#allocation2 + $0x218] sm:$0xff]  ;;  %v16126_v7 = vcombine.low %v722_v60, %v738_v61 }
 0x101   :  { %6445 = vmatprep.subr.bf16.mxu0 %v15837_v4  ;;  %v690_v4 = vld [vmem:[#allocation2 + $0x1218] sm:$0xff] }
 0x102   :  { %6485 = vmatpush2.bf16.msra.mxu1 %v16380_v3  ;;  %v194_v3 = vld [vmem:[#allocation2 + $0x298] sm:$0xff] }
 0x103   :  { %6486 = vmatprep.subr.bf16.mxu1 %v16349_v5  ;;  %v706_v5 = vld [vmem:[#allocation2 + $0x1298] sm:$0xff]  ;;  %v15583_v8 = vcombine.high %v178_v2, %v194_v3  ;;  %v15582_v14 = vcombine.low %v178_v2, %v194_v3 }
 0x104   :  { %6446 = vmatpush2.bf16.msra.mxu0 %v15836_v10  ;;  %v16095_v9 = vcombine.high %v690_v4, %v706_v5  ;;  %v146_v10 = vld [vmem:[#allocation2 + $0x118] sm:$0xff]  ;;  %v16094_v15 = vcombine.low %v690_v4, %v706_v5 }
 0x105   :  { %6447 = vmatprep.subr.bf16.mxu0 %v15805_v12  ;;  %v658_v12 = vld [vmem:[#allocation2 + $0x1118] sm:$0xff] }
 0x106   :  { %6487 = vmatpush2.bf16.msra.mxu1 %v16348_v11  ;;  %v162_v11 = vld [vmem:[#allocation2 + $0x198] sm:$0xff] }
 0x107   :  { %6488 = vmatprep.subr.bf16.mxu1 %v16317_v13  ;;  %v674_v13 = vld [vmem:[#allocation2 + $0x1198] sm:$0xff]  ;;  %v15551_v17 = vcombine.high %v146_v10, %v162_v11  ;;  %v15550_v24 = vcombine.low %v146_v10, %v162_v11 }
 0x108   :  { %6448 = vmatpush2.bf16.msra.mxu0 %v15804_v20  ;;  %v16063_v18 = vcombine.high %v658_v12, %v674_v13  ;;  %v114_v20 = vld [vmem:[#allocation2 + $0x18] sm:$0xff]  ;;  %v16062_v25 = vcombine.low %v658_v12, %v674_v13 }
 0x109   :  { %6449 = vmatprep.subr.bf16.mxu0 %v15773_v22  ;;  %v626_v22 = vld [vmem:[#allocation2 + $0x1018] sm:$0xff] }
 0x10a   :  { %6489 = vmatpush2.bf16.msra.mxu1 %v16316_v21  ;;  %v130_v21 = vld [vmem:[#allocation2 + $0x98] sm:$0xff] }
 0x10b   :  { %6490 = vmatprep.subr.bf16.mxu1 %v16285_v23  ;;  %v642_v23 = vld [vmem:[#allocation2 + $0x1098] sm:$0xff]  ;;  %v15519_v26 = vcombine.high %v114_v20, %v130_v21  ;;  %v15518_v32 = vcombine.low %v114_v20, %v130_v21 }
 0x10c   :  { %6450 = vmatpush2.bf16.msra.mxu0 %v15772_v28  ;;  %v16031_v27 = vcombine.high %v626_v22, %v642_v23  ;;  %v594_v28 = vld [vmem:[#allocation2 + $0xf18] sm:$0xff]  ;;  %v16030_v33 = vcombine.low %v626_v22, %v642_v23 }
 0x10d   :  { %6501 = vmatprep.subr.bf16.mxu0 %v15743_v30  ;;  %v1106_v30 = vld [vmem:[#allocation2 + $0x1f18] sm:$0xff] }
 0x10e   :  { %6491 = vmatpush2.bf16.msra.mxu1 %v16284_v29  ;;  %v610_v29 = vld [vmem:[#allocation2 + $0xf98] sm:$0xff] }
 0x10f   :  { %6542 = vmatprep.subr.bf16.mxu1 %v16255_v31  ;;  %6452 = vmatmul.mubr.bf16.vlgmr.msra.gmra.mxu0 %v17896_v16  ;;  %v1122_v31 = vld [vmem:[#allocation2 + $0x1f98] sm:$0xff]  ;;  %v15999_v34 = vcombine.high %v594_v28, %v610_v29  ;;  %v15998_v40 = vcombine.low %v594_v28, %v610_v29 }
 0x110   :  { %6502 = vmatpush1.bf16.msra.mxu0 %v15742_v36  ;;  %6533 = vmatprep.mubr.bf16.mxu0 %v17884_v58  ;;  %v16511_v35 = vcombine.high %v1106_v30, %v1122_v31  ;;  %v562_v36 = vld [vmem:[#allocation2 + $0xe18] sm:$0xff]  ;;  %v16510_v41 = vcombine.low %v1106_v30, %v1122_v31 }
 0x111   :  { %6493 = vmatmul.mubr.bf16.vlgmr.msra.gmra.mxu1 %v17898_v19  ;;  %6503 = vmatprep.subr.bf16.mxu0 %v15711_v38  ;;  %v1074_v38 = vld [vmem:[#allocation2 + $0x1e18] sm:$0xff] }
 0x112   :  { %6543 = vmatpush1.bf16.msra.mxu1 %v16254_v37  ;;  %6574 = vmatprep.mubr.bf16.mxu1 %v17886_v59  ;;  %v578_v37 = vld [vmem:[#allocation2 + $0xe98] sm:$0xff] }
 0x113   :  { %6544 = vmatprep.subr.bf16.mxu1 %v16223_v39  ;;  %v1090_v39 = vld [vmem:[#allocation2 + $0x1e98] sm:$0xff]  ;;  %v15967_v42 = vcombine.high %v562_v36, %v578_v37  ;;  %v15966_v48 = vcombine.low %v562_v36, %v578_v37 }
 0x114   :  { %6504 = vmatpush1.bf16.msra.mxu0 %v15710_v44  ;;  %v16479_v43 = vcombine.high %v1074_v38, %v1090_v39  ;;  %v530_v44 = vld [vmem:[#allocation2 + $0xd18] sm:$0xff]  ;;  %v16478_v49 = vcombine.low %v1074_v38, %v1090_v39 }
 0x115   :  { %6505 = vmatprep.subr.bf16.mxu0 %v15679_v46  ;;  %v1042_v46 = vld [vmem:[#allocation2 + $0x1d18] sm:$0xff] }
 0x116   :  { %6545 = vmatpush1.bf16.msra.mxu1 %v16222_v45  ;;  %v546_v45 = vld [vmem:[#allocation2 + $0xd98] sm:$0xff] }
 0x117   :  { %6546 = vmatprep.subr.bf16.mxu1 %v16191_v47  ;;  %v1058_v47 = vld [vmem:[#allocation2 + $0x1d98] sm:$0xff]  ;;  %v15935_v50 = vcombine.high %v530_v44, %v546_v45  ;;  %v15934_v56 = vcombine.low %v530_v44, %v546_v45 }
 0x118   :  { %6506 = vmatpush1.bf16.msra.mxu0 %v15678_v52  ;;  %v16447_v51 = vcombine.high %v1042_v46, %v1058_v47  ;;  %v498_v52 = vld [vmem:[#allocation2 + $0xc18] sm:$0xff]  ;;  %v16446_v57 = vcombine.low %v1042_v46, %v1058_v47 }
 0x119   :  { %6507 = vmatprep.subr.bf16.mxu0 %v15647_v54  ;;  %v1010_v54 = vld [vmem:[#allocation2 + $0x1c18] sm:$0xff] }
 0x11a   :  { %6547 = vmatpush1.bf16.msra.mxu1 %v16190_v53  ;;  %v514_v53 = vld [vmem:[#allocation2 + $0xc98] sm:$0xff] }
 0x11b   :  { %6548 = vmatprep.subr.bf16.mxu1 %v16159_v55  ;;  %v1026_v55 = vld [vmem:[#allocation2 + $0x1c98] sm:$0xff]  ;;  %v15903_v60 = vcombine.high %v498_v52, %v514_v53  ;;  %v15902_v2 = vcombine.low %v498_v52, %v514_v53  ;;  %v803_v52 = vld [vmem:[#allocation2 + $0x15a0] sm:$0xff] }
 0x11c   :  { %6508 = vmatpush1.bf16.msra.mxu0 %v15646_v62  ;;  %v16415_v61 = vcombine.high %v1010_v54, %v1026_v55  ;;  %v466_v62 = vld [vmem:[#allocation2 + $0xb18] sm:$0xff]  ;;  %v16414_v3 = vcombine.low %v1010_v54, %v1026_v55 }
 0x11d   :  { %6509 = vmatprep.subr.bf16.mxu0 %v15615_v0  ;;  %v978_v0 = vld [vmem:[#allocation2 + $0x1b18] sm:$0xff] }
 0x11e   :  { %6549 = vmatpush1.bf16.msra.mxu1 %v16158_v63  ;;  %v482_v63 = vld [vmem:[#allocation2 + $0xb98] sm:$0xff] }
 0x11f   :  { %6550 = vmatprep.subr.bf16.mxu1 %v16127_v1  ;;  %v994_v1 = vld [vmem:[#allocation2 + $0x1b98] sm:$0xff]  ;;  %v15871_v4 = vcombine.high %v466_v62, %v482_v63  ;;  %v15870_v10 = vcombine.low %v466_v62, %v482_v63  ;;  %v243_v63 = vld [vmem:[#allocation2 + $0x420] sm:$0xff] }
 0x120   :  { %6510 = vmatpush1.bf16.msra.mxu0 %v15614_v6  ;;  %v16383_v5 = vcombine.high %v978_v0, %v994_v1  ;;  %v434_v6 = vld [vmem:[#allocation2 + $0xa18] sm:$0xff]  ;;  %v16382_v11 = vcombine.low %v978_v0, %v994_v1  ;;  %v259_v0 = vld [vmem:[#allocation2 + $0x4a0] sm:$0xff] }
 0x121   :  { %6511 = vmatprep.subr.bf16.mxu0 %v15583_v8  ;;  %v946_v8 = vld [vmem:[#allocation2 + $0x1a18] sm:$0xff] }
 0x122   :  { %6551 = vmatpush1.bf16.msra.mxu1 %v16126_v7  ;;  %v450_v7 = vld [vmem:[#allocation2 + $0xa98] sm:$0xff] }
 0x123   :  { %6552 = vmatprep.subr.bf16.mxu1 %v16095_v9  ;;  %v962_v9 = vld [vmem:[#allocation2 + $0x1a98] sm:$0xff]  ;;  %v15839_v12 = vcombine.high %v434_v6, %v450_v7  ;;  %v15838_v20 = vcombine.low %v434_v6, %v450_v7 }
 0x124   :  { %6512 = vmatpush1.bf16.msra.mxu0 %v15582_v14  ;;  %v16351_v13 = vcombine.high %v946_v8, %v962_v9  ;;  %v402_v14 = vld [vmem:[#allocation2 + $0x918] sm:$0xff]  ;;  %v16350_v21 = vcombine.low %v946_v8, %v962_v9  ;;  %v15649_v9 = vcombine.high %v243_v63, %v259_v0 }
 0x125   :  { %6513 = vmatprep.subr.bf16.mxu0 %v15551_v17  ;;  %v914_v17 = vld [vmem:[#allocation2 + $0x1918] sm:$0xff] }
 0x126   :  { %6553 = vmatpush1.bf16.msra.mxu1 %v16094_v15  ;;  %v418_v15 = vld [vmem:[#allocation2 + $0x998] sm:$0xff] }
 0x127   :  { %6554 = vmatprep.subr.bf16.mxu1 %v16063_v18  ;;  %v930_v18 = vld [vmem:[#allocation2 + $0x1998] sm:$0xff]  ;;  %v15807_v22 = vcombine.high %v402_v14, %v418_v15  ;;  %v15806_v28 = vcombine.low %v402_v14, %v418_v15  ;;  %v723_v14 = vld [vmem:[#allocation2 + $0x1320] sm:$0xff] }
 0x128   :  { %6514 = vmatpush1.bf16.msra.mxu0 %v15550_v24  ;;  %v16319_v23 = vcombine.high %v914_v17, %v930_v18  ;;  %v370_v24 = vld [vmem:[#allocation2 + $0x818] sm:$0xff]  ;;  %v16318_v29 = vcombine.low %v914_v17, %v930_v18  ;;  %v739_v15 = vld [vmem:[#allocation2 + $0x13a0] sm:$0xff]  ;;  %v15648_v17 = vcombine.low %v243_v63, %v259_v0 }
 0x129   :  { %6515 = vmatprep.subr.bf16.mxu0 %v15519_v26  ;;  %v882_v26 = vld [vmem:[#allocation2 + $0x1818] sm:$0xff] }
 0x12a   :  { %6555 = vmatpush1.bf16.msra.mxu1 %v16062_v25  ;;  %v386_v25 = vld [vmem:[#allocation2 + $0x898] sm:$0xff] }
 0x12b   :  { %6556 = vmatprep.subr.bf16.mxu1 %v16031_v27  ;;  %v898_v27 = vld [vmem:[#allocation2 + $0x1898] sm:$0xff]  ;;  %v15775_v30 = vcombine.high %v370_v24, %v386_v25  ;;  %v15774_v36 = vcombine.low %v370_v24, %v386_v25  ;;  %v691_v24 = vld [vmem:[#allocation2 + $0x1220] sm:$0xff] }
 0x12c   :  { %6516 = vmatpush1.bf16.msra.mxu0 %v15518_v32  ;;  %v16287_v31 = vcombine.high %v882_v26, %v898_v27  ;;  %v339_v32 = vld [vmem:[#allocation2 + $0x720] sm:$0xff]  ;;  %v16286_v37 = vcombine.low %v882_v26, %v898_v27  ;;  %v16128_v27 = vcombine.low %v723_v14, %v739_v15 }
 0x12d   :  { %6517 = vmatprep.subr.bf16.mxu0 %v15999_v34  ;;  %v851_v34 = vld [vmem:[#allocation2 + $0x1720] sm:$0xff] }
 0x12e   :  { %6557 = vmatpush1.bf16.msra.mxu1 %v16030_v33  ;;  %v355_v33 = vld [vmem:[#allocation2 + $0x7a0] sm:$0xff] }
 0x12f   :  { %6558 = vmatprep.subr.bf16.mxu1 %v16511_v35  ;;  %v867_v35 = vld [vmem:[#allocation2 + $0x17a0] sm:$0xff]  ;;  %v15745_v38 = vcombine.high %v339_v32, %v355_v33  ;;  %v15744_v44 = vcombine.low %v339_v32, %v355_v33 }
 0x130   :  { %6518 = vmatpush2.bf16.msra.mxu0 %v15998_v40  ;;  %v16257_v39 = vcombine.high %v851_v34, %v867_v35  ;;  %v307_v40 = vld [vmem:[#allocation2 + $0x620] sm:$0xff]  ;;  %v16256_v45 = vcombine.low %v851_v34, %v867_v35 }
 0x131   :  { %6519 = vmatprep.subr.bf16.mxu0 %v15967_v42  ;;  %v819_v42 = vld [vmem:[#allocation2 + $0x1620] sm:$0xff] }
 0x132   :  { %6559 = vmatpush2.bf16.msra.mxu1 %v16510_v41  ;;  %v323_v41 = vld [vmem:[#allocation2 + $0x6a0] sm:$0xff] }
 0x133   :  { %6560 = vmatprep.subr.bf16.mxu1 %v16479_v43  ;;  %v835_v43 = vld [vmem:[#allocation2 + $0x16a0] sm:$0xff]  ;;  %v15713_v46 = vcombine.high %v307_v40, %v323_v41  ;;  %v15712_v54 = vcombine.low %v307_v40, %v323_v41 }
 0x134   :  { %6520 = vmatpush2.bf16.msra.mxu0 %v15966_v48  ;;  %v16225_v47 = vcombine.high %v819_v42, %v835_v43  ;;  %v275_v48 = vld [vmem:[#allocation2 + $0x520] sm:$0xff] }
 0x135   :  { %6521 = vmatprep.subr.bf16.mxu0 %v15935_v50  ;;  %v707_v25 = vld [vmem:[#allocation2 + $0x12a0] sm:$0xff] }
 0x136   :  { %6561 = vmatpush2.bf16.msra.mxu1 %v16478_v49  ;;  %v291_v49 = vld [vmem:[#allocation2 + $0x5a0] sm:$0xff]  ;;  %v16096_v35 = vcombine.low %v691_v24, %v707_v25 }
 0x137   :  { %6562 = vmatprep.subr.bf16.mxu1 %v16447_v51  ;;  %v787_v51 = vld [vmem:[#allocation2 + $0x1520] sm:$0xff]  ;;  %v15680_v6 = vcombine.low %v275_v48, %v291_v49 }
 0x138   :  { %6522 = vmatpush2.bf16.msra.mxu0 %v15934_v56  ;;  %v16193_v62 = vcombine.high %v787_v51, %v803_v52  ;;  %v16192_v8 = vcombine.low %v787_v51, %v803_v52  ;;  %v659_v32 = vld [vmem:[#allocation2 + $0x1120] sm:$0xff] }
 0x139   :  { %6523 = vmatprep.subr.bf16.mxu0 %v15903_v60  ;;  %v15681_v60 = vcombine.high %v275_v48, %v291_v49  ;;  %v675_v33 = vld [vmem:[#allocation2 + $0x11a0] sm:$0xff] }
 0x13a   :  { %6563 = vmatpush2.bf16.msra.mxu1 %v16446_v57  ;;  %v16224_v57 = vcombine.low %v819_v42, %v835_v43  ;;  %v627_v40 = vld [vmem:[#allocation2 + $0x1020] sm:$0xff]  ;;  %v16064_v43 = vcombine.low %v659_v32, %v675_v33 }
 0x13b   :  { %6564 = vmatprep.subr.bf16.mxu1 %v16415_v61  ;;  %v643_v41 = vld [vmem:[#allocation2 + $0x10a0] sm:$0xff] }
 0x13c   :  { %6524 = vmatpush2.bf16.msra.mxu0 %v15902_v2  ;;  %v1107_v48 = vld [vmem:[#allocation2 + $0x1f20] sm:$0xff]  ;;  %v16032_v51 = vcombine.low %v627_v40, %v643_v41 }
 0x13d   :  { %6525 = vmatprep.subr.bf16.mxu0 %v15871_v4  ;;  %v771_v4 = vld [vmem:[#allocation2 + $0x14a0] sm:$0xff] }
 0x13e   :  { %6565 = vmatpush2.bf16.msra.mxu1 %v16414_v3  ;;  %v755_v3 = vld [vmem:[#allocation2 + $0x1420] sm:$0xff] }
 0x13f   :  { %6566 = vmatprep.subr.bf16.mxu1 %v16383_v5  ;;  %v16160_v18 = vcombine.low %v755_v3, %v771_v4  ;;  %v1123_v49 = vld [vmem:[#allocation2 + $0x1fa0] sm:$0xff] }
 0x140   :  { %6526 = vmatpush2.bf16.msra.mxu0 %v15870_v10 }
 0x141   :  { %6527 = vmatprep.subr.bf16.mxu0 %v15839_v12  ;;  %v211_v12 = vld [vmem:[#allocation2 + $0x320] sm:$0xff] }
 0x142   :  { %6567 = vmatpush2.bf16.msra.mxu1 %v16382_v11  ;;  %v16161_v11 = vcombine.high %v755_v3, %v771_v4  ;;  %v547_v3 = vld [vmem:[#allocation2 + $0xda0] sm:$0xff] }
 0x143   :  { %6568 = vmatprep.subr.bf16.mxu1 %v16351_v13  ;;  %v227_v13 = vld [vmem:[#allocation2 + $0x3a0] sm:$0xff] }
 0x144   :  { %6528 = vmatpush2.bf16.msra.mxu0 %v15838_v20  ;;  %v15617_v20 = vcombine.high %v211_v12, %v227_v13  ;;  %v15616_v26 = vcombine.low %v211_v12, %v227_v13  ;;  %v1043_v4 = vld [vmem:[#allocation2 + $0x1d20] sm:$0xff] }
 0x145   :  { %6529 = vmatprep.subr.bf16.mxu0 %v15807_v22  ;;  %v179_v22 = vld [vmem:[#allocation2 + $0x220] sm:$0xff] }
 0x146   :  { %6569 = vmatpush2.bf16.msra.mxu1 %v16350_v21  ;;  %v16129_v21 = vcombine.high %v723_v14, %v739_v15  ;;  %v1011_v12 = vld [vmem:[#allocation2 + $0x1c20] sm:$0xff] }
 0x147   :  { %6570 = vmatprep.subr.bf16.mxu1 %v16319_v23  ;;  %v195_v23 = vld [vmem:[#allocation2 + $0x2a0] sm:$0xff] }
 0x148   :  { %6530 = vmatpush2.bf16.msra.mxu0 %v15806_v28  ;;  %v15585_v28 = vcombine.high %v179_v22, %v195_v23  ;;  %v15584_v34 = vcombine.low %v179_v22, %v195_v23  ;;  %v1027_v13 = vld [vmem:[#allocation2 + $0x1ca0] sm:$0xff] }
 0x149   :  { %6531 = vmatprep.subr.bf16.mxu0 %v15775_v30  ;;  %v147_v30 = vld [vmem:[#allocation2 + $0x120] sm:$0xff] }
 0x14a   :  { %6571 = vmatpush2.bf16.msra.mxu1 %v16318_v29  ;;  %v16097_v29 = vcombine.high %v691_v24, %v707_v25  ;;  %v979_v22 = vld [vmem:[#allocation2 + $0x1b20] sm:$0xff]  ;;  %v16416_v25 = vcombine.low %v1011_v12, %v1027_v13 }
 0x14b   :  { %6572 = vmatprep.subr.bf16.mxu1 %v16287_v31  ;;  %v163_v31 = vld [vmem:[#allocation2 + $0x1a0] sm:$0xff] }
 0x14c   :  { %6532 = vmatpush2.bf16.msra.mxu0 %v15774_v36  ;;  %v15553_v36 = vcombine.high %v147_v30, %v163_v31  ;;  %v15552_v42 = vcombine.low %v147_v30, %v163_v31  ;;  %v995_v23 = vld [vmem:[#allocation2 + $0x1ba0] sm:$0xff] }
 0x14d   :  { %6583 = vmatprep.subr.bf16.mxu0 %v15745_v38  ;;  %v115_v38 = vld [vmem:[#allocation2 + $0x20] sm:$0xff] }
 0x14e   :  { %6573 = vmatpush2.bf16.msra.mxu1 %v16286_v37  ;;  %v16065_v37 = vcombine.high %v659_v32, %v675_v33  ;;  %v947_v30 = vld [vmem:[#allocation2 + $0x1a20] sm:$0xff]  ;;  %v16384_v33 = vcombine.low %v979_v22, %v995_v23 }
 0x14f   :  { %6624 = vmatprep.subr.bf16.mxu1 %v16257_v39  ;;  %v6289_v50 = vpop.f32.mrf.mxu0  ;;  %6534 = vmatmul.mubr.bf16.vlgmr.msra.gmra.mxu0 %v17896_v16  ;;  %v131_v39 = vld [vmem:[#allocation2 + $0xa0] sm:$0xff] }
 0x150   :  { %6584 = vmatpush1.bf16.msra.mxu0 %v15744_v44  ;;  %6615 = vmatprep.mubr.bf16.mxu0 %v17884_v58  ;;  %v15521_v44 = vcombine.high %v115_v38, %v131_v39  ;;  %v963_v31 = vld [vmem:[#allocation2 + $0x1aa0] sm:$0xff] }
 0x151   :  { %v6330_v53 = vpop.f32.mrf.mxu1  ;;  %6575 = vmatmul.mubr.bf16.vlgmr.msra.gmra.mxu1 %v17898_v19  ;;  %v6291_v56 = vpop.f32.mrf.mxu0  ;;  %6585 = vmatprep.subr.bf16.mxu0 %v15713_v46  ;;  %v595_v46 = vld [vmem:[#allocation2 + $0xf20] sm:$0xff] }
 0x152   :  { %v17914_v55 = vadd.f32 %v6330_v53, %v6289_v50  ;;  %6625 = vmatpush1.bf16.msra.mxu1 %v16256_v45  ;;  %6656 = vmatprep.mubr.bf16.mxu1 %v17886_v59  ;;  %v16033_v45 = vcombine.high %v627_v40, %v643_v41  ;;  %v15520_v50 = vcombine.low %v115_v38, %v131_v39  ;;  %v915_v38 = vld [vmem:[#allocation2 + $0x1920] sm:$0xff] }
 0x153   :  { %v6332_v61 = vpop.f32.mrf.mxu1  ;;  %6626 = vmatprep.subr.bf16.mxu1 %v16225_v47  ;;  %v6293_v2 = vpop.f32.mrf.mxu0  ;;  %v611_v47 = vld [vmem:[#allocation2 + $0xfa0] sm:$0xff]  ;;  %v16513_v53 = vcombine.high %v1107_v48, %v1123_v49  ;;  %v16352_v41 = vcombine.low %v947_v30, %v963_v31 }
 0x154   :  { %v17917_v1 = vadd.f32 %v6332_v61, %v6291_v56  ;;  %6586 = vmatpush1.bf16.msra.mxu0 %v15712_v54  ;;  %v16001_v52 = vcombine.high %v595_v46, %v611_v47  ;;  %v563_v54 = vld [vmem:[#allocation2 + $0xe20] sm:$0xff]  ;;  %v16000_v61 = vcombine.low %v595_v46, %v611_v47 }
 0x155   :  { %v6334_v5 = vpop.f32.mrf.mxu1  ;;  %v6294_v7 = vpop.f32.mrf.mxu0  ;;  %6587 = vmatprep.subr.bf16.mxu0 %v15681_v60  ;;  %v579_v56 = vld [vmem:[#allocation2 + $0xea0] sm:$0xff] }
 0x156   :  { %6627 = vmatpush1.bf16.msra.mxu1 %v16224_v57  ;;  %v1075_v57 = vld [vmem:[#allocation2 + $0x1e20] sm:$0xff]  ;;  %v15969_v63 = vcombine.high %v563_v54, %v579_v56 }
 0x157   :  { %v6335_v10 = vpop.f32.mrf.mxu1  ;;  %6628 = vmatprep.subr.bf16.mxu1 %v16193_v62  ;;  %v1091_v60 = vld [vmem:[#allocation2 + $0x1ea0] sm:$0xff]  ;;  %v16512_v62 = vcombine.low %v1107_v48, %v1123_v49 }
 0x158   :  { %6588 = vmatpush1.bf16.msra.mxu0 %v15680_v6  ;;  %v16481_v0 = vcombine.high %v1075_v57, %v1091_v60  ;;  %v531_v2 = vld [vmem:[#allocation2 + $0xd20] sm:$0xff]  ;;  %v15968_v6 = vcombine.low %v563_v54, %v579_v56  ;;  %v16480_v7 = vcombine.low %v1075_v57, %v1091_v60  ;;  %v852_v54 = vld [vmem:[#allocation2 + $0x1728] sm:$0xff] }
 0x159   :  { %6589 = vmatprep.subr.bf16.mxu0 %v15649_v9  ;;  %v1059_v5 = vld [vmem:[#allocation2 + $0x1da0] sm:$0xff]  ;;  %v15936_v14 = vcombine.low %v531_v2, %v547_v3  ;;  %v868_v56 = vld [vmem:[#allocation2 + $0x17a8] sm:$0xff] }
 0x15a   :  { %6629 = vmatpush1.bf16.msra.mxu1 %v16192_v8  ;;  %v15937_v8 = vcombine.high %v531_v2, %v547_v3  ;;  %v16449_v9 = vcombine.high %v1043_v4, %v1059_v5  ;;  %v499_v10 = vld [vmem:[#allocation2 + $0xc20] sm:$0xff]  ;;  %v16448_v15 = vcombine.low %v1043_v4, %v1059_v5  ;;  %v820_v2 = vld [vmem:[#allocation2 + $0x1628] sm:$0xff]  ;;  %v16258_v5 = vcombine.low %v852_v54, %v868_v56 }
 0x15b   :  { %6630 = vmatprep.subr.bf16.mxu1 %v16161_v11  ;;  %v515_v11 = vld [vmem:[#allocation2 + $0xca0] sm:$0xff]  ;;  %v836_v3 = vld [vmem:[#allocation2 + $0x16a8] sm:$0xff] }
 0x15c   :  { %6590 = vmatpush1.bf16.msra.mxu0 %v15648_v17  ;;  %v15905_v17 = vcombine.high %v499_v10, %v515_v11  ;;  %v15904_v24 = vcombine.low %v499_v10, %v515_v11  ;;  %v931_v39 = vld [vmem:[#allocation2 + $0x19a0] sm:$0xff]  ;;  %v788_v11 = vld [vmem:[#allocation2 + $0x1528] sm:$0xff] }
 0x15d   :  { %6591 = vmatprep.subr.bf16.mxu0 %v15617_v20  ;;  %v467_v20 = vld [vmem:[#allocation2 + $0xb20] sm:$0xff]  ;;  %v16320_v49 = vcombine.low %v915_v38, %v931_v39 }
 0x15e   :  { %6631 = vmatpush1.bf16.msra.mxu1 %v16160_v18  ;;  %v16417_v18 = vcombine.high %v1011_v12, %v1027_v13  ;;  %v883_v46 = vld [vmem:[#allocation2 + $0x1820] sm:$0xff]  ;;  %v804_v12 = vld [vmem:[#allocation2 + $0x15a8] sm:$0xff] }
 0x15f   :  { %6632 = vmatprep.subr.bf16.mxu1 %v16129_v21  ;;  %v483_v21 = vld [vmem:[#allocation2 + $0xba0] sm:$0xff] }
 0x160   :  { %6592 = vmatpush1.bf16.msra.mxu0 %v15616_v26  ;;  %v15873_v26 = vcombine.high %v467_v20, %v483_v21  ;;  %v15872_v32 = vcombine.low %v467_v20, %v483_v21  ;;  %v899_v47 = vld [vmem:[#allocation2 + $0x18a0] sm:$0xff] }
 0x161   :  { %6593 = vmatprep.subr.bf16.mxu0 %v15585_v28  ;;  %v435_v28 = vld [vmem:[#allocation2 + $0xa20] sm:$0xff]  ;;  %v16288_v60 = vcombine.low %v883_v46, %v899_v47 }
 0x162   :  { %6633 = vmatpush1.bf16.msra.mxu1 %v16128_v27  ;;  %v16385_v27 = vcombine.high %v979_v22, %v995_v23  ;;  %v16195_v22 = vcombine.high %v788_v11, %v804_v12  ;;  %v244_v23 = vld [vmem:[#allocation2 + $0x428] sm:$0xff] }
 0x163   :  { %6634 = vmatprep.subr.bf16.mxu1 %v16097_v29  ;;  %v451_v29 = vld [vmem:[#allocation2 + $0xaa0] sm:$0xff] }
 0x164   :  { %6594 = vmatpush1.bf16.msra.mxu0 %v15584_v34  ;;  %v15841_v34 = vcombine.high %v435_v28, %v451_v29  ;;  %v15840_v40 = vcombine.low %v435_v28, %v451_v29  ;;  %v772_v28 = vld [vmem:[#allocation2 + $0x14a8] sm:$0xff] }
 0x165   :  { %6595 = vmatprep.subr.bf16.mxu0 %v15553_v36  ;;  %v403_v36 = vld [vmem:[#allocation2 + $0x920] sm:$0xff] }
 0x166   :  { %6635 = vmatpush1.bf16.msra.mxu1 %v16096_v35  ;;  %v16353_v35 = vcombine.high %v947_v30, %v963_v31 }
 0x167   :  { %6636 = vmatprep.subr.bf16.mxu1 %v16065_v37  ;;  %v419_v37 = vld [vmem:[#allocation2 + $0x9a0] sm:$0xff] }
 0x168   :  { %6596 = vmatpush1.bf16.msra.mxu0 %v15552_v42  ;;  %v15809_v42 = vcombine.high %v403_v36, %v419_v37  ;;  %v15808_v48 = vcombine.low %v403_v36, %v419_v37  ;;  %v212_v36 = vld [vmem:[#allocation2 + $0x328] sm:$0xff] }
 0x169   :  { %6597 = vmatprep.subr.bf16.mxu0 %v15521_v44  ;;  %v371_v44 = vld [vmem:[#allocation2 + $0x820] sm:$0xff]  ;;  %v228_v37 = vld [vmem:[#allocation2 + $0x3a8] sm:$0xff] }
 0x16a   :  { %6637 = vmatpush1.bf16.msra.mxu1 %v16064_v43  ;;  %v16321_v43 = vcombine.high %v915_v38, %v931_v39  ;;  %v724_v38 = vld [vmem:[#allocation2 + $0x1328] sm:$0xff] }
 0x16b   :  { %6638 = vmatprep.subr.bf16.mxu1 %v16033_v45  ;;  %v387_v45 = vld [vmem:[#allocation2 + $0x8a0] sm:$0xff]  ;;  %v740_v39 = vld [vmem:[#allocation2 + $0x13a8] sm:$0xff] }
 0x16c   :  { %6598 = vmatpush1.bf16.msra.mxu0 %v15520_v50  ;;  %v15777_v50 = vcombine.high %v371_v44, %v387_v45  ;;  %v15776_v57 = vcombine.low %v371_v44, %v387_v45  ;;  %v180_v44 = vld [vmem:[#allocation2 + $0x228] sm:$0xff] }
 0x16d   :  { %6599 = vmatprep.subr.bf16.mxu0 %v16001_v52  ;;  %v340_v52 = vld [vmem:[#allocation2 + $0x728] sm:$0xff] }
 0x16e   :  { %6639 = vmatpush1.bf16.msra.mxu1 %v16032_v51  ;;  %v16289_v51 = vcombine.high %v883_v46, %v899_v47  ;;  %v196_v45 = vld [vmem:[#allocation2 + $0x2a8] sm:$0xff] }
 0x16f   :  { %6640 = vmatprep.subr.bf16.mxu1 %v16513_v53  ;;  %v356_v53 = vld [vmem:[#allocation2 + $0x7a8] sm:$0xff] }
 0x170   :  { %6600 = vmatpush2.bf16.msra.mxu0 %v16000_v61  ;;  %v15747_v61 = vcombine.high %v340_v52, %v356_v53  ;;  %v15746_v4 = vcombine.low %v340_v52, %v356_v53  ;;  %v692_v46 = vld [vmem:[#allocation2 + $0x1228] sm:$0xff] }
 0x171   :  { %6601 = vmatprep.subr.bf16.mxu0 %v15969_v63  ;;  %v308_v63 = vld [vmem:[#allocation2 + $0x628] sm:$0xff] }
 0x172   :  { %6641 = vmatpush2.bf16.msra.mxu1 %v16512_v62  ;;  %v16259_v62 = vcombine.high %v852_v54, %v868_v56  ;;  %v708_v47 = vld [vmem:[#allocation2 + $0x12a8] sm:$0xff] }
 0x173   :  { %6642 = vmatprep.subr.bf16.mxu1 %v16481_v0  ;;  %v324_v0 = vld [vmem:[#allocation2 + $0x6a8] sm:$0xff] }
 0x174   :  { %6602 = vmatpush2.bf16.msra.mxu0 %v15968_v6  ;;  %v15715_v6 = vcombine.high %v308_v63, %v324_v0  ;;  %v148_v52 = vld [vmem:[#allocation2 + $0x128] sm:$0xff] }
 0x175   :  { %6603 = vmatprep.subr.bf16.mxu0 %v15937_v8  ;;  %v276_v8 = vld [vmem:[#allocation2 + $0x528] sm:$0xff] }
 0x176   :  { %6643 = vmatpush2.bf16.msra.mxu1 %v16480_v7  ;;  %v16227_v7 = vcombine.high %v820_v2, %v836_v3  ;;  %v164_v53 = vld [vmem:[#allocation2 + $0x1a8] sm:$0xff] }
 0x177   :  { %6644 = vmatprep.subr.bf16.mxu1 %v16449_v9  ;;  %v292_v9 = vld [vmem:[#allocation2 + $0x5a8] sm:$0xff] }
 0x178   :  { %6604 = vmatpush2.bf16.msra.mxu0 %v15936_v14  ;;  %v15714_v14 = vcombine.low %v308_v63, %v324_v0  ;;  %v15683_v20 = vcombine.high %v276_v8, %v292_v9  ;;  %v15682_v30 = vcombine.low %v276_v8, %v292_v9  ;;  %v660_v54 = vld [vmem:[#allocation2 + $0x1128] sm:$0xff] }
 0x179   :  { %6605 = vmatprep.subr.bf16.mxu0 %v15905_v17  ;;  %v676_v56 = vld [vmem:[#allocation2 + $0x11a8] sm:$0xff] }
 0x17a   :  { %6645 = vmatpush2.bf16.msra.mxu1 %v16448_v15  ;;  %v116_v63 = vld [vmem:[#allocation2 + $0x28] sm:$0xff] }
 0x17b   :  { %6646 = vmatprep.subr.bf16.mxu1 %v16417_v18  ;;  %v16226_v18 = vcombine.low %v820_v2, %v836_v3  ;;  %v132_v0 = vld [vmem:[#allocation2 + $0xa8] sm:$0xff] }
 0x17c   :  { %6606 = vmatpush2.bf16.msra.mxu0 %v15904_v24  ;;  %v260_v24 = vld [vmem:[#allocation2 + $0x4a8] sm:$0xff] }
 0x17d   :  { %6607 = vmatprep.subr.bf16.mxu0 %v15873_v26  ;;  %v628_v2 = vld [vmem:[#allocation2 + $0x1028] sm:$0xff] }
 0x17e   :  { %6647 = vmatpush2.bf16.msra.mxu1 %v16416_v25  ;;  %v644_v3 = vld [vmem:[#allocation2 + $0x10a8] sm:$0xff] }
 0x17f   :  { %6648 = vmatprep.subr.bf16.mxu1 %v16385_v27  ;;  %v756_v27 = vld [vmem:[#allocation2 + $0x1428] sm:$0xff] }
 0x180   :  { %6608 = vmatpush2.bf16.msra.mxu0 %v15872_v32  ;;  %v16194_v32 = vcombine.low %v788_v11, %v804_v12  ;;  %v596_v8 = vld [vmem:[#allocation2 + $0xf28] sm:$0xff]  ;;  %v15522_v12 = vcombine.low %v116_v63, %v132_v0 }
 0x181   :  { %6609 = vmatprep.subr.bf16.mxu0 %v15841_v34  ;;  %v612_v9 = vld [vmem:[#allocation2 + $0xfa8] sm:$0xff] }
 0x182   :  { %6649 = vmatpush2.bf16.msra.mxu1 %v16384_v33  ;;  %v15651_v33 = vcombine.high %v244_v23, %v260_v24  ;;  %v1124_v11 = vld [vmem:[#allocation2 + $0x1fa8] sm:$0xff] }
 0x183   :  { %6650 = vmatprep.subr.bf16.mxu1 %v16353_v35  ;;  %v16163_v35 = vcombine.high %v756_v27, %v772_v28 }
 0x184   :  { %6610 = vmatpush2.bf16.msra.mxu0 %v15840_v40  ;;  %v15650_v40 = vcombine.low %v244_v23, %v260_v24  ;;  %v16002_v23 = vcombine.low %v596_v8, %v612_v9 }
 0x185   :  { %6611 = vmatprep.subr.bf16.mxu0 %v15809_v42  ;;  %v15619_v42 = vcombine.high %v212_v36, %v228_v37 }
 0x186   :  { %6651 = vmatpush2.bf16.msra.mxu1 %v16352_v41  ;;  %v16162_v41 = vcombine.low %v756_v27, %v772_v28  ;;  %v532_v28 = vld [vmem:[#allocation2 + $0xd28] sm:$0xff] }
 0x187   :  { %6652 = vmatprep.subr.bf16.mxu1 %v16321_v43  ;;  %v16131_v43 = vcombine.high %v724_v38, %v740_v39 }
 0x188   :  { %6612 = vmatpush2.bf16.msra.mxu0 %v15808_v48  ;;  %v15618_v48 = vcombine.low %v212_v36, %v228_v37  ;;  %v500_v36 = vld [vmem:[#allocation2 + $0xc28] sm:$0xff] }
 0x189   :  { %6613 = vmatprep.subr.bf16.mxu0 %v15777_v50  ;;  %v15587_v50 = vcombine.high %v180_v44, %v196_v45  ;;  %v516_v37 = vld [vmem:[#allocation2 + $0xca8] sm:$0xff] }
 0x18a   :  { %6653 = vmatpush2.bf16.msra.mxu1 %v16320_v49  ;;  %v16130_v49 = vcombine.low %v724_v38, %v740_v39  ;;  %v1012_v38 = vld [vmem:[#allocation2 + $0x1c28] sm:$0xff] }
 0x18b   :  { %6654 = vmatprep.subr.bf16.mxu1 %v16289_v51  ;;  %v16099_v51 = vcombine.high %v692_v46, %v708_v47  ;;  %v1028_v39 = vld [vmem:[#allocation2 + $0x1ca8] sm:$0xff] }
 0x18c   :  { %6614 = vmatpush2.bf16.msra.mxu0 %v15776_v57  ;;  %v15586_v57 = vcombine.low %v180_v44, %v196_v45  ;;  %v468_v44 = vld [vmem:[#allocation2 + $0xb28] sm:$0xff] }
 0x18d   :  { %6665 = vmatprep.subr.bf16.mxu0 %v15747_v61  ;;  %v15555_v61 = vcombine.high %v148_v52, %v164_v53  ;;  %v484_v45 = vld [vmem:[#allocation2 + $0xba8] sm:$0xff] }
 0x18e   :  { %6655 = vmatpush2.bf16.msra.mxu1 %v16288_v60  ;;  %v16098_v60 = vcombine.low %v692_v46, %v708_v47  ;;  %v980_v46 = vld [vmem:[#allocation2 + $0x1b28] sm:$0xff] }
 0x18f   :  { %6706 = vmatprep.subr.bf16.mxu1 %v16259_v62  ;;  %v6371_v10 = vpop.f32.mrf.mxu0  ;;  %6616 = vmatmul.mubr.bf16.vlgmr.msra.gmra.mxu0 %v17896_v16  ;;  %v16067_v62 = vcombine.high %v660_v54, %v676_v56  ;;  %v996_v47 = vld [vmem:[#allocation2 + $0x1ba8] sm:$0xff] }
 0x190   :  { %6666 = vmatpush1.bf16.msra.mxu0 %v15746_v4  ;;  %6697 = vmatprep.mubr.bf16.mxu0 %v17884_v58  ;;  %v15554_v4 = vcombine.low %v148_v52, %v164_v53  ;;  %v436_v52 = vld [vmem:[#allocation2 + $0xa28] sm:$0xff] }
 0x191   :  { %v6412_v13 = vpop.f32.mrf.mxu1  ;;  %6657 = vmatmul.mubr.bf16.vlgmr.msra.gmra.mxu1 %v17898_v19  ;;  %v6373_v17 = vpop.f32.mrf.mxu0  ;;  %6667 = vmatprep.subr.bf16.mxu0 %v15715_v6  ;;  %v15523_v6 = vcombine.high %v116_v63, %v132_v0  ;;  %v452_v53 = vld [vmem:[#allocation2 + $0xaa8] sm:$0xff] }
 0x192   :  { %v17922_v15 = vadd.f32 %v6412_v13, %v6371_v10  ;;  %6707 = vmatpush1.bf16.msra.mxu1 %v16258_v5  ;;  %6738 = vmatprep.mubr.bf16.mxu1 %v17886_v59  ;;  %v16066_v5 = vcombine.low %v660_v54, %v676_v56  ;;  %v1108_v10 = vld [vmem:[#allocation2 + $0x1f28] sm:$0xff]  ;;  %v16034_v13 = vcombine.low %v628_v2, %v644_v3 }
 0x193   :  { %v6414_v21 = vpop.f32.mrf.mxu1  ;;  %6708 = vmatprep.subr.bf16.mxu1 %v16227_v7  ;;  %v6375_v26 = vpop.f32.mrf.mxu0  ;;  %v16035_v7 = vcombine.high %v628_v2, %v644_v3  ;;  %v16514_v24 = vcombine.low %v1108_v10, %v1124_v11  ;;  %v948_v54 = vld [vmem:[#allocation2 + $0x1a28] sm:$0xff] }
 0x194   :  { %v17925_v25 = vadd.f32 %v6414_v21, %v6373_v17  ;;  %6668 = vmatpush1.bf16.msra.mxu0 %v15714_v14  ;;  %v16003_v14 = vcombine.high %v596_v8, %v612_v9  ;;  %v16515_v17 = vcombine.high %v1108_v10, %v1124_v11  ;;  %v1076_v21 = vld [vmem:[#allocation2 + $0x1e28] sm:$0xff] }
 0x195   :  { %v6416_v29 = vpop.f32.mrf.mxu1  ;;  %v6376_v31 = vpop.f32.mrf.mxu0  ;;  %6669 = vmatprep.subr.bf16.mxu0 %v15683_v20  ;;  %v580_v20 = vld [vmem:[#allocation2 + $0xea8] sm:$0xff] }
 0x196   :  { %6709 = vmatpush1.bf16.msra.mxu1 %v16226_v18  ;;  %v564_v18 = vld [vmem:[#allocation2 + $0xe28] sm:$0xff] }
 0x197   :  { %v6417_v34 = vpop.f32.mrf.mxu1  ;;  %6710 = vmatprep.subr.bf16.mxu1 %v16195_v22  ;;  %v1092_v22 = vld [vmem:[#allocation2 + $0x1ea8] sm:$0xff]  ;;  %v15971_v26 = vcombine.high %v564_v18, %v580_v20 }
 0x198   :  { %6670 = vmatpush1.bf16.msra.mxu0 %v15682_v30  ;;  %v16483_v27 = vcombine.high %v1076_v21, %v1092_v22  ;;  %v548_v29 = vld [vmem:[#allocation2 + $0xda8] sm:$0xff] }
 0x199   :  { %6671 = vmatprep.subr.bf16.mxu0 %v15651_v33  ;;  %v1044_v30 = vld [vmem:[#allocation2 + $0x1d28] sm:$0xff]  ;;  %v16482_v33 = vcombine.low %v1076_v21, %v1092_v22  ;;  %v15939_v34 = vcombine.high %v532_v28, %v548_v29  ;;  %v853_v21 = vld [vmem:[#allocation2 + $0x1730] sm:$0xff] }
 0x19a   :  { %6711 = vmatpush1.bf16.msra.mxu1 %v16194_v32  ;;  %v1060_v31 = vld [vmem:[#allocation2 + $0x1da8] sm:$0xff]  ;;  %v15970_v32 = vcombine.low %v564_v18, %v580_v20  ;;  %v341_v18 = vld [vmem:[#allocation2 + $0x730] sm:$0xff] }
 0x19b   :  { %6712 = vmatprep.subr.bf16.mxu1 %v16163_v35  ;;  %v16451_v35 = vcombine.high %v1044_v30, %v1060_v31  ;;  %v964_v56 = vld [vmem:[#allocation2 + $0x1aa8] sm:$0xff]  ;;  %v357_v20 = vld [vmem:[#allocation2 + $0x7b0] sm:$0xff] }
 0x19c   :  { %6672 = vmatpush1.bf16.msra.mxu0 %v15650_v40  ;;  %v15938_v40 = vcombine.low %v532_v28, %v548_v29  ;;  %v404_v63 = vld [vmem:[#allocation2 + $0x928] sm:$0xff]  ;;  %v869_v22 = vld [vmem:[#allocation2 + $0x17b0] sm:$0xff] }
 0x19d   :  { %6673 = vmatprep.subr.bf16.mxu0 %v15619_v42  ;;  %v15907_v42 = vcombine.high %v500_v36, %v516_v37  ;;  %v420_v0 = vld [vmem:[#allocation2 + $0x9a8] sm:$0xff]  ;;  %v309_v28 = vld [vmem:[#allocation2 + $0x630] sm:$0xff] }
 0x19e   :  { %6713 = vmatpush1.bf16.msra.mxu1 %v16162_v41  ;;  %v16450_v41 = vcombine.low %v1044_v30, %v1060_v31  ;;  %v916_v2 = vld [vmem:[#allocation2 + $0x1928] sm:$0xff]  ;;  %v325_v29 = vld [vmem:[#allocation2 + $0x6b0] sm:$0xff] }
 0x19f   :  { %6714 = vmatprep.subr.bf16.mxu1 %v16131_v43  ;;  %v16419_v43 = vcombine.high %v1012_v38, %v1028_v39  ;;  %v932_v3 = vld [vmem:[#allocation2 + $0x19a8] sm:$0xff]  ;;  %v821_v30 = vld [vmem:[#allocation2 + $0x1630] sm:$0xff] }
 0x1a0   :  { %6674 = vmatpush1.bf16.msra.mxu0 %v15618_v48  ;;  %v15906_v48 = vcombine.low %v500_v36, %v516_v37  ;;  %v372_v8 = vld [vmem:[#allocation2 + $0x828] sm:$0xff]  ;;  %v837_v31 = vld [vmem:[#allocation2 + $0x16b0] sm:$0xff] }
 0x1a1   :  { %6675 = vmatprep.subr.bf16.mxu0 %v15587_v50  ;;  %v15875_v50 = vcombine.high %v468_v44, %v484_v45  ;;  %v388_v9 = vld [vmem:[#allocation2 + $0x8a8] sm:$0xff]  ;;  %v277_v36 = vld [vmem:[#allocation2 + $0x530] sm:$0xff] }
 0x1a2   :  { %6715 = vmatpush1.bf16.msra.mxu1 %v16130_v49  ;;  %v16418_v49 = vcombine.low %v1012_v38, %v1028_v39  ;;  %v884_v10 = vld [vmem:[#allocation2 + $0x1828] sm:$0xff]  ;;  %v293_v37 = vld [vmem:[#allocation2 + $0x5b0] sm:$0xff] }
 0x1a3   :  { %6716 = vmatprep.subr.bf16.mxu1 %v16099_v51  ;;  %v16387_v51 = vcombine.high %v980_v46, %v996_v47  ;;  %v900_v11 = vld [vmem:[#allocation2 + $0x18a8] sm:$0xff]  ;;  %v789_v39 = vld [vmem:[#allocation2 + $0x1530] sm:$0xff] }
 0x1a4   :  { %6676 = vmatpush1.bf16.msra.mxu0 %v15586_v57  ;;  %v15874_v57 = vcombine.low %v468_v44, %v484_v45  ;;  %v16228_v45 = vcombine.low %v821_v30, %v837_v31 }
 0x1a5   :  { %6677 = vmatprep.subr.bf16.mxu0 %v15555_v61  ;;  %v15843_v61 = vcombine.high %v436_v52, %v452_v53 }
 0x1a6   :  { %6717 = vmatpush1.bf16.msra.mxu1 %v16098_v60  ;;  %v16386_v60 = vcombine.low %v980_v46, %v996_v47  ;;  %v15685_v46 = vcombine.high %v277_v36, %v293_v37 }
 0x1a7   :  { %6718 = vmatprep.subr.bf16.mxu1 %v16067_v62  ;;  %v16355_v62 = vcombine.high %v948_v54, %v964_v56 }
 0x1a8   :  { %6678 = vmatpush1.bf16.msra.mxu0 %v15554_v4  ;;  %v15842_v4 = vcombine.low %v436_v52, %v452_v53  ;;  %v757_v53 = vld [vmem:[#allocation2 + $0x1430] sm:$0xff] }
 0x1a9   :  { %6679 = vmatprep.subr.bf16.mxu0 %v15523_v6  ;;  %v15811_v6 = vcombine.high %v404_v63, %v420_v0 }
 0x1aa   :  { %6719 = vmatpush1.bf16.msra.mxu1 %v16066_v5  ;;  %v16354_v5 = vcombine.low %v948_v54, %v964_v56  ;;  %v773_v54 = vld [vmem:[#allocation2 + $0x14b0] sm:$0xff] }
 0x1ab   :  { %6720 = vmatprep.subr.bf16.mxu1 %v16035_v7  ;;  %v16323_v7 = vcombine.high %v916_v2, %v932_v3 }
 0x1ac   :  { %6680 = vmatpush1.bf16.msra.mxu0 %v15522_v12  ;;  %v15810_v12 = vcombine.low %v404_v63, %v420_v0  ;;  %v16165_v0 = vcombine.high %v757_v53, %v773_v54 }
 0x1ad   :  { %6681 = vmatprep.subr.bf16.mxu0 %v16003_v14  ;;  %v15779_v14 = vcombine.high %v372_v8, %v388_v9 }
 0x1ae   :  { %6721 = vmatpush1.bf16.msra.mxu1 %v16034_v13  ;;  %v16322_v13 = vcombine.low %v916_v2, %v932_v3  ;;  %v213_v2 = vld [vmem:[#allocation2 + $0x330] sm:$0xff] }
 0x1af   :  { %6722 = vmatprep.subr.bf16.mxu1 %v16515_v17  ;;  %v16291_v17 = vcombine.high %v884_v10, %v900_v11  ;;  %v229_v3 = vld [vmem:[#allocation2 + $0x3b0] sm:$0xff] }
 0x1b0   :  { %6682 = vmatpush2.bf16.msra.mxu0 %v16002_v23  ;;  %v15778_v23 = vcombine.low %v372_v8, %v388_v9  ;;  %v15621_v8 = vcombine.high %v213_v2, %v229_v3 }
 0x1b1   :  { %6683 = vmatprep.subr.bf16.mxu0 %v15971_v26  ;;  %v15749_v26 = vcombine.high %v341_v18, %v357_v20 }
 0x1b2   :  { %6723 = vmatpush2.bf16.msra.mxu1 %v16514_v24  ;;  %v16290_v24 = vcombine.low %v884_v10, %v900_v11  ;;  %v181_v10 = vld [vmem:[#allocation2 + $0x230] sm:$0xff] }
 0x1b3   :  { %6724 = vmatprep.subr.bf16.mxu1 %v16483_v27  ;;  %v16261_v27 = vcombine.high %v853_v21, %v869_v22  ;;  %v197_v11 = vld [vmem:[#allocation2 + $0x2b0] sm:$0xff] }
 0x1b4   :  { %6684 = vmatpush2.bf16.msra.mxu0 %v15970_v32  ;;  %v15748_v32 = vcombine.low %v341_v18, %v357_v20  ;;  %v15589_v18 = vcombine.high %v181_v10, %v197_v11 }
 0x1b5   :  { %6685 = vmatprep.subr.bf16.mxu0 %v15939_v34  ;;  %v15717_v34 = vcombine.high %v309_v28, %v325_v29 }
 0x1b6   :  { %6725 = vmatpush2.bf16.msra.mxu1 %v16482_v33  ;;  %v16260_v33 = vcombine.low %v853_v21, %v869_v22  ;;  %v149_v21 = vld [vmem:[#allocation2 + $0x130] sm:$0xff] }
 0x1b7   :  { %6726 = vmatprep.subr.bf16.mxu1 %v16451_v35  ;;  %v16229_v35 = vcombine.high %v821_v30, %v837_v31  ;;  %v165_v22 = vld [vmem:[#allocation2 + $0x1b0] sm:$0xff] }
 0x1b8   :  { %6686 = vmatpush2.bf16.msra.mxu0 %v15938_v40  ;;  %v805_v40 = vld [vmem:[#allocation2 + $0x15b0] sm:$0xff] }
 0x1b9   :  { %6687 = vmatprep.subr.bf16.mxu0 %v15907_v42  ;;  %v15716_v42 = vcombine.low %v309_v28, %v325_v29  ;;  %v15557_v28 = vcombine.high %v149_v21, %v165_v22  ;;  %v117_v30 = vld [vmem:[#allocation2 + $0x30] sm:$0xff] }
 0x1ba   :  { %6727 = vmatpush2.bf16.msra.mxu1 %v16450_v41  ;;  %v133_v31 = vld [vmem:[#allocation2 + $0xb0] sm:$0xff] }
 0x1bb   :  { %6728 = vmatprep.subr.bf16.mxu1 %v16419_v43 }
 0x1bc   :  { %6688 = vmatpush2.bf16.msra.mxu0 %v15906_v48  ;;  %v16197_v48 = vcombine.high %v789_v39, %v805_v40 }
 0x1bd   :  { %6689 = vmatprep.subr.bf16.mxu0 %v15875_v50  ;;  %v261_v50 = vld [vmem:[#allocation2 + $0x4b0] sm:$0xff] }
 0x1be   :  { %6729 = vmatpush2.bf16.msra.mxu1 %v16418_v49  ;;  %v245_v49 = vld [vmem:[#allocation2 + $0x430] sm:$0xff] }
 0x1bf   :  { %6730 = vmatprep.subr.bf16.mxu1 %v16387_v51 }
 0x1c0   :  { %6690 = vmatpush2.bf16.msra.mxu0 %v15874_v57  ;;  %v15684_v57 = vcombine.low %v277_v36, %v293_v37  ;;  %v15525_v36 = vcombine.high %v117_v30, %v133_v31 }
 0x1c1   :  { %6691 = vmatprep.subr.bf16.mxu0 %v15843_v61  ;;  %v16196_v61 = vcombine.low %v789_v39, %v805_v40  ;;  %v613_v39 = vld [vmem:[#allocation2 + $0xfb0] sm:$0xff] }
 0x1c2   :  { %6731 = vmatpush2.bf16.msra.mxu1 %v16386_v60  ;;  %v1109_v40 = vld [vmem:[#allocation2 + $0x1f30] sm:$0xff] }
 0x1c3   :  { %6732 = vmatprep.subr.bf16.mxu1 %v16355_v62  ;;  %v15653_v62 = vcombine.high %v245_v49, %v261_v50 }
 0x1c4   :  { %6692 = vmatpush2.bf16.msra.mxu0 %v15842_v4  ;;  %v725_v4 = vld [vmem:[#allocation2 + $0x1330] sm:$0xff] }
 0x1c5   :  { %6693 = vmatprep.subr.bf16.mxu0 %v15811_v6  ;;  %v15652_v6 = vcombine.low %v245_v49, %v261_v50  ;;  %v1077_v49 = vld [vmem:[#allocation2 + $0x1e30] sm:$0xff] }
 0x1c6   :  { %6733 = vmatpush2.bf16.msra.mxu1 %v16354_v5  ;;  %v741_v5 = vld [vmem:[#allocation2 + $0x13b0] sm:$0xff] }
 0x1c7   :  { %6734 = vmatprep.subr.bf16.mxu1 %v16323_v7  ;;  %v16164_v7 = vcombine.low %v757_v53, %v773_v54  ;;  %v16133_v9 = vcombine.high %v725_v4, %v741_v5  ;;  %v1093_v50 = vld [vmem:[#allocation2 + $0x1eb0] sm:$0xff] }
 0x1c8   :  { %6694 = vmatpush2.bf16.msra.mxu0 %v15810_v12  ;;  %v693_v12 = vld [vmem:[#allocation2 + $0x1230] sm:$0xff] }
 0x1c9   :  { %6695 = vmatprep.subr.bf16.mxu0 %v15779_v14  ;;  %v15620_v14 = vcombine.low %v213_v2, %v229_v3 }
 0x1ca   :  { %6735 = vmatpush2.bf16.msra.mxu1 %v16322_v13  ;;  %v709_v13 = vld [vmem:[#allocation2 + $0x12b0] sm:$0xff] }
 0x1cb   :  { %6736 = vmatprep.subr.bf16.mxu1 %v16291_v17  ;;  %v16132_v17 = vcombine.low %v725_v4, %v741_v5  ;;  %v16101_v20 = vcombine.high %v693_v12, %v709_v13  ;;  %v501_v4 = vld [vmem:[#allocation2 + $0xc30] sm:$0xff] }
 0x1cc   :  { %6696 = vmatpush2.bf16.msra.mxu0 %v15778_v23  ;;  %v661_v23 = vld [vmem:[#allocation2 + $0x1130] sm:$0xff] }
 0x1cd   :  { %6747 = vmatprep.subr.bf16.mxu0 %v15749_v26  ;;  %v15588_v26 = vcombine.low %v181_v10, %v197_v11  ;;  %v517_v5 = vld [vmem:[#allocation2 + $0xcb0] sm:$0xff] }
 0x1ce   :  { %6737 = vmatpush2.bf16.msra.mxu1 %v16290_v24  ;;  %v677_v24 = vld [vmem:[#allocation2 + $0x11b0] sm:$0xff]  ;;  %v15909_v10 = vcombine.high %v501_v4, %v517_v5 }
 0x1cf   :  { %6788 = vmatprep.subr.bf16.mxu1 %v16261_v27  ;;  %v6453_v38 = vpop.f32.mrf.mxu0  ;;  %6698 = vmatmul.mubr.bf16.vlgmr.msra.gmra.mxu0 %v17896_v16  ;;  %v16100_v27 = vcombine.low %v693_v12, %v709_v13  ;;  %v16069_v29 = vcombine.high %v661_v23, %v677_v24  ;;  %v469_v12 = vld [vmem:[#allocation2 + $0xb30] sm:$0xff] }
 0x1d0   :  { %6748 = vmatpush1.bf16.msra.mxu0 %v15748_v32  ;;  %6779 = vmatprep.mubr.bf16.mxu0 %v17884_v58  ;;  %v629_v32 = vld [vmem:[#allocation2 + $0x1030] sm:$0xff] }
 0x1d1   :  { %v6494_v41 = vpop.f32.mrf.mxu1  ;;  %6739 = vmatmul.mubr.bf16.vlgmr.msra.gmra.mxu1 %v17898_v19  ;;  %v6455_v44 = vpop.f32.mrf.mxu0  ;;  %6749 = vmatprep.subr.bf16.mxu0 %v15717_v34  ;;  %v15556_v34 = vcombine.low %v149_v21, %v165_v22  ;;  %v485_v13 = vld [vmem:[#allocation2 + $0xbb0] sm:$0xff] }
 0x1d2   :  { %v17930_v43 = vadd.f32 %v6494_v41, %v6453_v38  ;;  %6789 = vmatpush1.bf16.msra.mxu1 %v16260_v33  ;;  %6820 = vmatprep.mubr.bf16.mxu1 %v17886_v59  ;;  %v645_v33 = vld [vmem:[#allocation2 + $0x10b0] sm:$0xff]  ;;  %v15877_v21 = vcombine.high %v469_v12, %v485_v13 }
 0x1d3   :  { %v6496_v47 = vpop.f32.mrf.mxu1  ;;  %6790 = vmatprep.subr.bf16.mxu1 %v16229_v35  ;;  %v6457_v52 = vpop.f32.mrf.mxu0  ;;  %v16068_v35 = vcombine.low %v661_v23, %v677_v24  ;;  %v16037_v37 = vcombine.high %v629_v32, %v645_v33  ;;  %v597_v38 = vld [vmem:[#allocation2 + $0xf30] sm:$0xff] }
 0x1d4   :  { %v17933_v51 = vadd.f32 %v6496_v47, %v6455_v44  ;;  %6750 = vmatpush1.bf16.msra.mxu0 %v15716_v42  ;;  %v1125_v41 = vld [vmem:[#allocation2 + $0x1fb0] sm:$0xff]  ;;  %v15524_v42 = vcombine.low %v117_v30, %v133_v31  ;;  %v16036_v44 = vcombine.low %v629_v32, %v645_v33  ;;  %v16004_v52 = vcombine.low %v597_v38, %v613_v39 }
 0x1d5   :  { %v6498_v56 = vpop.f32.mrf.mxu1  ;;  %v6458_v60 = vpop.f32.mrf.mxu0  ;;  %6751 = vmatprep.subr.bf16.mxu0 %v15685_v46  ;;  %v16517_v46 = vcombine.high %v1109_v40, %v1125_v41  ;;  %v565_v47 = vld [vmem:[#allocation2 + $0xe30] sm:$0xff]  ;;  %v16516_v53 = vcombine.low %v1109_v40, %v1125_v41 }
 0x1d6   :  { %6791 = vmatpush1.bf16.msra.mxu1 %v16228_v45  ;;  %v16005_v45 = vcombine.high %v597_v38, %v613_v39  ;;  %v16485_v56 = vcombine.high %v1077_v49, %v1093_v50  ;;  %v549_v60 = vld [vmem:[#allocation2 + $0xdb0] sm:$0xff] }
 0x1d7   :  { %v6499_v63 = vpop.f32.mrf.mxu1  ;;  %6792 = vmatprep.subr.bf16.mxu1 %v16197_v48  ;;  %v581_v48 = vld [vmem:[#allocation2 + $0xeb0] sm:$0xff] }
 0x1d8   :  { %6752 = vmatpush1.bf16.msra.mxu0 %v15684_v57  ;;  %v15973_v54 = vcombine.high %v565_v47, %v581_v48  ;;  %v533_v57 = vld [vmem:[#allocation2 + $0xd30] sm:$0xff]  ;;  %v15972_v63 = vcombine.low %v565_v47, %v581_v48 }
 0x1d9   :  { %6753 = vmatprep.subr.bf16.mxu0 %v15653_v62  ;;  %v1061_v62 = vld [vmem:[#allocation2 + $0x1db0] sm:$0xff]  ;;  %v15941_v2 = vcombine.high %v533_v57, %v549_v60 }
 0x1da   :  { %6793 = vmatpush1.bf16.msra.mxu1 %v16196_v61  ;;  %v1045_v61 = vld [vmem:[#allocation2 + $0x1d30] sm:$0xff] }
 0x1db   :  { %6794 = vmatprep.subr.bf16.mxu1 %v16165_v0  ;;  %v16484_v0 = vcombine.low %v1077_v49, %v1093_v50  ;;  %v16453_v3 = vcombine.high %v1045_v61, %v1061_v62  ;;  %v437_v23 = vld [vmem:[#allocation2 + $0xa30] sm:$0xff]  ;;  %v342_v49 = vld [vmem:[#allocation2 + $0x738] sm:$0xff] }
 0x1dc   :  { %6754 = vmatpush1.bf16.msra.mxu0 %v15652_v6  ;;  %v1013_v6 = vld [vmem:[#allocation2 + $0x1c30] sm:$0xff]  ;;  %v358_v50 = vld [vmem:[#allocation2 + $0x7b8] sm:$0xff] }
 0x1dd   :  { %6755 = vmatprep.subr.bf16.mxu0 %v15621_v8  ;;  %v15940_v8 = vcombine.low %v533_v57, %v549_v60  ;;  %v453_v24 = vld [vmem:[#allocation2 + $0xab0] sm:$0xff]  ;;  %v15751_v57 = vcombine.high %v342_v49, %v358_v50 }
 0x1de   :  { %6795 = vmatpush1.bf16.msra.mxu1 %v16164_v7  ;;  %v1029_v7 = vld [vmem:[#allocation2 + $0x1cb0] sm:$0xff]  ;;  %v15845_v30 = vcombine.high %v437_v23, %v453_v24 }
 0x1df   :  { %6796 = vmatprep.subr.bf16.mxu1 %v16133_v9  ;;  %v16452_v9 = vcombine.low %v1045_v61, %v1061_v62  ;;  %v16421_v11 = vcombine.high %v1013_v6, %v1029_v7  ;;  %v405_v32 = vld [vmem:[#allocation2 + $0x930] sm:$0xff]  ;;  %v310_v61 = vld [vmem:[#allocation2 + $0x638] sm:$0xff] }
 0x1e0   :  { %6756 = vmatpush1.bf16.msra.mxu0 %v15620_v14  ;;  %v981_v14 = vld [vmem:[#allocation2 + $0x1b30] sm:$0xff]  ;;  %v326_v62 = vld [vmem:[#allocation2 + $0x6b8] sm:$0xff] }
 0x1e1   :  { %6757 = vmatprep.subr.bf16.mxu0 %v15589_v18  ;;  %v15908_v18 = vcombine.low %v501_v4, %v517_v5  ;;  %v421_v33 = vld [vmem:[#allocation2 + $0x9b0] sm:$0xff]  ;;  %v15719_v4 = vcombine.high %v310_v61, %v326_v62 }
 0x1e2   :  { %6797 = vmatpush1.bf16.msra.mxu1 %v16132_v17  ;;  %v997_v17 = vld [vmem:[#allocation2 + $0x1bb0] sm:$0xff]  ;;  %v15813_v38 = vcombine.high %v405_v32, %v421_v33 }
 0x1e3   :  { %6798 = vmatprep.subr.bf16.mxu1 %v16101_v20  ;;  %v16420_v20 = vcombine.low %v1013_v6, %v1029_v7  ;;  %v16389_v22 = vcombine.high %v981_v14, %v997_v17  ;;  %v373_v40 = vld [vmem:[#allocation2 + $0x830] sm:$0xff]  ;;  %v278_v6 = vld [vmem:[#allocation2 + $0x538] sm:$0xff] }
 0x1e4   :  { %6758 = vmatpush1.bf16.msra.mxu0 %v15588_v26  ;;  %v949_v26 = vld [vmem:[#allocation2 + $0x1a30] sm:$0xff]  ;;  %v294_v7 = vld [vmem:[#allocation2 + $0x5b8] sm:$0xff] }
 0x1e5   :  { %6759 = vmatprep.subr.bf16.mxu0 %v15557_v28  ;;  %v15876_v28 = vcombine.low %v469_v12, %v485_v13  ;;  %v389_v41 = vld [vmem:[#allocation2 + $0x8b0] sm:$0xff]  ;;  %v15718_v12 = vcombine.low %v310_v61, %v326_v62 }
 0x1e6   :  { %6799 = vmatpush1.bf16.msra.mxu1 %v16100_v27  ;;  %v965_v27 = vld [vmem:[#allocation2 + $0x1ab0] sm:$0xff]  ;;  %v15781_v47 = vcombine.high %v373_v40, %v389_v41 }
 0x1e7   :  { %6800 = vmatprep.subr.bf16.mxu1 %v16069_v29  ;;  %v16388_v29 = vcombine.low %v981_v14, %v997_v17  ;;  %v16357_v31 = vcombine.high %v949_v26, %v965_v27 }
 0x1e8   :  { %6760 = vmatpush1.bf16.msra.mxu0 %v15556_v34  ;;  %v917_v34 = vld [vmem:[#allocation2 + $0x1930] sm:$0xff] }
 0x1e9   :  { %6761 = vmatprep.subr.bf16.mxu0 %v15525_v36  ;;  %v15844_v36 = vcombine.low %v437_v23, %v453_v24  ;;  %v262_v23 = vld [vmem:[#allocation2 + $0x4b8] sm:$0xff] }
 0x1ea   :  { %6801 = vmatpush1.bf16.msra.mxu1 %v16068_v35  ;;  %v933_v35 = vld [vmem:[#allocation2 + $0x19b0] sm:$0xff] }
 0x1eb   :  { %6802 = vmatprep.subr.bf16.mxu1 %v16037_v37  ;;  %v16356_v37 = vcombine.low %v949_v26, %v965_v27  ;;  %v16325_v39 = vcombine.high %v917_v34, %v933_v35  ;;  %v758_v27 = vld [vmem:[#allocation2 + $0x1438] sm:$0xff] }
 0x1ec   :  { %6762 = vmatpush1.bf16.msra.mxu0 %v15524_v42  ;;  %v885_v42 = vld [vmem:[#allocation2 + $0x1830] sm:$0xff] }
 0x1ed   :  { %6763 = vmatprep.subr.bf16.mxu0 %v16005_v45  ;;  %v15812_v45 = vcombine.low %v405_v32, %v421_v33 }
 0x1ee   :  { %6803 = vmatpush1.bf16.msra.mxu1 %v16036_v44  ;;  %v901_v44 = vld [vmem:[#allocation2 + $0x18b0] sm:$0xff] }
 0x1ef   :  { %6804 = vmatprep.subr.bf16.mxu1 %v16517_v46  ;;  %v16324_v46 = vcombine.low %v917_v34, %v933_v35  ;;  %v16293_v48 = vcombine.high %v885_v42, %v901_v44 }
 0x1f0   :  { %6764 = vmatpush2.bf16.msra.mxu0 %v16004_v52  ;;  %v854_v52 = vld [vmem:[#allocation2 + $0x1738] sm:$0xff] }
 0x1f1   :  { %6765 = vmatprep.subr.bf16.mxu0 %v15973_v54  ;;  %v15780_v54 = vcombine.low %v373_v40, %v389_v41 }
 0x1f2   :  { %6805 = vmatpush2.bf16.msra.mxu1 %v16516_v53  ;;  %v870_v53 = vld [vmem:[#allocation2 + $0x17b8] sm:$0xff] }
 0x1f3   :  { %6806 = vmatprep.subr.bf16.mxu1 %v16485_v56  ;;  %v16292_v56 = vcombine.low %v885_v42, %v901_v44  ;;  %v16263_v60 = vcombine.high %v854_v52, %v870_v53 }
 0x1f4   :  { %6766 = vmatpush2.bf16.msra.mxu0 %v15972_v63  ;;  %v822_v63 = vld [vmem:[#allocation2 + $0x1638] sm:$0xff] }
 0x1f5   :  { %6767 = vmatprep.subr.bf16.mxu0 %v15941_v2  ;;  %v15750_v2 = vcombine.low %v342_v49, %v358_v50 }
 0x1f6   :  { %6807 = vmatpush2.bf16.msra.mxu1 %v16484_v0  ;;  %v838_v0 = vld [vmem:[#allocation2 + $0x16b8] sm:$0xff] }
 0x1f7   :  { %6808 = vmatprep.subr.bf16.mxu1 %v16453_v3  ;;  %v16262_v3 = vcombine.low %v854_v52, %v870_v53  ;;  %v16231_v5 = vcombine.high %v822_v63, %v838_v0  ;;  %v16230_v17 = vcombine.low %v822_v63, %v838_v0 }
 0x1f8   :  { %6768 = vmatpush2.bf16.msra.mxu0 %v15940_v8 }
 0x1f9   :  { %6769 = vmatprep.subr.bf16.mxu0 %v15909_v10  ;;  %v806_v10 = vld [vmem:[#allocation2 + $0x15b8] sm:$0xff] }
 0x1fa   :  { %6809 = vmatpush2.bf16.msra.mxu1 %v16452_v9  ;;  %v790_v9 = vld [vmem:[#allocation2 + $0x1538] sm:$0xff] }
 0x1fb   :  { %6810 = vmatprep.subr.bf16.mxu1 %v16421_v11  ;;  %v16198_v32 = vcombine.low %v790_v9, %v806_v10 }
 0x1fc   :  { %6770 = vmatpush2.bf16.msra.mxu0 %v15908_v18  ;;  %v15687_v18 = vcombine.high %v278_v6, %v294_v7 }
 0x1fd   :  { %6771 = vmatprep.subr.bf16.mxu0 %v15877_v21  ;;  %v16199_v21 = vcombine.high %v790_v9, %v806_v10  ;;  %v598_v10 = vld [vmem:[#allocation2 + $0xf38] sm:$0xff] }
 0x1fe   :  { %6811 = vmatpush2.bf16.msra.mxu1 %v16420_v20 }
 0x1ff   :  { %6812 = vmatprep.subr.bf16.mxu1 %v16389_v22  ;;  %v246_v22 = vld [vmem:[#allocation2 + $0x438] sm:$0xff] }
 0x200   :  { %6772 = vmatpush2.bf16.msra.mxu0 %v15876_v28  ;;  %v774_v28 = vld [vmem:[#allocation2 + $0x14b8] sm:$0xff]  ;;  %v15655_v33 = vcombine.high %v246_v22, %v262_v23  ;;  %v15654_v40 = vcombine.low %v246_v22, %v262_v23 }
 0x201   :  { %6773 = vmatprep.subr.bf16.mxu0 %v15845_v30  ;;  %v15686_v30 = vcombine.low %v278_v6, %v294_v7  ;;  %v16167_v35 = vcombine.high %v758_v27, %v774_v28  ;;  %v16166_v41 = vcombine.low %v758_v27, %v774_v28  ;;  %v566_v22 = vld [vmem:[#allocation2 + $0xe38] sm:$0xff] }
 0x202   :  { %6813 = vmatpush2.bf16.msra.mxu1 %v16388_v29  ;;  %v582_v23 = vld [vmem:[#allocation2 + $0xeb8] sm:$0xff] }
 0x203   :  { %6814 = vmatprep.subr.bf16.mxu1 %v16357_v31  ;;  %v1094_v27 = vld [vmem:[#allocation2 + $0x1eb8] sm:$0xff] }
 0x204   :  { %6774 = vmatpush2.bf16.msra.mxu0 %v15844_v36  ;;  %v214_v36 = vld [vmem:[#allocation2 + $0x338] sm:$0xff] }
 0x205   :  { %6775 = vmatprep.subr.bf16.mxu0 %v15813_v38  ;;  %v726_v38 = vld [vmem:[#allocation2 + $0x1338] sm:$0xff] }
 0x206   :  { %6815 = vmatpush2.bf16.msra.mxu1 %v16356_v37  ;;  %v230_v37 = vld [vmem:[#allocation2 + $0x3b8] sm:$0xff] }
 0x207   :  { %6816 = vmatprep.subr.bf16.mxu1 %v16325_v39  ;;  %v742_v39 = vld [vmem:[#allocation2 + $0x13b8] sm:$0xff]  ;;  %v15623_v42 = vcombine.high %v214_v36, %v230_v37  ;;  %v15622_v49 = vcombine.low %v214_v36, %v230_v37  ;;  %v15974_v36 = vcombine.low %v566_v22, %v582_v23 }
 0x208   :  { %6776 = vmatpush2.bf16.msra.mxu0 %v15812_v45  ;;  %v16135_v44 = vcombine.high %v726_v38, %v742_v39  ;;  %v182_v45 = vld [vmem:[#allocation2 + $0x238] sm:$0xff]  ;;  %v16134_v50 = vcombine.low %v726_v38, %v742_v39 }
 0x209   :  { %6777 = vmatprep.subr.bf16.mxu0 %v15781_v47  ;;  %v694_v47 = vld [vmem:[#allocation2 + $0x1238] sm:$0xff] }
 0x20a   :  { %6817 = vmatpush2.bf16.msra.mxu1 %v16324_v46  ;;  %v198_v46 = vld [vmem:[#allocation2 + $0x2b8] sm:$0xff] }
 0x20b   :  { %6818 = vmatprep.subr.bf16.mxu1 %v16293_v48  ;;  %v710_v48 = vld [vmem:[#allocation2 + $0x12b8] sm:$0xff]  ;;  %v15591_v52 = vcombine.high %v182_v45, %v198_v46  ;;  %v15590_v61 = vcombine.low %v182_v45, %v198_v46 }
 0x20c   :  { %6778 = vmatpush2.bf16.msra.mxu0 %v15780_v54  ;;  %v16103_v53 = vcombine.high %v694_v47, %v710_v48  ;;  %v150_v54 = vld [vmem:[#allocation2 + $0x138] sm:$0xff]  ;;  %v16102_v62 = vcombine.low %v694_v47, %v710_v48 }
 0x20d   :  { %6829 = vmatprep.subr.bf16.mxu0 %v15751_v57  ;;  %v662_v57 = vld [vmem:[#allocation2 + $0x1138] sm:$0xff] }
 0x20e   :  { %6819 = vmatpush2.bf16.msra.mxu1 %v16292_v56  ;;  %v166_v56 = vld [vmem:[#allocation2 + $0x1b8] sm:$0xff] }
 0x20f   :  { %6870 = vmatprep.subr.bf16.mxu1 %v16263_v60  ;;  %v6535_v8 = vpop.f32.mrf.mxu0  ;;  %6780 = vmatmul.mubr.bf16.vlgmr.msra.gmra.mxu0 %v17896_v16  ;;  %v678_v60 = vld [vmem:[#allocation2 + $0x11b8] sm:$0xff]  ;;  %v15559_v63 = vcombine.high %v150_v54, %v166_v56  ;;  %v15558_v6 = vcombine.low %v150_v54, %v166_v56 }
 0x210   :  { %6830 = vmatpush1.bf16.msra.mxu0 %v15750_v2  ;;  %6861 = vmatprep.mubr.bf16.mxu0 %v17884_v58  ;;  %v16071_v0 = vcombine.high %v662_v57, %v678_v60  ;;  %v118_v2 = vld [vmem:[#allocation2 + $0x38] sm:$0xff]  ;;  %v16070_v7 = vcombine.low %v662_v57, %v678_v60 }
 0x211   :  { %v6576_v11 = vpop.f32.mrf.mxu1  ;;  %6821 = vmatmul.mubr.bf16.vlgmr.msra.gmra.mxu1 %v17898_v19  ;;  %v6537_v14 = vpop.f32.mrf.mxu0  ;;  %6831 = vmatprep.subr.bf16.mxu0 %v15719_v4  ;;  %v630_v4 = vld [vmem:[#allocation2 + $0x1038] sm:$0xff] }
 0x212   :  { %v17938_v13 = vadd.f32 %v6576_v11, %v6535_v8  ;;  %6871 = vmatpush1.bf16.msra.mxu1 %v16262_v3  ;;  %6902 = vmatprep.mubr.bf16.mxu1 %v17886_v59  ;;  %v134_v3 = vld [vmem:[#allocation2 + $0xb8] sm:$0xff] }
 0x213   :  { %v6578_v20 = vpop.f32.mrf.mxu1  ;;  %6872 = vmatprep.subr.bf16.mxu1 %v16231_v5  ;;  %v6539_v26 = vpop.f32.mrf.mxu0  ;;  %v646_v5 = vld [vmem:[#allocation2 + $0x10b8] sm:$0xff]  ;;  %v15527_v8 = vcombine.high %v118_v2, %v134_v3 }
 0x214   :  { %v17941_v24 = vadd.f32 %v6578_v20, %v6537_v14  ;;  %6832 = vmatpush1.bf16.msra.mxu0 %v15718_v12  ;;  %v16039_v9 = vcombine.high %v630_v4, %v646_v5  ;;  %v614_v11 = vld [vmem:[#allocation2 + $0xfb8] sm:$0xff] }
 0x215   :  { %v6580_v29 = vpop.f32.mrf.mxu1  ;;  %v6540_v31 = vpop.f32.mrf.mxu0  ;;  %6833 = vmatprep.subr.bf16.mxu0 %v15687_v18  ;;  %v1110_v12 = vld [vmem:[#allocation2 + $0x1f38] sm:$0xff]  ;;  %v16038_v18 = vcombine.low %v630_v4, %v646_v5  ;;  %v16007_v20 = vcombine.high %v598_v10, %v614_v11  ;;  %v16006_v28 = vcombine.low %v598_v10, %v614_v11 }
 0x216   :  { %6873 = vmatpush1.bf16.msra.mxu1 %v16230_v17  ;;  %v1126_v14 = vld [vmem:[#allocation2 + $0x1fb8] sm:$0xff]  ;;  %v15526_v17 = vcombine.low %v118_v2, %v134_v3 }
 0x217   :  { %v6581_v34 = vpop.f32.mrf.mxu1  ;;  %6874 = vmatprep.subr.bf16.mxu1 %v16199_v21  ;;  %v16519_v21 = vcombine.high %v1110_v12, %v1126_v14  ;;  %v1078_v26 = vld [vmem:[#allocation2 + $0x1e38] sm:$0xff]  ;;  %v16518_v29 = vcombine.low %v1110_v12, %v1126_v14 }
 0x218   :  { %6834 = vmatpush1.bf16.msra.mxu0 %v15686_v30  ;;  %v15975_v30 = vcombine.high %v566_v22, %v582_v23  ;;  %v16487_v31 = vcombine.high %v1078_v26, %v1094_v27  ;;  %v1046_v34 = vld [vmem:[#allocation2 + $0x1d38] sm:$0xff]  ;;  %v16486_v37 = vcombine.low %v1078_v26, %v1094_v27 }
 0x219   :  { %6835 = vmatprep.subr.bf16.mxu0 %v15655_v33  ;;  %v550_v33 = vld [vmem:[#allocation2 + $0xdb8] sm:$0xff] }
 0x21a   :  { %6875 = vmatpush1.bf16.msra.mxu1 %v16198_v32  ;;  %v534_v32 = vld [vmem:[#allocation2 + $0xd38] sm:$0xff] }
 0x21b   :  { %6876 = vmatprep.subr.bf16.mxu1 %v16167_v35  ;;  %v1062_v35 = vld [vmem:[#allocation2 + $0x1db8] sm:$0xff]  ;;  %v15943_v38 = vcombine.high %v534_v32, %v550_v33  ;;  %v15942_v45 = vcombine.low %v534_v32, %v550_v33 }
 0x21c   :  { %6836 = vmatpush1.bf16.msra.mxu0 %v15654_v40  ;;  %v16455_v39 = vcombine.high %v1046_v34, %v1062_v35  ;;  %v502_v40 = vld [vmem:[#allocation2 + $0xc38] sm:$0xff]  ;;  %v16454_v46 = vcombine.low %v1046_v34, %v1062_v35 }
 0x21d   :  { %6837 = vmatprep.subr.bf16.mxu0 %v15623_v42  ;;  %v1014_v42 = vld [vmem:[#allocation2 + $0x1c38] sm:$0xff] }
 0x21e   :  { %6877 = vmatpush1.bf16.msra.mxu1 %v16166_v41  ;;  %v518_v41 = vld [vmem:[#allocation2 + $0xcb8] sm:$0xff] }
 0x21f   :  { %6878 = vmatprep.subr.bf16.mxu1 %v16135_v44  ;;  %v1030_v44 = vld [vmem:[#allocation2 + $0x1cb8] sm:$0xff]  ;;  %v15911_v47 = vcombine.high %v502_v40, %v518_v41  ;;  %v15910_v54 = vcombine.low %v502_v40, %v518_v41 }
 0x220   :  { %6838 = vmatpush1.bf16.msra.mxu0 %v15622_v49  ;;  %v16423_v48 = vcombine.high %v1014_v42, %v1030_v44  ;;  %v470_v49 = vld [vmem:[#allocation2 + $0xb38] sm:$0xff]  ;;  %v16422_v56 = vcombine.low %v1014_v42, %v1030_v44 }
 0x221   :  { %6839 = vmatprep.subr.bf16.mxu0 %v15591_v52  ;;  %v982_v52 = vld [vmem:[#allocation2 + $0x1b38] sm:$0xff] }
 0x222   :  { %6879 = vmatpush1.bf16.msra.mxu1 %v16134_v50  ;;  %v486_v50 = vld [vmem:[#allocation2 + $0xbb8] sm:$0xff] }
 0x223   :  { %6880 = vmatprep.subr.bf16.mxu1 %v16103_v53  ;;  %v998_v53 = vld [vmem:[#allocation2 + $0x1bb8] sm:$0xff]  ;;  %v15879_v57 = vcombine.high %v470_v49, %v486_v50  ;;  %v15878_v2 = vcombine.low %v470_v49, %v486_v50  ;;  %v807_v49 = vld [vmem:[#allocation2 + $0x15c0] sm:$0xff] }
 0x224   :  { %6840 = vmatpush1.bf16.msra.mxu0 %v15590_v61  ;;  %v16391_v60 = vcombine.high %v982_v52, %v998_v53  ;;  %v438_v61 = vld [vmem:[#allocation2 + $0xa38] sm:$0xff]  ;;  %v16390_v3 = vcombine.low %v982_v52, %v998_v53 }
 0x225   :  { %6841 = vmatprep.subr.bf16.mxu0 %v15559_v63  ;;  %v950_v63 = vld [vmem:[#allocation2 + $0x1a38] sm:$0xff] }
 0x226   :  { %6881 = vmatpush1.bf16.msra.mxu1 %v16102_v62  ;;  %v454_v62 = vld [vmem:[#allocation2 + $0xab8] sm:$0xff] }
 0x227   :  { %6882 = vmatprep.subr.bf16.mxu1 %v16071_v0  ;;  %v966_v0 = vld [vmem:[#allocation2 + $0x1ab8] sm:$0xff]  ;;  %v15847_v4 = vcombine.high %v438_v61, %v454_v62  ;;  %v15846_v10 = vcombine.low %v438_v61, %v454_v62  ;;  %v247_v62 = vld [vmem:[#allocation2 + $0x440] sm:$0xff] }
 0x228   :  { %6842 = vmatpush1.bf16.msra.mxu0 %v15558_v6  ;;  %v16359_v5 = vcombine.high %v950_v63, %v966_v0  ;;  %v406_v6 = vld [vmem:[#allocation2 + $0x938] sm:$0xff]  ;;  %v16358_v11 = vcombine.low %v950_v63, %v966_v0  ;;  %v263_v63 = vld [vmem:[#allocation2 + $0x4c0] sm:$0xff] }
 0x229   :  { %6843 = vmatprep.subr.bf16.mxu0 %v15527_v8  ;;  %v918_v8 = vld [vmem:[#allocation2 + $0x1938] sm:$0xff] }
 0x22a   :  { %6883 = vmatpush1.bf16.msra.mxu1 %v16070_v7  ;;  %v422_v7 = vld [vmem:[#allocation2 + $0x9b8] sm:$0xff] }
 0x22b   :  { %6884 = vmatprep.subr.bf16.mxu1 %v16039_v9  ;;  %v934_v9 = vld [vmem:[#allocation2 + $0x19b8] sm:$0xff]  ;;  %v15815_v12 = vcombine.high %v406_v6, %v422_v7  ;;  %v15814_v22 = vcombine.low %v406_v6, %v422_v7 }
 0x22c   :  { %6844 = vmatpush1.bf16.msra.mxu0 %v15526_v17  ;;  %v16327_v14 = vcombine.high %v918_v8, %v934_v9  ;;  %v374_v17 = vld [vmem:[#allocation2 + $0x838] sm:$0xff]  ;;  %v16326_v23 = vcombine.low %v918_v8, %v934_v9 }
 0x22d   :  { %6845 = vmatprep.subr.bf16.mxu0 %v16007_v20  ;;  %v886_v20 = vld [vmem:[#allocation2 + $0x1838] sm:$0xff] }
 0x22e   :  { %6885 = vmatpush1.bf16.msra.mxu1 %v16038_v18  ;;  %v390_v18 = vld [vmem:[#allocation2 + $0x8b8] sm:$0xff] }
 0x22f   :  { %6886 = vmatprep.subr.bf16.mxu1 %v16519_v21  ;;  %v902_v21 = vld [vmem:[#allocation2 + $0x18b8] sm:$0xff]  ;;  %v15783_v26 = vcombine.high %v374_v17, %v390_v18  ;;  %v15782_v32 = vcombine.low %v374_v17, %v390_v18  ;;  %v215_v17 = vld [vmem:[#allocation2 + $0x340] sm:$0xff] }
 0x230   :  { %6846 = vmatpush2.bf16.msra.mxu0 %v16006_v28  ;;  %v16295_v27 = vcombine.high %v886_v20, %v902_v21  ;;  %v343_v28 = vld [vmem:[#allocation2 + $0x740] sm:$0xff]  ;;  %v16294_v33 = vcombine.low %v886_v20, %v902_v21 }
 0x231   :  { %6847 = vmatprep.subr.bf16.mxu0 %v15975_v30  ;;  %v855_v30 = vld [vmem:[#allocation2 + $0x1740] sm:$0xff] }
 0x232   :  { %6887 = vmatpush2.bf16.msra.mxu1 %v16518_v29  ;;  %v359_v29 = vld [vmem:[#allocation2 + $0x7c0] sm:$0xff] }
 0x233   :  { %6888 = vmatprep.subr.bf16.mxu1 %v16487_v31  ;;  %v871_v31 = vld [vmem:[#allocation2 + $0x17c0] sm:$0xff]  ;;  %v15753_v34 = vcombine.high %v343_v28, %v359_v29  ;;  %v15752_v40 = vcombine.low %v343_v28, %v359_v29 }
 0x234   :  { %6848 = vmatpush2.bf16.msra.mxu0 %v15974_v36  ;;  %v16265_v35 = vcombine.high %v855_v30, %v871_v31  ;;  %v311_v36 = vld [vmem:[#allocation2 + $0x640] sm:$0xff]  ;;  %v16264_v41 = vcombine.low %v855_v30, %v871_v31 }
 0x235   :  { %6849 = vmatprep.subr.bf16.mxu0 %v15943_v38  ;;  %v823_v38 = vld [vmem:[#allocation2 + $0x1640] sm:$0xff] }
 0x236   :  { %6889 = vmatpush2.bf16.msra.mxu1 %v16486_v37  ;;  %v327_v37 = vld [vmem:[#allocation2 + $0x6c0] sm:$0xff] }
 0x237   :  { %6890 = vmatprep.subr.bf16.mxu1 %v16455_v39  ;;  %v839_v39 = vld [vmem:[#allocation2 + $0x16c0] sm:$0xff]  ;;  %v15721_v42 = vcombine.high %v311_v36, %v327_v37  ;;  %v15720_v52 = vcombine.low %v311_v36, %v327_v37 }
 0x238   :  { %6850 = vmatpush2.bf16.msra.mxu0 %v15942_v45  ;;  %v16233_v44 = vcombine.high %v823_v38, %v839_v39  ;;  %v279_v45 = vld [vmem:[#allocation2 + $0x540] sm:$0xff] }
 0x239   :  { %6851 = vmatprep.subr.bf16.mxu0 %v15911_v47  ;;  %v231_v18 = vld [vmem:[#allocation2 + $0x3c0] sm:$0xff] }
 0x23a   :  { %6891 = vmatpush2.bf16.msra.mxu1 %v16454_v46  ;;  %v295_v46 = vld [vmem:[#allocation2 + $0x5c0] sm:$0xff] }
 0x23b   :  { %6892 = vmatprep.subr.bf16.mxu1 %v16423_v48  ;;  %v791_v48 = vld [vmem:[#allocation2 + $0x1540] sm:$0xff]  ;;  %v15688_v7 = vcombine.low %v279_v45, %v295_v46 }
 0x23c   :  { %6852 = vmatpush2.bf16.msra.mxu0 %v15910_v54  ;;  %v16201_v61 = vcombine.high %v791_v48, %v807_v49  ;;  %v727_v20 = vld [vmem:[#allocation2 + $0x1340] sm:$0xff] }
 0x23d   :  { %6853 = vmatprep.subr.bf16.mxu0 %v15879_v57  ;;  %v15689_v57 = vcombine.high %v279_v45, %v295_v46  ;;  %v743_v21 = vld [vmem:[#allocation2 + $0x13c0] sm:$0xff] }
 0x23e   :  { %6893 = vmatpush2.bf16.msra.mxu1 %v16422_v56  ;;  %v16232_v56 = vcombine.low %v823_v38, %v839_v39  ;;  %v183_v28 = vld [vmem:[#allocation2 + $0x240] sm:$0xff] }
 0x23f   :  { %6894 = vmatprep.subr.bf16.mxu1 %v16391_v60  ;;  %v199_v29 = vld [vmem:[#allocation2 + $0x2c0] sm:$0xff] }
 0x240   :  { %6854 = vmatpush2.bf16.msra.mxu0 %v15878_v2  ;;  %v695_v30 = vld [vmem:[#allocation2 + $0x1240] sm:$0xff] }
 0x241   :  { %6855 = vmatprep.subr.bf16.mxu0 %v15847_v4  ;;  %v759_v4 = vld [vmem:[#allocation2 + $0x1440] sm:$0xff] }
 0x242   :  { %6895 = vmatpush2.bf16.msra.mxu1 %v16390_v3  ;;  %v711_v31 = vld [vmem:[#allocation2 + $0x12c0] sm:$0xff] }
 0x243   :  { %6896 = vmatprep.subr.bf16.mxu1 %v16359_v5  ;;  %v775_v5 = vld [vmem:[#allocation2 + $0x14c0] sm:$0xff] }
 0x244   :  { %6856 = vmatpush2.bf16.msra.mxu0 %v15846_v10  ;;  %v16200_v10 = vcombine.low %v791_v48, %v807_v49  ;;  %v151_v36 = vld [vmem:[#allocation2 + $0x140] sm:$0xff] }
 0x245   :  { %6857 = vmatprep.subr.bf16.mxu0 %v15815_v12  ;;  %v167_v37 = vld [vmem:[#allocation2 + $0x1c0] sm:$0xff] }
 0x246   :  { %6897 = vmatpush2.bf16.msra.mxu1 %v16358_v11  ;;  %v15657_v11 = vcombine.high %v247_v62, %v263_v63  ;;  %v663_v38 = vld [vmem:[#allocation2 + $0x1140] sm:$0xff]  ;;  %v15560_v49 = vcombine.low %v151_v36, %v167_v37 }
 0x247   :  { %6898 = vmatprep.subr.bf16.mxu1 %v16327_v14  ;;  %v16169_v14 = vcombine.high %v759_v4, %v775_v5  ;;  %v679_v39 = vld [vmem:[#allocation2 + $0x11c0] sm:$0xff] }
 0x248   :  { %6858 = vmatpush2.bf16.msra.mxu0 %v15814_v22  ;;  %v15656_v22 = vcombine.low %v247_v62, %v263_v63  ;;  %v119_v45 = vld [vmem:[#allocation2 + $0x40] sm:$0xff] }
 0x249   :  { %6859 = vmatprep.subr.bf16.mxu0 %v15783_v26  ;;  %v15625_v26 = vcombine.high %v215_v17, %v231_v18  ;;  %v135_v46 = vld [vmem:[#allocation2 + $0xc0] sm:$0xff] }
 0x24a   :  { %6899 = vmatpush2.bf16.msra.mxu1 %v16326_v23  ;;  %v16168_v23 = vcombine.low %v759_v4, %v775_v5  ;;  %v647_v48 = vld [vmem:[#allocation2 + $0x10c0] sm:$0xff]  ;;  %v15528_v62 = vcombine.low %v119_v45, %v135_v46 }
 0x24b   :  { %6900 = vmatprep.subr.bf16.mxu1 %v16295_v27  ;;  %v16137_v27 = vcombine.high %v727_v20, %v743_v21  ;;  %v567_v5 = vld [vmem:[#allocation2 + $0xe40] sm:$0xff] }
 0x24c   :  { %6860 = vmatpush2.bf16.msra.mxu0 %v15782_v32  ;;  %v15624_v32 = vcombine.low %v215_v17, %v231_v18  ;;  %v535_v17 = vld [vmem:[#allocation2 + $0xd40] sm:$0xff] }
 0x24d   :  { %6911 = vmatprep.subr.bf16.mxu0 %v15753_v34  ;;  %v15593_v34 = vcombine.high %v183_v28, %v199_v29  ;;  %v551_v18 = vld [vmem:[#allocation2 + $0xdc0] sm:$0xff] }
 0x24e   :  { %6901 = vmatpush2.bf16.msra.mxu1 %v16294_v33  ;;  %v16136_v33 = vcombine.low %v727_v20, %v743_v21  ;;  %v1047_v20 = vld [vmem:[#allocation2 + $0x1d40] sm:$0xff] }
 0x24f   :  { %6952 = vmatprep.subr.bf16.mxu1 %v16265_v35  ;;  %v6617_v47 = vpop.f32.mrf.mxu0  ;;  %6862 = vmatmul.mubr.bf16.vlgmr.msra.gmra.mxu0 %v17896_v16  ;;  %v16105_v35 = vcombine.high %v695_v30, %v711_v31  ;;  %v1063_v21 = vld [vmem:[#allocation2 + $0x1dc0] sm:$0xff] }
 0x250   :  { %6912 = vmatpush1.bf16.msra.mxu0 %v15752_v40  ;;  %6943 = vmatprep.mubr.bf16.mxu0 %v17884_v58  ;;  %v15592_v40 = vcombine.low %v183_v28, %v199_v29  ;;  %v503_v28 = vld [vmem:[#allocation2 + $0xc40] sm:$0xff] }
 0x251   :  { %v6658_v50 = vpop.f32.mrf.mxu1  ;;  %6903 = vmatmul.mubr.bf16.vlgmr.msra.gmra.mxu1 %v17898_v19  ;;  %v6619_v54 = vpop.f32.mrf.mxu0  ;;  %6913 = vmatprep.subr.bf16.mxu0 %v15721_v42  ;;  %v15561_v42 = vcombine.high %v151_v36, %v167_v37  ;;  %v519_v29 = vld [vmem:[#allocation2 + $0xcc0] sm:$0xff] }
 0x252   :  { %v17946_v53 = vadd.f32 %v6658_v50, %v6617_v47  ;;  %6953 = vmatpush1.bf16.msra.mxu1 %v16264_v41  ;;  %6984 = vmatprep.mubr.bf16.mxu1 %v17886_v59  ;;  %v16104_v41 = vcombine.low %v695_v30, %v711_v31  ;;  %v631_v47 = vld [vmem:[#allocation2 + $0x1040] sm:$0xff]  ;;  %v16072_v50 = vcombine.low %v663_v38, %v679_v39 }
 0x253   :  { %v6660_v60 = vpop.f32.mrf.mxu1  ;;  %6954 = vmatprep.subr.bf16.mxu1 %v16233_v44  ;;  %v6621_v3 = vpop.f32.mrf.mxu0  ;;  %v16073_v44 = vcombine.high %v663_v38, %v679_v39  ;;  %v16040_v63 = vcombine.low %v631_v47, %v647_v48  ;;  %v1015_v30 = vld [vmem:[#allocation2 + $0x1c40] sm:$0xff] }
 0x254   :  { %v7567_v0 = vmax.f32 %v17914_v55, %v17946_v53  ;;  %v17951_v2 = vadd.f32 %v6660_v60, %v6619_v54  ;;  %6914 = vmatpush1.bf16.msra.mxu0 %v15720_v52  ;;  %v15529_v52 = vcombine.high %v119_v45, %v135_v46  ;;  %v16041_v54 = vcombine.high %v631_v47, %v647_v48  ;;  %v1111_v60 = vld [vmem:[#allocation2 + $0x1f40] sm:$0xff] }
 0x255   :  { %v6662_v6 = vpop.f32.mrf.mxu1  ;;  %v6622_v9 = vpop.f32.mrf.mxu0  ;;  %6915 = vmatprep.subr.bf16.mxu0 %v15689_v57  ;;  %v615_v57 = vld [vmem:[#allocation2 + $0xfc0] sm:$0xff] }
 0x256   :  { %v7568_v8 = vmax.f32 %v17917_v1, %v17951_v2  ;;  %6955 = vmatpush1.bf16.msra.mxu1 %v16232_v56  ;;  %v599_v56 = vld [vmem:[#allocation2 + $0xf40] sm:$0xff] }
 0x257   :  { %v6663_v12 = vpop.f32.mrf.mxu1  ;;  %6956 = vmatprep.subr.bf16.mxu1 %v16201_v61  ;;  %v1127_v61 = vld [vmem:[#allocation2 + $0x1fc0] sm:$0xff]  ;;  %v16009_v3 = vcombine.high %v599_v56, %v615_v57 }
 0x258   :  { %6916 = vmatpush1.bf16.msra.mxu0 %v15688_v7  ;;  %v16521_v4 = vcombine.high %v1111_v60, %v1127_v61  ;;  %v583_v6 = vld [vmem:[#allocation2 + $0xec0] sm:$0xff] }
 0x259   :  { %6917 = vmatprep.subr.bf16.mxu0 %v15657_v11  ;;  %v1079_v7 = vld [vmem:[#allocation2 + $0x1e40] sm:$0xff]  ;;  %v16520_v11 = vcombine.low %v1111_v60, %v1127_v61  ;;  %v15977_v12 = vcombine.high %v567_v5, %v583_v6 }
 0x25a   :  { %6957 = vmatpush1.bf16.msra.mxu1 %v16200_v10  ;;  %v1095_v9 = vld [vmem:[#allocation2 + $0x1ec0] sm:$0xff]  ;;  %v16008_v10 = vcombine.low %v599_v56, %v615_v57 }
 0x25b   :  { %6958 = vmatprep.subr.bf16.mxu1 %v16169_v14  ;;  %v16489_v14 = vcombine.high %v1079_v7, %v1095_v9  ;;  %v1031_v31 = vld [vmem:[#allocation2 + $0x1cc0] sm:$0xff] }
 0x25c   :  { %6918 = vmatpush1.bf16.msra.mxu0 %v15656_v22  ;;  %v15976_v22 = vcombine.low %v567_v5, %v583_v6  ;;  %v471_v36 = vld [vmem:[#allocation2 + $0xb40] sm:$0xff] }
 0x25d   :  { %6919 = vmatprep.subr.bf16.mxu0 %v15625_v26  ;;  %v15945_v26 = vcombine.high %v535_v17, %v551_v18  ;;  %v487_v37 = vld [vmem:[#allocation2 + $0xbc0] sm:$0xff] }
 0x25e   :  { %6959 = vmatpush1.bf16.msra.mxu1 %v16168_v23  ;;  %v16488_v23 = vcombine.low %v1079_v7, %v1095_v9  ;;  %v983_v38 = vld [vmem:[#allocation2 + $0x1b40] sm:$0xff] }
 0x25f   :  { %6960 = vmatprep.subr.bf16.mxu1 %v16137_v27  ;;  %v16457_v27 = vcombine.high %v1047_v20, %v1063_v21  ;;  %v999_v39 = vld [vmem:[#allocation2 + $0x1bc0] sm:$0xff] }
 0x260   :  { %6920 = vmatpush1.bf16.msra.mxu0 %v15624_v32  ;;  %v15944_v32 = vcombine.low %v535_v17, %v551_v18  ;;  %v439_v45 = vld [vmem:[#allocation2 + $0xa40] sm:$0xff]  ;;  %v344_v17 = vld [vmem:[#allocation2 + $0x748] sm:$0xff] }
 0x261   :  { %6921 = vmatprep.subr.bf16.mxu0 %v15593_v34  ;;  %v15913_v34 = vcombine.high %v503_v28, %v519_v29  ;;  %v455_v46 = vld [vmem:[#allocation2 + $0xac0] sm:$0xff]  ;;  %v360_v18 = vld [vmem:[#allocation2 + $0x7c8] sm:$0xff] }
 0x262   :  { %6961 = vmatpush1.bf16.msra.mxu1 %v16136_v33  ;;  %v16456_v33 = vcombine.low %v1047_v20, %v1063_v21  ;;  %v951_v47 = vld [vmem:[#allocation2 + $0x1a40] sm:$0xff]  ;;  %v856_v20 = vld [vmem:[#allocation2 + $0x1748] sm:$0xff] }
 0x263   :  { %6962 = vmatprep.subr.bf16.mxu1 %v16105_v35  ;;  %v16425_v35 = vcombine.high %v1015_v30, %v1031_v31  ;;  %v967_v48 = vld [vmem:[#allocation2 + $0x1ac0] sm:$0xff]  ;;  %v872_v21 = vld [vmem:[#allocation2 + $0x17c8] sm:$0xff] }
 0x264   :  { %6922 = vmatpush1.bf16.msra.mxu0 %v15592_v40  ;;  %v15912_v40 = vcombine.low %v503_v28, %v519_v29  ;;  %v407_v56 = vld [vmem:[#allocation2 + $0x940] sm:$0xff]  ;;  %v312_v28 = vld [vmem:[#allocation2 + $0x648] sm:$0xff] }
 0x265   :  { %6923 = vmatprep.subr.bf16.mxu0 %v15561_v42  ;;  %v15881_v42 = vcombine.high %v471_v36, %v487_v37  ;;  %v423_v57 = vld [vmem:[#allocation2 + $0x9c0] sm:$0xff]  ;;  %v328_v29 = vld [vmem:[#allocation2 + $0x6c8] sm:$0xff] }
 0x266   :  { %6963 = vmatpush1.bf16.msra.mxu1 %v16104_v41  ;;  %v16424_v41 = vcombine.low %v1015_v30, %v1031_v31  ;;  %v919_v60 = vld [vmem:[#allocation2 + $0x1940] sm:$0xff]  ;;  %v824_v30 = vld [vmem:[#allocation2 + $0x1648] sm:$0xff] }
 0x267   :  { %6964 = vmatprep.subr.bf16.mxu1 %v16073_v44  ;;  %v16393_v44 = vcombine.high %v983_v38, %v999_v39  ;;  %v935_v61 = vld [vmem:[#allocation2 + $0x19c0] sm:$0xff]  ;;  %v840_v31 = vld [vmem:[#allocation2 + $0x16c8] sm:$0xff] }
 0x268   :  { %6924 = vmatpush1.bf16.msra.mxu0 %v15560_v49  ;;  %v15880_v49 = vcombine.low %v471_v36, %v487_v37  ;;  %v375_v5 = vld [vmem:[#allocation2 + $0x840] sm:$0xff]  ;;  %v280_v36 = vld [vmem:[#allocation2 + $0x548] sm:$0xff] }
 0x269   :  { %6925 = vmatprep.subr.bf16.mxu0 %v15529_v52  ;;  %v15849_v52 = vcombine.high %v439_v45, %v455_v46  ;;  %v391_v6 = vld [vmem:[#allocation2 + $0x8c0] sm:$0xff]  ;;  %v296_v37 = vld [vmem:[#allocation2 + $0x5c8] sm:$0xff] }
 0x26a   :  { %6965 = vmatpush1.bf16.msra.mxu1 %v16072_v50  ;;  %v16392_v50 = vcombine.low %v983_v38, %v999_v39  ;;  %v887_v7 = vld [vmem:[#allocation2 + $0x1840] sm:$0xff]  ;;  %v792_v39 = vld [vmem:[#allocation2 + $0x1548] sm:$0xff] }
 0x26b   :  { %6966 = vmatprep.subr.bf16.mxu1 %v16041_v54  ;;  %v16361_v54 = vcombine.high %v951_v47, %v967_v48  ;;  %v903_v9 = vld [vmem:[#allocation2 + $0x18c0] sm:$0xff] }
 0x26c   :  { %6926 = vmatpush1.bf16.msra.mxu0 %v15528_v62  ;;  %v15848_v62 = vcombine.low %v439_v45, %v455_v46  ;;  %v16234_v46 = vcombine.low %v824_v30, %v840_v31 }
 0x26d   :  { %6927 = vmatprep.subr.bf16.mxu0 %v16009_v3  ;;  %v15817_v3 = vcombine.high %v407_v56, %v423_v57 }
 0x26e   :  { %6967 = vmatpush1.bf16.msra.mxu1 %v16040_v63  ;;  %v16360_v63 = vcombine.low %v951_v47, %v967_v48  ;;  %v15691_v47 = vcombine.high %v280_v36, %v296_v37 }
 0x26f   :  { %6968 = vmatprep.subr.bf16.mxu1 %v16521_v4  ;;  %v16329_v4 = vcombine.high %v919_v60, %v935_v61 }
 0x270   :  { %6928 = vmatpush2.bf16.msra.mxu0 %v16008_v10  ;;  %v15816_v10 = vcombine.low %v407_v56, %v423_v57 }
 0x271   :  { %6929 = vmatprep.subr.bf16.mxu0 %v15977_v12  ;;  %v15785_v12 = vcombine.high %v375_v5, %v391_v6 }
 0x272   :  { %6969 = vmatpush2.bf16.msra.mxu1 %v16520_v11  ;;  %v16328_v11 = vcombine.low %v919_v60, %v935_v61  ;;  %v760_v60 = vld [vmem:[#allocation2 + $0x1448] sm:$0xff] }
 0x273   :  { %6970 = vmatprep.subr.bf16.mxu1 %v16489_v14  ;;  %v16297_v14 = vcombine.high %v887_v7, %v903_v9  ;;  %v776_v61 = vld [vmem:[#allocation2 + $0x14c8] sm:$0xff] }
 0x274   :  { %6930 = vmatpush2.bf16.msra.mxu0 %v15976_v22  ;;  %v15784_v22 = vcombine.low %v375_v5, %v391_v6 }
 0x275   :  { %6931 = vmatprep.subr.bf16.mxu0 %v15945_v26  ;;  %v15755_v26 = vcombine.high %v344_v17, %v360_v18 }
 0x276   :  { %6971 = vmatpush2.bf16.msra.mxu1 %v16488_v23  ;;  %v16296_v23 = vcombine.low %v887_v7, %v903_v9  ;;  %v16171_v9 = vcombine.high %v760_v60, %v776_v61 }
 0x277   :  { %6972 = vmatprep.subr.bf16.mxu1 %v16457_v27  ;;  %v16267_v27 = vcombine.high %v856_v20, %v872_v21 }
 0x278   :  { %6932 = vmatpush2.bf16.msra.mxu0 %v15944_v32  ;;  %v15754_v32 = vcombine.low %v344_v17, %v360_v18  ;;  %v16170_v18 = vcombine.low %v760_v60, %v776_v61  ;;  %v1128_v60 = vld [vmem:[#allocation2 + $0x1fc8] sm:$0xff] }
 0x279   :  { %6933 = vmatprep.subr.bf16.mxu0 %v15913_v34  ;;  %v15723_v34 = vcombine.high %v312_v28, %v328_v29 }
 0x27a   :  { %6973 = vmatpush2.bf16.msra.mxu1 %v16456_v33  ;;  %v16266_v33 = vcombine.low %v856_v20, %v872_v21 }
 0x27b   :  { %6974 = vmatprep.subr.bf16.mxu1 %v16425_v35  ;;  %v16235_v35 = vcombine.high %v824_v30, %v840_v31 }
 0x27c   :  { %6934 = vmatpush2.bf16.msra.mxu0 %v15912_v40  ;;  %v808_v40 = vld [vmem:[#allocation2 + $0x15c8] sm:$0xff] }
 0x27d   :  { %6935 = vmatprep.subr.bf16.mxu0 %v15881_v42  ;;  %v15722_v42 = vcombine.low %v312_v28, %v328_v29  ;;  %v16202_v5 = vcombine.low %v792_v39, %v808_v40 }
 0x27e   :  { %6975 = vmatpush2.bf16.msra.mxu1 %v16424_v41 }
 0x27f   :  { %6976 = vmatprep.subr.bf16.mxu1 %v16393_v44 }
 0x280   :  { %6936 = vmatpush2.bf16.msra.mxu0 %v15880_v49  ;;  %v16203_v49 = vcombine.high %v792_v39, %v808_v40  ;;  %v120_v40 = vld [vmem:[#allocation2 + $0x48] sm:$0xff] }
 0x281   :  { %6937 = vmatprep.subr.bf16.mxu0 %v15849_v52  ;;  %v264_v52 = vld [vmem:[#allocation2 + $0x4c8] sm:$0xff] }
 0x282   :  { %6977 = vmatpush2.bf16.msra.mxu1 %v16392_v50  ;;  %v248_v50 = vld [vmem:[#allocation2 + $0x448] sm:$0xff] }
 0x283   :  { %6978 = vmatprep.subr.bf16.mxu1 %v16361_v54  ;;  %v15659_v6 = vcombine.high %v248_v50, %v264_v52  ;;  %v15658_v17 = vcombine.low %v248_v50, %v264_v52  ;;  %v600_v50 = vld [vmem:[#allocation2 + $0xf48] sm:$0xff] }
 0x284   :  { %6938 = vmatpush2.bf16.msra.mxu0 %v15848_v62  ;;  %v616_v52 = vld [vmem:[#allocation2 + $0xfc8] sm:$0xff] }
 0x285   :  { %6939 = vmatprep.subr.bf16.mxu0 %v15817_v3 }
 0x286   :  { %6979 = vmatpush2.bf16.msra.mxu1 %v16360_v63  ;;  %v15690_v63 = vcombine.low %v280_v36, %v296_v37 }
 0x287   :  { %6980 = vmatprep.subr.bf16.mxu1 %v16329_v4 }
 0x288   :  { %6940 = vmatpush2.bf16.msra.mxu0 %v15816_v10  ;;  %v216_v10 = vld [vmem:[#allocation2 + $0x348] sm:$0xff] }
 0x289   :  { %6941 = vmatprep.subr.bf16.mxu0 %v15785_v12  ;;  %v728_v12 = vld [vmem:[#allocation2 + $0x1348] sm:$0xff] }
 0x28a   :  { %6981 = vmatpush2.bf16.msra.mxu1 %v16328_v11  ;;  %v232_v11 = vld [vmem:[#allocation2 + $0x3c8] sm:$0xff] }
 0x28b   :  { %6982 = vmatprep.subr.bf16.mxu1 %v16297_v14  ;;  %v744_v14 = vld [vmem:[#allocation2 + $0x13c8] sm:$0xff]  ;;  %v15627_v20 = vcombine.high %v216_v10, %v232_v11  ;;  %v15626_v28 = vcombine.low %v216_v10, %v232_v11  ;;  %v16010_v10 = vcombine.low %v600_v50, %v616_v52 }
 0x28c   :  { %6942 = vmatpush2.bf16.msra.mxu0 %v15784_v22  ;;  %v16139_v21 = vcombine.high %v728_v12, %v744_v14  ;;  %v184_v22 = vld [vmem:[#allocation2 + $0x248] sm:$0xff]  ;;  %v16138_v29 = vcombine.low %v728_v12, %v744_v14 }
 0x28d   :  { %6993 = vmatprep.subr.bf16.mxu0 %v15755_v26  ;;  %v696_v26 = vld [vmem:[#allocation2 + $0x1248] sm:$0xff] }
 0x28e   :  { %6983 = vmatpush2.bf16.msra.mxu1 %v16296_v23  ;;  %v200_v23 = vld [vmem:[#allocation2 + $0x2c8] sm:$0xff] }
 0x28f   :  { %7034 = vmatprep.subr.bf16.mxu1 %v16267_v27  ;;  %v6699_v38 = vpop.f32.mrf.mxu0  ;;  %6944 = vmatmul.mubr.bf16.vlgmr.msra.gmra.mxu0 %v17896_v16  ;;  %v712_v27 = vld [vmem:[#allocation2 + $0x12c8] sm:$0xff]  ;;  %v15595_v30 = vcombine.high %v184_v22, %v200_v23  ;;  %v15594_v36 = vcombine.low %v184_v22, %v200_v23 }
 0x290   :  { %6994 = vmatpush1.bf16.msra.mxu0 %v15754_v32  ;;  %7025 = vmatprep.mubr.bf16.mxu0 %v17884_v58  ;;  %v16107_v31 = vcombine.high %v696_v26, %v712_v27  ;;  %v152_v32 = vld [vmem:[#allocation2 + $0x148] sm:$0xff]  ;;  %v16106_v37 = vcombine.low %v696_v26, %v712_v27 }
 0x291   :  { %v6740_v41 = vpop.f32.mrf.mxu1  ;;  %6985 = vmatmul.mubr.bf16.vlgmr.msra.gmra.mxu1 %v17898_v19  ;;  %v6701_v45 = vpop.f32.mrf.mxu0  ;;  %6995 = vmatprep.subr.bf16.mxu0 %v15723_v34  ;;  %v664_v34 = vld [vmem:[#allocation2 + $0x1148] sm:$0xff] }
 0x292   :  { %v17958_v44 = vadd.f32 %v6740_v41, %v6699_v38  ;;  %7035 = vmatpush1.bf16.msra.mxu1 %v16266_v33  ;;  %7066 = vmatprep.mubr.bf16.mxu1 %v17886_v59  ;;  %v168_v33 = vld [vmem:[#allocation2 + $0x1c8] sm:$0xff] }
 0x293   :  { %v6742_v48 = vpop.f32.mrf.mxu1  ;;  %7036 = vmatprep.subr.bf16.mxu1 %v16235_v35  ;;  %v6703_v57 = vpop.f32.mrf.mxu0  ;;  %v680_v35 = vld [vmem:[#allocation2 + $0x11c8] sm:$0xff]  ;;  %v15563_v38 = vcombine.high %v152_v32, %v168_v33 }
 0x294   :  { %v7569_v54 = vmax.f32 %v17922_v15, %v17958_v44  ;;  %v17963_v56 = vadd.f32 %v6742_v48, %v6701_v45  ;;  %6996 = vmatpush1.bf16.msra.mxu0 %v15722_v42  ;;  %v16075_v39 = vcombine.high %v664_v34, %v680_v35  ;;  %v136_v41 = vld [vmem:[#allocation2 + $0xc8] sm:$0xff] }
 0x295   :  { %v6744_v62 = vpop.f32.mrf.mxu1  ;;  %v6704_v4 = vpop.f32.mrf.mxu0  ;;  %6997 = vmatprep.subr.bf16.mxu0 %v15691_v47  ;;  %v632_v42 = vld [vmem:[#allocation2 + $0x1048] sm:$0xff]  ;;  %v16074_v47 = vcombine.low %v664_v34, %v680_v35  ;;  %v15531_v48 = vcombine.high %v120_v40, %v136_v41  ;;  %v15530_v61 = vcombine.low %v120_v40, %v136_v41 }
 0x296   :  { %v7570_v3 = vmax.f32 %v17925_v25, %v17963_v56  ;;  %7037 = vmatpush1.bf16.msra.mxu1 %v16234_v46  ;;  %v648_v45 = vld [vmem:[#allocation2 + $0x10c8] sm:$0xff]  ;;  %v15562_v46 = vcombine.low %v152_v32, %v168_v33  ;;  %v18081_v56 = vld [vmem:[#allocation6 + $0xb88] sm:$0xff] }
 0x297   :  { %v6745_v7 = vpop.f32.mrf.mxu1  ;;  %7038 = vmatprep.subr.bf16.mxu1 %v16203_v49  ;;  %v16043_v49 = vcombine.high %v632_v42, %v648_v45  ;;  %v1112_v57 = vld [vmem:[#allocation2 + $0x1f48] sm:$0xff]  ;;  %v16042_v62 = vcombine.low %v632_v42, %v648_v45 }
 0x298   :  { %6998 = vmatpush1.bf16.msra.mxu0 %v15690_v63  ;;  %v16011_v63 = vcombine.high %v600_v50, %v616_v52  ;;  %v16523_v4 = vcombine.high %v1112_v57, %v1128_v60  ;;  %v1080_v7 = vld [vmem:[#allocation2 + $0x1e48] sm:$0xff]  ;;  %v16522_v11 = vcombine.low %v1112_v57, %v1128_v60 }
 0x299   :  { %6999 = vmatprep.subr.bf16.mxu0 %v15659_v6  ;;  %v584_v6 = vld [vmem:[#allocation2 + $0xec8] sm:$0xff] }
 0x29a   :  { %7039 = vmatpush1.bf16.msra.mxu1 %v16202_v5  ;;  %v568_v5 = vld [vmem:[#allocation2 + $0xe48] sm:$0xff] }
 0x29b   :  { %7040 = vmatprep.subr.bf16.mxu1 %v16171_v9  ;;  %v1096_v9 = vld [vmem:[#allocation2 + $0x1ec8] sm:$0xff]  ;;  %v15979_v12 = vcombine.high %v568_v5, %v584_v6  ;;  %v15978_v22 = vcombine.low %v568_v5, %v584_v6 }
 0x29c   :  { %7000 = vmatpush1.bf16.msra.mxu0 %v15658_v17  ;;  %v16491_v14 = vcombine.high %v1080_v7, %v1096_v9  ;;  %v536_v17 = vld [vmem:[#allocation2 + $0xd48] sm:$0xff]  ;;  %v16490_v23 = vcombine.low %v1080_v7, %v1096_v9 }
 0x29d   :  { %7001 = vmatprep.subr.bf16.mxu0 %v15627_v20  ;;  %v1048_v20 = vld [vmem:[#allocation2 + $0x1d48] sm:$0xff] }
 0x29e   :  { %7041 = vmatpush1.bf16.msra.mxu1 %v16170_v18  ;;  %v552_v18 = vld [vmem:[#allocation2 + $0xdc8] sm:$0xff] }
 0x29f   :  { %7042 = vmatprep.subr.bf16.mxu1 %v16139_v21  ;;  %v1064_v21 = vld [vmem:[#allocation2 + $0x1dc8] sm:$0xff]  ;;  %v15947_v26 = vcombine.high %v536_v17, %v552_v18  ;;  %v15946_v32 = vcombine.low %v536_v17, %v552_v18 }
 0x2a0   :  { %7002 = vmatpush1.bf16.msra.mxu0 %v15626_v28  ;;  %v16459_v27 = vcombine.high %v1048_v20, %v1064_v21  ;;  %v504_v28 = vld [vmem:[#allocation2 + $0xc48] sm:$0xff]  ;;  %v16458_v33 = vcombine.low %v1048_v20, %v1064_v21 }
 0x2a1   :  { %7003 = vmatprep.subr.bf16.mxu0 %v15595_v30  ;;  %v1016_v30 = vld [vmem:[#allocation2 + $0x1c48] sm:$0xff] }
 0x2a2   :  { %7043 = vmatpush1.bf16.msra.mxu1 %v16138_v29  ;;  %v520_v29 = vld [vmem:[#allocation2 + $0xcc8] sm:$0xff] }
 0x2a3   :  { %7044 = vmatprep.subr.bf16.mxu1 %v16107_v31  ;;  %v1032_v31 = vld [vmem:[#allocation2 + $0x1cc8] sm:$0xff]  ;;  %v15915_v34 = vcombine.high %v504_v28, %v520_v29  ;;  %v15914_v40 = vcombine.low %v504_v28, %v520_v29 }
 0x2a4   :  { %7004 = vmatpush1.bf16.msra.mxu0 %v15594_v36  ;;  %v16427_v35 = vcombine.high %v1016_v30, %v1032_v31  ;;  %v472_v36 = vld [vmem:[#allocation2 + $0xb48] sm:$0xff]  ;;  %v16426_v41 = vcombine.low %v1016_v30, %v1032_v31 }
 0x2a5   :  { %7005 = vmatprep.subr.bf16.mxu0 %v15563_v38  ;;  %v984_v38 = vld [vmem:[#allocation2 + $0x1b48] sm:$0xff] }
 0x2a6   :  { %7045 = vmatpush1.bf16.msra.mxu1 %v16106_v37  ;;  %v488_v37 = vld [vmem:[#allocation2 + $0xbc8] sm:$0xff] }
 0x2a7   :  { %7046 = vmatprep.subr.bf16.mxu1 %v16075_v39  ;;  %v1000_v39 = vld [vmem:[#allocation2 + $0x1bc8] sm:$0xff]  ;;  %v15883_v42 = vcombine.high %v472_v36, %v488_v37  ;;  %v15882_v50 = vcombine.low %v472_v36, %v488_v37 }
 0x2a8   :  { %7006 = vmatpush1.bf16.msra.mxu0 %v15562_v46  ;;  %v16395_v45 = vcombine.high %v984_v38, %v1000_v39  ;;  %v440_v46 = vld [vmem:[#allocation2 + $0xa48] sm:$0xff]  ;;  %v16394_v52 = vcombine.low %v984_v38, %v1000_v39 }
 0x2a9   :  { %7007 = vmatprep.subr.bf16.mxu0 %v15531_v48  ;;  %v952_v48 = vld [vmem:[#allocation2 + $0x1a48] sm:$0xff] }
 0x2aa   :  { %7047 = vmatpush1.bf16.msra.mxu1 %v16074_v47  ;;  %v456_v47 = vld [vmem:[#allocation2 + $0xac8] sm:$0xff] }
 0x2ab   :  { %7048 = vmatprep.subr.bf16.mxu1 %v16043_v49  ;;  %v968_v49 = vld [vmem:[#allocation2 + $0x1ac8] sm:$0xff]  ;;  %v15851_v57 = vcombine.high %v440_v46, %v456_v47  ;;  %v15850_v5 = vcombine.low %v440_v46, %v456_v47  ;;  %v809_v46 = vld [vmem:[#allocation2 + $0x15d0] sm:$0xff] }
 0x2ac   :  { %7008 = vmatpush1.bf16.msra.mxu0 %v15530_v61  ;;  %v16363_v60 = vcombine.high %v952_v48, %v968_v49  ;;  %v408_v61 = vld [vmem:[#allocation2 + $0x948] sm:$0xff]  ;;  %v16362_v6 = vcombine.low %v952_v48, %v968_v49 }
 0x2ad   :  { %7009 = vmatprep.subr.bf16.mxu0 %v16011_v63  ;;  %v920_v63 = vld [vmem:[#allocation2 + $0x1948] sm:$0xff] }
 0x2ae   :  { %7049 = vmatpush1.bf16.msra.mxu1 %v16042_v62  ;;  %v424_v62 = vld [vmem:[#allocation2 + $0x9c8] sm:$0xff] }
 0x2af   :  { %7050 = vmatprep.subr.bf16.mxu1 %v16523_v4  ;;  %v936_v4 = vld [vmem:[#allocation2 + $0x19c8] sm:$0xff]  ;;  %v15819_v7 = vcombine.high %v408_v61, %v424_v62  ;;  %v15818_v17 = vcombine.low %v408_v61, %v424_v62  ;;  %v249_v62 = vld [vmem:[#allocation2 + $0x450] sm:$0xff] }
 0x2b0   :  { %7010 = vmatpush2.bf16.msra.mxu0 %v16010_v10  ;;  %v16331_v9 = vcombine.high %v920_v63, %v936_v4  ;;  %v376_v10 = vld [vmem:[#allocation2 + $0x848] sm:$0xff]  ;;  %v16330_v18 = vcombine.low %v920_v63, %v936_v4  ;;  %v265_v63 = vld [vmem:[#allocation2 + $0x4d0] sm:$0xff] }
 0x2b1   :  { %7011 = vmatprep.subr.bf16.mxu0 %v15979_v12  ;;  %v888_v12 = vld [vmem:[#allocation2 + $0x1848] sm:$0xff] }
 0x2b2   :  { %7051 = vmatpush2.bf16.msra.mxu1 %v16522_v11  ;;  %v392_v11 = vld [vmem:[#allocation2 + $0x8c8] sm:$0xff] }
 0x2b3   :  { %7052 = vmatprep.subr.bf16.mxu1 %v16491_v14  ;;  %v904_v14 = vld [vmem:[#allocation2 + $0x18c8] sm:$0xff]  ;;  %v15787_v20 = vcombine.high %v376_v10, %v392_v11  ;;  %v15786_v28 = vcombine.low %v376_v10, %v392_v11 }
 0x2b4   :  { %7012 = vmatpush2.bf16.msra.mxu0 %v15978_v22  ;;  %v16299_v21 = vcombine.high %v888_v12, %v904_v14  ;;  %v345_v22 = vld [vmem:[#allocation2 + $0x750] sm:$0xff]  ;;  %v16298_v29 = vcombine.low %v888_v12, %v904_v14 }
 0x2b5   :  { %7013 = vmatprep.subr.bf16.mxu0 %v15947_v26  ;;  %v857_v26 = vld [vmem:[#allocation2 + $0x1750] sm:$0xff] }
 0x2b6   :  { %7053 = vmatpush2.bf16.msra.mxu1 %v16490_v23  ;;  %v361_v23 = vld [vmem:[#allocation2 + $0x7d0] sm:$0xff] }
 0x2b7   :  { %7054 = vmatprep.subr.bf16.mxu1 %v16459_v27  ;;  %v873_v27 = vld [vmem:[#allocation2 + $0x17d0] sm:$0xff]  ;;  %v15757_v30 = vcombine.high %v345_v22, %v361_v23  ;;  %v15756_v36 = vcombine.low %v345_v22, %v361_v23 }
 0x2b8   :  { %7014 = vmatpush2.bf16.msra.mxu0 %v15946_v32  ;;  %v16269_v31 = vcombine.high %v857_v26, %v873_v27  ;;  %v313_v32 = vld [vmem:[#allocation2 + $0x650] sm:$0xff]  ;;  %v16268_v37 = vcombine.low %v857_v26, %v873_v27 }
 0x2b9   :  { %7015 = vmatprep.subr.bf16.mxu0 %v15915_v34  ;;  %v825_v34 = vld [vmem:[#allocation2 + $0x1650] sm:$0xff] }
 0x2ba   :  { %7055 = vmatpush2.bf16.msra.mxu1 %v16458_v33  ;;  %v329_v33 = vld [vmem:[#allocation2 + $0x6d0] sm:$0xff] }
 0x2bb   :  { %7056 = vmatprep.subr.bf16.mxu1 %v16427_v35  ;;  %v841_v35 = vld [vmem:[#allocation2 + $0x16d0] sm:$0xff]  ;;  %v15725_v38 = vcombine.high %v313_v32, %v329_v33  ;;  %v15724_v48 = vcombine.low %v313_v32, %v329_v33 }
 0x2bc   :  { %7016 = vmatpush2.bf16.msra.mxu0 %v15914_v40  ;;  %v16237_v39 = vcombine.high %v825_v34, %v841_v35  ;;  %v281_v40 = vld [vmem:[#allocation2 + $0x550] sm:$0xff] }
 0x2bd   :  { %7017 = vmatprep.subr.bf16.mxu0 %v15883_v42  ;;  %v217_v22 = vld [vmem:[#allocation2 + $0x350] sm:$0xff] }
 0x2be   :  { %7057 = vmatpush2.bf16.msra.mxu1 %v16426_v41  ;;  %v297_v41 = vld [vmem:[#allocation2 + $0x5d0] sm:$0xff] }
 0x2bf   :  { %7058 = vmatprep.subr.bf16.mxu1 %v16395_v45  ;;  %v793_v45 = vld [vmem:[#allocation2 + $0x1550] sm:$0xff]  ;;  %v15692_v11 = vcombine.low %v281_v40, %v297_v41 }
 0x2c0   :  { %7018 = vmatpush2.bf16.msra.mxu0 %v15882_v50  ;;  %v16205_v61 = vcombine.high %v793_v45, %v809_v46  ;;  %v233_v23 = vld [vmem:[#allocation2 + $0x3d0] sm:$0xff] }
 0x2c1   :  { %7019 = vmatprep.subr.bf16.mxu0 %v15851_v57  ;;  %v15693_v57 = vcombine.high %v281_v40, %v297_v41  ;;  %v729_v26 = vld [vmem:[#allocation2 + $0x1350] sm:$0xff] }
 0x2c2   :  { %7059 = vmatpush2.bf16.msra.mxu1 %v16394_v52  ;;  %v16236_v52 = vcombine.low %v825_v34, %v841_v35  ;;  %v745_v27 = vld [vmem:[#allocation2 + $0x13d0] sm:$0xff] }
 0x2c3   :  { %7060 = vmatprep.subr.bf16.mxu1 %v16363_v60  ;;  %v185_v32 = vld [vmem:[#allocation2 + $0x250] sm:$0xff] }
 0x2c4   :  { %7020 = vmatpush2.bf16.msra.mxu0 %v15850_v5  ;;  %v201_v33 = vld [vmem:[#allocation2 + $0x2d0] sm:$0xff] }
 0x2c5   :  { %7021 = vmatprep.subr.bf16.mxu0 %v15819_v7  ;;  %v761_v7 = vld [vmem:[#allocation2 + $0x1450] sm:$0xff] }
 0x2c6   :  { %7061 = vmatpush2.bf16.msra.mxu1 %v16362_v6  ;;  %v697_v34 = vld [vmem:[#allocation2 + $0x1250] sm:$0xff] }
 0x2c7   :  { %7062 = vmatprep.subr.bf16.mxu1 %v16331_v9  ;;  %v777_v9 = vld [vmem:[#allocation2 + $0x14d0] sm:$0xff] }
 0x2c8   :  { %7022 = vmatpush2.bf16.msra.mxu0 %v15818_v17  ;;  %v16204_v17 = vcombine.low %v793_v45, %v809_v46  ;;  %v713_v35 = vld [vmem:[#allocation2 + $0x12d0] sm:$0xff]  ;;  %v15596_v46 = vcombine.low %v185_v32, %v201_v33 }
 0x2c9   :  { %7023 = vmatprep.subr.bf16.mxu0 %v15787_v20  ;;  %v153_v40 = vld [vmem:[#allocation2 + $0x150] sm:$0xff] }
 0x2ca   :  { %7063 = vmatpush2.bf16.msra.mxu1 %v16330_v18  ;;  %v15661_v18 = vcombine.high %v249_v62, %v265_v63  ;;  %v169_v41 = vld [vmem:[#allocation2 + $0x1d0] sm:$0xff] }
 0x2cb   :  { %7064 = vmatprep.subr.bf16.mxu1 %v16299_v21  ;;  %v16173_v21 = vcombine.high %v761_v7, %v777_v9  ;;  %v681_v45 = vld [vmem:[#allocation2 + $0x11d0] sm:$0xff] }
 0x2cc   :  { %7024 = vmatpush2.bf16.msra.mxu0 %v15786_v28  ;;  %v15660_v28 = vcombine.low %v249_v62, %v265_v63  ;;  %v15564_v62 = vcombine.low %v153_v40, %v169_v41 }
 0x2cd   :  { %7075 = vmatprep.subr.bf16.mxu0 %v15757_v30  ;;  %v15629_v30 = vcombine.high %v217_v22, %v233_v23 }
 0x2ce   :  { %7065 = vmatpush2.bf16.msra.mxu1 %v16298_v29  ;;  %v16172_v29 = vcombine.low %v761_v7, %v777_v9  ;;  %v601_v9 = vld [vmem:[#allocation2 + $0xf50] sm:$0xff] }
 0x2cf   :  { %7116 = vmatprep.subr.bf16.mxu1 %v16269_v31  ;;  %v6781_v42 = vpop.f32.mrf.mxu0  ;;  %7026 = vmatmul.mubr.bf16.vlgmr.msra.gmra.mxu0 %v17896_v16  ;;  %v16141_v31 = vcombine.high %v729_v26, %v745_v27 }
 0x2d0   :  { %7076 = vmatpush1.bf16.msra.mxu0 %v15756_v36  ;;  %7107 = vmatprep.mubr.bf16.mxu0 %v17884_v58  ;;  %v15628_v36 = vcombine.low %v217_v22, %v233_v23  ;;  %v569_v22 = vld [vmem:[#allocation2 + $0xe50] sm:$0xff] }
 0x2d1   :  { %v6822_v47 = vpop.f32.mrf.mxu1  ;;  %7067 = vmatmul.mubr.bf16.vlgmr.msra.gmra.mxu1 %v17898_v19  ;;  %v6783_v50 = vpop.f32.mrf.mxu0  ;;  %7077 = vmatprep.subr.bf16.mxu0 %v15725_v38  ;;  %v15597_v38 = vcombine.high %v185_v32, %v201_v33  ;;  %v585_v23 = vld [vmem:[#allocation2 + $0xed0] sm:$0xff] }
 0x2d2   :  { %v17970_v49 = vadd.f32 %v6822_v47, %v6781_v42  ;;  %7117 = vmatpush1.bf16.msra.mxu1 %v16268_v37  ;;  %7148 = vmatprep.mubr.bf16.mxu1 %v17886_v59  ;;  %v16140_v37 = vcombine.low %v729_v26, %v745_v27  ;;  %v665_v42 = vld [vmem:[#allocation2 + $0x1150] sm:$0xff]  ;;  %v16108_v47 = vcombine.low %v697_v34, %v713_v35 }
 0x2d3   :  { %v6824_v60 = vpop.f32.mrf.mxu1  ;;  %7118 = vmatprep.subr.bf16.mxu1 %v16237_v39  ;;  %v6785_v6 = vpop.f32.mrf.mxu0  ;;  %v16109_v39 = vcombine.high %v697_v34, %v713_v35  ;;  %v16076_v63 = vcombine.low %v665_v42, %v681_v45  ;;  %v1081_v26 = vld [vmem:[#allocation2 + $0x1e50] sm:$0xff] }
 0x2d4   :  { %v7571_v4 = vmax.f32 %v17930_v43, %v17970_v49  ;;  %v17975_v5 = vadd.f32 %v6824_v60, %v6783_v50  ;;  %7078 = vmatpush1.bf16.msra.mxu0 %v15724_v48  ;;  %v15565_v48 = vcombine.high %v153_v40, %v169_v41  ;;  %v16077_v50 = vcombine.high %v665_v42, %v681_v45  ;;  %v633_v60 = vld [vmem:[#allocation2 + $0x1050] sm:$0xff] }
 0x2d5   :  { %v6826_v10 = vpop.f32.mrf.mxu1  ;;  %v6786_v14 = vpop.f32.mrf.mxu0  ;;  %7079 = vmatprep.subr.bf16.mxu0 %v15693_v57  ;;  %v137_v57 = vld [vmem:[#allocation2 + $0xd0] sm:$0xff] }
 0x2d6   :  { %v7572_v12 = vmax.f32 %v17933_v51, %v17975_v5  ;;  %7119 = vmatpush1.bf16.msra.mxu1 %v16236_v52  ;;  %v121_v52 = vld [vmem:[#allocation2 + $0x50] sm:$0xff] }
 0x2d7   :  { %v6827_v20 = vpop.f32.mrf.mxu1  ;;  %7120 = vmatprep.subr.bf16.mxu1 %v16205_v61  ;;  %v649_v61 = vld [vmem:[#allocation2 + $0x10d0] sm:$0xff]  ;;  %v15533_v6 = vcombine.high %v121_v52, %v137_v57 }
 0x2d8   :  { %7080 = vmatpush1.bf16.msra.mxu0 %v15692_v11  ;;  %v16045_v7 = vcombine.high %v633_v60, %v649_v61  ;;  %v617_v10 = vld [vmem:[#allocation2 + $0xfd0] sm:$0xff] }
 0x2d9   :  { %7081 = vmatprep.subr.bf16.mxu0 %v15661_v18  ;;  %v1113_v11 = vld [vmem:[#allocation2 + $0x1f50] sm:$0xff]  ;;  %v16044_v18 = vcombine.low %v633_v60, %v649_v61  ;;  %v16013_v20 = vcombine.high %v601_v9, %v617_v10 }
 0x2da   :  { %7121 = vmatpush1.bf16.msra.mxu1 %v16204_v17  ;;  %v1129_v14 = vld [vmem:[#allocation2 + $0x1fd0] sm:$0xff]  ;;  %v15532_v17 = vcombine.low %v121_v52, %v137_v57 }
 0x2db   :  { %7122 = vmatprep.subr.bf16.mxu1 %v16173_v21  ;;  %v16525_v21 = vcombine.high %v1113_v11, %v1129_v14  ;;  %v1097_v27 = vld [vmem:[#allocation2 + $0x1ed0] sm:$0xff] }
 0x2dc   :  { %7082 = vmatpush1.bf16.msra.mxu0 %v15660_v28  ;;  %v16012_v28 = vcombine.low %v601_v9, %v617_v10  ;;  %v537_v32 = vld [vmem:[#allocation2 + $0xd50] sm:$0xff] }
 0x2dd   :  { %7083 = vmatprep.subr.bf16.mxu0 %v15629_v30  ;;  %v15981_v30 = vcombine.high %v569_v22, %v585_v23  ;;  %v553_v33 = vld [vmem:[#allocation2 + $0xdd0] sm:$0xff] }
 0x2de   :  { %7123 = vmatpush1.bf16.msra.mxu1 %v16172_v29  ;;  %v16524_v29 = vcombine.low %v1113_v11, %v1129_v14  ;;  %v1049_v34 = vld [vmem:[#allocation2 + $0x1d50] sm:$0xff] }
 0x2df   :  { %7124 = vmatprep.subr.bf16.mxu1 %v16141_v31  ;;  %v16493_v31 = vcombine.high %v1081_v26, %v1097_v27  ;;  %v1065_v35 = vld [vmem:[#allocation2 + $0x1dd0] sm:$0xff] }
 0x2e0   :  { %7084 = vmatpush1.bf16.msra.mxu0 %v15628_v36  ;;  %v15980_v36 = vcombine.low %v569_v22, %v585_v23  ;;  %v505_v40 = vld [vmem:[#allocation2 + $0xc50] sm:$0xff] }
 0x2e1   :  { %7085 = vmatprep.subr.bf16.mxu0 %v15597_v38  ;;  %v15949_v38 = vcombine.high %v537_v32, %v553_v33  ;;  %v521_v41 = vld [vmem:[#allocation2 + $0xcd0] sm:$0xff] }
 0x2e2   :  { %7125 = vmatpush1.bf16.msra.mxu1 %v16140_v37  ;;  %v16492_v37 = vcombine.low %v1081_v26, %v1097_v27  ;;  %v1017_v42 = vld [vmem:[#allocation2 + $0x1c50] sm:$0xff] }
 0x2e3   :  { %7126 = vmatprep.subr.bf16.mxu1 %v16109_v39  ;;  %v16461_v39 = vcombine.high %v1049_v34, %v1065_v35  ;;  %v1033_v45 = vld [vmem:[#allocation2 + $0x1cd0] sm:$0xff] }
 0x2e4   :  { %7086 = vmatpush1.bf16.msra.mxu0 %v15596_v46  ;;  %v15948_v46 = vcombine.low %v537_v32, %v553_v33  ;;  %v473_v52 = vld [vmem:[#allocation2 + $0xb50] sm:$0xff] }
 0x2e5   :  { %7087 = vmatprep.subr.bf16.mxu0 %v15565_v48  ;;  %v15917_v48 = vcombine.high %v505_v40, %v521_v41  ;;  %v489_v57 = vld [vmem:[#allocation2 + $0xbd0] sm:$0xff] }
 0x2e6   :  { %7127 = vmatpush1.bf16.msra.mxu1 %v16108_v47  ;;  %v16460_v47 = vcombine.low %v1049_v34, %v1065_v35  ;;  %v985_v60 = vld [vmem:[#allocation2 + $0x1b50] sm:$0xff] }
 0x2e7   :  { %7128 = vmatprep.subr.bf16.mxu1 %v16077_v50  ;;  %v16429_v50 = vcombine.high %v1017_v42, %v1033_v45  ;;  %v1001_v61 = vld [vmem:[#allocation2 + $0x1bd0] sm:$0xff] }
 0x2e8   :  { %7088 = vmatpush1.bf16.msra.mxu0 %v15564_v62  ;;  %v15916_v62 = vcombine.low %v505_v40, %v521_v41  ;;  %v441_v9 = vld [vmem:[#allocation2 + $0xa50] sm:$0xff]  ;;  %v346_v40 = vld [vmem:[#allocation2 + $0x758] sm:$0xff] }
 0x2e9   :  { %7089 = vmatprep.subr.bf16.mxu0 %v15533_v6  ;;  %v15885_v6 = vcombine.high %v473_v52, %v489_v57  ;;  %v457_v10 = vld [vmem:[#allocation2 + $0xad0] sm:$0xff]  ;;  %v362_v41 = vld [vmem:[#allocation2 + $0x7d8] sm:$0xff] }
 0x2ea   :  { %7129 = vmatpush1.bf16.msra.mxu1 %v16076_v63  ;;  %v16428_v63 = vcombine.low %v1017_v42, %v1033_v45  ;;  %v953_v11 = vld [vmem:[#allocation2 + $0x1a50] sm:$0xff]  ;;  %v858_v42 = vld [vmem:[#allocation2 + $0x1758] sm:$0xff] }
 0x2eb   :  { %7130 = vmatprep.subr.bf16.mxu1 %v16045_v7  ;;  %v16397_v7 = vcombine.high %v985_v60, %v1001_v61  ;;  %v969_v14 = vld [vmem:[#allocation2 + $0x1ad0] sm:$0xff]  ;;  %v874_v45 = vld [vmem:[#allocation2 + $0x17d8] sm:$0xff] }
 0x2ec   :  { %7090 = vmatpush1.bf16.msra.mxu0 %v15532_v17  ;;  %v15884_v17 = vcombine.low %v473_v52, %v489_v57  ;;  %v409_v22 = vld [vmem:[#allocation2 + $0x950] sm:$0xff]  ;;  %v314_v52 = vld [vmem:[#allocation2 + $0x658] sm:$0xff] }
 0x2ed   :  { %7091 = vmatprep.subr.bf16.mxu0 %v16013_v20  ;;  %v15853_v20 = vcombine.high %v441_v9, %v457_v10  ;;  %v425_v23 = vld [vmem:[#allocation2 + $0x9d0] sm:$0xff]  ;;  %v330_v57 = vld [vmem:[#allocation2 + $0x6d8] sm:$0xff] }
 0x2ee   :  { %7131 = vmatpush1.bf16.msra.mxu1 %v16044_v18  ;;  %v16396_v18 = vcombine.low %v985_v60, %v1001_v61  ;;  %v921_v26 = vld [vmem:[#allocation2 + $0x1950] sm:$0xff]  ;;  %v826_v60 = vld [vmem:[#allocation2 + $0x1658] sm:$0xff] }
 0x2ef   :  { %7132 = vmatprep.subr.bf16.mxu1 %v16525_v21  ;;  %v16365_v21 = vcombine.high %v953_v11, %v969_v14  ;;  %v937_v27 = vld [vmem:[#allocation2 + $0x19d0] sm:$0xff]  ;;  %v842_v61 = vld [vmem:[#allocation2 + $0x16d8] sm:$0xff] }
 0x2f0   :  { %7092 = vmatpush2.bf16.msra.mxu0 %v16012_v28  ;;  %v15852_v28 = vcombine.low %v441_v9, %v457_v10  ;;  %v377_v32 = vld [vmem:[#allocation2 + $0x850] sm:$0xff]  ;;  %v282_v9 = vld [vmem:[#allocation2 + $0x558] sm:$0xff] }
 0x2f1   :  { %7093 = vmatprep.subr.bf16.mxu0 %v15981_v30  ;;  %v15821_v30 = vcombine.high %v409_v22, %v425_v23  ;;  %v393_v33 = vld [vmem:[#allocation2 + $0x8d0] sm:$0xff]  ;;  %v298_v10 = vld [vmem:[#allocation2 + $0x5d8] sm:$0xff] }
 0x2f2   :  { %7133 = vmatpush2.bf16.msra.mxu1 %v16524_v29  ;;  %v16364_v29 = vcombine.low %v953_v11, %v969_v14  ;;  %v889_v34 = vld [vmem:[#allocation2 + $0x1850] sm:$0xff]  ;;  %v794_v14 = vld [vmem:[#allocation2 + $0x1558] sm:$0xff] }
 0x2f3   :  { %7134 = vmatprep.subr.bf16.mxu1 %v16493_v31  ;;  %v16333_v31 = vcombine.high %v921_v26, %v937_v27  ;;  %v905_v35 = vld [vmem:[#allocation2 + $0x18d0] sm:$0xff] }
 0x2f4   :  { %7094 = vmatpush2.bf16.msra.mxu0 %v15980_v36  ;;  %v15820_v36 = vcombine.low %v409_v22, %v425_v23  ;;  %v16238_v23 = vcombine.low %v826_v60, %v842_v61  ;;  %v7738_v5 = vld [vmem:[#allocation6 + $0x288] sm:$0xff] }
 0x2f5   :  { %7095 = vmatprep.subr.bf16.mxu0 %v15949_v38  ;;  %v15789_v38 = vcombine.high %v377_v32, %v393_v33 }
 0x2f6   :  { %7135 = vmatpush2.bf16.msra.mxu1 %v16492_v37  ;;  %v16332_v37 = vcombine.low %v921_v26, %v937_v27  ;;  %v15695_v26 = vcombine.high %v282_v9, %v298_v10 }
 0x2f7   :  { %7136 = vmatprep.subr.bf16.mxu1 %v16461_v39  ;;  %v16301_v39 = vcombine.high %v889_v34, %v905_v35 }
 0x2f8   :  { %7096 = vmatpush2.bf16.msra.mxu0 %v15948_v46  ;;  %v15788_v46 = vcombine.low %v377_v32, %v393_v33 }
 0x2f9   :  { %7097 = vmatprep.subr.bf16.mxu0 %v15917_v48  ;;  %v15759_v48 = vcombine.high %v346_v40, %v362_v41 }
 0x2fa   :  { %7137 = vmatpush2.bf16.msra.mxu1 %v16460_v47  ;;  %v16300_v47 = vcombine.low %v889_v34, %v905_v35  ;;  %v762_v34 = vld [vmem:[#allocation2 + $0x1458] sm:$0xff] }
 0x2fb   :  { %7138 = vmatprep.subr.bf16.mxu1 %v16429_v50  ;;  %v16271_v50 = vcombine.high %v858_v42, %v874_v45  ;;  %v778_v35 = vld [vmem:[#allocation2 + $0x14d8] sm:$0xff] }
 0x2fc   :  { %7098 = vmatpush2.bf16.msra.mxu0 %v15916_v62  ;;  %v15758_v62 = vcombine.low %v346_v40, %v362_v41 }
 0x2fd   :  { %7099 = vmatprep.subr.bf16.mxu0 %v15885_v6  ;;  %v15727_v6 = vcombine.high %v314_v52, %v330_v57 }
 0x2fe   :  { %7139 = vmatpush2.bf16.msra.mxu1 %v16428_v63  ;;  %v16270_v63 = vcombine.low %v858_v42, %v874_v45  ;;  %v16175_v45 = vcombine.high %v762_v34, %v778_v35 }
 0x2ff   :  { %7140 = vmatprep.subr.bf16.mxu1 %v16397_v7  ;;  %v16239_v7 = vcombine.high %v826_v60, %v842_v61 }
 0x300   :  { %7100 = vmatpush2.bf16.msra.mxu0 %v15884_v17  ;;  %v810_v17 = vld [vmem:[#allocation2 + $0x15d8] sm:$0xff] }
 0x301   :  { %7101 = vmatprep.subr.bf16.mxu0 %v15853_v20  ;;  %v15726_v20 = vcombine.low %v314_v52, %v330_v57  ;;  %v16206_v40 = vcombine.low %v794_v14, %v810_v17  ;;  %v16174_v57 = vcombine.low %v762_v34, %v778_v35  ;;  %v650_v34 = vld [vmem:[#allocation2 + $0x10d8] sm:$0xff] }
 0x302   :  { %7141 = vmatpush2.bf16.msra.mxu1 %v16396_v18 }
 0x303   :  { %7142 = vmatprep.subr.bf16.mxu1 %v16365_v21 }
 0x304   :  { %7102 = vmatpush2.bf16.msra.mxu0 %v15852_v28  ;;  %v16207_v28 = vcombine.high %v794_v14, %v810_v17  ;;  %v154_v17 = vld [vmem:[#allocation2 + $0x158] sm:$0xff] }
 0x305   :  { %7103 = vmatprep.subr.bf16.mxu0 %v15821_v30  ;;  %v266_v30 = vld [vmem:[#allocation2 + $0x4d8] sm:$0xff] }
 0x306   :  { %7143 = vmatpush2.bf16.msra.mxu1 %v16364_v29  ;;  %v250_v29 = vld [vmem:[#allocation2 + $0x458] sm:$0xff] }
 0x307   :  { %7144 = vmatprep.subr.bf16.mxu1 %v16333_v31  ;;  %v15663_v41 = vcombine.high %v250_v29, %v266_v30  ;;  %v15662_v52 = vcombine.low %v250_v29, %v266_v30  ;;  %v122_v29 = vld [vmem:[#allocation2 + $0x58] sm:$0xff] }
 0x308   :  { %7104 = vmatpush2.bf16.msra.mxu0 %v15820_v36  ;;  %v138_v30 = vld [vmem:[#allocation2 + $0xd8] sm:$0xff] }
 0x309   :  { %7105 = vmatprep.subr.bf16.mxu0 %v15789_v38 }
 0x30a   :  { %7145 = vmatpush2.bf16.msra.mxu1 %v16332_v37  ;;  %v15694_v37 = vcombine.low %v282_v9, %v298_v10 }
 0x30b   :  { %7146 = vmatprep.subr.bf16.mxu1 %v16301_v39 }
 0x30c   :  { %7106 = vmatpush2.bf16.msra.mxu0 %v15788_v46  ;;  %v218_v46 = vld [vmem:[#allocation2 + $0x358] sm:$0xff] }
 0x30d   :  { %7157 = vmatprep.subr.bf16.mxu0 %v15759_v48  ;;  %v730_v48 = vld [vmem:[#allocation2 + $0x1358] sm:$0xff] }
 0x30e   :  { %7147 = vmatpush2.bf16.msra.mxu1 %v16300_v47  ;;  %v234_v47 = vld [vmem:[#allocation2 + $0x3d8] sm:$0xff] }
 0x30f   :  { %7198 = vmatprep.subr.bf16.mxu1 %v16271_v50  ;;  %v6863_v11 = vpop.f32.mrf.mxu0  ;;  %7108 = vmatmul.mubr.bf16.vlgmr.msra.gmra.mxu0 %v17896_v16  ;;  %v746_v50 = vld [vmem:[#allocation2 + $0x13d8] sm:$0xff]  ;;  %v15631_v60 = vcombine.high %v218_v46, %v234_v47  ;;  %v15630_v9 = vcombine.low %v218_v46, %v234_v47  ;;  %v15534_v46 = vcombine.low %v122_v29, %v138_v30 }
 0x310   :  { %7158 = vmatpush1.bf16.msra.mxu0 %v15758_v62  ;;  %7189 = vmatprep.mubr.bf16.mxu0 %v17884_v58  ;;  %v16143_v61 = vcombine.high %v730_v48, %v746_v50  ;;  %v186_v62 = vld [vmem:[#allocation2 + $0x258] sm:$0xff]  ;;  %v16142_v10 = vcombine.low %v730_v48, %v746_v50 }
 0x311   :  { %v6904_v18 = vpop.f32.mrf.mxu1  ;;  %7149 = vmatmul.mubr.bf16.vlgmr.msra.gmra.mxu1 %v17898_v19  ;;  %v6865_v22 = vpop.f32.mrf.mxu0  ;;  %7159 = vmatprep.subr.bf16.mxu0 %v15727_v6  ;;  %v698_v6 = vld [vmem:[#allocation2 + $0x1258] sm:$0xff] }
 0x312   :  { %v17982_v21 = vadd.f32 %v6904_v18, %v6863_v11  ;;  %7199 = vmatpush1.bf16.msra.mxu1 %v16270_v63  ;;  %7230 = vmatprep.mubr.bf16.mxu1 %v17886_v59  ;;  %v202_v63 = vld [vmem:[#allocation2 + $0x2d8] sm:$0xff] }
 0x313   :  { %v6906_v27 = vpop.f32.mrf.mxu1  ;;  %7200 = vmatprep.subr.bf16.mxu1 %v16239_v7  ;;  %v6867_v33 = vpop.f32.mrf.mxu0  ;;  %v714_v7 = vld [vmem:[#allocation2 + $0x12d8] sm:$0xff]  ;;  %v15599_v11 = vcombine.high %v186_v62, %v202_v63 }
 0x314   :  { %v7573_v31 = vmax.f32 %v17938_v13, %v17982_v21  ;;  %v17987_v32 = vadd.f32 %v6906_v27, %v6865_v22  ;;  %7160 = vmatpush1.bf16.msra.mxu0 %v15726_v20  ;;  %v16111_v14 = vcombine.high %v698_v6, %v714_v7  ;;  %v170_v18 = vld [vmem:[#allocation2 + $0x1d8] sm:$0xff] }
 0x315   :  { %v6908_v36 = vpop.f32.mrf.mxu1  ;;  %v6868_v39 = vpop.f32.mrf.mxu0  ;;  %7161 = vmatprep.subr.bf16.mxu0 %v15695_v26  ;;  %v666_v20 = vld [vmem:[#allocation2 + $0x1158] sm:$0xff]  ;;  %v16110_v26 = vcombine.low %v698_v6, %v714_v7  ;;  %v15567_v27 = vcombine.high %v154_v17, %v170_v18  ;;  %v15566_v35 = vcombine.low %v154_v17, %v170_v18 }
 0x316   :  { %v7574_v38 = vmax.f32 %v17941_v24, %v17987_v32  ;;  %7201 = vmatpush1.bf16.msra.mxu1 %v16238_v23  ;;  %v682_v22 = vld [vmem:[#allocation2 + $0x11d8] sm:$0xff]  ;;  %v15598_v23 = vcombine.low %v186_v62, %v202_v63  ;;  %v7994_v24 = vld [vmem:[#allocation6 + $0xa88] sm:$0xff] }
 0x317   :  { %v6909_v42 = vpop.f32.mrf.mxu1  ;;  %7202 = vmatprep.subr.bf16.mxu1 %v16207_v28  ;;  %v16079_v28 = vcombine.high %v666_v20, %v682_v22  ;;  %v634_v33 = vld [vmem:[#allocation2 + $0x1058] sm:$0xff]  ;;  %v16078_v36 = vcombine.low %v666_v20, %v682_v22 }
 0x318   :  { %7162 = vmatpush1.bf16.msra.mxu0 %v15694_v37  ;;  %v15535_v37 = vcombine.high %v122_v29, %v138_v30  ;;  %v16047_v39 = vcombine.high %v634_v33, %v650_v34  ;;  %v1114_v42 = vld [vmem:[#allocation2 + $0x1f58] sm:$0xff]  ;;  %v16046_v47 = vcombine.low %v634_v33, %v650_v34 }
 0x319   :  { %7163 = vmatprep.subr.bf16.mxu0 %v15663_v41  ;;  %v618_v41 = vld [vmem:[#allocation2 + $0xfd8] sm:$0xff] }
 0x31a   :  { %7203 = vmatpush1.bf16.msra.mxu1 %v16206_v40  ;;  %v602_v40 = vld [vmem:[#allocation2 + $0xf58] sm:$0xff] }
 0x31b   :  { %7204 = vmatprep.subr.bf16.mxu1 %v16175_v45  ;;  %v1130_v45 = vld [vmem:[#allocation2 + $0x1fd8] sm:$0xff]  ;;  %v16015_v48 = vcombine.high %v602_v40, %v618_v41  ;;  %v16014_v62 = vcombine.low %v602_v40, %v618_v41 }
 0x31c   :  { %7164 = vmatpush1.bf16.msra.mxu0 %v15662_v52  ;;  %v16527_v50 = vcombine.high %v1114_v42, %v1130_v45  ;;  %v570_v52 = vld [vmem:[#allocation2 + $0xe58] sm:$0xff]  ;;  %v16526_v63 = vcombine.low %v1114_v42, %v1130_v45 }
 0x31d   :  { %7165 = vmatprep.subr.bf16.mxu0 %v15631_v60  ;;  %v1082_v60 = vld [vmem:[#allocation2 + $0x1e58] sm:$0xff] }
 0x31e   :  { %7205 = vmatpush1.bf16.msra.mxu1 %v16174_v57  ;;  %v586_v57 = vld [vmem:[#allocation2 + $0xed8] sm:$0xff] }
 0x31f   :  { %7206 = vmatprep.subr.bf16.mxu1 %v16143_v61  ;;  %v1098_v61 = vld [vmem:[#allocation2 + $0x1ed8] sm:$0xff]  ;;  %v15983_v6 = vcombine.high %v570_v52, %v586_v57  ;;  %v15982_v17 = vcombine.low %v570_v52, %v586_v57 }
 0x320   :  { %7166 = vmatpush1.bf16.msra.mxu0 %v15630_v9  ;;  %v16495_v7 = vcombine.high %v1082_v60, %v1098_v61  ;;  %v538_v9 = vld [vmem:[#allocation2 + $0xd58] sm:$0xff]  ;;  %v16494_v18 = vcombine.low %v1082_v60, %v1098_v61 }
 0x321   :  { %7167 = vmatprep.subr.bf16.mxu0 %v15599_v11  ;;  %v1050_v11 = vld [vmem:[#allocation2 + $0x1d58] sm:$0xff] }
 0x322   :  { %7207 = vmatpush1.bf16.msra.mxu1 %v16142_v10  ;;  %v554_v10 = vld [vmem:[#allocation2 + $0xdd8] sm:$0xff] }
 0x323   :  { %7208 = vmatprep.subr.bf16.mxu1 %v16111_v14  ;;  %v1066_v14 = vld [vmem:[#allocation2 + $0x1dd8] sm:$0xff]  ;;  %v15951_v20 = vcombine.high %v538_v9, %v554_v10  ;;  %v15950_v29 = vcombine.low %v538_v9, %v554_v10 }
 0x324   :  { %7168 = vmatpush1.bf16.msra.mxu0 %v15598_v23  ;;  %v16463_v22 = vcombine.high %v1050_v11, %v1066_v14  ;;  %v506_v23 = vld [vmem:[#allocation2 + $0xc58] sm:$0xff]  ;;  %v16462_v30 = vcombine.low %v1050_v11, %v1066_v14 }
 0x325   :  { %7169 = vmatprep.subr.bf16.mxu0 %v15567_v27  ;;  %v1018_v27 = vld [vmem:[#allocation2 + $0x1c58] sm:$0xff] }
 0x326   :  { %7209 = vmatpush1.bf16.msra.mxu1 %v16110_v26  ;;  %v522_v26 = vld [vmem:[#allocation2 + $0xcd8] sm:$0xff] }
 0x327   :  { %7210 = vmatprep.subr.bf16.mxu1 %v16079_v28  ;;  %v1034_v28 = vld [vmem:[#allocation2 + $0x1cd8] sm:$0xff]  ;;  %v15919_v33 = vcombine.high %v506_v23, %v522_v26  ;;  %v15918_v40 = vcombine.low %v506_v23, %v522_v26 }
 0x328   :  { %7170 = vmatpush1.bf16.msra.mxu0 %v15566_v35  ;;  %v16431_v34 = vcombine.high %v1018_v27, %v1034_v28  ;;  %v474_v35 = vld [vmem:[#allocation2 + $0xb58] sm:$0xff]  ;;  %v16430_v41 = vcombine.low %v1018_v27, %v1034_v28 }
 0x329   :  { %7171 = vmatprep.subr.bf16.mxu0 %v15535_v37  ;;  %v986_v37 = vld [vmem:[#allocation2 + $0x1b58] sm:$0xff] }
 0x32a   :  { %7211 = vmatpush1.bf16.msra.mxu1 %v16078_v36  ;;  %v490_v36 = vld [vmem:[#allocation2 + $0xbd8] sm:$0xff] }
 0x32b   :  { %7212 = vmatprep.subr.bf16.mxu1 %v16047_v39  ;;  %v1002_v39 = vld [vmem:[#allocation2 + $0x1bd8] sm:$0xff]  ;;  %v15887_v42 = vcombine.high %v474_v35, %v490_v36  ;;  %v15886_v52 = vcombine.low %v474_v35, %v490_v36 }
 0x32c   :  { %7172 = vmatpush1.bf16.msra.mxu0 %v15534_v46  ;;  %v16399_v45 = vcombine.high %v986_v37, %v1002_v39  ;;  %v442_v46 = vld [vmem:[#allocation2 + $0xa58] sm:$0xff]  ;;  %v16398_v57 = vcombine.low %v986_v37, %v1002_v39 }
 0x32d   :  { %7173 = vmatprep.subr.bf16.mxu0 %v16015_v48  ;;  %v954_v48 = vld [vmem:[#allocation2 + $0x1a58] sm:$0xff] }
 0x32e   :  { %7213 = vmatpush1.bf16.msra.mxu1 %v16046_v47  ;;  %v458_v47 = vld [vmem:[#allocation2 + $0xad8] sm:$0xff] }
 0x32f   :  { %7214 = vmatprep.subr.bf16.mxu1 %v16527_v50  ;;  %v970_v50 = vld [vmem:[#allocation2 + $0x1ad8] sm:$0xff]  ;;  %v15855_v60 = vcombine.high %v442_v46, %v458_v47  ;;  %v15854_v9 = vcombine.low %v442_v46, %v458_v47 }
 0x330   :  { %7174 = vmatpush2.bf16.msra.mxu0 %v16014_v62  ;;  %v16367_v61 = vcombine.high %v954_v48, %v970_v50  ;;  %v410_v62 = vld [vmem:[#allocation2 + $0x958] sm:$0xff]  ;;  %v16366_v10 = vcombine.low %v954_v48, %v970_v50 }
 0x331   :  { %7175 = vmatprep.subr.bf16.mxu0 %v15983_v6  ;;  %v922_v6 = vld [vmem:[#allocation2 + $0x1958] sm:$0xff] }
 0x332   :  { %7215 = vmatpush2.bf16.msra.mxu1 %v16526_v63  ;;  %v426_v63 = vld [vmem:[#allocation2 + $0x9d8] sm:$0xff] }
 0x333   :  { %7216 = vmatprep.subr.bf16.mxu1 %v16495_v7  ;;  %v938_v7 = vld [vmem:[#allocation2 + $0x19d8] sm:$0xff]  ;;  %v15823_v11 = vcombine.high %v410_v62, %v426_v63  ;;  %v15822_v23 = vcombine.low %v410_v62, %v426_v63  ;;  %v811_v62 = vld [vmem:[#allocation2 + $0x15e0] sm:$0xff] }
 0x334   :  { %7176 = vmatpush2.bf16.msra.mxu0 %v15982_v17  ;;  %v16335_v14 = vcombine.high %v922_v6, %v938_v7  ;;  %v378_v17 = vld [vmem:[#allocation2 + $0x858] sm:$0xff]  ;;  %v16334_v26 = vcombine.low %v922_v6, %v938_v7 }
 0x335   :  { %7177 = vmatprep.subr.bf16.mxu0 %v15951_v20  ;;  %v890_v20 = vld [vmem:[#allocation2 + $0x1858] sm:$0xff] }
 0x336   :  { %7217 = vmatpush2.bf16.msra.mxu1 %v16494_v18  ;;  %v394_v18 = vld [vmem:[#allocation2 + $0x8d8] sm:$0xff] }
 0x337   :  { %7218 = vmatprep.subr.bf16.mxu1 %v16463_v22  ;;  %v906_v22 = vld [vmem:[#allocation2 + $0x18d8] sm:$0xff]  ;;  %v15791_v27 = vcombine.high %v378_v17, %v394_v18  ;;  %v15790_v35 = vcombine.low %v378_v17, %v394_v18  ;;  %v251_v18 = vld [vmem:[#allocation2 + $0x460] sm:$0xff] }
 0x338   :  { %7178 = vmatpush2.bf16.msra.mxu0 %v15950_v29  ;;  %v16303_v28 = vcombine.high %v890_v20, %v906_v22  ;;  %v347_v29 = vld [vmem:[#allocation2 + $0x760] sm:$0xff]  ;;  %v16302_v36 = vcombine.low %v890_v20, %v906_v22 }
 0x339   :  { %7179 = vmatprep.subr.bf16.mxu0 %v15919_v33  ;;  %v859_v33 = vld [vmem:[#allocation2 + $0x1760] sm:$0xff] }
 0x33a   :  { %7219 = vmatpush2.bf16.msra.mxu1 %v16462_v30  ;;  %v363_v30 = vld [vmem:[#allocation2 + $0x7e0] sm:$0xff] }
 0x33b   :  { %7220 = vmatprep.subr.bf16.mxu1 %v16431_v34  ;;  %v875_v34 = vld [vmem:[#allocation2 + $0x17e0] sm:$0xff]  ;;  %v15761_v37 = vcombine.high %v347_v29, %v363_v30  ;;  %v15760_v46 = vcombine.low %v347_v29, %v363_v30 }
 0x33c   :  { %7180 = vmatpush2.bf16.msra.mxu0 %v15918_v40  ;;  %v16273_v39 = vcombine.high %v859_v33, %v875_v34  ;;  %v315_v40 = vld [vmem:[#allocation2 + $0x660] sm:$0xff]  ;;  %v16272_v47 = vcombine.low %v859_v33, %v875_v34 }
 0x33d   :  { %7181 = vmatprep.subr.bf16.mxu0 %v15887_v42  ;;  %v827_v42 = vld [vmem:[#allocation2 + $0x1660] sm:$0xff] }
 0x33e   :  { %7221 = vmatpush2.bf16.msra.mxu1 %v16430_v41  ;;  %v331_v41 = vld [vmem:[#allocation2 + $0x6e0] sm:$0xff] }
 0x33f   :  { %7222 = vmatprep.subr.bf16.mxu1 %v16399_v45  ;;  %v843_v45 = vld [vmem:[#allocation2 + $0x16e0] sm:$0xff]  ;;  %v15729_v48 = vcombine.high %v315_v40, %v331_v41  ;;  %v15728_v6 = vcombine.low %v315_v40, %v331_v41 }
 0x340   :  { %7182 = vmatpush2.bf16.msra.mxu0 %v15886_v52  ;;  %v16241_v50 = vcombine.high %v827_v42, %v843_v45  ;;  %v283_v52 = vld [vmem:[#allocation2 + $0x560] sm:$0xff] }
 0x341   :  { %7183 = vmatprep.subr.bf16.mxu0 %v15855_v60  ;;  %v267_v20 = vld [vmem:[#allocation2 + $0x4e0] sm:$0xff] }
 0x342   :  { %7223 = vmatpush2.bf16.msra.mxu1 %v16398_v57  ;;  %v299_v57 = vld [vmem:[#allocation2 + $0x5e0] sm:$0xff]  ;;  %v15665_v34 = vcombine.high %v251_v18, %v267_v20 }
 0x343   :  { %7224 = vmatprep.subr.bf16.mxu1 %v16367_v61  ;;  %v795_v61 = vld [vmem:[#allocation2 + $0x1560] sm:$0xff]  ;;  %v15696_v29 = vcombine.low %v283_v52, %v299_v57 }
 0x344   :  { %7184 = vmatpush2.bf16.msra.mxu0 %v15854_v9  ;;  %v16209_v17 = vcombine.high %v795_v61, %v811_v62  ;;  %v16208_v33 = vcombine.low %v795_v61, %v811_v62  ;;  %v731_v40 = vld [vmem:[#allocation2 + $0x1360] sm:$0xff] }
 0x345   :  { %7185 = vmatprep.subr.bf16.mxu0 %v15823_v11  ;;  %v15697_v11 = vcombine.high %v283_v52, %v299_v57  ;;  %v747_v41 = vld [vmem:[#allocation2 + $0x13e0] sm:$0xff] }
 0x346   :  { %7225 = vmatpush2.bf16.msra.mxu1 %v16366_v10  ;;  %v16240_v10 = vcombine.low %v827_v42, %v843_v45  ;;  %v15664_v42 = vcombine.low %v251_v18, %v267_v20  ;;  %v699_v52 = vld [vmem:[#allocation2 + $0x1260] sm:$0xff]  ;;  %v16144_v61 = vcombine.low %v731_v40, %v747_v41 }
 0x347   :  { %7226 = vmatprep.subr.bf16.mxu1 %v16335_v14  ;;  %v715_v57 = vld [vmem:[#allocation2 + $0x12e0] sm:$0xff] }
 0x348   :  { %7186 = vmatpush2.bf16.msra.mxu0 %v15822_v23 }
 0x349   :  { %7187 = vmatprep.subr.bf16.mxu0 %v15791_v27  ;;  %v779_v27 = vld [vmem:[#allocation2 + $0x14e0] sm:$0xff] }
 0x34a   :  { %7227 = vmatpush2.bf16.msra.mxu1 %v16334_v26  ;;  %v763_v26 = vld [vmem:[#allocation2 + $0x1460] sm:$0xff] }
 0x34b   :  { %7228 = vmatprep.subr.bf16.mxu1 %v16303_v28  ;;  %v16176_v45 = vcombine.low %v763_v26, %v779_v27 }
 0x34c   :  { %7188 = vmatpush2.bf16.msra.mxu0 %v15790_v35 }
 0x34d   :  { %7239 = vmatprep.subr.bf16.mxu0 %v15761_v37  ;;  %v219_v37 = vld [vmem:[#allocation2 + $0x360] sm:$0xff] }
 0x34e   :  { %7229 = vmatpush2.bf16.msra.mxu1 %v16302_v36  ;;  %v16177_v36 = vcombine.high %v763_v26, %v779_v27  ;;  %v139_v26 = vld [vmem:[#allocation2 + $0xe0] sm:$0xff] }
 0x34f   :  { %7280 = vmatprep.subr.bf16.mxu1 %v16273_v39  ;;  %v6945_v60 = vpop.f32.mrf.mxu0  ;;  %7190 = vmatmul.mubr.bf16.vlgmr.msra.gmra.mxu0 %v17896_v16  ;;  %v235_v39 = vld [vmem:[#allocation2 + $0x3e0] sm:$0xff] }
 0x350   :  { %7240 = vmatpush1.bf16.msra.mxu0 %v15760_v46  ;;  %7271 = vmatprep.mubr.bf16.mxu0 %v17884_v58  ;;  %v15633_v46 = vcombine.high %v219_v37, %v235_v39  ;;  %v635_v27 = vld [vmem:[#allocation2 + $0x1060] sm:$0xff] }
 0x351   :  { %v6986_v63 = vpop.f32.mrf.mxu1  ;;  %7231 = vmatmul.mubr.bf16.vlgmr.msra.gmra.mxu1 %v17898_v19  ;;  %v6947_v9 = vpop.f32.mrf.mxu0  ;;  %7241 = vmatprep.subr.bf16.mxu0 %v15729_v48  ;;  %v187_v48 = vld [vmem:[#allocation2 + $0x260] sm:$0xff] }
 0x352   :  { %v17994_v7 = vadd.f32 %v6986_v63, %v6945_v60  ;;  %7281 = vmatpush1.bf16.msra.mxu1 %v16272_v47  ;;  %7312 = vmatprep.mubr.bf16.mxu1 %v17886_v59  ;;  %v16145_v47 = vcombine.high %v731_v40, %v747_v41  ;;  %v15632_v60 = vcombine.low %v219_v37, %v235_v39  ;;  %v1115_v37 = vld [vmem:[#allocation2 + $0x1f60] sm:$0xff] }
 0x353   :  { %v6988_v14 = vpop.f32.mrf.mxu1  ;;  %7282 = vmatprep.subr.bf16.mxu1 %v16241_v50  ;;  %v6949_v23 = vpop.f32.mrf.mxu0  ;;  %v203_v50 = vld [vmem:[#allocation2 + $0x2e0] sm:$0xff]  ;;  %v16113_v63 = vcombine.high %v699_v52, %v715_v57 }
 0x354   :  { %v17997_v22 = vadd.f32 %v6988_v14, %v6947_v9  ;;  %7242 = vmatpush1.bf16.msra.mxu0 %v15728_v6  ;;  %v15601_v62 = vcombine.high %v187_v48, %v203_v50  ;;  %v155_v6 = vld [vmem:[#allocation2 + $0x160] sm:$0xff]  ;;  %v15600_v14 = vcombine.low %v187_v48, %v203_v50 }
 0x355   :  { %v6990_v28 = vpop.f32.mrf.mxu1  ;;  %v6950_v30 = vpop.f32.mrf.mxu0  ;;  %7243 = vmatprep.subr.bf16.mxu0 %v15697_v11  ;;  %v171_v9 = vld [vmem:[#allocation2 + $0x1e0] sm:$0xff] }
 0x356   :  { %7283 = vmatpush1.bf16.msra.mxu1 %v16240_v10  ;;  %v667_v10 = vld [vmem:[#allocation2 + $0x1160] sm:$0xff]  ;;  %v15569_v18 = vcombine.high %v155_v6, %v171_v9 }
 0x357   :  { %v6991_v35 = vpop.f32.mrf.mxu1  ;;  %7284 = vmatprep.subr.bf16.mxu1 %v16209_v17  ;;  %v683_v11 = vld [vmem:[#allocation2 + $0x11e0] sm:$0xff]  ;;  %v16112_v17 = vcombine.low %v699_v52, %v715_v57 }
 0x358   :  { %7244 = vmatpush1.bf16.msra.mxu0 %v15696_v29  ;;  %v16081_v20 = vcombine.high %v667_v10, %v683_v11  ;;  %v123_v23 = vld [vmem:[#allocation2 + $0x60] sm:$0xff]  ;;  %v15568_v29 = vcombine.low %v155_v6, %v171_v9  ;;  %v16080_v30 = vcombine.low %v667_v10, %v683_v11 }
 0x359   :  { %7245 = vmatprep.subr.bf16.mxu0 %v15665_v34  ;;  %v651_v28 = vld [vmem:[#allocation2 + $0x10e0] sm:$0xff]  ;;  %v15536_v40 = vcombine.low %v123_v23, %v139_v26 }
 0x35a   :  { %7285 = vmatpush1.bf16.msra.mxu1 %v16208_v33  ;;  %v15537_v33 = vcombine.high %v123_v23, %v139_v26  ;;  %v16049_v34 = vcombine.high %v635_v27, %v651_v28  ;;  %v603_v35 = vld [vmem:[#allocation2 + $0xf60] sm:$0xff]  ;;  %v16048_v41 = vcombine.low %v635_v27, %v651_v28 }
 0x35b   :  { %7286 = vmatprep.subr.bf16.mxu1 %v16177_v36  ;;  %v619_v36 = vld [vmem:[#allocation2 + $0xfe0] sm:$0xff] }
 0x35c   :  { %7246 = vmatpush1.bf16.msra.mxu0 %v15664_v42  ;;  %v1131_v39 = vld [vmem:[#allocation2 + $0x1fe0] sm:$0xff]  ;;  %v16017_v42 = vcombine.high %v603_v35, %v619_v36  ;;  %v16016_v52 = vcombine.low %v603_v35, %v619_v36 }
 0x35d   :  { %7247 = vmatprep.subr.bf16.mxu0 %v15633_v46  ;;  %v571_v46 = vld [vmem:[#allocation2 + $0xe60] sm:$0xff]  ;;  %v16528_v57 = vcombine.low %v1115_v37, %v1131_v39 }
 0x35e   :  { %7287 = vmatpush1.bf16.msra.mxu1 %v16176_v45  ;;  %v16529_v45 = vcombine.high %v1115_v37, %v1131_v39  ;;  %v1083_v48 = vld [vmem:[#allocation2 + $0x1e60] sm:$0xff] }
 0x35f   :  { %7288 = vmatprep.subr.bf16.mxu1 %v16145_v47  ;;  %v587_v47 = vld [vmem:[#allocation2 + $0xee0] sm:$0xff] }
 0x360   :  { %7248 = vmatpush1.bf16.msra.mxu0 %v15632_v60  ;;  %v1099_v50 = vld [vmem:[#allocation2 + $0x1ee0] sm:$0xff]  ;;  %v15985_v60 = vcombine.high %v571_v46, %v587_v47  ;;  %v15984_v10 = vcombine.low %v571_v46, %v587_v47 }
 0x361   :  { %7249 = vmatprep.subr.bf16.mxu0 %v15601_v62  ;;  %v539_v62 = vld [vmem:[#allocation2 + $0xd60] sm:$0xff]  ;;  %v16496_v11 = vcombine.low %v1083_v48, %v1099_v50 }
 0x362   :  { %7289 = vmatpush1.bf16.msra.mxu1 %v16144_v61  ;;  %v16497_v61 = vcombine.high %v1083_v48, %v1099_v50  ;;  %v1051_v6 = vld [vmem:[#allocation2 + $0x1d60] sm:$0xff] }
 0x363   :  { %7290 = vmatprep.subr.bf16.mxu1 %v16113_v63  ;;  %v555_v63 = vld [vmem:[#allocation2 + $0xde0] sm:$0xff] }
 0x364   :  { %7250 = vmatpush1.bf16.msra.mxu0 %v15600_v14  ;;  %v1067_v9 = vld [vmem:[#allocation2 + $0x1de0] sm:$0xff]  ;;  %v15953_v14 = vcombine.high %v539_v62, %v555_v63  ;;  %v15952_v27 = vcombine.low %v539_v62, %v555_v63 }
 0x365   :  { %7251 = vmatprep.subr.bf16.mxu0 %v15569_v18  ;;  %v507_v18 = vld [vmem:[#allocation2 + $0xc60] sm:$0xff]  ;;  %v16464_v28 = vcombine.low %v1051_v6, %v1067_v9 }
 0x366   :  { %7291 = vmatpush1.bf16.msra.mxu1 %v16112_v17  ;;  %v16465_v17 = vcombine.high %v1051_v6, %v1067_v9  ;;  %v1019_v23 = vld [vmem:[#allocation2 + $0x1c60] sm:$0xff] }
 0x367   :  { %7292 = vmatprep.subr.bf16.mxu1 %v16081_v20  ;;  %v523_v20 = vld [vmem:[#allocation2 + $0xce0] sm:$0xff] }
 0x368   :  { %7252 = vmatpush1.bf16.msra.mxu0 %v15568_v29  ;;  %v1035_v26 = vld [vmem:[#allocation2 + $0x1ce0] sm:$0xff]  ;;  %v15921_v29 = vcombine.high %v507_v18, %v523_v20  ;;  %v15920_v37 = vcombine.low %v507_v18, %v523_v20 }
 0x369   :  { %7253 = vmatprep.subr.bf16.mxu0 %v15537_v33  ;;  %v475_v33 = vld [vmem:[#allocation2 + $0xb60] sm:$0xff]  ;;  %v16432_v39 = vcombine.low %v1019_v23, %v1035_v26 }
 0x36a   :  { %7293 = vmatpush1.bf16.msra.mxu1 %v16080_v30  ;;  %v16433_v30 = vcombine.high %v1019_v23, %v1035_v26  ;;  %v987_v35 = vld [vmem:[#allocation2 + $0x1b60] sm:$0xff] }
 0x36b   :  { %7294 = vmatprep.subr.bf16.mxu1 %v16049_v34  ;;  %v491_v34 = vld [vmem:[#allocation2 + $0xbe0] sm:$0xff] }
 0x36c   :  { %7254 = vmatpush1.bf16.msra.mxu0 %v15536_v40  ;;  %v1003_v36 = vld [vmem:[#allocation2 + $0x1be0] sm:$0xff]  ;;  %v15889_v40 = vcombine.high %v475_v33, %v491_v34  ;;  %v15888_v48 = vcombine.low %v475_v33, %v491_v34  ;;  %v860_v33 = vld [vmem:[#allocation2 + $0x1768] sm:$0xff] }
 0x36d   :  { %7255 = vmatprep.subr.bf16.mxu0 %v16017_v42  ;;  %v443_v42 = vld [vmem:[#allocation2 + $0xa60] sm:$0xff]  ;;  %v16400_v50 = vcombine.low %v987_v35, %v1003_v36  ;;  %v876_v34 = vld [vmem:[#allocation2 + $0x17e8] sm:$0xff] }
 0x36e   :  { %7295 = vmatpush1.bf16.msra.mxu1 %v16048_v41  ;;  %v16401_v41 = vcombine.high %v987_v35, %v1003_v36  ;;  %v955_v46 = vld [vmem:[#allocation2 + $0x1a60] sm:$0xff] }
 0x36f   :  { %7296 = vmatprep.subr.bf16.mxu1 %v16529_v45  ;;  %v459_v45 = vld [vmem:[#allocation2 + $0xae0] sm:$0xff] }
 0x370   :  { %7256 = vmatpush2.bf16.msra.mxu0 %v16016_v52  ;;  %v971_v47 = vld [vmem:[#allocation2 + $0x1ae0] sm:$0xff]  ;;  %v15857_v52 = vcombine.high %v443_v42, %v459_v45  ;;  %v15856_v6 = vcombine.low %v443_v42, %v459_v45  ;;  %v828_v42 = vld [vmem:[#allocation2 + $0x1668] sm:$0xff] }
 0x371   :  { %7257 = vmatprep.subr.bf16.mxu0 %v15985_v60  ;;  %v411_v60 = vld [vmem:[#allocation2 + $0x960] sm:$0xff]  ;;  %v16368_v9 = vcombine.low %v955_v46, %v971_v47  ;;  %v844_v45 = vld [vmem:[#allocation2 + $0x16e8] sm:$0xff] }
 0x372   :  { %7297 = vmatpush2.bf16.msra.mxu1 %v16528_v57  ;;  %v16369_v57 = vcombine.high %v955_v46, %v971_v47  ;;  %v923_v62 = vld [vmem:[#allocation2 + $0x1960] sm:$0xff]  ;;  %v16274_v47 = vcombine.low %v860_v33, %v876_v34 }
 0x373   :  { %7298 = vmatprep.subr.bf16.mxu1 %v16497_v61  ;;  %v427_v61 = vld [vmem:[#allocation2 + $0x9e0] sm:$0xff] }
 0x374   :  { %7258 = vmatpush2.bf16.msra.mxu0 %v15984_v10  ;;  %v939_v63 = vld [vmem:[#allocation2 + $0x19e0] sm:$0xff]  ;;  %v15825_v10 = vcombine.high %v411_v60, %v427_v61  ;;  %v15824_v23 = vcombine.low %v411_v60, %v427_v61  ;;  %v796_v61 = vld [vmem:[#allocation2 + $0x1568] sm:$0xff] }
 0x375   :  { %7259 = vmatprep.subr.bf16.mxu0 %v15953_v14  ;;  %v379_v14 = vld [vmem:[#allocation2 + $0x860] sm:$0xff]  ;;  %v16336_v26 = vcombine.low %v923_v62, %v939_v63 }
 0x376   :  { %7299 = vmatpush2.bf16.msra.mxu1 %v16496_v11  ;;  %v16337_v11 = vcombine.high %v923_v62, %v939_v63  ;;  %v891_v18 = vld [vmem:[#allocation2 + $0x1860] sm:$0xff]  ;;  %v812_v62 = vld [vmem:[#allocation2 + $0x15e8] sm:$0xff] }
 0x377   :  { %7300 = vmatprep.subr.bf16.mxu1 %v16465_v17  ;;  %v395_v17 = vld [vmem:[#allocation2 + $0x8e0] sm:$0xff] }
 0x378   :  { %7260 = vmatpush2.bf16.msra.mxu0 %v15952_v27  ;;  %v907_v20 = vld [vmem:[#allocation2 + $0x18e0] sm:$0xff]  ;;  %v15793_v27 = vcombine.high %v379_v14, %v395_v17  ;;  %v15792_v35 = vcombine.low %v379_v14, %v395_v17 }
 0x379   :  { %7261 = vmatprep.subr.bf16.mxu0 %v15921_v29  ;;  %v348_v29 = vld [vmem:[#allocation2 + $0x768] sm:$0xff]  ;;  %v16304_v36 = vcombine.low %v891_v18, %v907_v20 }
 0x37a   :  { %7301 = vmatpush2.bf16.msra.mxu1 %v16464_v28  ;;  %v16305_v28 = vcombine.high %v891_v18, %v907_v20  ;;  %v16211_v18 = vcombine.high %v796_v61, %v812_v62  ;;  %v252_v20 = vld [vmem:[#allocation2 + $0x468] sm:$0xff] }
 0x37b   :  { %7302 = vmatprep.subr.bf16.mxu1 %v16433_v30  ;;  %v364_v30 = vld [vmem:[#allocation2 + $0x7e8] sm:$0xff] }
 0x37c   :  { %7262 = vmatpush2.bf16.msra.mxu0 %v15920_v37  ;;  %v15763_v37 = vcombine.high %v348_v29, %v364_v30  ;;  %v15762_v46 = vcombine.low %v348_v29, %v364_v30  ;;  %v780_v29 = vld [vmem:[#allocation2 + $0x14e8] sm:$0xff] }
 0x37d   :  { %7263 = vmatprep.subr.bf16.mxu0 %v15889_v40  ;;  %v316_v40 = vld [vmem:[#allocation2 + $0x668] sm:$0xff] }
 0x37e   :  { %7303 = vmatpush2.bf16.msra.mxu1 %v16432_v39  ;;  %v16275_v39 = vcombine.high %v860_v33, %v876_v34 }
 0x37f   :  { %7304 = vmatprep.subr.bf16.mxu1 %v16401_v41  ;;  %v332_v41 = vld [vmem:[#allocation2 + $0x6e8] sm:$0xff] }
 0x380   :  { %7264 = vmatpush2.bf16.msra.mxu0 %v15888_v48  ;;  %v15731_v48 = vcombine.high %v316_v40, %v332_v41 }
 0x381   :  { %7265 = vmatprep.subr.bf16.mxu0 %v15857_v52  ;;  %v284_v52 = vld [vmem:[#allocation2 + $0x568] sm:$0xff] }
 0x382   :  { %7305 = vmatpush2.bf16.msra.mxu1 %v16400_v50  ;;  %v16243_v50 = vcombine.high %v828_v42, %v844_v45 }
 0x383   :  { %7306 = vmatprep.subr.bf16.mxu1 %v16369_v57  ;;  %v300_v57 = vld [vmem:[#allocation2 + $0x5e8] sm:$0xff] }
 0x384   :  { %7266 = vmatpush2.bf16.msra.mxu0 %v15856_v6  ;;  %v15730_v6 = vcombine.low %v316_v40, %v332_v41  ;;  %v15699_v14 = vcombine.high %v284_v52, %v300_v57  ;;  %v15698_v33 = vcombine.low %v284_v52, %v300_v57  ;;  %v220_v40 = vld [vmem:[#allocation2 + $0x368] sm:$0xff] }
 0x385   :  { %7267 = vmatprep.subr.bf16.mxu0 %v15825_v10  ;;  %v236_v41 = vld [vmem:[#allocation2 + $0x3e8] sm:$0xff] }
 0x386   :  { %7307 = vmatpush2.bf16.msra.mxu1 %v16368_v9  ;;  %v188_v52 = vld [vmem:[#allocation2 + $0x268] sm:$0xff] }
 0x387   :  { %7308 = vmatprep.subr.bf16.mxu1 %v16337_v11  ;;  %v16242_v11 = vcombine.low %v828_v42, %v844_v45  ;;  %v732_v42 = vld [vmem:[#allocation2 + $0x1368] sm:$0xff] }
 0x388   :  { %7268 = vmatpush2.bf16.msra.mxu0 %v15824_v23  ;;  %v268_v23 = vld [vmem:[#allocation2 + $0x4e8] sm:$0xff] }
 0x389   :  { %7269 = vmatprep.subr.bf16.mxu0 %v15793_v27  ;;  %v748_v45 = vld [vmem:[#allocation2 + $0x13e8] sm:$0xff] }
 0x38a   :  { %7309 = vmatpush2.bf16.msra.mxu1 %v16336_v26  ;;  %v204_v57 = vld [vmem:[#allocation2 + $0x2e8] sm:$0xff] }
 0x38b   :  { %7310 = vmatprep.subr.bf16.mxu1 %v16305_v28  ;;  %v764_v28 = vld [vmem:[#allocation2 + $0x1468] sm:$0xff] }
 0x38c   :  { %7270 = vmatpush2.bf16.msra.mxu0 %v15792_v35  ;;  %v16210_v35 = vcombine.low %v796_v61, %v812_v62  ;;  %v716_v61 = vld [vmem:[#allocation2 + $0x12e8] sm:$0xff]  ;;  %v15634_v62 = vcombine.low %v220_v40, %v236_v41 }
 0x38d   :  { %7321 = vmatprep.subr.bf16.mxu0 %v15763_v37 }
 0x38e   :  { %7311 = vmatpush2.bf16.msra.mxu1 %v16304_v36  ;;  %v15667_v36 = vcombine.high %v252_v20, %v268_v23 }
 0x38f   :  { %7362 = vmatprep.subr.bf16.mxu1 %v16275_v39  ;;  %v7027_v60 = vpop.f32.mrf.mxu0  ;;  %7272 = vmatmul.mubr.bf16.vlgmr.msra.gmra.mxu0 %v17896_v16  ;;  %v16179_v39 = vcombine.high %v764_v28, %v780_v29 }
 0x390   :  { %7322 = vmatpush1.bf16.msra.mxu0 %v15762_v46  ;;  %7353 = vmatprep.mubr.bf16.mxu0 %v17884_v58  ;;  %v15666_v46 = vcombine.low %v252_v20, %v268_v23  ;;  %v15602_v20 = vcombine.low %v188_v52, %v204_v57 }
 0x391   :  { %v7068_v63 = vpop.f32.mrf.mxu1  ;;  %7313 = vmatmul.mubr.bf16.vlgmr.msra.gmra.mxu1 %v17898_v19  ;;  %v7029_v10 = vpop.f32.mrf.mxu0  ;;  %7323 = vmatprep.subr.bf16.mxu0 %v15731_v48  ;;  %v15635_v48 = vcombine.high %v220_v40, %v236_v41  ;;  %v604_v40 = vld [vmem:[#allocation2 + $0xf68] sm:$0xff] }
 0x392   :  { %v18002_v9 = vadd.f32 %v7068_v63, %v7027_v60  ;;  %7363 = vmatpush1.bf16.msra.mxu1 %v16274_v47  ;;  %7394 = vmatprep.mubr.bf16.mxu1 %v17886_v59  ;;  %v16178_v47 = vcombine.low %v764_v28, %v780_v29  ;;  %v700_v60 = vld [vmem:[#allocation2 + $0x1268] sm:$0xff]  ;;  %v16146_v63 = vcombine.low %v732_v42, %v748_v45 }
 0x393   :  { %v7070_v17 = vpop.f32.mrf.mxu1  ;;  %7364 = vmatprep.subr.bf16.mxu1 %v16243_v50  ;;  %v7031_v27 = vpop.f32.mrf.mxu0  ;;  %v16147_v50 = vcombine.high %v732_v42, %v748_v45  ;;  %v16114_v23 = vcombine.low %v700_v60, %v716_v61  ;;  %v124_v29 = vld [vmem:[#allocation2 + $0x68] sm:$0xff] }
 0x394   :  { %v18005_v26 = vadd.f32 %v7070_v17, %v7029_v10  ;;  %7324 = vmatpush1.bf16.msra.mxu0 %v15730_v6  ;;  %v15603_v6 = vcombine.high %v188_v52, %v204_v57  ;;  %v16115_v10 = vcombine.high %v700_v60, %v716_v61  ;;  %v668_v17 = vld [vmem:[#allocation2 + $0x1168] sm:$0xff] }
 0x395   :  { %v7072_v30 = vpop.f32.mrf.mxu1  ;;  %v7032_v34 = vpop.f32.mrf.mxu0  ;;  %7325 = vmatprep.subr.bf16.mxu0 %v15699_v14  ;;  %v172_v14 = vld [vmem:[#allocation2 + $0x1e8] sm:$0xff] }
 0x396   :  { %7365 = vmatpush1.bf16.msra.mxu1 %v16242_v11  ;;  %v156_v11 = vld [vmem:[#allocation2 + $0x168] sm:$0xff] }
 0x397   :  { %v7073_v37 = vpop.f32.mrf.mxu1  ;;  %7366 = vmatprep.subr.bf16.mxu1 %v16211_v18  ;;  %v684_v18 = vld [vmem:[#allocation2 + $0x11e8] sm:$0xff]  ;;  %v15571_v27 = vcombine.high %v156_v11, %v172_v14 }
 0x398   :  { %7326 = vmatpush1.bf16.msra.mxu0 %v15698_v33  ;;  %v16083_v28 = vcombine.high %v668_v17, %v684_v18  ;;  %v140_v30 = vld [vmem:[#allocation2 + $0xe8] sm:$0xff] }
 0x399   :  { %7327 = vmatprep.subr.bf16.mxu0 %v15667_v36  ;;  %v636_v33 = vld [vmem:[#allocation2 + $0x1068] sm:$0xff]  ;;  %v16082_v36 = vcombine.low %v668_v17, %v684_v18  ;;  %v15539_v37 = vcombine.high %v124_v29, %v140_v30 }
 0x39a   :  { %7367 = vmatpush1.bf16.msra.mxu1 %v16210_v35  ;;  %v652_v34 = vld [vmem:[#allocation2 + $0x10e8] sm:$0xff]  ;;  %v15570_v35 = vcombine.low %v156_v11, %v172_v14 }
 0x39b   :  { %7368 = vmatprep.subr.bf16.mxu1 %v16179_v39  ;;  %v16051_v39 = vcombine.high %v636_v33, %v652_v34  ;;  %v620_v41 = vld [vmem:[#allocation2 + $0xfe8] sm:$0xff] }
 0x39c   :  { %7328 = vmatpush1.bf16.msra.mxu0 %v15666_v46  ;;  %v1116_v42 = vld [vmem:[#allocation2 + $0x1f68] sm:$0xff]  ;;  %v15538_v46 = vcombine.low %v124_v29, %v140_v30 }
 0x39d   :  { %7329 = vmatprep.subr.bf16.mxu0 %v15635_v48  ;;  %v1132_v45 = vld [vmem:[#allocation2 + $0x1fe8] sm:$0xff]  ;;  %v16019_v48 = vcombine.high %v604_v40, %v620_v41 }
 0x39e   :  { %7369 = vmatpush1.bf16.msra.mxu1 %v16178_v47  ;;  %v16050_v47 = vcombine.low %v636_v33, %v652_v34  ;;  %v572_v52 = vld [vmem:[#allocation2 + $0xe68] sm:$0xff] }
 0x39f   :  { %7370 = vmatprep.subr.bf16.mxu1 %v16147_v50  ;;  %v16531_v50 = vcombine.high %v1116_v42, %v1132_v45  ;;  %v588_v57 = vld [vmem:[#allocation2 + $0xee8] sm:$0xff] }
 0x3a0   :  { %7330 = vmatpush1.bf16.msra.mxu0 %v15634_v62  ;;  %v1084_v60 = vld [vmem:[#allocation2 + $0x1e68] sm:$0xff]  ;;  %v16018_v62 = vcombine.low %v604_v40, %v620_v41 }
 0x3a1   :  { %7331 = vmatprep.subr.bf16.mxu0 %v15603_v6  ;;  %v1100_v61 = vld [vmem:[#allocation2 + $0x1ee8] sm:$0xff]  ;;  %v15987_v6 = vcombine.high %v572_v52, %v588_v57 }
 0x3a2   :  { %7371 = vmatpush1.bf16.msra.mxu1 %v16146_v63  ;;  %v16530_v63 = vcombine.low %v1116_v42, %v1132_v45  ;;  %v540_v11 = vld [vmem:[#allocation2 + $0xd68] sm:$0xff] }
 0x3a3   :  { %7372 = vmatprep.subr.bf16.mxu1 %v16115_v10  ;;  %v16499_v10 = vcombine.high %v1084_v60, %v1100_v61  ;;  %v556_v14 = vld [vmem:[#allocation2 + $0xde8] sm:$0xff] }
 0x3a4   :  { %7332 = vmatpush1.bf16.msra.mxu0 %v15602_v20  ;;  %v1052_v17 = vld [vmem:[#allocation2 + $0x1d68] sm:$0xff]  ;;  %v15986_v20 = vcombine.low %v572_v52, %v588_v57 }
 0x3a5   :  { %7333 = vmatprep.subr.bf16.mxu0 %v15571_v27  ;;  %v1068_v18 = vld [vmem:[#allocation2 + $0x1de8] sm:$0xff]  ;;  %v15955_v27 = vcombine.high %v540_v11, %v556_v14 }
 0x3a6   :  { %7373 = vmatpush1.bf16.msra.mxu1 %v16114_v23  ;;  %v16498_v23 = vcombine.low %v1084_v60, %v1100_v61  ;;  %v508_v29 = vld [vmem:[#allocation2 + $0xc68] sm:$0xff] }
 0x3a7   :  { %7374 = vmatprep.subr.bf16.mxu1 %v16083_v28  ;;  %v16467_v28 = vcombine.high %v1052_v17, %v1068_v18  ;;  %v524_v30 = vld [vmem:[#allocation2 + $0xce8] sm:$0xff] }
 0x3a8   :  { %7334 = vmatpush1.bf16.msra.mxu0 %v15570_v35  ;;  %v1020_v33 = vld [vmem:[#allocation2 + $0x1c68] sm:$0xff]  ;;  %v15954_v35 = vcombine.low %v540_v11, %v556_v14 }
 0x3a9   :  { %7335 = vmatprep.subr.bf16.mxu0 %v15539_v37  ;;  %v1036_v34 = vld [vmem:[#allocation2 + $0x1ce8] sm:$0xff]  ;;  %v15923_v37 = vcombine.high %v508_v29, %v524_v30 }
 0x3aa   :  { %7375 = vmatpush1.bf16.msra.mxu1 %v16082_v36  ;;  %v16466_v36 = vcombine.low %v1052_v17, %v1068_v18  ;;  %v476_v40 = vld [vmem:[#allocation2 + $0xb68] sm:$0xff] }
 0x3ab   :  { %7376 = vmatprep.subr.bf16.mxu1 %v16051_v39  ;;  %v16435_v39 = vcombine.high %v1020_v33, %v1036_v34  ;;  %v492_v41 = vld [vmem:[#allocation2 + $0xbe8] sm:$0xff] }
 0x3ac   :  { %7336 = vmatpush1.bf16.msra.mxu0 %v15538_v46  ;;  %v988_v42 = vld [vmem:[#allocation2 + $0x1b68] sm:$0xff]  ;;  %v15922_v46 = vcombine.low %v508_v29, %v524_v30 }
 0x3ad   :  { %7337 = vmatprep.subr.bf16.mxu0 %v16019_v48  ;;  %v1004_v45 = vld [vmem:[#allocation2 + $0x1be8] sm:$0xff]  ;;  %v15891_v48 = vcombine.high %v476_v40, %v492_v41 }
 0x3ae   :  { %7377 = vmatpush1.bf16.msra.mxu1 %v16050_v47  ;;  %v16434_v47 = vcombine.low %v1020_v33, %v1036_v34  ;;  %v444_v52 = vld [vmem:[#allocation2 + $0xa68] sm:$0xff] }
 0x3af   :  { %7378 = vmatprep.subr.bf16.mxu1 %v16531_v50  ;;  %v16403_v50 = vcombine.high %v988_v42, %v1004_v45  ;;  %v460_v57 = vld [vmem:[#allocation2 + $0xae8] sm:$0xff] }
 0x3b0   :  { %7338 = vmatpush2.bf16.msra.mxu0 %v16018_v62  ;;  %v956_v60 = vld [vmem:[#allocation2 + $0x1a68] sm:$0xff]  ;;  %v15890_v62 = vcombine.low %v476_v40, %v492_v41  ;;  %v349_v40 = vld [vmem:[#allocation2 + $0x770] sm:$0xff] }
 0x3b1   :  { %7339 = vmatprep.subr.bf16.mxu0 %v15987_v6  ;;  %v972_v61 = vld [vmem:[#allocation2 + $0x1ae8] sm:$0xff]  ;;  %v15859_v6 = vcombine.high %v444_v52, %v460_v57  ;;  %v365_v41 = vld [vmem:[#allocation2 + $0x7f0] sm:$0xff] }
 0x3b2   :  { %7379 = vmatpush2.bf16.msra.mxu1 %v16530_v63  ;;  %v16402_v63 = vcombine.low %v988_v42, %v1004_v45  ;;  %v412_v11 = vld [vmem:[#allocation2 + $0x968] sm:$0xff]  ;;  %v861_v42 = vld [vmem:[#allocation2 + $0x1770] sm:$0xff] }
 0x3b3   :  { %7380 = vmatprep.subr.bf16.mxu1 %v16499_v10  ;;  %v16371_v10 = vcombine.high %v956_v60, %v972_v61  ;;  %v428_v14 = vld [vmem:[#allocation2 + $0x9e8] sm:$0xff]  ;;  %v877_v45 = vld [vmem:[#allocation2 + $0x17f0] sm:$0xff] }
 0x3b4   :  { %7340 = vmatpush2.bf16.msra.mxu0 %v15986_v20  ;;  %v924_v17 = vld [vmem:[#allocation2 + $0x1968] sm:$0xff]  ;;  %v15858_v20 = vcombine.low %v444_v52, %v460_v57  ;;  %v317_v52 = vld [vmem:[#allocation2 + $0x670] sm:$0xff] }
 0x3b5   :  { %7341 = vmatprep.subr.bf16.mxu0 %v15955_v27  ;;  %v940_v18 = vld [vmem:[#allocation2 + $0x19e8] sm:$0xff]  ;;  %v15827_v27 = vcombine.high %v412_v11, %v428_v14  ;;  %v333_v57 = vld [vmem:[#allocation2 + $0x6f0] sm:$0xff] }
 0x3b6   :  { %7381 = vmatpush2.bf16.msra.mxu1 %v16498_v23  ;;  %v16370_v23 = vcombine.low %v956_v60, %v972_v61  ;;  %v380_v29 = vld [vmem:[#allocation2 + $0x868] sm:$0xff]  ;;  %v829_v60 = vld [vmem:[#allocation2 + $0x1670] sm:$0xff] }
 0x3b7   :  { %7382 = vmatprep.subr.bf16.mxu1 %v16467_v28  ;;  %v16339_v28 = vcombine.high %v924_v17, %v940_v18  ;;  %v396_v30 = vld [vmem:[#allocation2 + $0x8e8] sm:$0xff]  ;;  %v845_v61 = vld [vmem:[#allocation2 + $0x16f0] sm:$0xff] }
 0x3b8   :  { %7342 = vmatpush2.bf16.msra.mxu0 %v15954_v35  ;;  %v892_v33 = vld [vmem:[#allocation2 + $0x1868] sm:$0xff]  ;;  %v15826_v35 = vcombine.low %v412_v11, %v428_v14  ;;  %v285_v11 = vld [vmem:[#allocation2 + $0x570] sm:$0xff] }
 0x3b9   :  { %7343 = vmatprep.subr.bf16.mxu0 %v15923_v37  ;;  %v908_v34 = vld [vmem:[#allocation2 + $0x18e8] sm:$0xff]  ;;  %v15795_v37 = vcombine.high %v380_v29, %v396_v30  ;;  %v301_v14 = vld [vmem:[#allocation2 + $0x5f0] sm:$0xff] }
 0x3ba   :  { %7383 = vmatpush2.bf16.msra.mxu1 %v16466_v36  ;;  %v16338_v36 = vcombine.low %v924_v17, %v940_v18  ;;  %v797_v18 = vld [vmem:[#allocation2 + $0x1570] sm:$0xff] }
 0x3bb   :  { %7384 = vmatprep.subr.bf16.mxu1 %v16435_v39  ;;  %v16307_v39 = vcombine.high %v892_v33, %v908_v34 }
 0x3bc   :  { %7344 = vmatpush2.bf16.msra.mxu0 %v15922_v46  ;;  %v15794_v46 = vcombine.low %v380_v29, %v396_v30  ;;  %v16244_v30 = vcombine.low %v829_v60, %v845_v61 }
 0x3bd   :  { %7345 = vmatprep.subr.bf16.mxu0 %v15891_v48  ;;  %v15765_v48 = vcombine.high %v349_v40, %v365_v41 }
 0x3be   :  { %7385 = vmatpush2.bf16.msra.mxu1 %v16434_v47  ;;  %v16306_v47 = vcombine.low %v892_v33, %v908_v34  ;;  %v15701_v33 = vcombine.high %v285_v11, %v301_v14 }
 0x3bf   :  { %7386 = vmatprep.subr.bf16.mxu1 %v16403_v50  ;;  %v16277_v50 = vcombine.high %v861_v42, %v877_v45 }
 0x3c0   :  { %7346 = vmatpush2.bf16.msra.mxu0 %v15890_v62  ;;  %v15764_v62 = vcombine.low %v349_v40, %v365_v41  ;;  %v765_v41 = vld [vmem:[#allocation2 + $0x1470] sm:$0xff] }
 0x3c1   :  { %7347 = vmatprep.subr.bf16.mxu0 %v15859_v6  ;;  %v15733_v6 = vcombine.high %v317_v52, %v333_v57 }
 0x3c2   :  { %7387 = vmatpush2.bf16.msra.mxu1 %v16402_v63  ;;  %v16276_v63 = vcombine.low %v861_v42, %v877_v45  ;;  %v781_v42 = vld [vmem:[#allocation2 + $0x14f0] sm:$0xff] }
 0x3c3   :  { %7388 = vmatprep.subr.bf16.mxu1 %v16371_v10  ;;  %v16245_v10 = vcombine.high %v829_v60, %v845_v61  ;;  %v221_v60 = vld [vmem:[#allocation2 + $0x370] sm:$0xff] }
 0x3c4   :  { %7348 = vmatpush2.bf16.msra.mxu0 %v15858_v20  ;;  %v813_v20 = vld [vmem:[#allocation2 + $0x15f0] sm:$0xff] }
 0x3c5   :  { %7349 = vmatprep.subr.bf16.mxu0 %v15827_v27  ;;  %v15732_v27 = vcombine.low %v317_v52, %v333_v57  ;;  %v16181_v57 = vcombine.high %v765_v41, %v781_v42  ;;  %v237_v61 = vld [vmem:[#allocation2 + $0x3f0] sm:$0xff] }
 0x3c6   :  { %7389 = vmatpush2.bf16.msra.mxu1 %v16370_v23 }
 0x3c7   :  { %7390 = vmatprep.subr.bf16.mxu1 %v16339_v28 }
 0x3c8   :  { %7350 = vmatpush2.bf16.msra.mxu0 %v15826_v35  ;;  %v16213_v35 = vcombine.high %v797_v18, %v813_v20 }
 0x3c9   :  { %7351 = vmatprep.subr.bf16.mxu0 %v15795_v37  ;;  %v269_v37 = vld [vmem:[#allocation2 + $0x4f0] sm:$0xff] }
 0x3ca   :  { %7391 = vmatpush2.bf16.msra.mxu1 %v16338_v36  ;;  %v253_v36 = vld [vmem:[#allocation2 + $0x470] sm:$0xff] }
 0x3cb   :  { %7392 = vmatprep.subr.bf16.mxu1 %v16307_v39 }
 0x3cc   :  { %7352 = vmatpush2.bf16.msra.mxu0 %v15794_v46  ;;  %v15700_v46 = vcombine.low %v285_v11, %v301_v14  ;;  %v189_v14 = vld [vmem:[#allocation2 + $0x270] sm:$0xff] }
 0x3cd   :  { %7403 = vmatprep.subr.bf16.mxu0 %v15765_v48  ;;  %v16212_v48 = vcombine.low %v797_v18, %v813_v20  ;;  %v717_v18 = vld [vmem:[#allocation2 + $0x12f0] sm:$0xff]  ;;  %v15636_v20 = vcombine.low %v221_v60, %v237_v61 }
 0x3ce   :  { %7393 = vmatpush2.bf16.msra.mxu1 %v16306_v47 }
 0x3cf   :  { %7444 = vmatprep.subr.bf16.mxu1 %v16277_v50  ;;  %v7109_v17 = vpop.f32.mrf.mxu0  ;;  %7354 = vmatmul.mubr.bf16.vlgmr.msra.gmra.mxu0 %v17896_v16  ;;  %v15669_v50 = vcombine.high %v253_v36, %v269_v37 }
 0x3d0   :  { %7404 = vmatpush1.bf16.msra.mxu0 %v15764_v62  ;;  %7435 = vmatprep.mubr.bf16.mxu0 %v17884_v58  ;;  %v733_v62 = vld [vmem:[#allocation2 + $0x1370] sm:$0xff] }
 0x3d1   :  { %v7150_v23 = vpop.f32.mrf.mxu1  ;;  %7395 = vmatmul.mubr.bf16.vlgmr.msra.gmra.mxu1 %v17898_v19  ;;  %v7111_v29 = vpop.f32.mrf.mxu0  ;;  %7405 = vmatprep.subr.bf16.mxu0 %v15733_v6  ;;  %v15668_v6 = vcombine.low %v253_v36, %v269_v37  ;;  %v669_v36 = vld [vmem:[#allocation2 + $0x1170] sm:$0xff] }
 0x3d2   :  { %v18010_v28 = vadd.f32 %v7150_v23, %v7109_v17  ;;  %7445 = vmatpush1.bf16.msra.mxu1 %v16276_v63  ;;  %7476 = vmatprep.mubr.bf16.mxu1 %v17886_v59  ;;  %v749_v63 = vld [vmem:[#allocation2 + $0x13f0] sm:$0xff]  ;;  %v15637_v17 = vcombine.high %v221_v60, %v237_v61 }
 0x3d3   :  { %v7152_v34 = vpop.f32.mrf.mxu1  ;;  %7446 = vmatprep.subr.bf16.mxu1 %v16245_v10  ;;  %v7113_v40 = vpop.f32.mrf.mxu0  ;;  %v16180_v10 = vcombine.low %v765_v41, %v781_v42  ;;  %v16149_v11 = vcombine.high %v733_v62, %v749_v63  ;;  %v205_v23 = vld [vmem:[#allocation2 + $0x2f0] sm:$0xff] }
 0x3d4   :  { %v18013_v39 = vadd.f32 %v7152_v34, %v7111_v29  ;;  %7406 = vmatpush1.bf16.msra.mxu0 %v15732_v27  ;;  %v701_v27 = vld [vmem:[#allocation2 + $0x1270] sm:$0xff]  ;;  %v16148_v29 = vcombine.low %v733_v62, %v749_v63  ;;  %v15604_v40 = vcombine.low %v189_v14, %v205_v23 }
 0x3d5   :  { %v7154_v45 = vpop.f32.mrf.mxu1  ;;  %v7114_v47 = vpop.f32.mrf.mxu0  ;;  %7407 = vmatprep.subr.bf16.mxu0 %v15701_v33  ;;  %v16117_v33 = vcombine.high %v701_v27, %v717_v18  ;;  %v157_v34 = vld [vmem:[#allocation2 + $0x170] sm:$0xff]  ;;  %v16116_v41 = vcombine.low %v701_v27, %v717_v18 }
 0x3d6   :  { %7447 = vmatpush1.bf16.msra.mxu1 %v16244_v30  ;;  %v15605_v30 = vcombine.high %v189_v14, %v205_v23  ;;  %v685_v37 = vld [vmem:[#allocation2 + $0x11f0] sm:$0xff] }
 0x3d7   :  { %v7155_v52 = vpop.f32.mrf.mxu1  ;;  %7448 = vmatprep.subr.bf16.mxu1 %v16213_v35  ;;  %v173_v35 = vld [vmem:[#allocation2 + $0x1f0] sm:$0xff]  ;;  %v16085_v45 = vcombine.high %v669_v36, %v685_v37 }
 0x3d8   :  { %7408 = vmatpush1.bf16.msra.mxu0 %v15700_v46  ;;  %v15573_v42 = vcombine.high %v157_v34, %v173_v35  ;;  %v125_v46 = vld [vmem:[#allocation2 + $0x70] sm:$0xff]  ;;  %v15572_v52 = vcombine.low %v157_v34, %v173_v35 }
 0x3d9   :  { %7409 = vmatprep.subr.bf16.mxu0 %v15669_v50  ;;  %v141_v47 = vld [vmem:[#allocation2 + $0xf0] sm:$0xff] }
 0x3da   :  { %7449 = vmatpush1.bf16.msra.mxu1 %v16212_v48  ;;  %v637_v48 = vld [vmem:[#allocation2 + $0x1070] sm:$0xff]  ;;  %v15541_v60 = vcombine.high %v125_v46, %v141_v47 }
 0x3db   :  { %7450 = vmatprep.subr.bf16.mxu1 %v16181_v57  ;;  %v653_v50 = vld [vmem:[#allocation2 + $0x10f0] sm:$0xff]  ;;  %v16084_v57 = vcombine.low %v669_v36, %v685_v37 }
 0x3dc   :  { %7410 = vmatpush1.bf16.msra.mxu0 %v15668_v6  ;;  %v16053_v61 = vcombine.high %v637_v48, %v653_v50  ;;  %v605_v62 = vld [vmem:[#allocation2 + $0xf70] sm:$0xff] }
 0x3dd   :  { %7411 = vmatprep.subr.bf16.mxu0 %v15637_v17  ;;  %v621_v63 = vld [vmem:[#allocation2 + $0xff0] sm:$0xff]  ;;  %v15540_v17 = vcombine.low %v125_v46, %v141_v47 }
 0x3de   :  { %7451 = vmatpush1.bf16.msra.mxu1 %v16180_v10  ;;  %v1117_v6 = vld [vmem:[#allocation2 + $0x1f70] sm:$0xff]  ;;  %v16021_v14 = vcombine.high %v605_v62, %v621_v63 }
 0x3df   :  { %7452 = vmatprep.subr.bf16.mxu1 %v16149_v11  ;;  %v1133_v10 = vld [vmem:[#allocation2 + $0x1ff0] sm:$0xff]  ;;  %v16052_v11 = vcombine.low %v637_v48, %v653_v50 }
 0x3e0   :  { %7412 = vmatpush1.bf16.msra.mxu0 %v15636_v20  ;;  %v16533_v23 = vcombine.high %v1117_v6, %v1133_v10  ;;  %v573_v27 = vld [vmem:[#allocation2 + $0xe70] sm:$0xff] }
 0x3e1   :  { %7413 = vmatprep.subr.bf16.mxu0 %v15605_v30  ;;  %v589_v18 = vld [vmem:[#allocation2 + $0xef0] sm:$0xff]  ;;  %v16020_v30 = vcombine.low %v605_v62, %v621_v63 }
 0x3e2   :  { %7453 = vmatpush1.bf16.msra.mxu1 %v16148_v29  ;;  %v1085_v20 = vld [vmem:[#allocation2 + $0x1e70] sm:$0xff]  ;;  %v15989_v34 = vcombine.high %v573_v27, %v589_v18 }
 0x3e3   :  { %7454 = vmatprep.subr.bf16.mxu1 %v16117_v33  ;;  %v1101_v29 = vld [vmem:[#allocation2 + $0x1ef0] sm:$0xff]  ;;  %v16532_v33 = vcombine.low %v1117_v6, %v1133_v10 }
 0x3e4   :  { %7414 = vmatpush1.bf16.msra.mxu0 %v15604_v40  ;;  %v16501_v35 = vcombine.high %v1085_v20, %v1101_v29  ;;  %v541_v36 = vld [vmem:[#allocation2 + $0xd70] sm:$0xff] }
 0x3e5   :  { %7415 = vmatprep.subr.bf16.mxu0 %v15573_v42  ;;  %v557_v37 = vld [vmem:[#allocation2 + $0xdf0] sm:$0xff]  ;;  %v15988_v42 = vcombine.low %v573_v27, %v589_v18 }
 0x3e6   :  { %7455 = vmatpush1.bf16.msra.mxu1 %v16116_v41  ;;  %v1053_v40 = vld [vmem:[#allocation2 + $0x1d70] sm:$0xff]  ;;  %v15957_v46 = vcombine.high %v541_v36, %v557_v37 }
 0x3e7   :  { %7456 = vmatprep.subr.bf16.mxu1 %v16085_v45  ;;  %v1069_v41 = vld [vmem:[#allocation2 + $0x1df0] sm:$0xff]  ;;  %v16500_v45 = vcombine.low %v1085_v20, %v1101_v29 }
 0x3e8   :  { %7416 = vmatpush1.bf16.msra.mxu0 %v15572_v52  ;;  %v16469_v47 = vcombine.high %v1053_v40, %v1069_v41  ;;  %v509_v48 = vld [vmem:[#allocation2 + $0xc70] sm:$0xff] }
 0x3e9   :  { %7417 = vmatprep.subr.bf16.mxu0 %v15541_v60  ;;  %v525_v50 = vld [vmem:[#allocation2 + $0xcf0] sm:$0xff]  ;;  %v15956_v60 = vcombine.low %v541_v36, %v557_v37 }
 0x3ea   :  { %7457 = vmatpush1.bf16.msra.mxu1 %v16084_v57  ;;  %v1021_v52 = vld [vmem:[#allocation2 + $0x1c70] sm:$0xff]  ;;  %v15925_v62 = vcombine.high %v509_v48, %v525_v50 }
 0x3eb   :  { %7458 = vmatprep.subr.bf16.mxu1 %v16053_v61  ;;  %v1037_v57 = vld [vmem:[#allocation2 + $0x1cf0] sm:$0xff]  ;;  %v16468_v61 = vcombine.low %v1053_v40, %v1069_v41 }
 0x3ec   :  { %7418 = vmatpush1.bf16.msra.mxu0 %v15540_v17  ;;  %v16437_v63 = vcombine.high %v1021_v52, %v1037_v57  ;;  %v477_v6 = vld [vmem:[#allocation2 + $0xb70] sm:$0xff] }
 0x3ed   :  { %7419 = vmatprep.subr.bf16.mxu0 %v16021_v14  ;;  %v493_v10 = vld [vmem:[#allocation2 + $0xbf0] sm:$0xff]  ;;  %v15924_v14 = vcombine.low %v509_v48, %v525_v50 }
 0x3ee   :  { %7459 = vmatpush1.bf16.msra.mxu1 %v16052_v11  ;;  %v989_v17 = vld [vmem:[#allocation2 + $0x1b70] sm:$0xff]  ;;  %v15893_v27 = vcombine.high %v477_v6, %v493_v10 }
 0x3ef   :  { %7460 = vmatprep.subr.bf16.mxu1 %v16533_v23  ;;  %v1005_v11 = vld [vmem:[#allocation2 + $0x1bf0] sm:$0xff]  ;;  %v16436_v23 = vcombine.low %v1021_v52, %v1037_v57 }
 0x3f0   :  { %7420 = vmatpush2.bf16.msra.mxu0 %v16020_v30  ;;  %v16405_v18 = vcombine.high %v989_v17, %v1005_v11  ;;  %v445_v20 = vld [vmem:[#allocation2 + $0xa70] sm:$0xff] }
 0x3f1   :  { %7421 = vmatprep.subr.bf16.mxu0 %v15989_v34  ;;  %v461_v29 = vld [vmem:[#allocation2 + $0xaf0] sm:$0xff]  ;;  %v15892_v34 = vcombine.low %v477_v6, %v493_v10 }
 0x3f2   :  { %7461 = vmatpush2.bf16.msra.mxu1 %v16532_v33  ;;  %v957_v30 = vld [vmem:[#allocation2 + $0x1a70] sm:$0xff]  ;;  %v15861_v36 = vcombine.high %v445_v20, %v461_v29 }
 0x3f3   :  { %7462 = vmatprep.subr.bf16.mxu1 %v16501_v35  ;;  %v973_v33 = vld [vmem:[#allocation2 + $0x1af0] sm:$0xff]  ;;  %v16404_v35 = vcombine.low %v989_v17, %v1005_v11  ;;  %v350_v17 = vld [vmem:[#allocation2 + $0x778] sm:$0xff] }
 0x3f4   :  { %7422 = vmatpush2.bf16.msra.mxu0 %v15988_v42  ;;  %v16373_v37 = vcombine.high %v957_v30, %v973_v33  ;;  %v413_v40 = vld [vmem:[#allocation2 + $0x970] sm:$0xff]  ;;  %v366_v11 = vld [vmem:[#allocation2 + $0x7f8] sm:$0xff] }
 0x3f5   :  { %7423 = vmatprep.subr.bf16.mxu0 %v15957_v46  ;;  %v429_v41 = vld [vmem:[#allocation2 + $0x9f0] sm:$0xff]  ;;  %v15860_v46 = vcombine.low %v445_v20, %v461_v29  ;;  %v15767_v20 = vcombine.high %v350_v17, %v366_v11 }
 0x3f6   :  { %7463 = vmatpush2.bf16.msra.mxu1 %v16500_v45  ;;  %v925_v42 = vld [vmem:[#allocation2 + $0x1970] sm:$0xff]  ;;  %v15829_v48 = vcombine.high %v413_v40, %v429_v41 }
 0x3f7   :  { %7464 = vmatprep.subr.bf16.mxu1 %v16469_v47  ;;  %v941_v45 = vld [vmem:[#allocation2 + $0x19f0] sm:$0xff]  ;;  %v16372_v47 = vcombine.low %v957_v30, %v973_v33  ;;  %v318_v30 = vld [vmem:[#allocation2 + $0x678] sm:$0xff] }
 0x3f8   :  { %7424 = vmatpush2.bf16.msra.mxu0 %v15956_v60  ;;  %v16341_v50 = vcombine.high %v925_v42, %v941_v45  ;;  %v381_v52 = vld [vmem:[#allocation2 + $0x870] sm:$0xff]  ;;  %v334_v33 = vld [vmem:[#allocation2 + $0x6f8] sm:$0xff] }
 0x3f9   :  { %7425 = vmatprep.subr.bf16.mxu0 %v15925_v62  ;;  %v397_v57 = vld [vmem:[#allocation2 + $0x8f0] sm:$0xff]  ;;  %v15828_v62 = vcombine.low %v413_v40, %v429_v41  ;;  %v15735_v40 = vcombine.high %v318_v30, %v334_v33 }
 0x3fa   :  { %7465 = vmatpush2.bf16.msra.mxu1 %v16468_v61  ;;  %v893_v60 = vld [vmem:[#allocation2 + $0x1870] sm:$0xff]  ;;  %v15797_v6 = vcombine.high %v381_v52, %v397_v57 }
 0x3fb   :  { %7466 = vmatprep.subr.bf16.mxu1 %v16437_v63  ;;  %v909_v61 = vld [vmem:[#allocation2 + $0x18f0] sm:$0xff]  ;;  %v16340_v63 = vcombine.low %v925_v42, %v941_v45  ;;  %v286_v42 = vld [vmem:[#allocation2 + $0x578] sm:$0xff] }
 0x3fc   :  { %7426 = vmatpush2.bf16.msra.mxu0 %v15924_v14  ;;  %v16309_v10 = vcombine.high %v893_v60, %v909_v61  ;;  %v862_v14 = vld [vmem:[#allocation2 + $0x1778] sm:$0xff] }
 0x3fd   :  { %7427 = vmatprep.subr.bf16.mxu0 %v15893_v27  ;;  %v15796_v27 = vcombine.low %v381_v52, %v397_v57  ;;  %v302_v45 = vld [vmem:[#allocation2 + $0x5f8] sm:$0xff]  ;;  %v15734_v52 = vcombine.low %v318_v30, %v334_v33 }
 0x3fe   :  { %7467 = vmatpush2.bf16.msra.mxu1 %v16436_v23  ;;  %v878_v23 = vld [vmem:[#allocation2 + $0x17f8] sm:$0xff] }
 0x3ff   :  { %7468 = vmatprep.subr.bf16.mxu1 %v16405_v18  ;;  %v16308_v18 = vcombine.low %v893_v60, %v909_v61  ;;  %v16279_v29 = vcombine.high %v862_v14, %v878_v23 }
 0x400   :  { %7428 = vmatpush2.bf16.msra.mxu0 %v15892_v34  ;;  %v830_v34 = vld [vmem:[#allocation2 + $0x1678] sm:$0xff] }
 0x401   :  { %7429 = vmatprep.subr.bf16.mxu0 %v15861_v36  ;;  %v15766_v36 = vcombine.low %v350_v17, %v366_v11  ;;  %v270_v17 = vld [vmem:[#allocation2 + $0x4f8] sm:$0xff] }
 0x402   :  { %7469 = vmatpush2.bf16.msra.mxu1 %v16404_v35  ;;  %v846_v35 = vld [vmem:[#allocation2 + $0x16f8] sm:$0xff] }
 0x403   :  { %7470 = vmatprep.subr.bf16.mxu1 %v16373_v37  ;;  %v16278_v37 = vcombine.low %v862_v14, %v878_v23  ;;  %v16247_v41 = vcombine.high %v830_v34, %v846_v35  ;;  %v16246_v61 = vcombine.low %v830_v34, %v846_v35  ;;  %v766_v23 = vld [vmem:[#allocation2 + $0x1478] sm:$0xff] }
 0x404   :  { %7430 = vmatpush2.bf16.msra.mxu0 %v15860_v46 }
 0x405   :  { %7431 = vmatprep.subr.bf16.mxu0 %v15829_v48  ;;  %v814_v48 = vld [vmem:[#allocation2 + $0x15f8] sm:$0xff] }
 0x406   :  { %7471 = vmatpush2.bf16.msra.mxu1 %v16372_v47  ;;  %v798_v47 = vld [vmem:[#allocation2 + $0x1578] sm:$0xff] }
 0x407   :  { %7472 = vmatprep.subr.bf16.mxu1 %v16341_v50  ;;  %v16214_v30 = vcombine.low %v798_v47, %v814_v48 }
 0x408   :  { %7432 = vmatpush2.bf16.msra.mxu0 %v15828_v62  ;;  %v15703_v62 = vcombine.high %v286_v42, %v302_v45 }
 0x409   :  { %7433 = vmatprep.subr.bf16.mxu0 %v15797_v6  ;;  %v16215_v6 = vcombine.high %v798_v47, %v814_v48  ;;  %v718_v47 = vld [vmem:[#allocation2 + $0x12f8] sm:$0xff] }
 0x40a   :  { %7473 = vmatpush2.bf16.msra.mxu1 %v16340_v63 }
 0x40b   :  { %7474 = vmatprep.subr.bf16.mxu1 %v16309_v10  ;;  %v254_v10 = vld [vmem:[#allocation2 + $0x478] sm:$0xff] }
 0x40c   :  { %7434 = vmatpush2.bf16.msra.mxu0 %v15796_v27  ;;  %v782_v27 = vld [vmem:[#allocation2 + $0x14f8] sm:$0xff]  ;;  %v15671_v33 = vcombine.high %v254_v10, %v270_v17 }
 0x40d   :  { %7485 = vmatprep.subr.bf16.mxu0 %v15767_v20  ;;  %v15702_v20 = vcombine.low %v286_v42, %v302_v45  ;;  %v16183_v35 = vcombine.high %v766_v23, %v782_v27  ;;  %v190_v45 = vld [vmem:[#allocation2 + $0x278] sm:$0xff] }
 0x40e   :  { %7475 = vmatpush2.bf16.msra.mxu1 %v16308_v18 }
 0x40f   :  { %7526 = vmatprep.subr.bf16.mxu1 %v16279_v29  ;;  %v7191_v46 = vpop.f32.mrf.mxu0  ;;  %7436 = vmatmul.mubr.bf16.vlgmr.msra.gmra.mxu0 %v17896_v16 }
 0x410   :  { %7486 = vmatpush1.bf16.msra.mxu0 %v15766_v36  ;;  %7517 = vmatprep.mubr.bf16.mxu0 %v17884_v58  ;;  %v222_v36 = vld [vmem:[#allocation2 + $0x378] sm:$0xff] }
 0x411   :  { %v7232_v50 = vpop.f32.mrf.mxu1  ;;  %7477 = vmatmul.mubr.bf16.vlgmr.msra.gmra.mxu1 %v17898_v19  ;;  %v7193_v60 = vpop.f32.mrf.mxu0  ;;  %7487 = vmatprep.subr.bf16.mxu0 %v15735_v40  ;;  %v238_v58 = vld [vmem:[#allocation2 + $0x3f8] sm:$0xff] }
 0x412   :  { %v18018_v57 = vadd.f32 %v7232_v50, %v7191_v46  ;;  %7527 = vmatpush1.bf16.msra.mxu1 %v16278_v37  ;;  %7558 = vmatprep.mubr.bf16.mxu1 %v17886_v59  ;;  %v734_v37 = vld [vmem:[#allocation2 + $0x1378] sm:$0xff]  ;;  %v16182_v59 = vcombine.low %v766_v23, %v782_v27  ;;  %v15639_v46 = vcombine.high %v222_v36, %v238_v58 }
 0x413   :  { %v7234_v63 = vpop.f32.mrf.mxu1  ;;  %7528 = vmatprep.subr.bf16.mxu1 %v16247_v41  ;;  %v7195_v14 = vpop.f32.mrf.mxu0  ;;  %v750_v40 = vld [vmem:[#allocation2 + $0x13f8] sm:$0xff]  ;;  %v15670_v41 = vcombine.low %v254_v10, %v270_v17  ;;  %v15638_v48 = vcombine.low %v222_v36, %v238_v58 }
 0x414   :  { %v18021_v11 = vadd.f32 %v7234_v63, %v7193_v60  ;;  %7488 = vmatpush1.bf16.msra.mxu0 %v15734_v52  ;;  %v16151_v42 = vcombine.high %v734_v37, %v750_v40  ;;  %v206_v50 = vld [vmem:[#allocation2 + $0x2f8] sm:$0xff]  ;;  %v16150_v60 = vcombine.low %v734_v37, %v750_v40 }
 0x415   :  { %v7236_v18 = vpop.f32.mrf.mxu1  ;;  %v7196_v29 = vpop.f32.mrf.mxu0  ;;  %7489 = vmatprep.subr.bf16.mxu0 %v15703_v62  ;;  %v702_v52 = vld [vmem:[#allocation2 + $0x1278] sm:$0xff]  ;;  %v15606_v14 = vcombine.low %v190_v45, %v206_v50 }
 0x416   :  { %7529 = vmatpush1.bf16.msra.mxu1 %v16246_v61  ;;  %v15607_v61 = vcombine.high %v190_v45, %v206_v50  ;;  %v16119_v62 = vcombine.high %v702_v52, %v718_v47  ;;  %v158_v63 = vld [vmem:[#allocation2 + $0x178] sm:$0xff]  ;;  %v16118_v23 = vcombine.low %v702_v52, %v718_v47 }
 0x417   :  { %v7237_v34 = vpop.f32.mrf.mxu1  ;;  %7530 = vmatprep.subr.bf16.mxu1 %v16215_v6  ;;  %v174_v6 = vld [vmem:[#allocation2 + $0x1f8] sm:$0xff] }
 0x418   :  { %7490 = vmatpush1.bf16.msra.mxu0 %v15702_v20  ;;  %v670_v10 = vld [vmem:[#allocation2 + $0x1178] sm:$0xff]  ;;  %v15575_v27 = vcombine.high %v158_v63, %v174_v6  ;;  %v15574_v34 = vcombine.low %v158_v63, %v174_v6 }
 0x419   :  { %7491 = vmatprep.subr.bf16.mxu0 %v15671_v33  ;;  %v686_v17 = vld [vmem:[#allocation2 + $0x11f8] sm:$0xff] }
 0x41a   :  { %7531 = vmatpush1.bf16.msra.mxu1 %v16214_v30  ;;  %v16087_v18 = vcombine.high %v670_v10, %v686_v17  ;;  %v126_v20 = vld [vmem:[#allocation2 + $0x78] sm:$0xff] }
 0x41b   :  { %7532 = vmatprep.subr.bf16.mxu1 %v16183_v35  ;;  %v142_v29 = vld [vmem:[#allocation2 + $0xf8] sm:$0xff]  ;;  %v16086_v35 = vcombine.low %v670_v10, %v686_v17 }
 0x41c   :  { %7492 = vmatpush1.bf16.msra.mxu0 %v15670_v41  ;;  %v638_v30 = vld [vmem:[#allocation2 + $0x1078] sm:$0xff]  ;;  %v15543_v36 = vcombine.high %v126_v20, %v142_v29 }
 0x41d   :  { %7493 = vmatprep.subr.bf16.mxu0 %v15639_v46  ;;  %v654_v33 = vld [vmem:[#allocation2 + $0x10f8] sm:$0xff]  ;;  %v15542_v46 = vcombine.low %v126_v20, %v142_v29 }
 0x41e   :  { %7533 = vmatpush1.bf16.msra.mxu1 %v16182_v59  ;;  %v16055_v58 = vcombine.high %v638_v30, %v654_v33  ;;  %v606_v37 = vld [vmem:[#allocation2 + $0xf78] sm:$0xff] }
 0x41f   :  { %7534 = vmatprep.subr.bf16.mxu1 %v16151_v42  ;;  %v622_v40 = vld [vmem:[#allocation2 + $0xff8] sm:$0xff]  ;;  %v16054_v42 = vcombine.low %v638_v30, %v654_v33 }
 0x420   :  { %7494 = vmatpush1.bf16.msra.mxu0 %v15638_v48  ;;  %v1118_v41 = vld [vmem:[#allocation2 + $0x1f78] sm:$0xff]  ;;  %v16023_v45 = vcombine.high %v606_v37, %v622_v40 }
 0x421   :  { %7495 = vmatprep.subr.bf16.mxu0 %v15607_v61  ;;  %v1134_v59 = vld [vmem:[#allocation2 + $0x1ff8] sm:$0xff]  ;;  %v16022_v61 = vcombine.low %v606_v37, %v622_v40 }
 0x422   :  { %7535 = vmatpush1.bf16.msra.mxu1 %v16150_v60  ;;  %v16535_v50 = vcombine.high %v1118_v41, %v1134_v59  ;;  %v574_v52 = vld [vmem:[#allocation2 + $0xe78] sm:$0xff] }
 0x423   :  { %7536 = vmatprep.subr.bf16.mxu1 %v16119_v62  ;;  %v590_v47 = vld [vmem:[#allocation2 + $0xef8] sm:$0xff]  ;;  %v16534_v62 = vcombine.low %v1118_v41, %v1134_v59 }
 0x424   :  { %7496 = vmatpush1.bf16.msra.mxu0 %v15606_v14  ;;  %v1086_v48 = vld [vmem:[#allocation2 + $0x1e78] sm:$0xff]  ;;  %v15991_v63 = vcombine.high %v574_v52, %v590_v47 }
 0x425   :  { %7497 = vmatprep.subr.bf16.mxu0 %v15575_v27  ;;  %v1102_v60 = vld [vmem:[#allocation2 + $0x1ef8] sm:$0xff]  ;;  %v15990_v27 = vcombine.low %v574_v52, %v590_v47 }
 0x426   :  { %7537 = vmatpush1.bf16.msra.mxu1 %v16118_v23  ;;  %v16503_v6 = vcombine.high %v1086_v48, %v1102_v60  ;;  %v542_v10 = vld [vmem:[#allocation2 + $0xd78] sm:$0xff] }
 0x427   :  { %7538 = vmatprep.subr.bf16.mxu1 %v16087_v18  ;;  %v558_v17 = vld [vmem:[#allocation2 + $0xdf8] sm:$0xff]  ;;  %v16502_v18 = vcombine.low %v1086_v48, %v1102_v60 }
 0x428   :  { %7498 = vmatpush1.bf16.msra.mxu0 %v15574_v34  ;;  %v1054_v14 = vld [vmem:[#allocation2 + $0x1d78] sm:$0xff]  ;;  %v15959_v20 = vcombine.high %v542_v10, %v558_v17 }
 0x429   :  { %7499 = vmatprep.subr.bf16.mxu0 %v15543_v36  ;;  %v1070_v23 = vld [vmem:[#allocation2 + $0x1df8] sm:$0xff]  ;;  %v15958_v36 = vcombine.low %v542_v10, %v558_v17 }
 0x42a   :  { %7539 = vmatpush1.bf16.msra.mxu1 %v16086_v35  ;;  %v16471_v29 = vcombine.high %v1054_v14, %v1070_v23  ;;  %v510_v30 = vld [vmem:[#allocation2 + $0xc78] sm:$0xff] }
 0x42b   :  { %7540 = vmatprep.subr.bf16.mxu1 %v16055_v58  ;;  %v526_v33 = vld [vmem:[#allocation2 + $0xcf8] sm:$0xff]  ;;  %v16470_v58 = vcombine.low %v1054_v14, %v1070_v23 }
 0x42c   :  { %7500 = vmatpush1.bf16.msra.mxu0 %v15542_v46  ;;  %v1022_v34 = vld [vmem:[#allocation2 + $0x1c78] sm:$0xff]  ;;  %v15927_v37 = vcombine.high %v510_v30, %v526_v33 }
 0x42d   :  { %7501 = vmatprep.subr.bf16.mxu0 %v16023_v45  ;;  %v1038_v35 = vld [vmem:[#allocation2 + $0x1cf8] sm:$0xff]  ;;  %v15926_v45 = vcombine.low %v510_v30, %v526_v33 }
 0x42e   :  { %7541 = vmatpush1.bf16.msra.mxu1 %v16054_v42  ;;  %v16439_v40 = vcombine.high %v1022_v34, %v1038_v35  ;;  %v478_v41 = vld [vmem:[#allocation2 + $0xb78] sm:$0xff] }
 0x42f   :  { %7542 = vmatprep.subr.bf16.mxu1 %v16535_v50  ;;  %v494_v59 = vld [vmem:[#allocation2 + $0xbf8] sm:$0xff]  ;;  %v16438_v50 = vcombine.low %v1022_v34, %v1038_v35 }
 0x430   :  { %7502 = vmatpush2.bf16.msra.mxu0 %v16022_v61  ;;  %v990_v46 = vld [vmem:[#allocation2 + $0x1b78] sm:$0xff]  ;;  %v15895_v52 = vcombine.high %v478_v41, %v494_v59 }
 0x431   :  { %7503 = vmatprep.subr.bf16.mxu0 %v15991_v63  ;;  %v1006_v42 = vld [vmem:[#allocation2 + $0x1bf8] sm:$0xff]  ;;  %v15894_v63 = vcombine.low %v478_v41, %v494_v59 }
 0x432   :  { %7543 = vmatpush2.bf16.msra.mxu1 %v16534_v62  ;;  %v16407_v47 = vcombine.high %v990_v46, %v1006_v42  ;;  %v446_v48 = vld [vmem:[#allocation2 + $0xa78] sm:$0xff] }
 0x433   :  { %7544 = vmatprep.subr.bf16.mxu1 %v16503_v6  ;;  %v462_v60 = vld [vmem:[#allocation2 + $0xaf8] sm:$0xff]  ;;  %v16406_v6 = vcombine.low %v990_v46, %v1006_v42  ;;  %v7769_v46 = vld [vmem:[#allocation6 + $0x380] sm:$0xff] }
 0x434   :  { %7504 = vmatpush2.bf16.msra.mxu0 %v15990_v27  ;;  %v958_v61 = vld [vmem:[#allocation2 + $0x1a78] sm:$0xff]  ;;  %v15863_v10 = vcombine.high %v446_v48, %v462_v60  ;;  %v7777_v42 = vld [vmem:[#allocation6 + $0x3c0] sm:$0xff] }
 0x435   :  { %7505 = vmatprep.subr.bf16.mxu0 %v15959_v20  ;;  %v974_v62 = vld [vmem:[#allocation2 + $0x1af8] sm:$0xff]  ;;  %v15862_v20 = vcombine.low %v446_v48, %v462_v60  ;;  %v16649_v48 = vcombine.high %v7769_v46, %v7777_v42  ;;  %v7593_v60 = vlaneseq }
 0x436   :  { %7545 = vmatpush2.bf16.msra.mxu1 %v16502_v18  ;;  %v16375_v17 = vcombine.high %v958_v61, %v974_v62  ;;  %v414_v14 = vld [vmem:[#allocation2 + $0x978] sm:$0xff] }
 0x437   :  { %7546 = vmatprep.subr.bf16.mxu1 %v16471_v29  ;;  %v430_v23 = vld [vmem:[#allocation2 + $0x9f8] sm:$0xff]  ;;  %v16374_v29 = vcombine.low %v958_v61, %v974_v62  ;;  %v7753_v61 = vld [vmem:[#allocation6 + $0x300] sm:$0xff] }
 0x438   :  { %7506 = vmatpush2.bf16.msra.mxu0 %v15958_v36  ;;  %v926_v27 = vld [vmem:[#allocation2 + $0x1978] sm:$0xff]  ;;  %v15831_v30 = vcombine.high %v414_v14, %v430_v23  ;;  %v7761_v62 = vld [vmem:[#allocation6 + $0x340] sm:$0xff] }
 0x439   :  { %7507 = vmatprep.subr.bf16.mxu0 %v15927_v37  ;;  %v942_v18 = vld [vmem:[#allocation2 + $0x19f8] sm:$0xff]  ;;  %v15830_v37 = vcombine.low %v414_v14, %v430_v23  ;;  %v16633_v14 = vcombine.high %v7753_v61, %v7761_v62 }
 0x43a   :  { %7547 = vmatpush2.bf16.msra.mxu1 %v16470_v58  ;;  %v16343_v33 = vcombine.high %v926_v27, %v942_v18  ;;  %v382_v34 = vld [vmem:[#allocation2 + $0x878] sm:$0xff] }
 0x43b   :  { %7548 = vmatprep.subr.bf16.mxu1 %v16439_v40  ;;  %v398_v35 = vld [vmem:[#allocation2 + $0x8f8] sm:$0xff]  ;;  %v16342_v40 = vcombine.low %v926_v27, %v942_v18  ;;  %v18024_v27 = vshrl.u32 %v7593_v60, 7  ;;  %v7737_v18 = vld [vmem:[#allocation6 + $0x280] sm:$0xff] }
 0x43c   :  { %7508 = vmatpush2.bf16.msra.mxu0 %v15926_v45  ;;  %v894_v36 = vld [vmem:[#allocation2 + $0x1878] sm:$0xff]  ;;  %v15799_v41 = vcombine.high %v382_v34, %v398_v35  ;;  %v8025_v45 = vld [vmem:[#allocation6 + $0xb80] sm:$0xff] }
 0x43d   :  { %7509 = vmatprep.subr.bf16.mxu0 %v15895_v52  ;;  %v910_v58 = vld [vmem:[#allocation2 + $0x18f8] sm:$0xff]  ;;  %v15798_v52 = vcombine.low %v382_v34, %v398_v35  ;;  %v8001_v34 = vld [vmem:[#allocation6 + $0xac0] sm:$0xff] }
 0x43e   :  { %7549 = vmatpush2.bf16.msra.mxu1 %v16438_v50  ;;  %v16311_v59 = vcombine.high %v894_v36, %v910_v58  ;;  %v8033_v50 = vld [vmem:[#allocation6 + $0xbc0] sm:$0xff] }
 0x43f   :  { %7550 = vmatprep.subr.bf16.mxu1 %v16407_v47  ;;  %v16310_v47 = vcombine.low %v894_v36, %v910_v58  ;;  %v16904_v23 = vcombine.low %v8025_v45, %v8033_v50  ;;  %v7599_v36 = vsub.s32 1, %v18024_v27  ;;  %v16632_v58 = vcombine.low %v7753_v61, %v7761_v62  ;;  %v7985_v60 = vld [vmem:[#allocation6 + $0xa40] sm:$0xff] }
 0x440   :  { %7510 = vmatpush2.bf16.msra.mxu0 %v15894_v63  ;;  %v16905_v63 = vcombine.high %v8025_v45, %v8033_v50 }
 0x441   :  { %7511 = vmatprep.subr.bf16.mxu0 %v15863_v10  ;;  %v8017_v10 = vld [vmem:[#allocation6 + $0xb40] sm:$0xff] }
 0x442   :  { %7551 = vmatpush2.bf16.msra.mxu1 %v16406_v6  ;;  %v8009_v6 = vld [vmem:[#allocation6 + $0xb00] sm:$0xff] }
 0x443   :  { %7552 = vmatprep.subr.bf16.mxu1 %v16375_v17  ;;  %v16648_v17 = vcombine.low %v7769_v46, %v7777_v42  ;;  %v7729_v46 = vld [vmem:[#allocation6 + $0x240] sm:$0xff]  ;;  %v16888_v42 = vcombine.low %v8009_v6, %v8017_v10 }
 0x444   :  { %7512 = vmatpush2.bf16.msra.mxu0 %v15862_v20  ;;  %v7745_v20 = vld [vmem:[#allocation6 + $0x2c0] sm:$0xff] }
 0x445   :  { %7513 = vmatprep.subr.bf16.mxu0 %v15831_v30 }
 0x446   :  { %7553 = vmatpush2.bf16.msra.mxu1 %v16374_v29  ;;  %v16889_v29 = vcombine.high %v8009_v6, %v8017_v10 }
 0x447   :  { %7554 = vmatprep.subr.bf16.mxu1 %v16343_v33  ;;  %v7993_v33 = vld [vmem:[#allocation6 + $0xa80] sm:$0xff] }
 0x448   :  { %7514 = vmatpush2.bf16.msra.mxu0 %v15830_v37 }
 0x449   :  { %7515 = vmatprep.subr.bf16.mxu0 %v15799_v41  ;;  %v16617_v41 = vcombine.high %v7737_v18, %v7745_v20 }
 0x44a   :  { %7555 = vmatpush2.bf16.msra.mxu1 %v16342_v40 }
 0x44b   :  { %7556 = vmatprep.subr.bf16.mxu1 %v16311_v59  ;;  %v7721_v59 = vld [vmem:[#allocation6 + $0x200] sm:$0xff] }
 0x44c   :  { %7516 = vmatpush2.bf16.msra.mxu0 %v15798_v52  ;;  %v18030_v52 = vld [vmem:[#allocation4] sm:$0xff]  ;;  %v16600_v55 = vcombine.low %v7721_v59, %v7729_v46 }
 0x44d   :  { %13801 = vmatprep.subr.bf16.mxu0 %v16649_v48  ;;  %v7977_v48 = vld [vmem:[#allocation6 + $0xa00] sm:$0xff]  ;;  %v7600_v61 = vrot.slane %v18030_v52, %v7599_v36 }
 0x44e   :  { %7557 = vmatpush2.bf16.msra.mxu1 %v16310_v47 }
 0x44f   :  { %13842 = vmatprep.subr.bf16.mxu1 %v16905_v63  ;;  %v7273_v30 = vpop.f32.mrf.mxu0  ;;  %7518 = vmatmul.mubr.bf16.vlgmr.msra.gmra.mxu0 %v17896_v16  ;;  %v16873_v16 = vcombine.high %v7993_v33, %v8001_v34  ;;  %v16616_v63 = vcombine.low %v7737_v18, %v7745_v20  ;;  %v7961_v20 = vld [vmem:[#allocation6 + $0x980] sm:$0xff] }
 0x450   :  { %13802 = vmatpush1.bf16.msra.mxu0 %v16648_v17  ;;  %v16601_v17 = vcombine.high %v7721_v59, %v7729_v46  ;;  %v7673_v59 = vld [vmem:[#allocation6 + $0x80] sm:$0xff] }
 0x451   :  { %v7314_v35 = vpop.f32.mrf.mxu1  ;;  %7559 = vmatmul.mubr.bf16.vlgmr.msra.gmra.mxu1 %v17898_v19  ;;  %v7275_v40 = vpop.f32.mrf.mxu0  ;;  %13803 = vmatprep.subr.bf16.mxu0 %v16633_v14  ;;  %v16872_v14 = vcombine.low %v7993_v33, %v8001_v34  ;;  %v7697_v33 = vld [vmem:[#allocation6 + $0x140] sm:$0xff] }
 0x452   :  { %v7315_v37 = vadd.f32 %v7314_v35, %v7273_v30  ;;  %13843 = vmatpush1.bf16.msra.mxu1 %v16904_v23  ;;  %v7713_v30 = vld [vmem:[#allocation6 + $0x1c0] sm:$0xff]  ;;  %v16857_v35 = vcombine.high %v7977_v48, %v7985_v60 }
 0x453   :  { %v7316_v45 = vpop.f32.mrf.mxu1  ;;  %13844 = vmatprep.subr.bf16.mxu1 %v16889_v29  ;;  %v7277_v47 = vpop.f32.mrf.mxu0  ;;  %v7705_v29 = vld [vmem:[#allocation6 + $0x180] sm:$0xff] }
 0x454   :  { %v7575_v50 = vmax.f32 %v17994_v7, %v7315_v37  ;;  %v7317_v19 = vadd.f32 %v7316_v45, %v7275_v40  ;;  %13804 = vmatpush1.bf16.msra.mxu0 %v16632_v58  ;;  %v7969_v58 = vld [vmem:[#allocation6 + $0x9c0] sm:$0xff]  ;;  %v16584_v45 = vcombine.low %v7705_v29, %v7713_v30 }
 0x455   :  { %v7318_v62 = vpop.f32.mrf.mxu1  ;;  %v7278_v10 = vpop.f32.mrf.mxu0  ;;  %13805 = vmatprep.subr.bf16.mxu0 %v16617_v41  ;;  %v7689_v37 = vld [vmem:[#allocation6 + $0x100] sm:$0xff]  ;;  %v16841_v34 = vcombine.high %v7961_v20, %v7969_v58 }
 0x456   :  { %v18038_v6 = vmax.f32 %v7567_v0, %v7575_v50  ;;  %v7576_v7 = vmax.f32 %v17997_v22, %v7317_v19  ;;  %13845 = vmatpush1.bf16.msra.mxu1 %v16888_v42  ;;  %v16585_v0 = vcombine.high %v7705_v29, %v7713_v30  ;;  %v16856_v22 = vcombine.low %v7977_v48, %v7985_v60  ;;  %v7945_v41 = vld [vmem:[#allocation6 + $0x900] sm:$0xff] }
 0x457   :  { %v7319_v23 = vpop.f32.mrf.mxu1  ;;  %13846 = vmatprep.subr.bf16.mxu1 %v16873_v16  ;;  %v7953_v42 = vld [vmem:[#allocation6 + $0x940] sm:$0xff]  ;;  %v16569_v2 = vcombine.high %v7689_v37, %v7697_v33  ;;  %v16568_v47 = vcombine.low %v7689_v37, %v7697_v33 }
 0x458   :  { %v7584_v18 = vmax.f32 %v7568_v8, %v7576_v7  ;;  %13806 = vmatpush1.bf16.msra.mxu0 %v16616_v63  ;;  %v16840_v8 = vcombine.low %v7961_v20, %v7969_v58  ;;  %v7681_v46 = vld [vmem:[#allocation6 + $0xc0] sm:$0xff]  ;;  %v16825_v16 = vcombine.high %v7945_v41, %v7953_v42  ;;  %v16824_v60 = vcombine.low %v7945_v41, %v7953_v42 }
 0x459   :  { %13807 = vmatprep.subr.bf16.mxu0 %v16601_v17  ;;  %v7929_v50 = vld [vmem:[#allocation6 + $0x880] sm:$0xff]  ;;  %v16553_v48 = vcombine.high %v7673_v59, %v7681_v46  ;;  %v16552_v10 = vcombine.low %v7673_v59, %v7681_v46 }
 0x45a   :  { %v7634_v53 = vadd.f32 %v7600_v61, %v7584_v18  ;;  %13847 = vmatpush1.bf16.msra.mxu1 %v16872_v14  ;;  %v7937_v19 = vld [vmem:[#allocation6 + $0x8c0] sm:$0xff] }
 0x45b   :  { %13848 = vmatprep.subr.bf16.mxu1 %v16857_v35  ;;  %v7657_v61 = vld [vmem:[#allocation6] sm:$0xff]  ;;  %v16809_v63 = vcombine.high %v7929_v50, %v7937_v19  ;;  %v16808_v23 = vcombine.low %v7929_v50, %v7937_v19 }
 0x45c   :  { %v7642_v40 = vmax.f32 %v7634_v53, 0.0  ;;  %13808 = vmatpush1.bf16.msra.mxu0 %v16600_v55  ;;  %v7665_v62 = vld [vmem:[#allocation6 + $0x40] sm:$0xff] }
 0x45d   :  { %13809 = vmatprep.subr.bf16.mxu0 %v16585_v0  ;;  %v7913_v17 = vld [vmem:[#allocation6 + $0x800] sm:$0xff]  ;;  %v16537_v14 = vcombine.high %v7657_v61, %v7665_v62  ;;  %v16536_v58 = vcombine.low %v7657_v61, %v7665_v62 }
 0x45e   :  { %v18044_v1 = vpack.c.bf16 %v7642_v40, %v7642_v40  ;;  %13849 = vmatpush1.bf16.msra.mxu1 %v16856_v22  ;;  %v7921_v7 = vld [vmem:[#allocation6 + $0x840] sm:$0xff] }
 0x45f   :  { %13850 = vmatprep.subr.bf16.mxu1 %v16841_v34  ;;  %v7897_v29 = vld [vmem:[#allocation6 + $0x780] sm:$0xff]  ;;  %v16793_v35 = vcombine.high %v7913_v17, %v7921_v7  ;;  %v16792_v53 = vcombine.low %v7913_v17, %v7921_v7 }
 0x460   :  { %13833 = vmatprep.mubr.bf16.mxu0 %v18044_v1  ;;  %13810 = vmatpush1.bf16.msra.mxu0 %v16584_v45  ;;  %v7905_v30 = vld [vmem:[#allocation6 + $0x7c0] sm:$0xff] }
 0x461   :  { %13811 = vmatprep.subr.bf16.mxu0 %v16569_v2  ;;  %v8153_v18 = vld [vmem:[#allocation6 + $0xf80] sm:$0xff]  ;;  %v16777_v55 = vcombine.high %v7897_v29, %v7905_v30  ;;  %v16776_v40 = vcombine.low %v7897_v29, %v7905_v30 }
 0x462   :  { %13851 = vmatpush1.bf16.msra.mxu1 %v16840_v8  ;;  %v8161_v20 = vld [vmem:[#allocation6 + $0xfc0] sm:$0xff] }
 0x463   :  { %13852 = vmatprep.subr.bf16.mxu1 %v16825_v16  ;;  %v7881_v0 = vld [vmem:[#allocation6 + $0x700] sm:$0xff]  ;;  %v17033_v37 = vcombine.high %v8153_v18, %v8161_v20  ;;  %v17032_v42 = vcombine.low %v8153_v18, %v8161_v20 }
 0x464   :  { %13812 = vmatpush1.bf16.msra.mxu0 %v16568_v47  ;;  %v7889_v22 = vld [vmem:[#allocation6 + $0x740] sm:$0xff] }
 0x465   :  { %13813 = vmatprep.subr.bf16.mxu0 %v16553_v48  ;;  %v8137_v33 = vld [vmem:[#allocation6 + $0xf00] sm:$0xff]  ;;  %v16761_v41 = vcombine.high %v7881_v0, %v7889_v22  ;;  %v16760_v16 = vcombine.low %v7881_v0, %v7889_v22 }
 0x466   :  { %13853 = vmatpush1.bf16.msra.mxu1 %v16824_v60  ;;  %v8145_v34 = vld [vmem:[#allocation6 + $0xf40] sm:$0xff] }
 0x467   :  { %13854 = vmatprep.subr.bf16.mxu1 %v16809_v63  ;;  %v7865_v45 = vld [vmem:[#allocation6 + $0x680] sm:$0xff]  ;;  %v17017_v8 = vcombine.high %v8137_v33, %v8145_v34  ;;  %v17016_v19 = vcombine.low %v8137_v33, %v8145_v34  ;;  %v7595_v33 = vsub.s32 0, %v18024_v27 }
 0x468   :  { %13814 = vmatpush1.bf16.msra.mxu0 %v16552_v10  ;;  %v7873_v2 = vld [vmem:[#allocation6 + $0x6c0] sm:$0xff] }
 0x469   :  { %13815 = vmatprep.subr.bf16.mxu0 %v16537_v14  ;;  %v8121_v59 = vld [vmem:[#allocation6 + $0xe80] sm:$0xff]  ;;  %v16745_v50 = vcombine.high %v7865_v45, %v7873_v2  ;;  %v16744_v63 = vcombine.low %v7865_v45, %v7873_v2 }
 0x46a   :  { %13855 = vmatpush1.bf16.msra.mxu1 %v16808_v23  ;;  %v8129_v46 = vld [vmem:[#allocation6 + $0xec0] sm:$0xff] }
 0x46b   :  { %13856 = vmatprep.subr.bf16.mxu1 %v16793_v35  ;;  %v7849_v47 = vld [vmem:[#allocation6 + $0x600] sm:$0xff]  ;;  %v17001_v60 = vcombine.high %v8121_v59, %v8129_v46  ;;  %v17000_v7 = vcombine.low %v8121_v59, %v8129_v46  ;;  %v7596_v46 = vrot.slane %v18030_v52, %v7595_v33 }
 0x46c   :  { %13816 = vmatpush1.bf16.msra.mxu0 %v16536_v58  ;;  %v7857_v48 = vld [vmem:[#allocation6 + $0x640] sm:$0xff] }
 0x46d   :  { %13817 = vmatprep.subr.bf16.mxu0 %v16777_v55  ;;  %v8105_v61 = vld [vmem:[#allocation6 + $0xe00] sm:$0xff]  ;;  %v16729_v17 = vcombine.high %v7849_v47, %v7857_v48  ;;  %v16728_v35 = vcombine.low %v7849_v47, %v7857_v48 }
 0x46e   :  { %13857 = vmatpush1.bf16.msra.mxu1 %v16792_v53  ;;  %v8113_v62 = vld [vmem:[#allocation6 + $0xe40] sm:$0xff] }
 0x46f   :  { %13858 = vmatprep.subr.bf16.mxu1 %v17033_v37  ;;  %v7833_v10 = vld [vmem:[#allocation6 + $0x580] sm:$0xff]  ;;  %v16985_v23 = vcombine.high %v8105_v61, %v8113_v62  ;;  %v16984_v20 = vcombine.low %v8105_v61, %v8113_v62 }
 0x470   :  { %13818 = vmatpush2.bf16.msra.mxu0 %v16776_v40  ;;  %v7841_v14 = vld [vmem:[#allocation6 + $0x5c0] sm:$0xff] }
 0x471   :  { %13819 = vmatprep.subr.bf16.mxu0 %v16761_v41  ;;  %v8089_v29 = vld [vmem:[#allocation6 + $0xd80] sm:$0xff]  ;;  %v16713_v18 = vcombine.high %v7833_v10, %v7841_v14  ;;  %v16712_v37 = vcombine.low %v7833_v10, %v7841_v14 }
 0x472   :  { %13859 = vmatpush2.bf16.msra.mxu1 %v17032_v42  ;;  %v8097_v30 = vld [vmem:[#allocation6 + $0xdc0] sm:$0xff] }
 0x473   :  { %13860 = vmatprep.subr.bf16.mxu1 %v17017_v8  ;;  %v7817_v58 = vld [vmem:[#allocation6 + $0x500] sm:$0xff]  ;;  %v16969_v53 = vcombine.high %v8089_v29, %v8097_v30  ;;  %v16968_v40 = vcombine.low %v8089_v29, %v8097_v30 }
 0x474   :  { %13820 = vmatpush2.bf16.msra.mxu0 %v16760_v16  ;;  %v7825_v55 = vld [vmem:[#allocation6 + $0x540] sm:$0xff] }
 0x475   :  { %13821 = vmatprep.subr.bf16.mxu0 %v16745_v50  ;;  %v8073_v0 = vld [vmem:[#allocation6 + $0xd00] sm:$0xff]  ;;  %v16697_v34 = vcombine.high %v7817_v58, %v7825_v55  ;;  %v16696_v59 = vcombine.low %v7817_v58, %v7825_v55 }
 0x476   :  { %13861 = vmatpush2.bf16.msra.mxu1 %v17016_v19  ;;  %v8081_v22 = vld [vmem:[#allocation6 + $0xd40] sm:$0xff] }
 0x477   :  { %13862 = vmatprep.subr.bf16.mxu1 %v17001_v60  ;;  %v7801_v41 = vld [vmem:[#allocation6 + $0x480] sm:$0xff]  ;;  %v16953_v45 = vcombine.high %v8073_v0, %v8081_v22  ;;  %v16952_v50 = vcombine.low %v8073_v0, %v8081_v22 }
 0x478   :  { %13822 = vmatpush2.bf16.msra.mxu0 %v16744_v63  ;;  %v7809_v42 = vld [vmem:[#allocation6 + $0x4c0] sm:$0xff]  ;;  %v7633_v63 = vadd.f32 %v7596_v46, %v18038_v6  ;;  %v7607_v46 = vsub.s32 3, %v18024_v27 }
 0x479   :  { %13823 = vmatprep.subr.bf16.mxu0 %v16729_v17  ;;  %v8057_v2 = vld [vmem:[#allocation6 + $0xc80] sm:$0xff]  ;;  %v16681_v16 = vcombine.high %v7801_v41, %v7809_v42  ;;  %v16680_v62 = vcombine.low %v7801_v41, %v7809_v42  ;;  %v7603_v42 = vsub.s32 2, %v18024_v27 }
 0x47a   :  { %13863 = vmatpush2.bf16.msra.mxu1 %v17000_v7  ;;  %v8065_v8 = vld [vmem:[#allocation6 + $0xcc0] sm:$0xff] }
 0x47b   :  { %13864 = vmatprep.subr.bf16.mxu1 %v16985_v23  ;;  %v7785_v19 = vld [vmem:[#allocation6 + $0x400] sm:$0xff]  ;;  %v16937_v48 = vcombine.high %v8057_v2, %v8065_v8  ;;  %v16936_v7 = vcombine.low %v8057_v2, %v8065_v8 }
 0x47c   :  { %13824 = vmatpush2.bf16.msra.mxu0 %v16728_v35  ;;  %v7793_v47 = vld [vmem:[#allocation6 + $0x440] sm:$0xff] }
 0x47d   :  { %13825 = vmatprep.subr.bf16.mxu0 %v16713_v18  ;;  %v8041_v60 = vld [vmem:[#allocation6 + $0xc00] sm:$0xff]  ;;  %v16665_v17 = vcombine.high %v7785_v19, %v7793_v47  ;;  %v16664_v35 = vcombine.low %v7785_v19, %v7793_v47  ;;  %v7641_v18 = vmax.f32 %v7633_v63, 0.0 }
 0x47e   :  { %13865 = vmatpush2.bf16.msra.mxu1 %v16984_v20  ;;  %v8049_v61 = vld [vmem:[#allocation6 + $0xc40] sm:$0xff] }
 0x47f   :  { %13866 = vmatprep.subr.bf16.mxu1 %v16969_v53  ;;  %v16921_v10 = vcombine.high %v8041_v60, %v8049_v61  ;;  %v8281_v14 = vld [vmem:[#allocation6 + $0x1380] sm:$0xff]  ;;  %v16920_v20 = vcombine.low %v8041_v60, %v8049_v61  ;;  %v18058_v22 = vpack.c.bf16 %v7641_v18, %v7641_v18  ;;  %v7604_v60 = vrot.slane %v18030_v52, %v7603_v42 }
 0x480   :  { %13826 = vmatpush2.bf16.msra.mxu0 %v16712_v37  ;;  %v8289_v23 = vld [vmem:[#allocation6 + $0x13c0] sm:$0xff] }
 0x481   :  { %13827 = vmatprep.subr.bf16.mxu0 %v16697_v34  ;;  %v18052_v29 = vld [vmem:[#allocation6 + $0x1b80] sm:$0xff]  ;;  %v17161_v58 = vcombine.high %v8281_v14, %v8289_v23  ;;  %v17160_v0 = vcombine.low %v8281_v14, %v8289_v23  ;;  %v7608_v14 = vrot.slane %v18030_v52, %v7607_v46 }
 0x482   :  { %13867 = vmatpush2.bf16.msra.mxu1 %v16968_v40  ;;  %v18054_v30 = vld [vmem:[#allocation6 + $0x1bc0] sm:$0xff] }
 0x483   :  { %13868 = vmatprep.subr.bf16.mxu1 %v16953_v45  ;;  %v8265_v6 = vld [vmem:[#allocation6 + $0x1300] sm:$0xff]  ;;  %v17417_v53 = vcombine.high %v18052_v29, %v18054_v30  ;;  %v17416_v25 = vcombine.low %v18052_v29, %v18054_v30 }
 0x484   :  { %13828 = vmatpush2.bf16.msra.mxu0 %v16696_v59  ;;  %v8273_v55 = vld [vmem:[#allocation6 + $0x1340] sm:$0xff] }
 0x485   :  { %13829 = vmatprep.subr.bf16.mxu0 %v16681_v16  ;;  %v17145_v37 = vcombine.high %v8265_v6, %v8273_v55  ;;  %v8249_v34 = vld [vmem:[#allocation6 + $0x1280] sm:$0xff]  ;;  %v17144_v2 = vcombine.low %v8265_v6, %v8273_v55 }
 0x486   :  { %13869 = vmatpush2.bf16.msra.mxu1 %v16952_v50  ;;  %v8257_v40 = vld [vmem:[#allocation6 + $0x12c0] sm:$0xff] }
 0x487   :  { %13870 = vmatprep.subr.bf16.mxu1 %v16937_v48  ;;  %v17129_v16 = vcombine.high %v8249_v34, %v8257_v40  ;;  %v8233_v19 = vld [vmem:[#allocation6 + $0x1200] sm:$0xff] }
 0x488   :  { %13830 = vmatpush2.bf16.msra.mxu0 %v16680_v62  ;;  %v8241_v47 = vld [vmem:[#allocation6 + $0x1240] sm:$0xff] }
 0x489   :  { %13831 = vmatprep.subr.bf16.mxu0 %v16665_v17  ;;  %v17128_v17 = vcombine.low %v8249_v34, %v8257_v40  ;;  %v17113_v23 = vcombine.high %v8233_v19, %v8241_v47  ;;  %v8217_v18 = vld [vmem:[#allocation6 + $0x1180] sm:$0xff]  ;;  %v17112_v15 = vcombine.low %v8233_v19, %v8241_v47 }
 0x48a   :  { %13871 = vmatpush2.bf16.msra.mxu1 %v16936_v7  ;;  %v8201_v55 = vld [vmem:[#allocation6 + $0x1100] sm:$0xff] }
 0x48b   :  { %13872 = vmatprep.subr.bf16.mxu1 %v16921_v10  ;;  %v8529_v34 = vld [vmem:[#allocation6 + $0x1b40] sm:$0xff] }
 0x48c   :  { %13832 = vmatpush2.bf16.msra.mxu0 %v16664_v35  ;;  %v8513_v19 = vld [vmem:[#allocation6 + $0x1ac0] sm:$0xff] }
 0x48d   :  { %13883 = vmatprep.subr.bf16.mxu0 %v17161_v58 }
 0x48e   :  { %13873 = vmatpush2.bf16.msra.mxu1 %v16920_v20  ;;  %v8225_v20 = vld [vmem:[#allocation6 + $0x11c0] sm:$0xff] }
 0x48f   :  { %13924 = vmatprep.subr.bf16.mxu1 %v17417_v53  ;;  %v7355_v41 = vpop.f32.mrf.mxu0  ;;  %13834 = vmatmul.mubr.bf16.vlgmr.msra.gmra.mxu0 %v18058_v22  ;;  %v8209_v53 = vld [vmem:[#allocation6 + $0x1140] sm:$0xff]  ;;  %v17096_v40 = vcombine.low %v8217_v18, %v8225_v20 }
 0x490   :  { %13884 = vmatpush1.bf16.msra.mxu0 %v17160_v0  ;;  %v17080_v29 = vcombine.low %v8201_v55, %v8209_v53 }
 0x491   :  { %v7396_v45 = vpop.f32.mrf.mxu1  ;;  %v7357_v59 = vpop.f32.mrf.mxu0  ;;  %13885 = vmatprep.subr.bf16.mxu0 %v17145_v37  ;;  %v8521_v37 = vld [vmem:[#allocation6 + $0x1b00] sm:$0xff] }
 0x492   :  { %v7397_v8 = vadd.f32 %v7396_v45, %v7355_v41  ;;  %v17081_v45 = vcombine.high %v8201_v55, %v8209_v53  ;;  %v8457_v55 = vld [vmem:[#allocation6 + $0x1900] sm:$0xff] }
 0x493   :  { %v7398_v50 = vpop.f32.mrf.mxu1  ;;  %v7359_v62 = vpop.f32.mrf.mxu0  ;;  %v8465_v53 = vld [vmem:[#allocation6 + $0x1940] sm:$0xff] }
 0x494   :  { %v7577_v48 = vmax.f32 %v18002_v9, %v7397_v8  ;;  %v7399_v61 = vadd.f32 %v7398_v50, %v7357_v59  ;;  %13886 = vmatpush1.bf16.msra.mxu0 %v17144_v2  ;;  %v8185_v8 = vld [vmem:[#allocation6 + $0x1080] sm:$0xff] }
 0x495   :  { %v7400_v63 = vpop.f32.mrf.mxu1  ;;  %v7360_v9 = vpop.f32.mrf.mxu0  ;;  %13887 = vmatprep.subr.bf16.mxu0 %v17129_v16  ;;  %v8193_v59 = vld [vmem:[#allocation6 + $0x10c0] sm:$0xff]  ;;  %v17401_v16 = vcombine.high %v8521_v37, %v8529_v34 }
 0x496   :  { %v7585_v7 = vmax.f32 %v7569_v54, %v7577_v48  ;;  %v7578_v10 = vmax.f32 %v18005_v26, %v7399_v61  ;;  %v17097_v54 = vcombine.high %v8217_v18, %v8225_v20  ;;  %v8505_v50 = vld [vmem:[#allocation6 + $0x1a80] sm:$0xff]  ;;  %v17065_v30 = vcombine.high %v8185_v8, %v8193_v59 }
 0x497   :  { %v7401_v35 = vpop.f32.mrf.mxu1  ;;  %v17400_v48 = vcombine.low %v8521_v37, %v8529_v34  ;;  %v8177_v61 = vld [vmem:[#allocation6 + $0x1040] sm:$0xff]  ;;  %v17385_v62 = vcombine.high %v8505_v50, %v8513_v19 }
 0x498   :  { %v7635_v58 = vadd.f32 %v7604_v60, %v7585_v7  ;;  %v7586_v6 = vmax.f32 %v7570_v3, %v7578_v10  ;;  %13888 = vmatpush1.bf16.msra.mxu0 %v17128_v17  ;;  %v18083_v3 = vld [vmem:[#allocation6 + $0xbc8] sm:$0xff]  ;;  %v8169_v60 = vld [vmem:[#allocation6 + $0x1000] sm:$0xff]  ;;  %v17064_v7 = vcombine.low %v8185_v8, %v8193_v59 }
 0x499   :  { %13889 = vmatprep.subr.bf16.mxu0 %v17113_v23  ;;  %v16906_v47 = vcombine.low %v18081_v56, %v18083_v3  ;;  %v8489_v63 = vld [vmem:[#allocation6 + $0x1a00] sm:$0xff]  ;;  %v17049_v10 = vcombine.high %v8169_v60, %v8177_v61  ;;  %v16907_v49 = vcombine.high %v18081_v56, %v18083_v3 }
 0x49a   :  { %v7636_v44 = vadd.f32 %v7608_v14, %v7586_v6  ;;  %v7643_v26 = vmax.f32 %v7635_v58, 0.0  ;;  %v8497_v17 = vld [vmem:[#allocation6 + $0x1a40] sm:$0xff]  ;;  %v17384_v14 = vcombine.low %v8505_v50, %v8513_v19  ;;  %v17048_v58 = vcombine.low %v8169_v60, %v8177_v61 }
 0x49b   :  { %v8409_v9 = vld [vmem:[#allocation6 + $0x1780] sm:$0xff]  ;;  %v17369_v35 = vcombine.high %v8489_v63, %v8497_v17  ;;  %v17336_v19 = vcombine.low %v8457_v55, %v8465_v53 }
 0x49c   :  { %v7644_v0 = vmax.f32 %v7636_v44, 0.0  ;;  %13890 = vmatpush1.bf16.msra.mxu0 %v17112_v15  ;;  %v18085_v2 = vpack.c.bf16 %v7643_v26, %v7643_v26  ;;  %v8417_v23 = vld [vmem:[#allocation6 + $0x17c0] sm:$0xff]  ;;  %v17368_v15 = vcombine.low %v8489_v63, %v8497_v17 }
 0x49d   :  { %13891 = vmatprep.subr.bf16.mxu0 %v17097_v54  ;;  %v8473_v18 = vld [vmem:[#allocation6 + $0x1980] sm:$0xff]  ;;  %v17289_v6 = vcombine.high %v8409_v9, %v8417_v23 }
 0x49e   :  { %v18077_v41 = vpack.c.bf16 %v7644_v0, %v7644_v0  ;;  %v8481_v20 = vld [vmem:[#allocation6 + $0x19c0] sm:$0xff]  ;;  %v17288_v0 = vcombine.low %v8409_v9, %v8417_v23 }
 0x49f   :  { %v8393_v44 = vld [vmem:[#allocation6 + $0x1700] sm:$0xff]  ;;  %v17353_v26 = vcombine.high %v8473_v18, %v8481_v20  ;;  %v17352_v34 = vcombine.low %v8473_v18, %v8481_v20 }
 0x4a0   :  { %13874 = vmatprep.mubr.bf16.mxu1 %v18077_v41  ;;  %13892 = vmatpush1.bf16.msra.mxu0 %v17096_v40  ;;  %v8401_v54 = vld [vmem:[#allocation6 + $0x1740] sm:$0xff] }
 0x4a1   :  { %13875 = vmatmul.mubr.bf16.vlgmr.msra.gmra.mxu1 %v18085_v2  ;;  %13893 = vmatprep.subr.bf16.mxu0 %v17081_v45  ;;  %v17273_v37 = vcombine.high %v8393_v44, %v8401_v54  ;;  %v8377_v40 = vld [vmem:[#allocation6 + $0x1680] sm:$0xff] }
 0x4a2   :  { %13925 = vmatpush1.bf16.msra.mxu1 %v17416_v25  ;;  %v8385_v45 = vld [vmem:[#allocation6 + $0x16c0] sm:$0xff]  ;;  %v17337_v25 = vcombine.high %v8457_v55, %v8465_v53 }
 0x4a3   :  { %13926 = vmatprep.subr.bf16.mxu1 %v17401_v16  ;;  %v8441_v8 = vld [vmem:[#allocation6 + $0x1880] sm:$0xff]  ;;  %v17272_v16 = vcombine.low %v8393_v44, %v8401_v54  ;;  %v17257_v50 = vcombine.high %v8377_v40, %v8385_v45 }
 0x4a4   :  { %13894 = vmatpush1.bf16.msra.mxu0 %v17080_v29  ;;  %v8449_v59 = vld [vmem:[#allocation6 + $0x18c0] sm:$0xff] }
 0x4a5   :  { %13895 = vmatprep.subr.bf16.mxu0 %v17065_v30  ;;  %v8361_v29 = vld [vmem:[#allocation6 + $0x1600] sm:$0xff]  ;;  %v17320_v17 = vcombine.low %v8441_v8, %v8449_v59 }
 0x4a6   :  { %13927 = vmatpush1.bf16.msra.mxu1 %v17400_v48  ;;  %v8369_v30 = vld [vmem:[#allocation6 + $0x1640] sm:$0xff]  ;;  %v17321_v48 = vcombine.high %v8441_v8, %v8449_v59 }
 0x4a7   :  { %13928 = vmatprep.subr.bf16.mxu1 %v17385_v62  ;;  %v8425_v60 = vld [vmem:[#allocation6 + $0x1800] sm:$0xff]  ;;  %v17256_v62 = vcombine.low %v8377_v40, %v8385_v45  ;;  %v17241_v63 = vcombine.high %v8361_v29, %v8369_v30 }
 0x4a8   :  { %13896 = vmatpush1.bf16.msra.mxu0 %v17064_v7  ;;  %v8433_v61 = vld [vmem:[#allocation6 + $0x1840] sm:$0xff] }
 0x4a9   :  { %13897 = vmatprep.subr.bf16.mxu0 %v17049_v10  ;;  %v8345_v7 = vld [vmem:[#allocation6 + $0x1580] sm:$0xff]  ;;  %v17304_v20 = vcombine.low %v8425_v60, %v8433_v61 }
 0x4aa   :  { %13929 = vmatpush1.bf16.msra.mxu1 %v17384_v14  ;;  %v8353_v10 = vld [vmem:[#allocation6 + $0x15c0] sm:$0xff]  ;;  %v17305_v14 = vcombine.high %v8425_v60, %v8433_v61 }
 0x4ab   :  { %13930 = vmatprep.subr.bf16.mxu1 %v17369_v35  ;;  %v8665_v9 = vld [vmem:[#allocation6 + $0x1f80] sm:$0xff]  ;;  %v17240_v35 = vcombine.low %v8361_v29, %v8369_v30  ;;  %v17225_v18 = vcombine.high %v8345_v7, %v8353_v10 }
 0x4ac   :  { %13898 = vmatpush1.bf16.msra.mxu0 %v17048_v58  ;;  %v8673_v23 = vld [vmem:[#allocation6 + $0x1fc0] sm:$0xff] }
 0x4ad   :  { %13899 = vmatprep.subr.bf16.mxu0 %v17289_v6  ;;  %v8329_v58 = vld [vmem:[#allocation6 + $0x1500] sm:$0xff]  ;;  %v17544_v53 = vcombine.low %v8665_v9, %v8673_v23 }
 0x4ae   :  { %13931 = vmatpush1.bf16.msra.mxu1 %v17368_v15  ;;  %v8337_v6 = vld [vmem:[#allocation6 + $0x1540] sm:$0xff]  ;;  %v17545_v15 = vcombine.high %v8665_v9, %v8673_v23 }
 0x4af   :  { %13932 = vmatprep.subr.bf16.mxu1 %v17353_v26  ;;  %v8649_v44 = vld [vmem:[#allocation6 + $0x1f00] sm:$0xff]  ;;  %v17224_v26 = vcombine.low %v8345_v7, %v8353_v10  ;;  %v17209_v55 = vcombine.high %v8329_v58, %v8337_v6 }
 0x4b0   :  { %13900 = vmatpush2.bf16.msra.mxu0 %v17288_v0  ;;  %v8657_v54 = vld [vmem:[#allocation6 + $0x1f40] sm:$0xff] }
 0x4b1   :  { %13901 = vmatprep.subr.bf16.mxu0 %v17273_v37  ;;  %v8313_v0 = vld [vmem:[#allocation6 + $0x1480] sm:$0xff]  ;;  %v17528_v59 = vcombine.low %v8649_v44, %v8657_v54 }
 0x4b2   :  { %13933 = vmatpush1.bf16.msra.mxu1 %v17352_v34  ;;  %v8321_v37 = vld [vmem:[#allocation6 + $0x14c0] sm:$0xff]  ;;  %v17529_v34 = vcombine.high %v8649_v44, %v8657_v54  ;;  %v7611_v44 = vsub.s32 4, %v18024_v27 }
 0x4b3   :  { %13934 = vmatprep.subr.bf16.mxu1 %v17337_v25  ;;  %v8633_v40 = vld [vmem:[#allocation6 + $0x1e80] sm:$0xff]  ;;  %v17208_v25 = vcombine.low %v8329_v58, %v8337_v6  ;;  %v17193_v8 = vcombine.high %v8313_v0, %v8321_v37 }
 0x4b4   :  { %13902 = vmatpush2.bf16.msra.mxu0 %v17272_v16  ;;  %v8641_v45 = vld [vmem:[#allocation6 + $0x1ec0] sm:$0xff] }
 0x4b5   :  { %13903 = vmatprep.subr.bf16.mxu0 %v17257_v50  ;;  %v8297_v16 = vld [vmem:[#allocation6 + $0x1400] sm:$0xff]  ;;  %v17512_v61 = vcombine.low %v8633_v40, %v8641_v45 }
 0x4b6   :  { %13935 = vmatpush1.bf16.msra.mxu1 %v17336_v19  ;;  %v8305_v50 = vld [vmem:[#allocation6 + $0x1440] sm:$0xff]  ;;  %v17513_v19 = vcombine.high %v8633_v40, %v8641_v45 }
 0x4b7   :  { %13936 = vmatprep.subr.bf16.mxu1 %v17321_v48  ;;  %v8617_v29 = vld [vmem:[#allocation6 + $0x1e00] sm:$0xff]  ;;  %v17192_v48 = vcombine.low %v8313_v0, %v8321_v37  ;;  %v17177_v60 = vcombine.high %v8297_v16, %v8305_v50  ;;  %v7615_v37 = vsub.s32 5, %v18024_v27 }
 0x4b8   :  { %13904 = vmatpush2.bf16.msra.mxu0 %v17256_v62  ;;  %v8625_v30 = vld [vmem:[#allocation6 + $0x1e40] sm:$0xff]  ;;  %v18091_v62 = vld [vmem:[#allocation6 + $0x388] sm:$0xff] }
 0x4b9   :  { %13905 = vmatprep.subr.bf16.mxu0 %v17241_v63  ;;  %v18093_v63 = vld [vmem:[#allocation6 + $0x3c8] sm:$0xff]  ;;  %v8601_v7 = vld [vmem:[#allocation6 + $0x1d80] sm:$0xff]  ;;  %v17496_v23 = vcombine.low %v8617_v29, %v8625_v30 }
 0x4ba   :  { %13937 = vmatpush1.bf16.msra.mxu1 %v17320_v17  ;;  %v17497_v17 = vcombine.high %v8617_v29, %v8625_v30  ;;  %v8609_v10 = vld [vmem:[#allocation6 + $0x1dc0] sm:$0xff]  ;;  %v16651_v9 = vcombine.high %v18091_v62, %v18093_v63 }
 0x4bb   :  { %13938 = vmatprep.subr.bf16.mxu1 %v17305_v14  ;;  %v17176_v14 = vcombine.low %v8297_v16, %v8305_v50  ;;  %v17480_v58 = vcombine.low %v8601_v7, %v8609_v10  ;;  %v8569_v54 = vld [vmem:[#allocation6 + $0x1c80] sm:$0xff] }
 0x4bc   :  { %13906 = vmatpush2.bf16.msra.mxu0 %v17240_v35  ;;  %v17481_v35 = vcombine.high %v8601_v7, %v8609_v10  ;;  %v8553_v50 = vld [vmem:[#allocation6 + $0x1c00] sm:$0xff] }
 0x4bd   :  { %13907 = vmatprep.subr.bf16.mxu0 %v17225_v18  ;;  %v8585_v18 = vld [vmem:[#allocation6 + $0x1d00] sm:$0xff] }
 0x4be   :  { %13939 = vmatpush1.bf16.msra.mxu1 %v17304_v20  ;;  %v8593_v20 = vld [vmem:[#allocation6 + $0x1d40] sm:$0xff] }
 0x4bf   :  { %13940 = vmatprep.subr.bf16.mxu1 %v17545_v15  ;;  %v17465_v6 = vcombine.high %v8585_v18, %v8593_v20 }
 0x4c0   :  { %13908 = vmatpush2.bf16.msra.mxu0 %v17224_v26  ;;  %v8577_v26 = vld [vmem:[#allocation6 + $0x1cc0] sm:$0xff] }
 0x4c1   :  { %13909 = vmatprep.subr.bf16.mxu0 %v17209_v55  ;;  %v17449_v45 = vcombine.high %v8569_v54, %v8577_v26 }
 0x4c2   :  { %13941 = vmatpush2.bf16.msra.mxu1 %v17544_v53 }
 0x4c3   :  { %13942 = vmatprep.subr.bf16.mxu1 %v17529_v34  ;;  %v17464_v34 = vcombine.low %v8585_v18, %v8593_v20  ;;  %v16650_v18 = vcombine.low %v18091_v62, %v18093_v63 }
 0x4c4   :  { %13910 = vmatpush2.bf16.msra.mxu0 %v17208_v25 }
 0x4c5   :  { %13911 = vmatprep.subr.bf16.mxu0 %v17193_v8  ;;  %v7612_v8 = vrot.slane %v18030_v52, %v7611_v44  ;;  %v7730_v44 = vld [vmem:[#allocation6 + $0x248] sm:$0xff] }
 0x4c6   :  { %13943 = vmatpush2.bf16.msra.mxu1 %v17528_v59 }
 0x4c7   :  { %13944 = vmatprep.subr.bf16.mxu1 %v17513_v19  ;;  %v8561_v19 = vld [vmem:[#allocation6 + $0x1c40] sm:$0xff] }
 0x4c8   :  { %13912 = vmatpush2.bf16.msra.mxu0 %v17192_v48 }
 0x4c9   :  { %13913 = vmatprep.subr.bf16.mxu0 %v17177_v60  ;;  %v7616_v60 = vrot.slane %v18030_v52, %v7615_v37  ;;  %v7762_v52 = vld [vmem:[#allocation6 + $0x348] sm:$0xff] }
 0x4ca   :  { %13945 = vmatpush2.bf16.msra.mxu1 %v17512_v61  ;;  %v7698_v37 = vld [vmem:[#allocation6 + $0x148] sm:$0xff] }
 0x4cb   :  { %13946 = vmatprep.subr.bf16.mxu1 %v17497_v17  ;;  %v17448_v17 = vcombine.low %v8569_v54, %v8577_v26  ;;  %v7706_v54 = vld [vmem:[#allocation6 + $0x188] sm:$0xff] }
 0x4cc   :  { %13914 = vmatpush2.bf16.msra.mxu0 %v17176_v14  ;;  %v7714_v26 = vld [vmem:[#allocation6 + $0x1c8] sm:$0xff] }
 0x4cd   :  { %13965 = vmatprep.subr.bf16.mxu0 %v16651_v9 }
 0x4ce   :  { %13947 = vmatpush2.bf16.msra.mxu1 %v17496_v23  ;;  %v17432_v23 = vcombine.low %v8553_v50, %v8561_v19 }
 0x4cf   :  { %13948 = vmatprep.subr.bf16.mxu1 %v17481_v35  ;;  %v7437_v15 = vpop.f32.mrf.mxu0 }
 0x4d1   :  { %v7478_v55 = vpop.f32.mrf.mxu1  ;;  %v7439_v0 = vpop.f32.mrf.mxu0 }
 0x4d2   :  { %v7479_v53 = vadd.f32 %v7478_v55, %v7437_v15  ;;  %13949 = vmatpush2.bf16.msra.mxu1 %v17480_v58  ;;  %v7722_v15 = vld [vmem:[#allocation6 + $0x208] sm:$0xff] }
 0x4d3   :  { %v7480_v40 = vpop.f32.mrf.mxu1  ;;  %13950 = vmatprep.subr.bf16.mxu1 %v17465_v6  ;;  %v7441_v16 = vpop.f32.mrf.mxu0  ;;  %v16603_v63 = vcombine.high %v7722_v15, %v7730_v44  ;;  %v16602_v55 = vcombine.low %v7722_v15, %v7730_v44 }
 0x4d4   :  { %v7579_v25 = vmax.f32 %v18010_v28, %v7479_v53  ;;  %v7481_v59 = vadd.f32 %v7480_v40, %v7439_v0  ;;  %v17433_v28 = vcombine.high %v8553_v50, %v8561_v19  ;;  %v16587_v53 = vcombine.high %v7706_v54, %v7714_v26  ;;  %v7690_v0 = vld [vmem:[#allocation6 + $0x108] sm:$0xff] }
 0x4d5   :  { %v7482_v29 = vpop.f32.mrf.mxu1  ;;  %v7442_v61 = vpop.f32.mrf.mxu0  ;;  %v16571_v40 = vcombine.high %v7690_v0, %v7698_v37  ;;  %v7658_v16 = vld [vmem:[#allocation6 + $0x8] sm:$0xff] }
 0x4d6   :  { %v7587_v30 = vmax.f32 %v7571_v4, %v7579_v25  ;;  %v7580_v48 = vmax.f32 %v18013_v39, %v7481_v59  ;;  %13951 = vmatpush2.bf16.msra.mxu1 %v17464_v34  ;;  %v7754_v39 = vld [vmem:[#allocation6 + $0x308] sm:$0xff]  ;;  %v16586_v34 = vcombine.low %v7706_v54, %v7714_v26 }
 0x4d7   :  { %v7483_v7 = vpop.f32.mrf.mxu1  ;;  %13952 = vmatprep.subr.bf16.mxu1 %v17449_v45  ;;  %v16635_v51 = vcombine.high %v7754_v39, %v7762_v52  ;;  %v16634_v58 = vcombine.low %v7754_v39, %v7762_v52  ;;  %v7674_v45 = vld [vmem:[#allocation6 + $0x88] sm:$0xff] }
 0x4d8   :  { %v7637_v10 = vadd.f32 %v7612_v8, %v7587_v30  ;;  %v7588_v14 = vmax.f32 %v7572_v12, %v7580_v48  ;;  %v7746_v12 = vld [vmem:[#allocation6 + $0x2c8] sm:$0xff]  ;;  %v16570_v8 = vcombine.low %v7690_v0, %v7698_v37  ;;  %v7623_v37 = vsub.s32 7, %v18024_v27 }
 0x4d9   :  { %v16619_v6 = vcombine.high %v7738_v5, %v7746_v12  ;;  %v16618_v62 = vcombine.low %v7738_v5, %v7746_v12  ;;  %v7682_v25 = vld [vmem:[#allocation6 + $0xc8] sm:$0xff] }
 0x4da   :  { %v7638_v9 = vadd.f32 %v7616_v60, %v7588_v14  ;;  %13953 = vmatpush2.bf16.msra.mxu1 %v17448_v17  ;;  %v7645_v43 = vmax.f32 %v7637_v10, 0.0  ;;  %v16555_v59 = vcombine.high %v7674_v45, %v7682_v25  ;;  %v7666_v50 = vld [vmem:[#allocation6 + $0x48] sm:$0xff]  ;;  %v16554_v19 = vcombine.low %v7674_v45, %v7682_v25 }
 0x4db   :  { %13954 = vmatprep.subr.bf16.mxu1 %v17433_v28  ;;  %v16539_v29 = vcombine.high %v7658_v16, %v7666_v50  ;;  %v7898_v30 = vld [vmem:[#allocation6 + $0x788] sm:$0xff]  ;;  %v16538_v60 = vcombine.low %v7658_v16, %v7666_v50 }
 0x4dc   :  { %v7646_v4 = vmax.f32 %v7638_v9, 0.0  ;;  %v18115_v20 = vpack.c.bf16 %v7645_v43, %v7645_v43  ;;  %v7906_v48 = vld [vmem:[#allocation6 + $0x7c8] sm:$0xff] }
 0x4dd   :  { %v16779_v61 = vcombine.high %v7898_v30, %v7906_v48  ;;  %v7882_v17 = vld [vmem:[#allocation6 + $0x708] sm:$0xff]  ;;  %v16778_v28 = vcombine.low %v7898_v30, %v7906_v48 }
 0x4de   :  { %v18111_v35 = vpack.c.bf16 %v7646_v4, %v7646_v4  ;;  %13955 = vmatpush2.bf16.msra.mxu1 %v17432_v23  ;;  %v7890_v7 = vld [vmem:[#allocation6 + $0x748] sm:$0xff] }
 0x4df   :  { %14006 = vmatprep.subr.bf16.mxu1 %v16907_v49  ;;  %v16763_v10 = vcombine.high %v7882_v17, %v7890_v7  ;;  %v7866_v14 = vld [vmem:[#allocation6 + $0x688] sm:$0xff]  ;;  %v16762_v23 = vcombine.low %v7882_v17, %v7890_v7 }
 0x4e0   :  { %13915 = vmatprep.mubr.bf16.mxu0 %v18111_v35  ;;  %v7874_v9 = vld [vmem:[#allocation6 + $0x6c8] sm:$0xff] }
 0x4e1   :  { %13916 = vmatmul.mubr.bf16.vlgmr.msra.gmra.mxu0 %v18115_v20  ;;  %v16747_v43 = vcombine.high %v7866_v14, %v7874_v9  ;;  %v7850_v49 = vld [vmem:[#allocation6 + $0x608] sm:$0xff]  ;;  %v16746_v39 = vcombine.low %v7866_v14, %v7874_v9 }
 0x4e2   :  { %13966 = vmatpush1.bf16.msra.mxu0 %v16650_v18  ;;  %13997 = vmatprep.mubr.bf16.mxu0 %v18044_v1  ;;  %v7858_v4 = vld [vmem:[#allocation6 + $0x648] sm:$0xff] }
 0x4e3   :  { %13967 = vmatprep.subr.bf16.mxu0 %v16635_v51  ;;  %v16731_v52 = vcombine.high %v7850_v49, %v7858_v4  ;;  %v7834_v18 = vld [vmem:[#allocation6 + $0x588] sm:$0xff]  ;;  %v16730_v5 = vcombine.low %v7850_v49, %v7858_v4 }
 0x4e4   :  { %v7842_v51 = vld [vmem:[#allocation6 + $0x5c8] sm:$0xff] }
 0x4e5   :  { %v16715_v12 = vcombine.high %v7834_v18, %v7842_v51  ;;  %v16714_v15 = vcombine.low %v7834_v18, %v7842_v51  ;;  %v7802_v54 = vld [vmem:[#allocation6 + $0x488] sm:$0xff] }
 0x4e6   :  { %13968 = vmatpush1.bf16.msra.mxu0 %v16634_v58  ;;  %v7818_v58 = vld [vmem:[#allocation6 + $0x508] sm:$0xff] }
 0x4e7   :  { %13969 = vmatprep.subr.bf16.mxu0 %v16619_v6  ;;  %v7826_v6 = vld [vmem:[#allocation6 + $0x548] sm:$0xff] }
 0x4e8   :  { %v16699_v44 = vcombine.high %v7818_v58, %v7826_v6  ;;  %v7810_v26 = vld [vmem:[#allocation6 + $0x4c8] sm:$0xff] }
 0x4e9   :  { %v16683_v45 = vcombine.high %v7802_v54, %v7810_v26  ;;  %v16682_v7 = vcombine.low %v7802_v54, %v7810_v26  ;;  %v8282_v9 = vld [vmem:[#allocation6 + $0x1388] sm:$0xff] }
 0x4ea   :  { %13970 = vmatpush1.bf16.msra.mxu0 %v16618_v62  ;;  %v8010_v49 = vld [vmem:[#allocation6 + $0xb08] sm:$0xff] }
 0x4eb   :  { %13971 = vmatprep.subr.bf16.mxu0 %v16603_v63  ;;  %v7619_v63 = vsub.s32 6, %v18024_v27  ;;  %v8018_v4 = vld [vmem:[#allocation6 + $0xb48] sm:$0xff] }
 0x4ec   :  { %v16891_v32 = vcombine.high %v8010_v49, %v8018_v4  ;;  %v7978_v54 = vld [vmem:[#allocation6 + $0xa08] sm:$0xff] }
 0x4ed   :  { %v7986_v26 = vld [vmem:[#allocation6 + $0xa48] sm:$0xff] }
 0x4ee   :  { %13972 = vmatpush1.bf16.msra.mxu0 %v16602_v55  ;;  %v16859_v3 = vcombine.high %v7978_v54, %v7986_v26 }
 0x4ef   :  { %13973 = vmatprep.subr.bf16.mxu0 %v16587_v53 }
 0x4f2   :  { %13974 = vmatpush1.bf16.msra.mxu0 %v16586_v34  ;;  %v16698_v34 = vcombine.low %v7818_v58, %v7826_v6  ;;  %v8250_v58 = vld [vmem:[#allocation6 + $0x1288] sm:$0xff] }
 0x4f3   :  { %13975 = vmatprep.subr.bf16.mxu0 %v16571_v40  ;;  %v8258_v6 = vld [vmem:[#allocation6 + $0x12c8] sm:$0xff] }
 0x4f4   :  { %v17130_v56 = vcombine.low %v8250_v58, %v8258_v6 }
 0x4f6   :  { %13976 = vmatpush1.bf16.msra.mxu0 %v16570_v8  ;;  %v17680_v8 = vld [vmem:[#allocation4] sm:$0xff] }
 0x4f7   :  { %13977 = vmatprep.subr.bf16.mxu0 %v16555_v59  ;;  %v7620_v59 = vrot.slane %v17680_v8, %v7619_v63  ;;  %v17131_v63 = vcombine.high %v8250_v58, %v8258_v6 }
 0x4fa   :  { %13978 = vmatpush1.bf16.msra.mxu0 %v16554_v19  ;;  %v7786_v19 = vld [vmem:[#allocation6 + $0x408] sm:$0xff] }
 0x4fb   :  { %13979 = vmatprep.subr.bf16.mxu0 %v16539_v29  ;;  %v7794_v29 = vld [vmem:[#allocation6 + $0x448] sm:$0xff] }
 0x4fc   :  { %v16666_v13 = vcombine.low %v7786_v19, %v7794_v29 }
 0x4fe   :  { %13980 = vmatpush1.bf16.msra.mxu0 %v16538_v60 }
 0x4ff   :  { %13981 = vmatprep.subr.bf16.mxu0 %v16779_v61  ;;  %v7624_v61 = vrot.slane %v17680_v8, %v7623_v37  ;;  %v7962_v37 = vld [vmem:[#allocation6 + $0x988] sm:$0xff] }
 0x502   :  { %13982 = vmatpush2.bf16.msra.mxu0 %v16778_v28 }
 0x503   :  { %13983 = vmatprep.subr.bf16.mxu0 %v16763_v10 }
 0x506   :  { %13984 = vmatpush2.bf16.msra.mxu0 %v16762_v23  ;;  %v8290_v23 = vld [vmem:[#allocation6 + $0x13c8] sm:$0xff] }
 0x507   :  { %13985 = vmatprep.subr.bf16.mxu0 %v16747_v43  ;;  %v17162_v51 = vcombine.low %v8282_v9, %v8290_v23 }
 0x50a   :  { %13986 = vmatpush2.bf16.msra.mxu0 %v16746_v39  ;;  %v8266_v39 = vld [vmem:[#allocation6 + $0x1308] sm:$0xff] }
 0x50b   :  { %13987 = vmatprep.subr.bf16.mxu0 %v16731_v52  ;;  %v8274_v52 = vld [vmem:[#allocation6 + $0x1348] sm:$0xff] }
 0x50e   :  { %13988 = vmatpush2.bf16.msra.mxu0 %v16730_v5 }
 0x50f   :  { %13989 = vmatprep.subr.bf16.mxu0 %v16715_v12  ;;  %v7519_v62 = vpop.f32.mrf.mxu0  ;;  %v8002_v12 = vld [vmem:[#allocation6 + $0xac8] sm:$0xff] }
 0x511   :  { %v7560_v55 = vpop.f32.mrf.mxu1  ;;  %v7521_v0 = vpop.f32.mrf.mxu0 }
 0x512   :  { %v7561_v53 = vadd.f32 %v7560_v55, %v7519_v62  ;;  %13990 = vmatpush2.bf16.msra.mxu0 %v16714_v15  ;;  %v16890_v15 = vcombine.low %v8010_v49, %v8018_v4  ;;  %v16875_v62 = vcombine.high %v7994_v24, %v8002_v12  ;;  %v8234_v55 = vld [vmem:[#allocation6 + $0x1208] sm:$0xff] }
 0x513   :  { %v7562_v40 = vpop.f32.mrf.mxu1  ;;  %13991 = vmatprep.subr.bf16.mxu0 %v16699_v44  ;;  %v7523_v50 = vpop.f32.mrf.mxu0  ;;  %v17146_v44 = vcombine.low %v8266_v39, %v8274_v52 }
 0x514   :  { %v7581_v25 = vmax.f32 %v18018_v57, %v7561_v53  ;;  %v7563_v16 = vadd.f32 %v7562_v40, %v7521_v0  ;;  %v16667_v57 = vcombine.high %v7786_v19, %v7794_v29  ;;  %v8242_v53 = vld [vmem:[#allocation6 + $0x1248] sm:$0xff]  ;;  %v16874_v0 = vcombine.low %v7994_v24, %v8002_v12 }
 0x515   :  { %v7564_v30 = vpop.f32.mrf.mxu1  ;;  %v7524_v17 = vpop.f32.mrf.mxu0  ;;  %v8218_v40 = vld [vmem:[#allocation6 + $0x1188] sm:$0xff]  ;;  %v17114_v8 = vcombine.low %v8234_v55, %v8242_v53 }
 0x516   :  { %v7589_v48 = vmax.f32 %v7573_v31, %v7581_v25  ;;  %v7582_v60 = vmax.f32 %v18021_v11, %v7563_v16  ;;  %13992 = vmatpush2.bf16.msra.mxu0 %v16698_v34  ;;  %v17163_v31 = vcombine.high %v8282_v9, %v8290_v23  ;;  %v7970_v34 = vld [vmem:[#allocation6 + $0x9c8] sm:$0xff]  ;;  %v16858_v25 = vcombine.low %v7978_v54, %v7986_v26 }
 0x517   :  { %v7565_v28 = vpop.f32.mrf.mxu1  ;;  %13993 = vmatprep.subr.bf16.mxu0 %v16683_v45  ;;  %v8226_v45 = vld [vmem:[#allocation6 + $0x11c8] sm:$0xff] }
 0x518   :  { %v7639_v10 = vadd.f32 %v7620_v59, %v7589_v48  ;;  %v7590_v14 = vmax.f32 %v7574_v38, %v7582_v60  ;;  %v17147_v38 = vcombine.high %v8266_v39, %v8274_v52  ;;  %v16843_v59 = vcombine.high %v7962_v37, %v7970_v34  ;;  %v7946_v50 = vld [vmem:[#allocation6 + $0x908] sm:$0xff] }
 0x519   :  { %v17099_v16 = vcombine.high %v8218_v40, %v8226_v45  ;;  %v7954_v19 = vld [vmem:[#allocation6 + $0x948] sm:$0xff]  ;;  %v16842_v48 = vcombine.low %v7962_v37, %v7970_v34  ;;  %v17098_v60 = vcombine.low %v8218_v40, %v8226_v45 }
 0x51a   :  { %v7640_v43 = vadd.f32 %v7624_v61, %v7590_v14  ;;  %13994 = vmatpush2.bf16.msra.mxu0 %v16682_v7  ;;  %v7647_v21 = vmax.f32 %v7639_v10, 0.0  ;;  %v8202_v29 = vld [vmem:[#allocation6 + $0x1108] sm:$0xff]  ;;  %v16827_v61 = vcombine.high %v7946_v50, %v7954_v19  ;;  %v16826_v14 = vcombine.low %v7946_v50, %v7954_v19 }
 0x51b   :  { %13995 = vmatprep.subr.bf16.mxu0 %v16667_v57  ;;  %v8210_v30 = vld [vmem:[#allocation6 + $0x1148] sm:$0xff] }
 0x51c   :  { %v7648_v11 = vmax.f32 %v7640_v43, 0.0  ;;  %v18132_v5 = vpack.c.bf16 %v7647_v21, %v7647_v21  ;;  %v17083_v17 = vcombine.high %v8202_v29, %v8210_v30  ;;  %v7930_v7 = vld [vmem:[#allocation6 + $0x888] sm:$0xff]  ;;  %v17082_v9 = vcombine.low %v8202_v29, %v8210_v30 }
 0x51d   :  { %v7938_v28 = vld [vmem:[#allocation6 + $0x8c8] sm:$0xff] }
 0x51e   :  { %v18130_v18 = vpack.c.bf16 %v7648_v11, %v7648_v11  ;;  %13996 = vmatpush2.bf16.msra.mxu0 %v16666_v13  ;;  %v8186_v57 = vld [vmem:[#allocation6 + $0x1088] sm:$0xff]  ;;  %v16811_v23 = vcombine.high %v7930_v7, %v7938_v28  ;;  %v16810_v49 = vcombine.low %v7930_v7, %v7938_v28 }
 0x51f   :  { %14047 = vmatprep.subr.bf16.mxu0 %v17163_v31  ;;  %v8194_v10 = vld [vmem:[#allocation6 + $0x10c8] sm:$0xff] }
 0x520   :  { %13956 = vmatprep.mubr.bf16.mxu1 %v18130_v18  ;;  %v17067_v43 = vcombine.high %v8186_v57, %v8194_v10  ;;  %v7914_v13 = vld [vmem:[#allocation6 + $0x808] sm:$0xff]  ;;  %v17066_v4 = vcombine.low %v8186_v57, %v8194_v10 }
 0x521   :  { %13998 = vmatmul.mubr.bf16.vlgmr.msra.gmra.mxu0 %v18058_v22  ;;  %13957 = vmatmul.mubr.bf16.vlgmr.msra.gmra.mxu1 %v18132_v5  ;;  %v7922_v21 = vld [vmem:[#allocation6 + $0x848] sm:$0xff] }
 0x522   :  { %14007 = vmatpush1.bf16.msra.mxu1 %v16906_v47  ;;  %14048 = vmatpush1.bf16.msra.mxu0 %v17162_v51  ;;  %v17115_v47 = vcombine.high %v8234_v55, %v8242_v53  ;;  %v8170_v31 = vld [vmem:[#allocation6 + $0x1008] sm:$0xff]  ;;  %v16795_v39 = vcombine.high %v7914_v13, %v7922_v21  ;;  %v16794_v12 = vcombine.low %v7914_v13, %v7922_v21 }
 0x523   :  { %14079 = vmatprep.mubr.bf16.mxu0 %v18111_v35  ;;  %14038 = vmatprep.mubr.bf16.mxu1 %v18077_v41  ;;  %v8178_v11 = vld [vmem:[#allocation6 + $0x1048] sm:$0xff] }
 0x524   :  { %14008 = vmatprep.subr.bf16.mxu1 %v16891_v32  ;;  %14049 = vmatprep.subr.bf16.mxu0 %v17147_v38  ;;  %v17051_v52 = vcombine.high %v8170_v31, %v8178_v11  ;;  %v8154_v51 = vld [vmem:[#allocation6 + $0xf88] sm:$0xff]  ;;  %v17050_v58 = vcombine.low %v8170_v31, %v8178_v11 }
 0x525   :  { %v8162_v24 = vld [vmem:[#allocation6 + $0xfc8] sm:$0xff] }
 0x526   :  { %14009 = vmatpush1.bf16.msra.mxu1 %v16890_v15  ;;  %14050 = vmatpush1.bf16.msra.mxu0 %v17146_v44  ;;  %v8410_v32 = vld [vmem:[#allocation6 + $0x1788] sm:$0xff]  ;;  %v17035_v6 = vcombine.high %v8154_v51, %v8162_v24  ;;  %v17034_v26 = vcombine.low %v8154_v51, %v8162_v24 }
 0x527   :  { %14010 = vmatprep.subr.bf16.mxu1 %v16875_v62  ;;  %14051 = vmatprep.subr.bf16.mxu0 %v17131_v63  ;;  %v8418_v38 = vld [vmem:[#allocation6 + $0x17c8] sm:$0xff] }
 0x528   :  { %v17291_v15 = vcombine.high %v8410_v32, %v8418_v38  ;;  %v8138_v44 = vld [vmem:[#allocation6 + $0xf08] sm:$0xff]  ;;  %v17290_v55 = vcombine.low %v8410_v32, %v8418_v38 }
 0x529   :  { %v8146_v62 = vld [vmem:[#allocation6 + $0xf48] sm:$0xff] }
 0x52a   :  { %14011 = vmatpush1.bf16.msra.mxu1 %v16874_v0  ;;  %14052 = vmatpush1.bf16.msra.mxu0 %v17130_v56  ;;  %v8394_v63 = vld [vmem:[#allocation6 + $0x1708] sm:$0xff]  ;;  %v17019_v53 = vcombine.high %v8138_v44, %v8146_v62  ;;  %v17018_v34 = vcombine.low %v8138_v44, %v8146_v62 }
 0x52b   :  { %14012 = vmatprep.subr.bf16.mxu1 %v16859_v3  ;;  %14053 = vmatprep.subr.bf16.mxu0 %v17115_v47  ;;  %v8402_v54 = vld [vmem:[#allocation6 + $0x1748] sm:$0xff] }
 0x52c   :  { %v17275_v0 = vcombine.high %v8394_v63, %v8402_v54  ;;  %v8122_v56 = vld [vmem:[#allocation6 + $0xe88] sm:$0xff]  ;;  %v17274_v40 = vcombine.low %v8394_v63, %v8402_v54 }
 0x52d   :  { %v8130_v3 = vld [vmem:[#allocation6 + $0xec8] sm:$0xff] }
 0x52e   :  { %14013 = vmatpush1.bf16.msra.mxu1 %v16858_v25  ;;  %14054 = vmatpush1.bf16.msra.mxu0 %v17114_v8  ;;  %v8378_v47 = vld [vmem:[#allocation6 + $0x1688] sm:$0xff]  ;;  %v17003_v45 = vcombine.high %v8122_v56, %v8130_v3  ;;  %v17002_v19 = vcombine.low %v8122_v56, %v8130_v3 }
 0x52f   :  { %14014 = vmatprep.subr.bf16.mxu1 %v16843_v59  ;;  %14055 = vmatprep.subr.bf16.mxu0 %v17099_v16  ;;  %v8386_v37 = vld [vmem:[#allocation6 + $0x16c8] sm:$0xff] }
 0x530   :  { %v17259_v25 = vcombine.high %v8378_v47, %v8386_v37  ;;  %v8106_v8 = vld [vmem:[#allocation6 + $0xe08] sm:$0xff]  ;;  %v17258_v29 = vcombine.low %v8378_v47, %v8386_v37  ;;  %v7771_v37 = vld [vmem:[#allocation6 + $0x390] sm:$0xff] }
 0x531   :  { %v8114_v59 = vld [vmem:[#allocation6 + $0xe48] sm:$0xff] }
 0x532   :  { %14015 = vmatpush1.bf16.msra.mxu1 %v16842_v48  ;;  %14056 = vmatpush1.bf16.msra.mxu0 %v17098_v60  ;;  %v8362_v16 = vld [vmem:[#allocation6 + $0x1608] sm:$0xff]  ;;  %v16987_v30 = vcombine.high %v8106_v8, %v8114_v59  ;;  %v16986_v28 = vcombine.low %v8106_v8, %v8114_v59 }
 0x533   :  { %14016 = vmatprep.subr.bf16.mxu1 %v16827_v61  ;;  %14057 = vmatprep.subr.bf16.mxu0 %v17083_v17  ;;  %v8370_v50 = vld [vmem:[#allocation6 + $0x1648] sm:$0xff] }
 0x534   :  { %v17243_v48 = vcombine.high %v8362_v16, %v8370_v50  ;;  %v8090_v60 = vld [vmem:[#allocation6 + $0xd88] sm:$0xff]  ;;  %v17242_v57 = vcombine.low %v8362_v16, %v8370_v50  ;;  %v7755_v50 = vld [vmem:[#allocation6 + $0x310] sm:$0xff] }
 0x535   :  { %v8098_v61 = vld [vmem:[#allocation6 + $0xdc8] sm:$0xff] }
 0x536   :  { %14017 = vmatpush1.bf16.msra.mxu1 %v16826_v14  ;;  %14058 = vmatpush1.bf16.msra.mxu0 %v17082_v9  ;;  %v8346_v17 = vld [vmem:[#allocation6 + $0x1588] sm:$0xff]  ;;  %v16971_v10 = vcombine.high %v8090_v60, %v8098_v61  ;;  %v16970_v21 = vcombine.low %v8090_v60, %v8098_v61 }
 0x537   :  { %14018 = vmatprep.subr.bf16.mxu1 %v16811_v23  ;;  %14059 = vmatprep.subr.bf16.mxu0 %v17067_v43  ;;  %v8354_v7 = vld [vmem:[#allocation6 + $0x15c8] sm:$0xff] }
 0x538   :  { %v17227_v14 = vcombine.high %v8346_v17, %v8354_v7  ;;  %v8074_v9 = vld [vmem:[#allocation6 + $0xd08] sm:$0xff]  ;;  %v17226_v31 = vcombine.low %v8346_v17, %v8354_v7 }
 0x539   :  { %v8082_v23 = vld [vmem:[#allocation6 + $0xd48] sm:$0xff] }
 0x53a   :  { %14019 = vmatpush1.bf16.msra.mxu1 %v16810_v49  ;;  %14060 = vmatpush1.bf16.msra.mxu0 %v17066_v4  ;;  %v8330_v43 = vld [vmem:[#allocation6 + $0x1508] sm:$0xff]  ;;  %v16955_v11 = vcombine.high %v8074_v9, %v8082_v23  ;;  %v16954_v38 = vcombine.low %v8074_v9, %v8082_v23 }
 0x53b   :  { %14020 = vmatprep.subr.bf16.mxu1 %v16795_v39  ;;  %14061 = vmatprep.subr.bf16.mxu0 %v17051_v52  ;;  %v8338_v13 = vld [vmem:[#allocation6 + $0x1548] sm:$0xff] }
 0x53c   :  { %v17211_v49 = vcombine.high %v8330_v43, %v8338_v13  ;;  %v8058_v4 = vld [vmem:[#allocation6 + $0xc88] sm:$0xff] }
 0x53d   :  { %v8066_v52 = vld [vmem:[#allocation6 + $0xcc8] sm:$0xff] }
 0x53e   :  { %14021 = vmatpush1.bf16.msra.mxu1 %v16794_v12  ;;  %14062 = vmatpush1.bf16.msra.mxu0 %v17050_v58  ;;  %v8314_v51 = vld [vmem:[#allocation6 + $0x1488] sm:$0xff]  ;;  %v17210_v12 = vcombine.low %v8330_v43, %v8338_v13  ;;  %v16939_v58 = vcombine.high %v8058_v4, %v8066_v52 }
 0x53f   :  { %14022 = vmatprep.subr.bf16.mxu1 %v17035_v6  ;;  %14063 = vmatprep.subr.bf16.mxu0 %v17291_v15  ;;  %v8322_v24 = vld [vmem:[#allocation6 + $0x14c8] sm:$0xff] }
 0x540   :  { %v17195_v6 = vcombine.high %v8314_v51, %v8322_v24  ;;  %v8042_v15 = vld [vmem:[#allocation6 + $0xc08] sm:$0xff] }
 0x541   :  { %v8050_v62 = vld [vmem:[#allocation6 + $0xc48] sm:$0xff] }
 0x542   :  { %14023 = vmatpush2.bf16.msra.mxu1 %v17034_v26  ;;  %14064 = vmatpush2.bf16.msra.mxu0 %v17290_v55  ;;  %v8298_v63 = vld [vmem:[#allocation6 + $0x1408] sm:$0xff]  ;;  %v16938_v55 = vcombine.low %v8058_v4, %v8066_v52  ;;  %v7723_v4 = vld [vmem:[#allocation6 + $0x210] sm:$0xff] }
 0x543   :  { %14024 = vmatprep.subr.bf16.mxu1 %v17019_v53  ;;  %14065 = vmatprep.subr.bf16.mxu0 %v17275_v0  ;;  %v8306_v54 = vld [vmem:[#allocation6 + $0x1448] sm:$0xff]  ;;  %v17194_v53 = vcombine.low %v8314_v51, %v8322_v24  ;;  %v16923_v0 = vcombine.high %v8042_v15, %v8050_v62 }
 0x544   :  { %v17179_v56 = vcombine.high %v8298_v63, %v8306_v54  ;;  %v8538_v3 = vld [vmem:[#allocation6 + $0x1b88] sm:$0xff] }
 0x545   :  { %v8546_v47 = vld [vmem:[#allocation6 + $0x1bc8] sm:$0xff] }
 0x546   :  { %14025 = vmatpush2.bf16.msra.mxu1 %v17018_v34  ;;  %14066 = vmatpush2.bf16.msra.mxu0 %v17274_v40  ;;  %v7779_v34 = vld [vmem:[#allocation6 + $0x3d0] sm:$0xff]  ;;  %v16922_v40 = vcombine.low %v8042_v15, %v8050_v62  ;;  %v8522_v59 = vld [vmem:[#allocation6 + $0x1b08] sm:$0xff] }
 0x547   :  { %14026 = vmatprep.subr.bf16.mxu1 %v17003_v45  ;;  %14067 = vmatprep.subr.bf16.mxu0 %v17259_v25  ;;  %v17178_v45 = vcombine.low %v8298_v63, %v8306_v54  ;;  %v17419_v25 = vcombine.high %v8538_v3, %v8546_v47  ;;  %v16653_v8 = vcombine.high %v7771_v37, %v7779_v34  ;;  %v8530_v16 = vld [vmem:[#allocation6 + $0x1b48] sm:$0xff]  ;;  %v7715_v15 = vld [vmem:[#allocation6 + $0x1d0] sm:$0xff] }
 0x548   :  { %v8506_v61 = vld [vmem:[#allocation6 + $0x1a88] sm:$0xff] }
 0x549   :  { %v8514_v17 = vld [vmem:[#allocation6 + $0x1ac8] sm:$0xff] }
 0x54a   :  { %14027 = vmatpush2.bf16.msra.mxu1 %v17002_v19  ;;  %14068 = vmatpush2.bf16.msra.mxu0 %v17258_v29  ;;  %v7763_v19 = vld [vmem:[#allocation6 + $0x350] sm:$0xff]  ;;  %v17418_v29 = vcombine.low %v8538_v3, %v8546_v47  ;;  %v17387_v43 = vcombine.high %v8506_v61, %v8514_v17  ;;  %v17386_v52 = vcombine.low %v8506_v61, %v8514_v17 }
 0x54b   :  { %14028 = vmatprep.subr.bf16.mxu1 %v16987_v30  ;;  %14069 = vmatprep.subr.bf16.mxu0 %v17243_v48  ;;  %v16652_v30 = vcombine.low %v7771_v37, %v7779_v34  ;;  %v17403_v48 = vcombine.high %v8522_v59, %v8530_v16  ;;  %v16637_v60 = vcombine.high %v7755_v50, %v7763_v19  ;;  %v8442_v34 = vld [vmem:[#allocation6 + $0x1888] sm:$0xff] }
 0x54c   :  { %v16636_v23 = vcombine.low %v7755_v50, %v7763_v19  ;;  %v8426_v19 = vld [vmem:[#allocation6 + $0x1808] sm:$0xff] }
 0x54e   :  { %14029 = vmatpush2.bf16.msra.mxu1 %v16986_v28  ;;  %14070 = vmatpush2.bf16.msra.mxu0 %v17242_v57  ;;  %v7739_v28 = vld [vmem:[#allocation6 + $0x290] sm:$0xff] }
 0x54f   :  { %14030 = vmatprep.subr.bf16.mxu1 %v16971_v10  ;;  %14071 = vmatprep.subr.bf16.mxu0 %v17227_v14  ;;  %v13835_v39 = vpop.f32.mrf.mxu0  ;;  %v7747_v57 = vld [vmem:[#allocation6 + $0x2d0] sm:$0xff]  ;;  %v17402_v14 = vcombine.low %v8522_v59, %v8530_v16 }
 0x550   :  { %v16620_v24 = vcombine.low %v7739_v28, %v7747_v57 }
 0x551   :  { %v13837_v32 = vpop.f32.mrf.mxu0 }
 0x552   :  { %14031 = vmatpush2.bf16.msra.mxu1 %v16970_v21  ;;  %14072 = vmatpush2.bf16.msra.mxu0 %v17226_v31  ;;  %v16621_v21 = vcombine.high %v7739_v28, %v7747_v57  ;;  %v8490_v31 = vld [vmem:[#allocation6 + $0x1a08] sm:$0xff] }
 0x553   :  { %14032 = vmatprep.subr.bf16.mxu1 %v16955_v11  ;;  %14073 = vmatprep.subr.bf16.mxu0 %v17211_v49  ;;  %v13839_v44 = vpop.f32.mrf.mxu0  ;;  %v8498_v11 = vld [vmem:[#allocation6 + $0x1a48] sm:$0xff] }
 0x554   :  { %v17370_v44 = vcombine.low %v8490_v31, %v8498_v11  ;;  %v8666_v28 = vld [vmem:[#allocation6 + $0x1f88] sm:$0xff] }
 0x555   :  { %v13840_v26 = vpop.f32.mrf.mxu0  ;;  %v8674_v57 = vld [vmem:[#allocation6 + $0x1fc8] sm:$0xff] }
 0x556   :  { %14033 = vmatpush2.bf16.msra.mxu1 %v16954_v38  ;;  %14074 = vmatpush2.bf16.msra.mxu0 %v17210_v12  ;;  %v17371_v38 = vcombine.high %v8490_v31, %v8498_v11  ;;  %v8458_v26 = vld [vmem:[#allocation6 + $0x1908] sm:$0xff] }
 0x557   :  { %14034 = vmatprep.subr.bf16.mxu1 %v16939_v58  ;;  %14075 = vmatprep.subr.bf16.mxu0 %v17195_v6  ;;  %v8474_v58 = vld [vmem:[#allocation6 + $0x1988] sm:$0xff]  ;;  %v7707_v6 = vld [vmem:[#allocation6 + $0x190] sm:$0xff] }
 0x558   :  { %v16589_v54 = vcombine.high %v7707_v6, %v7715_v15  ;;  %v16588_v3 = vcombine.low %v7707_v6, %v7715_v15  ;;  %v8650_v11 = vld [vmem:[#allocation6 + $0x1f08] sm:$0xff]  ;;  %v7875_v6 = vld [vmem:[#allocation6 + $0x6d0] sm:$0xff] }
 0x55a   :  { %14035 = vmatpush2.bf16.msra.mxu1 %v16938_v55  ;;  %14076 = vmatpush2.bf16.msra.mxu0 %v17194_v53  ;;  %v8466_v55 = vld [vmem:[#allocation6 + $0x1948] sm:$0xff]  ;;  %v7691_v53 = vld [vmem:[#allocation6 + $0x110] sm:$0xff] }
 0x55b   :  { %14036 = vmatprep.subr.bf16.mxu1 %v16923_v0  ;;  %14077 = vmatprep.subr.bf16.mxu0 %v17179_v56  ;;  %v7699_v0 = vld [vmem:[#allocation6 + $0x150] sm:$0xff]  ;;  %v17339_v47 = vcombine.high %v8458_v26, %v8466_v55 }
 0x55c   :  { %v16573_v37 = vcombine.high %v7691_v53, %v7699_v0  ;;  %v16572_v59 = vcombine.low %v7691_v53, %v7699_v0  ;;  %v7859_v53 = vld [vmem:[#allocation6 + $0x650] sm:$0xff] }
 0x55e   :  { %14037 = vmatpush2.bf16.msra.mxu1 %v16922_v40  ;;  %14078 = vmatpush2.bf16.msra.mxu0 %v17178_v45  ;;  %v8450_v40 = vld [vmem:[#allocation6 + $0x18c8] sm:$0xff]  ;;  %v7675_v45 = vld [vmem:[#allocation6 + $0x90] sm:$0xff] }
 0x55f   :  { %14088 = vmatprep.subr.bf16.mxu1 %v17419_v25  ;;  %14129 = vmatprep.subr.bf16.mxu0 %v16653_v8  ;;  %v7683_v25 = vld [vmem:[#allocation6 + $0xd0] sm:$0xff]  ;;  %v17338_v8 = vcombine.low %v8458_v26, %v8466_v55  ;;  %v17323_v16 = vcombine.high %v8442_v34, %v8450_v40  ;;  %v8626_v26 = vld [vmem:[#allocation6 + $0x1e48] sm:$0xff] }
 0x560   :  { %v16557_v50 = vcombine.high %v7675_v45, %v7683_v25  ;;  %v16556_v61 = vcombine.low %v7675_v45, %v7683_v25  ;;  %v7851_v55 = vld [vmem:[#allocation6 + $0x610] sm:$0xff] }
 0x561   :  { %14039 = vmatmul.mubr.bf16.vlgmr.msra.gmra.mxu1 %v18085_v2  ;;  %14080 = vmatmul.mubr.bf16.vlgmr.msra.gmra.mxu0 %v18115_v20  ;;  %v13876_v7 = vpop.f32.mrf.mxu1  ;;  %v7843_v45 = vld [vmem:[#allocation6 + $0x5d0] sm:$0xff] }
 0x562   :  { %v18144_v10 = vadd.f32 %v13876_v7, %v13835_v39  ;;  %14089 = vmatpush1.bf16.msra.mxu1 %v17418_v29  ;;  %14120 = vmatprep.mubr.bf16.mxu1 %v18130_v18  ;;  %v7731_v39 = vld [vmem:[#allocation6 + $0x250] sm:$0xff]  ;;  %v8434_v29 = vld [vmem:[#allocation6 + $0x1848] sm:$0xff] }
 0x563   :  { %14130 = vmatpush1.bf16.msra.mxu0 %v16652_v30  ;;  %14161 = vmatprep.mubr.bf16.mxu0 %v18044_v1  ;;  %v13878_v9 = vpop.f32.mrf.mxu1  ;;  %v16605_v12 = vcombine.high %v7723_v4, %v7731_v39  ;;  %v16604_v62 = vcombine.low %v7723_v4, %v7731_v39  ;;  %v7659_v30 = vld [vmem:[#allocation6 + $0x10] sm:$0xff]  ;;  %v17307_v17 = vcombine.high %v8426_v19, %v8434_v29 }
 0x564   :  { %v18148_v13 = vadd.f32 %v13878_v9, %v13837_v32  ;;  %14090 = vmatprep.subr.bf16.mxu1 %v17403_v48  ;;  %14131 = vmatprep.subr.bf16.mxu0 %v16637_v60  ;;  %v8482_v32 = vld [vmem:[#allocation6 + $0x19c8] sm:$0xff]  ;;  %v7667_v48 = vld [vmem:[#allocation6 + $0x50] sm:$0xff]  ;;  %v17322_v60 = vcombine.low %v8442_v34, %v8450_v40 }
 0x565   :  { %v13880_v49 = vpop.f32.mrf.mxu1  ;;  %v17355_v63 = vcombine.high %v8474_v58, %v8482_v32  ;;  %v17354_v56 = vcombine.low %v8474_v58, %v8482_v32  ;;  %v16541_v7 = vcombine.high %v7659_v30, %v7667_v48  ;;  %v7907_v9 = vld [vmem:[#allocation6 + $0x7d0] sm:$0xff]  ;;  %v8642_v58 = vld [vmem:[#allocation6 + $0x1ec8] sm:$0xff] }
 0x566   :  { %14091 = vmatpush1.bf16.msra.mxu1 %v17402_v14  ;;  %v7899_v14 = vld [vmem:[#allocation6 + $0x790] sm:$0xff]  ;;  %v8658_v49 = vld [vmem:[#allocation6 + $0x1f48] sm:$0xff] }
 0x567   :  { %14132 = vmatpush1.bf16.msra.mxu0 %v16636_v23  ;;  %v13881_v51 = vpop.f32.mrf.mxu1  ;;  %14092 = vmatprep.subr.bf16.mxu1 %v17387_v43  ;;  %v17306_v23 = vcombine.low %v8426_v19, %v8434_v29  ;;  %v16540_v43 = vcombine.low %v7659_v30, %v7667_v48  ;;  %v16781_v31 = vcombine.high %v7899_v14, %v7907_v9  ;;  %v7883_v4 = vld [vmem:[#allocation6 + $0x710] sm:$0xff]  ;;  %v8610_v34 = vld [vmem:[#allocation6 + $0x1dc8] sm:$0xff] }
 0x568   :  { %14133 = vmatprep.subr.bf16.mxu0 %v16621_v21  ;;  %v17547_v21 = vcombine.high %v8666_v28, %v8674_v57  ;;  %v7891_v39 = vld [vmem:[#allocation6 + $0x750] sm:$0xff]  ;;  %v16780_v51 = vcombine.low %v7899_v14, %v7907_v9  ;;  %v17530_v15 = vcombine.low %v8650_v11, %v8658_v49  ;;  %v8594_v19 = vld [vmem:[#allocation6 + $0x1d48] sm:$0xff] }
 0x569   :  { %v7867_v32 = vld [vmem:[#allocation6 + $0x690] sm:$0xff] }
 0x56a   :  { %14093 = vmatpush1.bf16.msra.mxu1 %v17386_v52  ;;  %v17546_v52 = vcombine.low %v8666_v28, %v8674_v57  ;;  %v7835_v40 = vld [vmem:[#allocation6 + $0x590] sm:$0xff]  ;;  %v8578_v28 = vld [vmem:[#allocation6 + $0x1cc8] sm:$0xff] }
 0x56b   :  { %14134 = vmatpush1.bf16.msra.mxu0 %v16620_v24  ;;  %14094 = vmatprep.subr.bf16.mxu1 %v17371_v38  ;;  %v17531_v24 = vcombine.high %v8650_v11, %v8658_v49  ;;  %v16765_v38 = vcombine.high %v7883_v4, %v7891_v39  ;;  %v7819_v29 = vld [vmem:[#allocation6 + $0x510] sm:$0xff]  ;;  %v8562_v11 = vld [vmem:[#allocation6 + $0x1c48] sm:$0xff] }
 0x56c   :  { %14135 = vmatprep.subr.bf16.mxu0 %v16605_v12  ;;  %v8634_v12 = vld [vmem:[#allocation6 + $0x1e88] sm:$0xff]  ;;  %v7827_v30 = vld [vmem:[#allocation6 + $0x550] sm:$0xff] }
 0x56d   :  { %v17514_v0 = vcombine.low %v8634_v12, %v8642_v58  ;;  %v7803_v57 = vld [vmem:[#allocation6 + $0x490] sm:$0xff] }
 0x56e   :  { %14095 = vmatpush1.bf16.msra.mxu1 %v17370_v44  ;;  %v16764_v44 = vcombine.low %v7883_v4, %v7891_v39  ;;  %v7811_v14 = vld [vmem:[#allocation6 + $0x4d0] sm:$0xff] }
 0x56f   :  { %14136 = vmatpush1.bf16.msra.mxu0 %v16604_v62  ;;  %14096 = vmatprep.subr.bf16.mxu1 %v17355_v63  ;;  %v17515_v62 = vcombine.high %v8634_v12, %v8642_v58  ;;  %v16749_v63 = vcombine.high %v7867_v32, %v7875_v6  ;;  %v7787_v49 = vld [vmem:[#allocation6 + $0x410] sm:$0xff] }
 0x570   :  { %14137 = vmatprep.subr.bf16.mxu0 %v16589_v54  ;;  %v8618_v54 = vld [vmem:[#allocation6 + $0x1e08] sm:$0xff]  ;;  %v7795_v4 = vld [vmem:[#allocation6 + $0x450] sm:$0xff] }
 0x571   :  { %v17498_v25 = vcombine.low %v8618_v54, %v8626_v26  ;;  %v8035_v12 = vld [vmem:[#allocation6 + $0xbd0] sm:$0xff] }
 0x572   :  { %14097 = vmatpush1.bf16.msra.mxu1 %v17354_v56  ;;  %v16748_v56 = vcombine.low %v7867_v32, %v7875_v6  ;;  %v8283_v58 = vld [vmem:[#allocation6 + $0x1390] sm:$0xff] }
 0x573   :  { %14138 = vmatpush1.bf16.msra.mxu0 %v16588_v3  ;;  %14098 = vmatprep.subr.bf16.mxu1 %v17339_v47  ;;  %v17499_v3 = vcombine.high %v8618_v54, %v8626_v26  ;;  %v16733_v47 = vcombine.high %v7851_v55, %v7859_v53  ;;  %v8291_v32 = vld [vmem:[#allocation6 + $0x13d0] sm:$0xff] }
 0x574   :  { %14139 = vmatprep.subr.bf16.mxu0 %v16573_v37  ;;  %v8602_v37 = vld [vmem:[#allocation6 + $0x1d88] sm:$0xff]  ;;  %v8019_v54 = vld [vmem:[#allocation6 + $0xb50] sm:$0xff] }
 0x575   :  { %v17482_v48 = vcombine.low %v8602_v37, %v8610_v34 }
 0x576   :  { %14099 = vmatpush1.bf16.msra.mxu1 %v17338_v8  ;;  %v16732_v8 = vcombine.low %v7851_v55, %v7859_v53  ;;  %v8267_v55 = vld [vmem:[#allocation6 + $0x1310] sm:$0xff] }
 0x577   :  { %14140 = vmatpush1.bf16.msra.mxu0 %v16572_v59  ;;  %14100 = vmatprep.subr.bf16.mxu1 %v17323_v16  ;;  %v17483_v59 = vcombine.high %v8602_v37, %v8610_v34  ;;  %v16717_v16 = vcombine.high %v7835_v40, %v7843_v45  ;;  %v8275_v53 = vld [vmem:[#allocation6 + $0x1350] sm:$0xff] }
 0x578   :  { %14141 = vmatprep.subr.bf16.mxu0 %v16557_v50  ;;  %v8586_v50 = vld [vmem:[#allocation6 + $0x1d08] sm:$0xff]  ;;  %v17149_v34 = vcombine.high %v8267_v55, %v8275_v53 }
 0x579   :  { %v17466_v9 = vcombine.low %v8586_v50, %v8594_v19 }
 0x57a   :  { %14101 = vmatpush1.bf16.msra.mxu1 %v17322_v60  ;;  %v16716_v60 = vcombine.low %v7835_v40, %v7843_v45  ;;  %v8251_v40 = vld [vmem:[#allocation6 + $0x1290] sm:$0xff] }
 0x57b   :  { %14142 = vmatpush1.bf16.msra.mxu0 %v16556_v61  ;;  %14102 = vmatprep.subr.bf16.mxu1 %v17307_v17  ;;  %v17467_v61 = vcombine.high %v8586_v50, %v8594_v19  ;;  %v16701_v17 = vcombine.high %v7819_v29, %v7827_v30  ;;  %v8259_v45 = vld [vmem:[#allocation6 + $0x12d0] sm:$0xff] }
 0x57c   :  { %14143 = vmatprep.subr.bf16.mxu0 %v16541_v7  ;;  %v8570_v7 = vld [vmem:[#allocation6 + $0x1c88] sm:$0xff] }
 0x57d   :  { %v17450_v39 = vcombine.low %v8570_v7, %v8578_v28 }
 0x57e   :  { %14103 = vmatpush1.bf16.msra.mxu1 %v17306_v23  ;;  %v16700_v23 = vcombine.low %v7819_v29, %v7827_v30  ;;  %v17133_v29 = vcombine.high %v8251_v40, %v8259_v45  ;;  %v7979_v30 = vld [vmem:[#allocation6 + $0xa10] sm:$0xff] }
 0x57f   :  { %14144 = vmatpush1.bf16.msra.mxu0 %v16540_v43  ;;  %14104 = vmatprep.subr.bf16.mxu1 %v17547_v21  ;;  %v17451_v43 = vcombine.high %v8570_v7, %v8578_v28  ;;  %v16685_v21 = vcombine.high %v7803_v57, %v7811_v14  ;;  %v17132_v28 = vcombine.low %v8251_v40, %v8259_v45  ;;  %v8155_v40 = vld [vmem:[#allocation6 + $0xf90] sm:$0xff] }
 0x580   :  { %14145 = vmatprep.subr.bf16.mxu0 %v16781_v31  ;;  %v8554_v31 = vld [vmem:[#allocation6 + $0x1c08] sm:$0xff]  ;;  %v8163_v45 = vld [vmem:[#allocation6 + $0xfd0] sm:$0xff] }
 0x581   :  { %v17434_v6 = vcombine.low %v8554_v31, %v8562_v11 }
 0x582   :  { %14105 = vmatpush2.bf16.msra.mxu1 %v17546_v52  ;;  %v16684_v52 = vcombine.low %v7803_v57, %v7811_v14 }
 0x583   :  { %14146 = vmatpush2.bf16.msra.mxu0 %v16780_v51  ;;  %14106 = vmatprep.subr.bf16.mxu1 %v17531_v24  ;;  %v17435_v51 = vcombine.high %v8554_v31, %v8562_v11  ;;  %v16669_v24 = vcombine.high %v7787_v49, %v7795_v4 }
 0x584   :  { %14147 = vmatprep.subr.bf16.mxu0 %v16765_v38  ;;  %v8027_v38 = vld [vmem:[#allocation6 + $0xb90] sm:$0xff] }
 0x585   :  { %v16908_v26 = vcombine.low %v8027_v38, %v8035_v12 }
 0x586   :  { %14107 = vmatpush2.bf16.msra.mxu1 %v17530_v15  ;;  %v16668_v15 = vcombine.low %v7787_v49, %v7795_v4  ;;  %v7947_v4 = vld [vmem:[#allocation6 + $0x910] sm:$0xff] }
 0x587   :  { %14148 = vmatpush2.bf16.msra.mxu0 %v16764_v44  ;;  %14108 = vmatprep.subr.bf16.mxu1 %v17515_v62  ;;  %v16909_v44 = vcombine.high %v8027_v38, %v8035_v12  ;;  %v17165_v62 = vcombine.high %v8283_v58, %v8291_v32 }
 0x588   :  { %14149 = vmatprep.subr.bf16.mxu0 %v16749_v63  ;;  %v8011_v63 = vld [vmem:[#allocation6 + $0xb10] sm:$0xff] }
 0x58a   :  { %14109 = vmatpush2.bf16.msra.mxu1 %v17514_v0  ;;  %v17164_v0 = vcombine.low %v8283_v58, %v8291_v32  ;;  %v7931_v32 = vld [vmem:[#allocation6 + $0x890] sm:$0xff] }
 0x58b   :  { %14150 = vmatpush2.bf16.msra.mxu0 %v16748_v56  ;;  %14110 = vmatprep.subr.bf16.mxu1 %v17499_v3  ;;  %v16893_v56 = vcombine.high %v8011_v63, %v8019_v54  ;;  %v7995_v3 = vld [vmem:[#allocation6 + $0xa90] sm:$0xff] }
 0x58c   :  { %14151 = vmatprep.subr.bf16.mxu0 %v16733_v47  ;;  %v8003_v47 = vld [vmem:[#allocation6 + $0xad0] sm:$0xff] }
 0x58d   :  { %v16877_v50 = vcombine.high %v7995_v3, %v8003_v47 }
 0x58e   :  { %14111 = vmatpush2.bf16.msra.mxu1 %v17498_v25 }
 0x58f   :  { %14152 = vmatpush2.bf16.msra.mxu0 %v16732_v8  ;;  %14112 = vmatprep.subr.bf16.mxu1 %v17483_v59  ;;  %v16892_v8 = vcombine.low %v8011_v63, %v8019_v54 }
 0x590   :  { %14153 = vmatprep.subr.bf16.mxu0 %v16717_v16  ;;  %v17148_v16 = vcombine.low %v8267_v55, %v8275_v53  ;;  %v7915_v55 = vld [vmem:[#allocation6 + $0x810] sm:$0xff] }
 0x591   :  { %v7923_v53 = vld [vmem:[#allocation6 + $0x850] sm:$0xff] }
 0x592   :  { %14113 = vmatpush2.bf16.msra.mxu1 %v17482_v48  ;;  %v7987_v48 = vld [vmem:[#allocation6 + $0xa50] sm:$0xff] }
 0x593   :  { %14154 = vmatpush2.bf16.msra.mxu0 %v16716_v60  ;;  %14114 = vmatprep.subr.bf16.mxu1 %v17467_v61  ;;  %v8235_v60 = vld [vmem:[#allocation6 + $0x1210] sm:$0xff]  ;;  %v16861_v57 = vcombine.high %v7979_v30, %v7987_v48 }
 0x594   :  { %14155 = vmatprep.subr.bf16.mxu0 %v16701_v17  ;;  %v8243_v61 = vld [vmem:[#allocation6 + $0x1250] sm:$0xff]  ;;  %v16876_v17 = vcombine.low %v7995_v3, %v8003_v47 }
 0x595   :  { %v17117_v14 = vcombine.high %v8235_v60, %v8243_v61  ;;  %v17116_v31 = vcombine.low %v8235_v60, %v8243_v61  ;;  %v8395_v60 = vld [vmem:[#allocation6 + $0x1710] sm:$0xff] }
 0x596   :  { %14115 = vmatpush2.bf16.msra.mxu1 %v17466_v9  ;;  %v7963_v9 = vld [vmem:[#allocation6 + $0x990] sm:$0xff] }
 0x597   :  { %14156 = vmatpush2.bf16.msra.mxu0 %v16700_v23  ;;  %14116 = vmatprep.subr.bf16.mxu1 %v17451_v43  ;;  %v8219_v23 = vld [vmem:[#allocation6 + $0x1190] sm:$0xff] }
 0x598   :  { %14157 = vmatprep.subr.bf16.mxu0 %v16685_v21  ;;  %v8227_v43 = vld [vmem:[#allocation6 + $0x11d0] sm:$0xff]  ;;  %v16860_v21 = vcombine.low %v7979_v30, %v7987_v48 }
 0x599   :  { %v17101_v49 = vcombine.high %v8219_v23, %v8227_v43  ;;  %v17100_v38 = vcombine.low %v8219_v23, %v8227_v43  ;;  %v8139_v48 = vld [vmem:[#allocation6 + $0xf10] sm:$0xff] }
 0x59a   :  { %14117 = vmatpush2.bf16.msra.mxu1 %v17450_v39  ;;  %v7955_v39 = vld [vmem:[#allocation6 + $0x950] sm:$0xff] }
 0x59b   :  { %14158 = vmatpush2.bf16.msra.mxu0 %v16684_v52  ;;  %14118 = vmatprep.subr.bf16.mxu1 %v17435_v51  ;;  %v8203_v52 = vld [vmem:[#allocation6 + $0x1110] sm:$0xff]  ;;  %v16829_v12 = vcombine.high %v7947_v4, %v7955_v39 }
 0x59c   :  { %14159 = vmatprep.subr.bf16.mxu0 %v16669_v24  ;;  %v8211_v51 = vld [vmem:[#allocation6 + $0x1150] sm:$0xff] }
 0x59d   :  { %v17085_v58 = vcombine.high %v8203_v52, %v8211_v51  ;;  %v17084_v63 = vcombine.low %v8203_v52, %v8211_v51  ;;  %v8403_v61 = vld [vmem:[#allocation6 + $0x1750] sm:$0xff] }
 0x59e   :  { %14119 = vmatpush2.bf16.msra.mxu1 %v17434_v6  ;;  %v7939_v6 = vld [vmem:[#allocation6 + $0x8d0] sm:$0xff] }
 0x59f   :  { %14160 = vmatpush2.bf16.msra.mxu0 %v16668_v15  ;;  %14170 = vmatprep.subr.bf16.mxu1 %v16909_v44  ;;  %v8187_v15 = vld [vmem:[#allocation6 + $0x1090] sm:$0xff]  ;;  %v16813_v54 = vcombine.high %v7931_v32, %v7939_v6  ;;  %v16812_v3 = vcombine.low %v7931_v32, %v7939_v6 }
 0x5a0   :  { %14211 = vmatprep.subr.bf16.mxu0 %v17165_v62  ;;  %v8195_v44 = vld [vmem:[#allocation6 + $0x10d0] sm:$0xff]  ;;  %v16828_v62 = vcombine.low %v7947_v4, %v7955_v39 }
 0x5a1   :  { %14121 = vmatmul.mubr.bf16.vlgmr.msra.gmra.mxu1 %v18132_v5  ;;  %v13917_v37 = vpop.f32.mrf.mxu0  ;;  %v17068_v47 = vcombine.low %v8187_v15, %v8195_v44  ;;  %v8387_v23 = vld [vmem:[#allocation6 + $0x16d0] sm:$0xff] }
 0x5a2   :  { %14162 = vmatmul.mubr.bf16.vlgmr.msra.gmra.mxu0 %v18058_v22  ;;  %v18153_v25 = vadd.f32 %v13917_v37, %v18144_v10  ;;  %14171 = vmatpush1.bf16.msra.mxu1 %v16908_v26  ;;  %v17069_v26 = vcombine.high %v8187_v15, %v8195_v44  ;;  %v16797_v37 = vcombine.high %v7915_v55, %v7923_v53  ;;  %v8115_v4 = vld [vmem:[#allocation6 + $0xe50] sm:$0xff] }
 0x5a3   :  { %14202 = vmatprep.mubr.bf16.mxu1 %v18077_v41  ;;  %14212 = vmatpush1.bf16.msra.mxu0 %v17164_v0  ;;  %v13919_v59 = vpop.f32.mrf.mxu0  ;;  %v8171_v0 = vld [vmem:[#allocation6 + $0x1010] sm:$0xff] }
 0x5a4   :  { %14243 = vmatprep.mubr.bf16.mxu0 %v18111_v35  ;;  %v18158_v19 = vadd.f32 %v13919_v59, %v18148_v13  ;;  %14172 = vmatprep.subr.bf16.mxu1 %v16893_v56  ;;  %v7971_v13 = vld [vmem:[#allocation6 + $0x9d0] sm:$0xff] }
 0x5a5   :  { %14213 = vmatprep.subr.bf16.mxu0 %v17149_v34  ;;  %v13921_v10 = vpop.f32.mrf.mxu0  ;;  %v16845_v11 = vcombine.high %v7963_v9, %v7971_v13  ;;  %v16844_v24 = vcombine.low %v7963_v9, %v7971_v13  ;;  %v8179_v56 = vld [vmem:[#allocation6 + $0x1050] sm:$0xff] }
 0x5a6   :  { %14173 = vmatpush1.bf16.msra.mxu1 %v16892_v8  ;;  %v17053_v34 = vcombine.high %v8171_v0, %v8179_v56  ;;  %v8411_v8 = vld [vmem:[#allocation6 + $0x1790] sm:$0xff] }
 0x5a7   :  { %14214 = vmatpush1.bf16.msra.mxu0 %v17148_v16  ;;  %v13922_v7 = vpop.f32.mrf.mxu0  ;;  %14174 = vmatprep.subr.bf16.mxu1 %v16877_v50  ;;  %v8419_v59 = vld [vmem:[#allocation6 + $0x17d0] sm:$0xff]  ;;  %v16796_v16 = vcombine.low %v7915_v55, %v7923_v53  ;;  %v17052_v50 = vcombine.low %v8171_v0, %v8179_v56 }
 0x5a8   :  { %14215 = vmatprep.subr.bf16.mxu0 %v17133_v29  ;;  %v17037_v29 = vcombine.high %v8155_v40, %v8163_v45  ;;  %v17293_v30 = vcombine.high %v8411_v8, %v8419_v59  ;;  %v8147_v10 = vld [vmem:[#allocation6 + $0xf50] sm:$0xff]  ;;  %v17292_v7 = vcombine.low %v8411_v8, %v8419_v59 }
 0x5a9   :  { %v8131_v9 = vld [vmem:[#allocation6 + $0xed0] sm:$0xff]  ;;  %v17020_v43 = vcombine.low %v8139_v48, %v8147_v10 }
 0x5aa   :  { %14175 = vmatpush1.bf16.msra.mxu1 %v16876_v17  ;;  %v17036_v17 = vcombine.low %v8155_v40, %v8163_v45  ;;  %v8379_v13 = vld [vmem:[#allocation6 + $0x1690] sm:$0xff] }
 0x5ab   :  { %14216 = vmatpush1.bf16.msra.mxu0 %v17132_v28  ;;  %14176 = vmatprep.subr.bf16.mxu1 %v16861_v57  ;;  %v17021_v28 = vcombine.high %v8139_v48, %v8147_v10  ;;  %v17277_v57 = vcombine.high %v8395_v60, %v8403_v61  ;;  %v8363_v39 = vld [vmem:[#allocation6 + $0x1610] sm:$0xff] }
 0x5ac   :  { %14217 = vmatprep.subr.bf16.mxu0 %v17117_v14  ;;  %v8123_v14 = vld [vmem:[#allocation6 + $0xe90] sm:$0xff] }
 0x5ad   :  { %v8371_v52 = vld [vmem:[#allocation6 + $0x1650] sm:$0xff]  ;;  %v17004_v51 = vcombine.low %v8123_v14, %v8131_v9 }
 0x5ae   :  { %14177 = vmatpush1.bf16.msra.mxu1 %v16860_v21  ;;  %v17276_v21 = vcombine.low %v8395_v60, %v8403_v61  ;;  %v8099_v32 = vld [vmem:[#allocation6 + $0xdd0] sm:$0xff] }
 0x5af   :  { %14218 = vmatpush1.bf16.msra.mxu0 %v17116_v31  ;;  %14178 = vmatprep.subr.bf16.mxu1 %v16845_v11  ;;  %v17005_v31 = vcombine.high %v8123_v14, %v8131_v9  ;;  %v17261_v11 = vcombine.high %v8379_v13, %v8387_v23  ;;  %v8347_v6 = vld [vmem:[#allocation6 + $0x1590] sm:$0xff]  ;;  %v7772_v9 = vld [vmem:[#allocation6 + $0x398] sm:$0xff] }
 0x5b0   :  { %14219 = vmatprep.subr.bf16.mxu0 %v17101_v49  ;;  %v8107_v49 = vld [vmem:[#allocation6 + $0xe10] sm:$0xff] }
 0x5b1   :  { %v8355_v15 = vld [vmem:[#allocation6 + $0x15d0] sm:$0xff]  ;;  %v16988_v44 = vcombine.low %v8107_v49, %v8115_v4 }
 0x5b2   :  { %14179 = vmatpush1.bf16.msra.mxu1 %v16844_v24  ;;  %v17260_v24 = vcombine.low %v8379_v13, %v8387_v23  ;;  %v8083_v55 = vld [vmem:[#allocation6 + $0xd50] sm:$0xff]  ;;  %v7780_v13 = vld [vmem:[#allocation6 + $0x3d8] sm:$0xff] }
 0x5b3   :  { %14220 = vmatpush1.bf16.msra.mxu0 %v17100_v38  ;;  %14180 = vmatprep.subr.bf16.mxu1 %v16829_v12  ;;  %v16989_v38 = vcombine.high %v8107_v49, %v8115_v4  ;;  %v17245_v12 = vcombine.high %v8363_v39, %v8371_v52  ;;  %v8331_v53 = vld [vmem:[#allocation6 + $0x1510] sm:$0xff] }
 0x5b4   :  { %14221 = vmatprep.subr.bf16.mxu0 %v17085_v58  ;;  %v8091_v58 = vld [vmem:[#allocation6 + $0xd90] sm:$0xff] }
 0x5b5   :  { %v8339_v0 = vld [vmem:[#allocation6 + $0x1550] sm:$0xff]  ;;  %v16972_v56 = vcombine.low %v8091_v58, %v8099_v32 }
 0x5b6   :  { %14181 = vmatpush1.bf16.msra.mxu1 %v16828_v62  ;;  %v17244_v62 = vcombine.low %v8363_v39, %v8371_v52  ;;  %v8067_v40 = vld [vmem:[#allocation6 + $0xcd0] sm:$0xff]  ;;  %v7756_v39 = vld [vmem:[#allocation6 + $0x318] sm:$0xff] }
 0x5b7   :  { %14222 = vmatpush1.bf16.msra.mxu0 %v17084_v63  ;;  %14182 = vmatprep.subr.bf16.mxu1 %v16813_v54  ;;  %v16973_v63 = vcombine.high %v8091_v58, %v8099_v32  ;;  %v17229_v54 = vcombine.high %v8347_v6, %v8355_v15  ;;  %v8315_v45 = vld [vmem:[#allocation6 + $0x1490] sm:$0xff]  ;;  %v7764_v52 = vld [vmem:[#allocation6 + $0x358] sm:$0xff] }
 0x5b8   :  { %14223 = vmatprep.subr.bf16.mxu0 %v17069_v26  ;;  %v8075_v26 = vld [vmem:[#allocation6 + $0xd10] sm:$0xff] }
 0x5b9   :  { %v8323_v8 = vld [vmem:[#allocation6 + $0x14d0] sm:$0xff]  ;;  %v16956_v59 = vcombine.low %v8075_v26, %v8083_v55 }
 0x5ba   :  { %14183 = vmatpush1.bf16.msra.mxu1 %v16812_v3  ;;  %v17228_v3 = vcombine.low %v8347_v6, %v8355_v15  ;;  %v8051_v48 = vld [vmem:[#allocation6 + $0xc50] sm:$0xff]  ;;  %v16639_v6 = vcombine.high %v7756_v39, %v7764_v52  ;;  %v7740_v15 = vld [vmem:[#allocation6 + $0x298] sm:$0xff] }
 0x5bb   :  { %14224 = vmatpush1.bf16.msra.mxu0 %v17068_v47  ;;  %14184 = vmatprep.subr.bf16.mxu1 %v16797_v37  ;;  %v16957_v47 = vcombine.high %v8075_v26, %v8083_v55  ;;  %v17213_v37 = vcombine.high %v8331_v53, %v8339_v0  ;;  %v8299_v10 = vld [vmem:[#allocation6 + $0x1410] sm:$0xff]  ;;  %v16638_v55 = vcombine.low %v7756_v39, %v7764_v52 }
 0x5bc   :  { %14225 = vmatprep.subr.bf16.mxu0 %v17053_v34  ;;  %v8059_v34 = vld [vmem:[#allocation6 + $0xc90] sm:$0xff] }
 0x5bd   :  { %v8307_v60 = vld [vmem:[#allocation6 + $0x1450] sm:$0xff]  ;;  %v16940_v61 = vcombine.low %v8059_v34, %v8067_v40 }
 0x5be   :  { %14185 = vmatpush1.bf16.msra.mxu1 %v16796_v16  ;;  %v17212_v16 = vcombine.low %v8331_v53, %v8339_v0  ;;  %v8547_v14 = vld [vmem:[#allocation6 + $0x1bd0] sm:$0xff] }
 0x5bf   :  { %14226 = vmatpush1.bf16.msra.mxu0 %v17052_v50  ;;  %14186 = vmatprep.subr.bf16.mxu1 %v17037_v29  ;;  %v16941_v50 = vcombine.high %v8059_v34, %v8067_v40  ;;  %v17197_v29 = vcombine.high %v8315_v45, %v8323_v8  ;;  %v8531_v49 = vld [vmem:[#allocation6 + $0x1b50] sm:$0xff]  ;;  %v7724_v34 = vld [vmem:[#allocation6 + $0x218] sm:$0xff] }
 0x5c0   :  { %14227 = vmatprep.subr.bf16.mxu0 %v17293_v30  ;;  %v8043_v30 = vld [vmem:[#allocation6 + $0xc10] sm:$0xff]  ;;  %v7732_v40 = vld [vmem:[#allocation6 + $0x258] sm:$0xff] }
 0x5c1   :  { %v16924_v23 = vcombine.low %v8043_v30, %v8051_v48 }
 0x5c2   :  { %14187 = vmatpush2.bf16.msra.mxu1 %v17036_v17  ;;  %v17196_v17 = vcombine.low %v8315_v45, %v8323_v8 }
 0x5c3   :  { %14228 = vmatpush2.bf16.msra.mxu0 %v17292_v7  ;;  %14188 = vmatprep.subr.bf16.mxu1 %v17021_v28  ;;  %v16925_v7 = vcombine.high %v8043_v30, %v8051_v48  ;;  %v17181_v28 = vcombine.high %v8299_v10, %v8307_v60  ;;  %v8483_v30 = vld [vmem:[#allocation6 + $0x19d0] sm:$0xff]  ;;  %v7708_v48 = vld [vmem:[#allocation6 + $0x198] sm:$0xff] }
 0x5c4   :  { %14229 = vmatprep.subr.bf16.mxu0 %v17277_v57  ;;  %v8539_v57 = vld [vmem:[#allocation6 + $0x1b90] sm:$0xff] }
 0x5c5   :  { %v17420_v4 = vcombine.low %v8539_v57, %v8547_v14 }
 0x5c6   :  { %14189 = vmatpush2.bf16.msra.mxu1 %v17020_v43  ;;  %v17180_v43 = vcombine.low %v8299_v10, %v8307_v60  ;;  %v7716_v10 = vld [vmem:[#allocation6 + $0x1d8] sm:$0xff] }
 0x5c7   :  { %14230 = vmatpush2.bf16.msra.mxu0 %v17276_v21  ;;  %14190 = vmatprep.subr.bf16.mxu1 %v17005_v31  ;;  %v17421_v21 = vcombine.high %v8539_v57, %v8547_v14  ;;  %v16655_v31 = vcombine.high %v7772_v9, %v7780_v13  ;;  %v8467_v57 = vld [vmem:[#allocation6 + $0x1950] sm:$0xff]  ;;  %v7692_v14 = vld [vmem:[#allocation6 + $0x118] sm:$0xff] }
 0x5c8   :  { %14231 = vmatprep.subr.bf16.mxu0 %v17261_v11  ;;  %v8523_v11 = vld [vmem:[#allocation6 + $0x1b10] sm:$0xff] }
 0x5ca   :  { %14191 = vmatpush2.bf16.msra.mxu1 %v17004_v51  ;;  %v16654_v51 = vcombine.low %v7772_v9, %v7780_v13  ;;  %v7700_v9 = vld [vmem:[#allocation6 + $0x158] sm:$0xff] }
 0x5cb   :  { %14232 = vmatpush2.bf16.msra.mxu0 %v17260_v24  ;;  %14192 = vmatprep.subr.bf16.mxu1 %v16989_v38  ;;  %v17405_v24 = vcombine.high %v8523_v11, %v8531_v49  ;;  %v8507_v38 = vld [vmem:[#allocation6 + $0x1a90] sm:$0xff]  ;;  %v16574_v52 = vcombine.low %v7692_v14, %v7700_v9 }
 0x5cc   :  { %14233 = vmatprep.subr.bf16.mxu0 %v17245_v12  ;;  %v8515_v12 = vld [vmem:[#allocation6 + $0x1ad0] sm:$0xff] }
 0x5cd   :  { %v17389_v53 = vcombine.high %v8507_v38, %v8515_v12  ;;  %v17388_v45 = vcombine.low %v8507_v38, %v8515_v12  ;;  %v8427_v38 = vld [vmem:[#allocation6 + $0x1810] sm:$0xff] }
 0x5ce   :  { %14193 = vmatpush2.bf16.msra.mxu1 %v16988_v44  ;;  %v7748_v44 = vld [vmem:[#allocation6 + $0x2d8] sm:$0xff]  ;;  %v8435_v12 = vld [vmem:[#allocation6 + $0x1850] sm:$0xff] }
 0x5cf   :  { %14234 = vmatpush2.bf16.msra.mxu0 %v17244_v62  ;;  %14194 = vmatprep.subr.bf16.mxu1 %v16973_v63  ;;  %v17404_v63 = vcombine.low %v8523_v11, %v8531_v49  ;;  %v8451_v11 = vld [vmem:[#allocation6 + $0x18d0] sm:$0xff]  ;;  %v7676_v49 = vld [vmem:[#allocation6 + $0x98] sm:$0xff] }
 0x5d0   :  { %14235 = vmatprep.subr.bf16.mxu0 %v17229_v54 }
 0x5d2   :  { %14195 = vmatpush2.bf16.msra.mxu1 %v16972_v56  ;;  %v16623_v56 = vcombine.high %v7740_v15, %v7748_v44 }
 0x5d3   :  { %14236 = vmatpush2.bf16.msra.mxu0 %v17228_v3  ;;  %14196 = vmatprep.subr.bf16.mxu1 %v16957_v47  ;;  %v8491_v3 = vld [vmem:[#allocation6 + $0x1a10] sm:$0xff] }
 0x5d4   :  { %14237 = vmatprep.subr.bf16.mxu0 %v17213_v37 }
 0x5d6   :  { %14197 = vmatpush2.bf16.msra.mxu1 %v16956_v59 }
 0x5d7   :  { %14238 = vmatpush2.bf16.msra.mxu0 %v17212_v16  ;;  %14198 = vmatprep.subr.bf16.mxu1 %v16941_v50  ;;  %v16622_v16 = vcombine.low %v7740_v15, %v7748_v44 }
 0x5d8   :  { %14239 = vmatprep.subr.bf16.mxu0 %v17197_v29  ;;  %v8475_v29 = vld [vmem:[#allocation6 + $0x1990] sm:$0xff] }
 0x5d9   :  { %v17356_v13 = vcombine.low %v8475_v29, %v8483_v30 }
 0x5da   :  { %14199 = vmatpush2.bf16.msra.mxu1 %v16940_v61  ;;  %v16606_v61 = vcombine.low %v7724_v34, %v7732_v40 }
 0x5db   :  { %14240 = vmatpush2.bf16.msra.mxu0 %v17196_v17  ;;  %14200 = vmatprep.subr.bf16.mxu1 %v16925_v7  ;;  %v17357_v17 = vcombine.high %v8475_v29, %v8483_v30  ;;  %v16591_v7 = vcombine.high %v7708_v48, %v7716_v10  ;;  %v8635_v30 = vld [vmem:[#allocation6 + $0x1e90] sm:$0xff] }
 0x5dc   :  { %14241 = vmatprep.subr.bf16.mxu0 %v17181_v28  ;;  %v8459_v28 = vld [vmem:[#allocation6 + $0x1910] sm:$0xff] }
 0x5dd   :  { %v17340_v39 = vcombine.low %v8459_v28, %v8467_v57 }
 0x5de   :  { %14201 = vmatpush2.bf16.msra.mxu1 %v16924_v23  ;;  %v16590_v23 = vcombine.low %v7708_v48, %v7716_v10  ;;  %v8643_v48 = vld [vmem:[#allocation6 + $0x1ed0] sm:$0xff]  ;;  %v7868_v10 = vld [vmem:[#allocation6 + $0x698] sm:$0xff] }
 0x5df   :  { %14242 = vmatpush2.bf16.msra.mxu0 %v17180_v43  ;;  %14252 = vmatprep.subr.bf16.mxu1 %v17421_v21  ;;  %v17341_v43 = vcombine.high %v8459_v28, %v8467_v57  ;;  %v16575_v21 = vcombine.high %v7692_v14, %v7700_v9  ;;  %v8619_v57 = vld [vmem:[#allocation6 + $0x1e10] sm:$0xff]  ;;  %v7852_v9 = vld [vmem:[#allocation6 + $0x618] sm:$0xff] }
 0x5e0   :  { %14293 = vmatprep.subr.bf16.mxu0 %v16655_v31  ;;  %v8443_v31 = vld [vmem:[#allocation6 + $0x1890] sm:$0xff] }
 0x5e1   :  { %v18160_v58 = vpop.f32.mrf.mxu0  ;;  %14203 = vmatmul.mubr.bf16.vlgmr.msra.gmra.mxu1 %v18085_v2  ;;  %v13958_v32 = vpop.f32.mrf.mxu1  ;;  %v17324_v15 = vcombine.low %v8443_v31, %v8451_v11  ;;  %v8627_v14 = vld [vmem:[#allocation6 + $0x1e50] sm:$0xff] }
 0x5e2   :  { %14244 = vmatmul.mubr.bf16.vlgmr.msra.gmra.mxu0 %v18115_v20  ;;  %v18165_v62 = vadd.f32 %v13958_v32, %v18153_v25  ;;  %14253 = vmatpush1.bf16.msra.mxu1 %v17420_v4  ;;  %v8499_v25 = vld [vmem:[#allocation6 + $0x1a50] sm:$0xff]  ;;  %v7684_v4 = vld [vmem:[#allocation6 + $0xd8] sm:$0xff] }
 0x5e3   :  { %14284 = vmatprep.mubr.bf16.mxu1 %v18130_v18  ;;  %14294 = vmatpush1.bf16.msra.mxu0 %v16654_v51  ;;  %v18168_v54 = vpop.f32.mrf.mxu0  ;;  %v13960_v26 = vpop.f32.mrf.mxu1  ;;  %v17373_v50 = vcombine.high %v8491_v3, %v8499_v25  ;;  %v17372_v60 = vcombine.low %v8491_v3, %v8499_v25  ;;  %v17325_v51 = vcombine.high %v8443_v31, %v8451_v11  ;;  %v7660_v32 = vld [vmem:[#allocation6 + $0x18] sm:$0xff]  ;;  %v8603_v11 = vld [vmem:[#allocation6 + $0x1d90] sm:$0xff] }
 0x5e4   :  { %14325 = vmatprep.mubr.bf16.mxu0 %v18044_v1  ;;  %v18172_v0 = vadd.f32 %v13960_v26, %v18158_v19  ;;  %14254 = vmatprep.subr.bf16.mxu1 %v17405_v24  ;;  %v16607_v19 = vcombine.high %v7724_v34, %v7732_v40  ;;  %v16559_v24 = vcombine.high %v7676_v49, %v7684_v4  ;;  %v7908_v3 = vld [vmem:[#allocation6 + $0x7d8] sm:$0xff]  ;;  %v8651_v40 = vld [vmem:[#allocation6 + $0x1f10] sm:$0xff] }
 0x5e5   :  { %v14003_v47 = vpop.f32.mrf.mxu0  ;;  %14295 = vmatprep.subr.bf16.mxu0 %v16639_v6  ;;  %v13962_v37 = vpop.f32.mrf.mxu1  ;;  %v7668_v6 = vld [vmem:[#allocation6 + $0x58] sm:$0xff]  ;;  %v16558_v44 = vcombine.low %v7676_v49, %v7684_v4  ;;  %v17308_v25 = vcombine.low %v8427_v38, %v8435_v12  ;;  %v8611_v49 = vld [vmem:[#allocation6 + $0x1dd0] sm:$0xff] }
 0x5e6   :  { %14255 = vmatpush1.bf16.msra.mxu1 %v17404_v63  ;;  %v17309_v63 = vcombine.high %v8427_v38, %v8435_v12  ;;  %v16543_v26 = vcombine.high %v7660_v32, %v7668_v6  ;;  %v16542_v47 = vcombine.low %v7660_v32, %v7668_v6  ;;  %v7836_v4 = vld [vmem:[#allocation6 + $0x598] sm:$0xff]  ;;  %v8587_v12 = vld [vmem:[#allocation6 + $0x1d10] sm:$0xff] }
 0x5e7   :  { %14296 = vmatpush1.bf16.msra.mxu0 %v16638_v55  ;;  %v14004_v8 = vpop.f32.mrf.mxu0  ;;  %v13963_v59 = vpop.f32.mrf.mxu1  ;;  %14256 = vmatprep.subr.bf16.mxu1 %v17389_v53  ;;  %v8667_v55 = vld [vmem:[#allocation6 + $0x1f90] sm:$0xff]  ;;  %v7820_v6 = vld [vmem:[#allocation6 + $0x518] sm:$0xff] }
 0x5e8   :  { %14297 = vmatprep.subr.bf16.mxu0 %v16623_v56  ;;  %v8675_v53 = vld [vmem:[#allocation6 + $0x1fd0] sm:$0xff]  ;;  %v7900_v56 = vld [vmem:[#allocation6 + $0x798] sm:$0xff] }
 0x5e9   :  { %v17549_v37 = vcombine.high %v8667_v55, %v8675_v53  ;;  %v16783_v34 = vcombine.high %v7900_v56, %v7908_v3  ;;  %v7884_v8 = vld [vmem:[#allocation6 + $0x718] sm:$0xff]  ;;  %v8595_v32 = vld [vmem:[#allocation6 + $0x1d50] sm:$0xff] }
 0x5ea   :  { %14257 = vmatpush1.bf16.msra.mxu1 %v17388_v45  ;;  %v8659_v45 = vld [vmem:[#allocation6 + $0x1f50] sm:$0xff]  ;;  %v7892_v59 = vld [vmem:[#allocation6 + $0x758] sm:$0xff] }
 0x5eb   :  { %14298 = vmatpush1.bf16.msra.mxu0 %v16622_v16  ;;  %14258 = vmatprep.subr.bf16.mxu1 %v17373_v50  ;;  %v17548_v16 = vcombine.low %v8667_v55, %v8675_v53  ;;  %v16782_v50 = vcombine.low %v7900_v56, %v7908_v3  ;;  %v16767_v29 = vcombine.high %v7884_v8, %v7892_v59  ;;  %v8571_v53 = vld [vmem:[#allocation6 + $0x1c90] sm:$0xff]  ;;  %v7804_v3 = vld [vmem:[#allocation6 + $0x498] sm:$0xff] }
 0x5ec   :  { %14299 = vmatprep.subr.bf16.mxu0 %v16607_v19  ;;  %v17533_v19 = vcombine.high %v8651_v40, %v8659_v45  ;;  %v8579_v56 = vld [vmem:[#allocation6 + $0x1cd0] sm:$0xff] }
 0x5ee   :  { %14259 = vmatpush1.bf16.msra.mxu1 %v17372_v60  ;;  %v7876_v60 = vld [vmem:[#allocation6 + $0x6d8] sm:$0xff] }
 0x5ef   :  { %14300 = vmatpush1.bf16.msra.mxu0 %v16606_v61  ;;  %14260 = vmatprep.subr.bf16.mxu1 %v17357_v17  ;;  %v17532_v61 = vcombine.low %v8651_v40, %v8659_v45  ;;  %v16766_v17 = vcombine.low %v7884_v8, %v7892_v59  ;;  %v16751_v28 = vcombine.high %v7868_v10, %v7876_v60  ;;  %v8555_v45 = vld [vmem:[#allocation6 + $0x1c10] sm:$0xff]  ;;  %v7788_v59 = vld [vmem:[#allocation6 + $0x418] sm:$0xff] }
 0x5f0   :  { %14301 = vmatprep.subr.bf16.mxu0 %v16591_v7  ;;  %v17517_v7 = vcombine.high %v8635_v30, %v8643_v48  ;;  %v8563_v8 = vld [vmem:[#allocation6 + $0x1c50] sm:$0xff] }
 0x5f2   :  { %14261 = vmatpush1.bf16.msra.mxu1 %v17356_v13  ;;  %v7860_v13 = vld [vmem:[#allocation6 + $0x658] sm:$0xff] }
 0x5f3   :  { %14302 = vmatpush1.bf16.msra.mxu0 %v16590_v23  ;;  %14262 = vmatprep.subr.bf16.mxu1 %v17341_v43  ;;  %v17516_v23 = vcombine.low %v8635_v30, %v8643_v48  ;;  %v16750_v43 = vcombine.low %v7868_v10, %v7876_v60  ;;  %v16735_v31 = vcombine.high %v7852_v9, %v7860_v13  ;;  %v8028_v48 = vld [vmem:[#allocation6 + $0xb98] sm:$0xff] }
 0x5f4   :  { %14303 = vmatprep.subr.bf16.mxu0 %v16575_v21  ;;  %v17501_v21 = vcombine.high %v8619_v57, %v8627_v14  ;;  %v8036_v10 = vld [vmem:[#allocation6 + $0xbd8] sm:$0xff] }
 0x5f5   :  { %v8284_v60 = vld [vmem:[#allocation6 + $0x1398] sm:$0xff] }
 0x5f6   :  { %14263 = vmatpush1.bf16.msra.mxu1 %v17340_v39  ;;  %v7844_v39 = vld [vmem:[#allocation6 + $0x5d8] sm:$0xff] }
 0x5f7   :  { %14304 = vmatpush1.bf16.msra.mxu0 %v16574_v52  ;;  %14264 = vmatprep.subr.bf16.mxu1 %v17325_v51  ;;  %v17500_v52 = vcombine.low %v8619_v57, %v8627_v14  ;;  %v16734_v51 = vcombine.low %v7852_v9, %v7860_v13  ;;  %v16719_v38 = vcombine.high %v7836_v4, %v7844_v39  ;;  %v8012_v14 = vld [vmem:[#allocation6 + $0xb18] sm:$0xff] }
 0x5f8   :  { %14305 = vmatprep.subr.bf16.mxu0 %v16559_v24  ;;  %v17485_v24 = vcombine.high %v8603_v11, %v8611_v49  ;;  %v8020_v9 = vld [vmem:[#allocation6 + $0xb58] sm:$0xff]  ;;  %v16910_v13 = vcombine.low %v8028_v48, %v8036_v10 }
 0x5fa   :  { %14265 = vmatpush1.bf16.msra.mxu1 %v17324_v15  ;;  %v7828_v15 = vld [vmem:[#allocation6 + $0x558] sm:$0xff] }
 0x5fb   :  { %14306 = vmatpush1.bf16.msra.mxu0 %v16558_v44  ;;  %14266 = vmatprep.subr.bf16.mxu1 %v17309_v63  ;;  %v17484_v44 = vcombine.low %v8603_v11, %v8611_v49  ;;  %v16718_v63 = vcombine.low %v7836_v4, %v7844_v39  ;;  %v16703_v55 = vcombine.high %v7820_v6, %v7828_v15  ;;  %v7996_v11 = vld [vmem:[#allocation6 + $0xa98] sm:$0xff] }
 0x5fc   :  { %14307 = vmatprep.subr.bf16.mxu0 %v16543_v26  ;;  %v17469_v26 = vcombine.high %v8587_v12, %v8595_v32  ;;  %v8004_v49 = vld [vmem:[#allocation6 + $0xad8] sm:$0xff] }
 0x5fe   :  { %14267 = vmatpush1.bf16.msra.mxu1 %v17308_v25  ;;  %v7812_v25 = vld [vmem:[#allocation6 + $0x4d8] sm:$0xff] }
 0x5ff   :  { %14308 = vmatpush1.bf16.msra.mxu0 %v16542_v47  ;;  %14268 = vmatprep.subr.bf16.mxu1 %v17549_v37  ;;  %v17468_v47 = vcombine.low %v8587_v12, %v8595_v32  ;;  %v16702_v37 = vcombine.low %v7820_v6, %v7828_v15  ;;  %v16687_v40 = vcombine.high %v7804_v3, %v7812_v25 }
 0x600   :  { %14309 = vmatprep.subr.bf16.mxu0 %v16783_v34  ;;  %v17453_v34 = vcombine.high %v8571_v53, %v8579_v56  ;;  %v16894_v12 = vcombine.low %v8012_v14, %v8020_v9 }
 0x602   :  { %14269 = vmatpush2.bf16.msra.mxu1 %v17548_v16  ;;  %v7796_v16 = vld [vmem:[#allocation6 + $0x458] sm:$0xff] }
 0x603   :  { %14310 = vmatpush2.bf16.msra.mxu0 %v16782_v50  ;;  %14270 = vmatprep.subr.bf16.mxu1 %v17533_v19  ;;  %v17452_v50 = vcombine.low %v8571_v53, %v8579_v56  ;;  %v16686_v19 = vcombine.low %v7804_v3, %v7812_v25  ;;  %v16671_v30 = vcombine.high %v7788_v59, %v7796_v16  ;;  %v7988_v53 = vld [vmem:[#allocation6 + $0xa58] sm:$0xff] }
 0x604   :  { %14311 = vmatprep.subr.bf16.mxu0 %v16767_v29  ;;  %v17437_v29 = vcombine.high %v8555_v45, %v8563_v8  ;;  %v8236_v25 = vld [vmem:[#allocation6 + $0x1218] sm:$0xff] }
 0x606   :  { %14271 = vmatpush2.bf16.msra.mxu1 %v17532_v61  ;;  %v8292_v61 = vld [vmem:[#allocation6 + $0x13d8] sm:$0xff] }
 0x607   :  { %14312 = vmatpush2.bf16.msra.mxu0 %v16766_v17  ;;  %14272 = vmatprep.subr.bf16.mxu1 %v17517_v7  ;;  %v17436_v17 = vcombine.low %v8555_v45, %v8563_v8  ;;  %v16670_v7 = vcombine.low %v7788_v59, %v7796_v16  ;;  %v17167_v57 = vcombine.high %v8284_v60, %v8292_v61  ;;  %v7964_v16 = vld [vmem:[#allocation6 + $0x998] sm:$0xff] }
 0x608   :  { %14313 = vmatprep.subr.bf16.mxu0 %v16751_v28  ;;  %v16911_v28 = vcombine.high %v8028_v48, %v8036_v10 }
 0x60a   :  { %14273 = vmatpush2.bf16.msra.mxu1 %v17516_v23  ;;  %v8268_v23 = vld [vmem:[#allocation6 + $0x1318] sm:$0xff] }
 0x60b   :  { %14314 = vmatpush2.bf16.msra.mxu0 %v16750_v43  ;;  %14274 = vmatprep.subr.bf16.mxu1 %v17501_v21  ;;  %v8276_v43 = vld [vmem:[#allocation6 + $0x1358] sm:$0xff]  ;;  %v17166_v21 = vcombine.low %v8284_v60, %v8292_v61 }
 0x60c   :  { %14315 = vmatprep.subr.bf16.mxu0 %v16735_v31  ;;  %v16895_v31 = vcombine.high %v8012_v14, %v8020_v9  ;;  %v17150_v15 = vcombine.low %v8268_v23, %v8276_v43  ;;  %v7948_v61 = vld [vmem:[#allocation6 + $0x918] sm:$0xff] }
 0x60e   :  { %14275 = vmatpush2.bf16.msra.mxu1 %v17500_v52  ;;  %v17151_v52 = vcombine.high %v8268_v23, %v8276_v43  ;;  %v7932_v23 = vld [vmem:[#allocation6 + $0x898] sm:$0xff] }
 0x60f   :  { %14316 = vmatpush2.bf16.msra.mxu0 %v16734_v51  ;;  %14276 = vmatprep.subr.bf16.mxu1 %v17485_v24  ;;  %v8252_v51 = vld [vmem:[#allocation6 + $0x1298] sm:$0xff] }
 0x610   :  { %14317 = vmatprep.subr.bf16.mxu0 %v16719_v38  ;;  %v8260_v24 = vld [vmem:[#allocation6 + $0x12d8] sm:$0xff] }
 0x611   :  { %v17134_v8 = vcombine.low %v8252_v51, %v8260_v24  ;;  %v7940_v43 = vld [vmem:[#allocation6 + $0x8d8] sm:$0xff] }
 0x612   :  { %14277 = vmatpush2.bf16.msra.mxu1 %v17484_v44  ;;  %v16879_v44 = vcombine.high %v7996_v11, %v8004_v49 }
 0x613   :  { %14318 = vmatpush2.bf16.msra.mxu0 %v16718_v63  ;;  %14278 = vmatprep.subr.bf16.mxu1 %v17469_v26 }
 0x614   :  { %14319 = vmatprep.subr.bf16.mxu0 %v16703_v55  ;;  %v17135_v55 = vcombine.high %v8252_v51, %v8260_v24  ;;  %v7924_v51 = vld [vmem:[#allocation6 + $0x858] sm:$0xff] }
 0x615   :  { %v8172_v24 = vld [vmem:[#allocation6 + $0x1018] sm:$0xff] }
 0x616   :  { %14279 = vmatpush2.bf16.msra.mxu1 %v17468_v47  ;;  %v8244_v47 = vld [vmem:[#allocation6 + $0x1258] sm:$0xff] }
 0x617   :  { %14320 = vmatpush2.bf16.msra.mxu0 %v16702_v37  ;;  %14280 = vmatprep.subr.bf16.mxu1 %v17453_v34  ;;  %v16878_v34 = vcombine.low %v7996_v11, %v8004_v49  ;;  %v17118_v48 = vcombine.low %v8236_v25, %v8244_v47 }
 0x618   :  { %14321 = vmatprep.subr.bf16.mxu0 %v16687_v40 }
 0x61a   :  { %14281 = vmatpush2.bf16.msra.mxu1 %v17452_v50  ;;  %v7972_v50 = vld [vmem:[#allocation6 + $0x9d8] sm:$0xff] }
 0x61b   :  { %14322 = vmatpush2.bf16.msra.mxu0 %v16686_v19  ;;  %14282 = vmatprep.subr.bf16.mxu1 %v17437_v29  ;;  %v8220_v19 = vld [vmem:[#allocation6 + $0x1198] sm:$0xff]  ;;  %v16847_v10 = vcombine.high %v7964_v16, %v7972_v50 }
 0x61c   :  { %14323 = vmatprep.subr.bf16.mxu0 %v16671_v30  ;;  %v8228_v29 = vld [vmem:[#allocation6 + $0x11d8] sm:$0xff] }
 0x61d   :  { %v17103_v60 = vcombine.high %v8220_v19, %v8228_v29  ;;  %v17102_v14 = vcombine.low %v8220_v19, %v8228_v29  ;;  %v8132_v19 = vld [vmem:[#allocation6 + $0xed8] sm:$0xff] }
 0x61e   :  { %14283 = vmatpush2.bf16.msra.mxu1 %v17436_v17  ;;  %v7956_v17 = vld [vmem:[#allocation6 + $0x958] sm:$0xff] }
 0x61f   :  { %14324 = vmatpush2.bf16.msra.mxu0 %v16670_v7  ;;  %14334 = vmatprep.subr.bf16.mxu1 %v16911_v28  ;;  %v8204_v7 = vld [vmem:[#allocation6 + $0x1118] sm:$0xff]  ;;  %v16831_v9 = vcombine.high %v7948_v61, %v7956_v17  ;;  %v16830_v11 = vcombine.low %v7948_v61, %v7956_v17 }
 0x620   :  { %14375 = vmatprep.subr.bf16.mxu0 %v17167_v57  ;;  %v8212_v28 = vld [vmem:[#allocation6 + $0x1158] sm:$0xff]  ;;  %v16846_v57 = vcombine.low %v7964_v16, %v7972_v50 }
 0x621   :  { %v14040_v4 = vpop.f32.mrf.mxu1  ;;  %v14081_v39 = vpop.f32.mrf.mxu0  ;;  %14285 = vmatmul.mubr.bf16.vlgmr.msra.gmra.mxu1 %v18132_v5  ;;  %v17086_v49 = vcombine.low %v8204_v7, %v8212_v28  ;;  %v8124_v50 = vld [vmem:[#allocation6 + $0xe98] sm:$0xff] }
 0x622   :  { %v14041_v38 = vadd.f32 %v14040_v4, %v18160_v58  ;;  %14326 = vmatmul.mubr.bf16.vlgmr.msra.gmra.mxu0 %v18058_v22  ;;  %14335 = vmatpush1.bf16.msra.mxu1 %v16910_v13  ;;  %v7980_v58 = vld [vmem:[#allocation6 + $0xa18] sm:$0xff]  ;;  %v17087_v13 = vcombine.high %v8204_v7, %v8212_v28  ;;  %v16815_v4 = vcombine.high %v7932_v23, %v7940_v43 }
 0x623   :  { %14366 = vmatprep.mubr.bf16.mxu1 %v18077_v41  ;;  %14376 = vmatpush1.bf16.msra.mxu0 %v17166_v21  ;;  %v14042_v32 = vpop.f32.mrf.mxu1  ;;  %v14083_v6 = vpop.f32.mrf.mxu0  ;;  %v16863_v59 = vcombine.high %v7980_v58, %v7988_v53  ;;  %v16862_v30 = vcombine.low %v7980_v58, %v7988_v53  ;;  %v8188_v21 = vld [vmem:[#allocation6 + $0x1098] sm:$0xff] }
 0x624   :  { %v18178_v63 = vadd.f32 %v14081_v39, %v14041_v38  ;;  %14407 = vmatprep.mubr.bf16.mxu0 %v18111_v35  ;;  %v14043_v26 = vadd.f32 %v14042_v32, %v18168_v54  ;;  %14336 = vmatprep.subr.bf16.mxu1 %v16895_v31  ;;  %v17119_v54 = vcombine.high %v8236_v25, %v8244_v47  ;;  %v8196_v31 = vld [vmem:[#allocation6 + $0x10d8] sm:$0xff] }
 0x625   :  { %v14044_v56 = vpop.f32.mrf.mxu1  ;;  %v14085_v3 = vpop.f32.mrf.mxu0  ;;  %14377 = vmatprep.subr.bf16.mxu0 %v17151_v52  ;;  %v17071_v39 = vcombine.high %v8188_v21, %v8196_v31  ;;  %v7916_v52 = vld [vmem:[#allocation6 + $0x818] sm:$0xff]  ;;  %v17070_v32 = vcombine.low %v8188_v21, %v8196_v31 }
 0x626   :  { %v18182_v37 = vadd.f32 %v14083_v6, %v14043_v26  ;;  %14337 = vmatpush1.bf16.msra.mxu1 %v16894_v12  ;;  %v8180_v38 = vld [vmem:[#allocation6 + $0x1058] sm:$0xff]  ;;  %v16814_v12 = vcombine.low %v7932_v23, %v7940_v43  ;;  %v16799_v6 = vcombine.high %v7916_v52, %v7924_v51  ;;  %v16798_v53 = vcombine.low %v7916_v52, %v7924_v51 }
 0x627   :  { %14378 = vmatpush1.bf16.msra.mxu0 %v17150_v15  ;;  %v14045_v40 = vpop.f32.mrf.mxu1  ;;  %v14086_v45 = vpop.f32.mrf.mxu0  ;;  %14338 = vmatprep.subr.bf16.mxu1 %v16879_v44  ;;  %v17055_v15 = vcombine.high %v8172_v24, %v8180_v38  ;;  %v8156_v44 = vld [vmem:[#allocation6 + $0xf98] sm:$0xff]  ;;  %v17054_v56 = vcombine.low %v8172_v24, %v8180_v38 }
 0x628   :  { %14379 = vmatprep.subr.bf16.mxu0 %v17135_v55  ;;  %v8164_v26 = vld [vmem:[#allocation6 + $0xfd8] sm:$0xff] }
 0x629   :  { %v8412_v55 = vld [vmem:[#allocation6 + $0x1798] sm:$0xff]  ;;  %v17039_v3 = vcombine.high %v8156_v44, %v8164_v26 }
 0x62a   :  { %14339 = vmatpush1.bf16.msra.mxu1 %v16878_v34  ;;  %v8420_v58 = vld [vmem:[#allocation6 + $0x17d8] sm:$0xff] }
 0x62b   :  { %14380 = vmatpush1.bf16.msra.mxu0 %v17134_v8  ;;  %14340 = vmatprep.subr.bf16.mxu1 %v16863_v59  ;;  %v17295_v25 = vcombine.high %v8412_v55, %v8420_v58  ;;  %v8140_v47 = vld [vmem:[#allocation6 + $0xf18] sm:$0xff]  ;;  %v17038_v8 = vcombine.low %v8156_v44, %v8164_v26  ;;  %v17294_v59 = vcombine.low %v8412_v55, %v8420_v58 }
 0x62c   :  { %14381 = vmatprep.subr.bf16.mxu0 %v17119_v54  ;;  %v8148_v34 = vld [vmem:[#allocation6 + $0xf58] sm:$0xff] }
 0x62d   :  { %v8396_v40 = vld [vmem:[#allocation6 + $0x1718] sm:$0xff]  ;;  %v17023_v54 = vcombine.high %v8140_v47, %v8148_v34 }
 0x62e   :  { %14341 = vmatpush1.bf16.msra.mxu1 %v16862_v30  ;;  %v8404_v45 = vld [vmem:[#allocation6 + $0x1758] sm:$0xff] }
 0x62f   :  { %14382 = vmatpush1.bf16.msra.mxu0 %v17118_v48  ;;  %14342 = vmatprep.subr.bf16.mxu1 %v16847_v10  ;;  %v17279_v16 = vcombine.high %v8396_v40, %v8404_v45  ;;  %v8380_v29 = vld [vmem:[#allocation6 + $0x1698] sm:$0xff]  ;;  %v17022_v48 = vcombine.low %v8140_v47, %v8148_v34  ;;  %v17278_v10 = vcombine.low %v8396_v40, %v8404_v45 }
 0x630   :  { %14383 = vmatprep.subr.bf16.mxu0 %v17103_v60  ;;  %v8388_v30 = vld [vmem:[#allocation6 + $0x16d8] sm:$0xff]  ;;  %v17007_v60 = vcombine.high %v8124_v50, %v8132_v19 }
 0x631   :  { %v17263_v61 = vcombine.high %v8380_v29, %v8388_v30  ;;  %v8108_v17 = vld [vmem:[#allocation6 + $0xe18] sm:$0xff] }
 0x632   :  { %14343 = vmatpush1.bf16.msra.mxu1 %v16846_v57  ;;  %v8116_v7 = vld [vmem:[#allocation6 + $0xe58] sm:$0xff] }
 0x633   :  { %14384 = vmatpush1.bf16.msra.mxu0 %v17102_v14  ;;  %14344 = vmatprep.subr.bf16.mxu1 %v16831_v9  ;;  %v8364_v28 = vld [vmem:[#allocation6 + $0x1618] sm:$0xff]  ;;  %v17006_v14 = vcombine.low %v8124_v50, %v8132_v19  ;;  %v17262_v9 = vcombine.low %v8380_v29, %v8388_v30  ;;  %v7773_v30 = vld [vmem:[#allocation6 + $0x3a0] sm:$0xff] }
 0x634   :  { %14385 = vmatprep.subr.bf16.mxu0 %v17087_v13  ;;  %v8372_v57 = vld [vmem:[#allocation6 + $0x1658] sm:$0xff]  ;;  %v16991_v13 = vcombine.high %v8108_v17, %v8116_v7 }
 0x635   :  { %v17247_v23 = vcombine.high %v8364_v28, %v8372_v57  ;;  %v8092_v43 = vld [vmem:[#allocation6 + $0xd98] sm:$0xff] }
 0x636   :  { %14345 = vmatpush1.bf16.msra.mxu1 %v16830_v11  ;;  %v8100_v21 = vld [vmem:[#allocation6 + $0xdd8] sm:$0xff] }
 0x637   :  { %14386 = vmatpush1.bf16.msra.mxu0 %v17086_v49  ;;  %14346 = vmatprep.subr.bf16.mxu1 %v16815_v4  ;;  %v8348_v31 = vld [vmem:[#allocation6 + $0x1598] sm:$0xff]  ;;  %v16990_v49 = vcombine.low %v8108_v17, %v8116_v7  ;;  %v17246_v4 = vcombine.low %v8364_v28, %v8372_v57 }
 0x638   :  { %14387 = vmatprep.subr.bf16.mxu0 %v17071_v39  ;;  %v8356_v11 = vld [vmem:[#allocation6 + $0x15d8] sm:$0xff]  ;;  %v16975_v39 = vcombine.high %v8092_v43, %v8100_v21 }
 0x639   :  { %v17231_v52 = vcombine.high %v8348_v31, %v8356_v11  ;;  %v8076_v51 = vld [vmem:[#allocation6 + $0xd18] sm:$0xff] }
 0x63a   :  { %14347 = vmatpush1.bf16.msra.mxu1 %v16814_v12  ;;  %v8084_v24 = vld [vmem:[#allocation6 + $0xd58] sm:$0xff] }
 0x63b   :  { %14388 = vmatpush1.bf16.msra.mxu0 %v17070_v32  ;;  %14348 = vmatprep.subr.bf16.mxu1 %v16799_v6  ;;  %v8332_v38 = vld [vmem:[#allocation6 + $0x1518] sm:$0xff]  ;;  %v16974_v32 = vcombine.low %v8092_v43, %v8100_v21  ;;  %v17230_v6 = vcombine.low %v8348_v31, %v8356_v11 }
 0x63c   :  { %14389 = vmatprep.subr.bf16.mxu0 %v17055_v15  ;;  %v8340_v12 = vld [vmem:[#allocation6 + $0x1558] sm:$0xff]  ;;  %v16959_v15 = vcombine.high %v8076_v51, %v8084_v24 }
 0x63d   :  { %v17215_v44 = vcombine.high %v8332_v38, %v8340_v12  ;;  %v8060_v26 = vld [vmem:[#allocation6 + $0xc98] sm:$0xff] }
 0x63e   :  { %14349 = vmatpush1.bf16.msra.mxu1 %v16798_v53  ;;  %v8068_v55 = vld [vmem:[#allocation6 + $0xcd8] sm:$0xff] }
 0x63f   :  { %14390 = vmatpush1.bf16.msra.mxu0 %v17054_v56  ;;  %14350 = vmatprep.subr.bf16.mxu1 %v17039_v3  ;;  %v8316_v58 = vld [vmem:[#allocation6 + $0x1498] sm:$0xff]  ;;  %v16958_v56 = vcombine.low %v8076_v51, %v8084_v24  ;;  %v17214_v3 = vcombine.low %v8332_v38, %v8340_v12 }
 0x640   :  { %14391 = vmatprep.subr.bf16.mxu0 %v17295_v25  ;;  %v8324_v53 = vld [vmem:[#allocation6 + $0x14d8] sm:$0xff]  ;;  %v16943_v25 = vcombine.high %v8060_v26, %v8068_v55 }
 0x641   :  { %v17199_v47 = vcombine.high %v8316_v58, %v8324_v53  ;;  %v8044_v34 = vld [vmem:[#allocation6 + $0xc18] sm:$0xff] }
 0x642   :  { %14351 = vmatpush2.bf16.msra.mxu1 %v17038_v8  ;;  %v8052_v40 = vld [vmem:[#allocation6 + $0xc58] sm:$0xff] }
 0x643   :  { %14392 = vmatpush2.bf16.msra.mxu0 %v17294_v59  ;;  %14352 = vmatprep.subr.bf16.mxu1 %v17023_v54  ;;  %v8300_v45 = vld [vmem:[#allocation6 + $0x1418] sm:$0xff]  ;;  %v16942_v59 = vcombine.low %v8060_v26, %v8068_v55  ;;  %v17198_v54 = vcombine.low %v8316_v58, %v8324_v53  ;;  %v7725_v55 = vld [vmem:[#allocation6 + $0x220] sm:$0xff] }
 0x644   :  { %14393 = vmatprep.subr.bf16.mxu0 %v17279_v16  ;;  %v8308_v8 = vld [vmem:[#allocation6 + $0x1458] sm:$0xff]  ;;  %v16927_v16 = vcombine.high %v8044_v34, %v8052_v40  ;;  %v7733_v58 = vld [vmem:[#allocation6 + $0x260] sm:$0xff] }
 0x645   :  { %v17183_v50 = vcombine.high %v8300_v45, %v8308_v8  ;;  %v8540_v19 = vld [vmem:[#allocation6 + $0x1b98] sm:$0xff] }
 0x646   :  { %14353 = vmatpush2.bf16.msra.mxu1 %v17022_v48  ;;  %v8548_v29 = vld [vmem:[#allocation6 + $0x1bd8] sm:$0xff]  ;;  %v7781_v48 = vld [vmem:[#allocation6 + $0x3e0] sm:$0xff] }
 0x647   :  { %14394 = vmatpush2.bf16.msra.mxu0 %v17278_v10  ;;  %14354 = vmatprep.subr.bf16.mxu1 %v17007_v60  ;;  %v16926_v10 = vcombine.low %v8044_v34, %v8052_v40  ;;  %v17182_v60 = vcombine.low %v8300_v45, %v8308_v8  ;;  %v16657_v17 = vcombine.high %v7773_v30, %v7781_v48  ;;  %v8524_v7 = vld [vmem:[#allocation6 + $0x1b18] sm:$0xff]  ;;  %v7709_v8 = vld [vmem:[#allocation6 + $0x1a0] sm:$0xff] }
 0x648   :  { %14395 = vmatprep.subr.bf16.mxu0 %v17263_v61  ;;  %v17423_v61 = vcombine.high %v8540_v19, %v8548_v29  ;;  %v8532_v28 = vld [vmem:[#allocation6 + $0x1b58] sm:$0xff]  ;;  %v17422_v57 = vcombine.low %v8540_v19, %v8548_v29  ;;  %v16609_v34 = vcombine.high %v7725_v55, %v7733_v58 }
 0x649   :  { %v8508_v43 = vld [vmem:[#allocation6 + $0x1a98] sm:$0xff]  ;;  %v17406_v51 = vcombine.low %v8524_v7, %v8532_v28 }
 0x64a   :  { %14355 = vmatpush2.bf16.msra.mxu1 %v17006_v14  ;;  %v7757_v14 = vld [vmem:[#allocation6 + $0x320] sm:$0xff]  ;;  %v8516_v21 = vld [vmem:[#allocation6 + $0x1ad8] sm:$0xff] }
 0x64b   :  { %14396 = vmatpush2.bf16.msra.mxu0 %v17262_v9  ;;  %14356 = vmatprep.subr.bf16.mxu1 %v16991_v13  ;;  %v7765_v9 = vld [vmem:[#allocation6 + $0x360] sm:$0xff]  ;;  %v16656_v13 = vcombine.low %v7773_v30, %v7781_v48  ;;  %v17391_v12 = vcombine.high %v8508_v43, %v8516_v21  ;;  %v8476_v40 = vld [vmem:[#allocation6 + $0x1998] sm:$0xff] }
 0x64c   :  { %14397 = vmatprep.subr.bf16.mxu0 %v17247_v23  ;;  %v17407_v23 = vcombine.high %v8524_v7, %v8532_v28  ;;  %v16641_v11 = vcombine.high %v7757_v14, %v7765_v9  ;;  %v16640_v38 = vcombine.low %v7757_v14, %v7765_v9  ;;  %v8484_v45 = vld [vmem:[#allocation6 + $0x19d8] sm:$0xff]  ;;  %v7693_v48 = vld [vmem:[#allocation6 + $0x120] sm:$0xff] }
 0x64d   :  { %v8460_v29 = vld [vmem:[#allocation6 + $0x1918] sm:$0xff]  ;;  %v7677_v14 = vld [vmem:[#allocation6 + $0xa0] sm:$0xff] }
 0x64e   :  { %14357 = vmatpush2.bf16.msra.mxu1 %v16990_v49  ;;  %v7741_v49 = vld [vmem:[#allocation6 + $0x2a0] sm:$0xff]  ;;  %v8468_v30 = vld [vmem:[#allocation6 + $0x1958] sm:$0xff] }
 0x64f   :  { %14398 = vmatpush2.bf16.msra.mxu0 %v17246_v4  ;;  %14358 = vmatprep.subr.bf16.mxu1 %v16975_v39  ;;  %v7749_v4 = vld [vmem:[#allocation6 + $0x2e0] sm:$0xff]  ;;  %v8444_v28 = vld [vmem:[#allocation6 + $0x1898] sm:$0xff] }
 0x650   :  { %14399 = vmatprep.subr.bf16.mxu0 %v17231_v52  ;;  %v7685_v9 = vld [vmem:[#allocation6 + $0xe0] sm:$0xff] }
 0x652   :  { %14359 = vmatpush2.bf16.msra.mxu1 %v16974_v32 }
 0x653   :  { %14400 = vmatpush2.bf16.msra.mxu0 %v17230_v6  ;;  %14360 = vmatprep.subr.bf16.mxu1 %v16959_v15  ;;  %v8492_v15 = vld [vmem:[#allocation6 + $0x1a18] sm:$0xff] }
 0x654   :  { %14401 = vmatprep.subr.bf16.mxu0 %v17215_v44  ;;  %v8500_v44 = vld [vmem:[#allocation6 + $0x1a58] sm:$0xff] }
 0x656   :  { %14361 = vmatpush2.bf16.msra.mxu1 %v16958_v56  ;;  %v17390_v56 = vcombine.low %v8508_v43, %v8516_v21  ;;  %v16561_v21 = vcombine.high %v7677_v14, %v7685_v9 }
 0x657   :  { %14402 = vmatpush2.bf16.msra.mxu0 %v17214_v3  ;;  %14362 = vmatprep.subr.bf16.mxu1 %v16943_v25  ;;  %v16624_v25 = vcombine.low %v7741_v49, %v7749_v4 }
 0x658   :  { %14403 = vmatprep.subr.bf16.mxu0 %v17199_v47  ;;  %v17375_v47 = vcombine.high %v8492_v15, %v8500_v44 }
 0x65a   :  { %14363 = vmatpush2.bf16.msra.mxu1 %v16942_v59  ;;  %v7717_v59 = vld [vmem:[#allocation6 + $0x1e0] sm:$0xff] }
 0x65b   :  { %14404 = vmatpush2.bf16.msra.mxu0 %v17198_v54  ;;  %14364 = vmatprep.subr.bf16.mxu1 %v16927_v16  ;;  %v17374_v54 = vcombine.low %v8492_v15, %v8500_v44  ;;  %v16608_v16 = vcombine.low %v7725_v55, %v7733_v58  ;;  %v16593_v19 = vcombine.high %v7709_v8, %v7717_v59  ;;  %v8676_v15 = vld [vmem:[#allocation6 + $0x1fd8] sm:$0xff]  ;;  %v7901_v44 = vld [vmem:[#allocation6 + $0x7a0] sm:$0xff] }
 0x65c   :  { %14405 = vmatprep.subr.bf16.mxu0 %v17183_v50  ;;  %v17359_v50 = vcombine.high %v8476_v40, %v8484_v45 }
 0x65e   :  { %14365 = vmatpush2.bf16.msra.mxu1 %v16926_v10  ;;  %v7701_v10 = vld [vmem:[#allocation6 + $0x160] sm:$0xff] }
 0x65f   :  { %14406 = vmatpush2.bf16.msra.mxu0 %v17182_v60  ;;  %14416 = vmatprep.subr.bf16.mxu1 %v17423_v61  ;;  %v17358_v60 = vcombine.low %v8476_v40, %v8484_v45  ;;  %v16592_v61 = vcombine.low %v7709_v8, %v7717_v59  ;;  %v16577_v7 = vcombine.high %v7693_v48, %v7701_v10  ;;  %v8636_v59 = vld [vmem:[#allocation6 + $0x1e98] sm:$0xff] }
 0x660   :  { %14457 = vmatprep.subr.bf16.mxu0 %v16657_v17  ;;  %v17343_v17 = vcombine.high %v8460_v29, %v8468_v30 }
 0x661   :  { %v14122_v31 = vpop.f32.mrf.mxu1  ;;  %14367 = vmatmul.mubr.bf16.vlgmr.msra.gmra.mxu1 %v18085_v2 }
 0x662   :  { %v18186_v39 = vadd.f32 %v14122_v31, %v18178_v63  ;;  %v18188_v52 = vpop.f32.mrf.mxu0  ;;  %14408 = vmatmul.mubr.bf16.vlgmr.msra.gmra.mxu0 %v18115_v20  ;;  %14417 = vmatpush1.bf16.msra.mxu1 %v17422_v57  ;;  %v16625_v63 = vcombine.high %v7741_v49, %v7749_v4  ;;  %v8452_v57 = vld [vmem:[#allocation6 + $0x18d8] sm:$0xff]  ;;  %v7661_v49 = vld [vmem:[#allocation6 + $0x20] sm:$0xff] }
 0x663   :  { %14448 = vmatprep.mubr.bf16.mxu1 %v18130_v18  ;;  %14458 = vmatpush1.bf16.msra.mxu0 %v16656_v13  ;;  %v14124_v24 = vpop.f32.mrf.mxu1  ;;  %v17342_v13 = vcombine.low %v8460_v29, %v8468_v30  ;;  %v17327_v43 = vcombine.high %v8444_v28, %v8452_v57  ;;  %v8428_v31 = vld [vmem:[#allocation6 + $0x1818] sm:$0xff]  ;;  %v7669_v4 = vld [vmem:[#allocation6 + $0x60] sm:$0xff] }
 0x664   :  { %14489 = vmatprep.mubr.bf16.mxu0 %v18044_v1  ;;  %v18194_v32 = vadd.f32 %v14124_v24, %v18182_v37  ;;  %v18196_v6 = vpop.f32.mrf.mxu0  ;;  %14418 = vmatprep.subr.bf16.mxu1 %v17407_v23  ;;  %v16576_v23 = vcombine.low %v7693_v48, %v7701_v10  ;;  %v16560_v24 = vcombine.low %v7677_v14, %v7685_v9  ;;  %v8620_v10 = vld [vmem:[#allocation6 + $0x1e18] sm:$0xff] }
 0x665   :  { %v14126_v26 = vpop.f32.mrf.mxu1  ;;  %14459 = vmatprep.subr.bf16.mxu0 %v16641_v11  ;;  %v8436_v11 = vld [vmem:[#allocation6 + $0x1858] sm:$0xff]  ;;  %v16544_v58 = vcombine.low %v7661_v49, %v7669_v4 }
 0x666   :  { %v14167_v53 = vpop.f32.mrf.mxu0  ;;  %14419 = vmatpush1.bf16.msra.mxu1 %v17406_v51  ;;  %v17326_v51 = vcombine.low %v8444_v28, %v8452_v57  ;;  %v7909_v26 = vld [vmem:[#allocation6 + $0x7e0] sm:$0xff]  ;;  %v17310_v55 = vcombine.low %v8428_v31, %v8436_v11  ;;  %v8604_v9 = vld [vmem:[#allocation6 + $0x1d98] sm:$0xff] }
 0x667   :  { %14460 = vmatpush1.bf16.msra.mxu0 %v16640_v38  ;;  %v14127_v3 = vpop.f32.mrf.mxu1  ;;  %14420 = vmatprep.subr.bf16.mxu1 %v17391_v12  ;;  %v17311_v38 = vcombine.high %v8428_v31, %v8436_v11  ;;  %v16545_v12 = vcombine.high %v7661_v49, %v7669_v4  ;;  %v16784_v40 = vcombine.low %v7901_v44, %v7909_v26  ;;  %v8588_v4 = vld [vmem:[#allocation6 + $0x1d18] sm:$0xff] }
 0x668   :  { %v14168_v37 = vpop.f32.mrf.mxu0  ;;  %14461 = vmatprep.subr.bf16.mxu0 %v16625_v63  ;;  %v8668_v63 = vld [vmem:[#allocation6 + $0x1f98] sm:$0xff] }
 0x669   :  { %v17551_v53 = vcombine.high %v8668_v63, %v8676_v15  ;;  %v8652_v3 = vld [vmem:[#allocation6 + $0x1f18] sm:$0xff]  ;;  %v7893_v37 = vld [vmem:[#allocation6 + $0x760] sm:$0xff] }
 0x66a   :  { %14421 = vmatpush1.bf16.msra.mxu1 %v17390_v56  ;;  %v16785_v56 = vcombine.high %v7901_v44, %v7909_v26  ;;  %v8572_v26 = vld [vmem:[#allocation6 + $0x1c98] sm:$0xff] }
 0x66b   :  { %14462 = vmatpush1.bf16.msra.mxu0 %v16624_v25  ;;  %14422 = vmatprep.subr.bf16.mxu1 %v17375_v47  ;;  %v8660_v25 = vld [vmem:[#allocation6 + $0x1f58] sm:$0xff]  ;;  %v7885_v47 = vld [vmem:[#allocation6 + $0x720] sm:$0xff] }
 0x66c   :  { %14463 = vmatprep.subr.bf16.mxu0 %v16609_v34  ;;  %v17550_v34 = vcombine.low %v8668_v63, %v8676_v15  ;;  %v17535_v45 = vcombine.high %v8652_v3, %v8660_v25  ;;  %v16769_v8 = vcombine.high %v7885_v47, %v7893_v37  ;;  %v16768_v29 = vcombine.low %v7885_v47, %v7893_v37  ;;  %v8556_v37 = vld [vmem:[#allocation6 + $0x1c18] sm:$0xff] }
 0x66e   :  { %14423 = vmatpush1.bf16.msra.mxu1 %v17374_v54  ;;  %v8644_v54 = vld [vmem:[#allocation6 + $0x1ed8] sm:$0xff] }
 0x66f   :  { %14464 = vmatpush1.bf16.msra.mxu0 %v16608_v16  ;;  %14424 = vmatprep.subr.bf16.mxu1 %v17359_v50  ;;  %v7869_v16 = vld [vmem:[#allocation6 + $0x6a0] sm:$0xff]  ;;  %v17519_v30 = vcombine.high %v8636_v59, %v8644_v54 }
 0x670   :  { %14465 = vmatprep.subr.bf16.mxu0 %v16593_v19  ;;  %v7877_v50 = vld [vmem:[#allocation6 + $0x6e0] sm:$0xff]  ;;  %v17534_v19 = vcombine.low %v8652_v3, %v8660_v25 }
 0x671   :  { %v16753_v48 = vcombine.high %v7869_v16, %v7877_v50  ;;  %v16752_v28 = vcombine.low %v7869_v16, %v7877_v50  ;;  %v8029_v50 = vld [vmem:[#allocation6 + $0xba0] sm:$0xff] }
 0x672   :  { %14425 = vmatpush1.bf16.msra.mxu1 %v17358_v60  ;;  %v8628_v60 = vld [vmem:[#allocation6 + $0x1e58] sm:$0xff] }
 0x673   :  { %14466 = vmatpush1.bf16.msra.mxu0 %v16592_v61  ;;  %14426 = vmatprep.subr.bf16.mxu1 %v17343_v17  ;;  %v7853_v61 = vld [vmem:[#allocation6 + $0x620] sm:$0xff]  ;;  %v17503_v57 = vcombine.high %v8620_v10, %v8628_v60 }
 0x674   :  { %14467 = vmatprep.subr.bf16.mxu0 %v16577_v7  ;;  %v7861_v17 = vld [vmem:[#allocation6 + $0x660] sm:$0xff]  ;;  %v17518_v7 = vcombine.low %v8636_v59, %v8644_v54 }
 0x675   :  { %v16737_v14 = vcombine.high %v7853_v61, %v7861_v17  ;;  %v16736_v31 = vcombine.low %v7853_v61, %v7861_v17  ;;  %v8013_v17 = vld [vmem:[#allocation6 + $0xb20] sm:$0xff] }
 0x676   :  { %14427 = vmatpush1.bf16.msra.mxu1 %v17342_v13  ;;  %v8612_v13 = vld [vmem:[#allocation6 + $0x1dd8] sm:$0xff] }
 0x677   :  { %14468 = vmatpush1.bf16.msra.mxu0 %v16576_v23  ;;  %14428 = vmatprep.subr.bf16.mxu1 %v17327_v43  ;;  %v7837_v23 = vld [vmem:[#allocation6 + $0x5a0] sm:$0xff]  ;;  %v17487_v11 = vcombine.high %v8604_v9, %v8612_v13 }
 0x678   :  { %14469 = vmatprep.subr.bf16.mxu0 %v16561_v21  ;;  %v7845_v43 = vld [vmem:[#allocation6 + $0x5e0] sm:$0xff]  ;;  %v17502_v21 = vcombine.low %v8620_v10, %v8628_v60 }
 0x679   :  { %v16721_v49 = vcombine.high %v7837_v23, %v7845_v43  ;;  %v16720_v63 = vcombine.low %v7837_v23, %v7845_v43  ;;  %v7997_v23 = vld [vmem:[#allocation6 + $0xaa0] sm:$0xff] }
 0x67a   :  { %14429 = vmatpush1.bf16.msra.mxu1 %v17326_v51  ;;  %v8596_v51 = vld [vmem:[#allocation6 + $0x1d58] sm:$0xff]  ;;  %v8005_v43 = vld [vmem:[#allocation6 + $0xae0] sm:$0xff] }
 0x67b   :  { %14470 = vmatpush1.bf16.msra.mxu0 %v16560_v24  ;;  %14430 = vmatprep.subr.bf16.mxu1 %v17311_v38  ;;  %v7821_v24 = vld [vmem:[#allocation6 + $0x520] sm:$0xff]  ;;  %v17471_v15 = vcombine.high %v8588_v4, %v8596_v51 }
 0x67c   :  { %14471 = vmatprep.subr.bf16.mxu0 %v16545_v12  ;;  %v7829_v38 = vld [vmem:[#allocation6 + $0x560] sm:$0xff]  ;;  %v17486_v12 = vcombine.low %v8604_v9, %v8612_v13 }
 0x67d   :  { %v16705_v44 = vcombine.high %v7821_v24, %v7829_v38  ;;  %v16704_v3 = vcombine.low %v7821_v24, %v7829_v38 }
 0x67e   :  { %14431 = vmatpush1.bf16.msra.mxu1 %v17310_v55  ;;  %v8580_v55 = vld [vmem:[#allocation6 + $0x1cd8] sm:$0xff] }
 0x67f   :  { %14472 = vmatpush1.bf16.msra.mxu0 %v16544_v58  ;;  %14432 = vmatprep.subr.bf16.mxu1 %v17551_v53  ;;  %v7805_v58 = vld [vmem:[#allocation6 + $0x4a0] sm:$0xff]  ;;  %v17455_v25 = vcombine.high %v8572_v26, %v8580_v55 }
 0x680   :  { %14473 = vmatprep.subr.bf16.mxu0 %v16785_v56  ;;  %v7813_v53 = vld [vmem:[#allocation6 + $0x4e0] sm:$0xff]  ;;  %v17470_v56 = vcombine.low %v8588_v4, %v8596_v51 }
 0x681   :  { %v16689_v47 = vcombine.high %v7805_v58, %v7813_v53  ;;  %v16688_v59 = vcombine.low %v7805_v58, %v7813_v53  ;;  %v7989_v58 = vld [vmem:[#allocation6 + $0xa60] sm:$0xff] }
 0x682   :  { %14433 = vmatpush2.bf16.msra.mxu1 %v17550_v34  ;;  %v8564_v34 = vld [vmem:[#allocation6 + $0x1c58] sm:$0xff] }
 0x683   :  { %14474 = vmatpush2.bf16.msra.mxu0 %v16784_v40  ;;  %14434 = vmatprep.subr.bf16.mxu1 %v17535_v45  ;;  %v7789_v40 = vld [vmem:[#allocation6 + $0x420] sm:$0xff]  ;;  %v17439_v54 = vcombine.high %v8556_v37, %v8564_v34 }
 0x684   :  { %14475 = vmatprep.subr.bf16.mxu0 %v16769_v8  ;;  %v7797_v45 = vld [vmem:[#allocation6 + $0x460] sm:$0xff]  ;;  %v17454_v8 = vcombine.low %v8572_v26, %v8580_v55 }
 0x685   :  { %v16673_v16 = vcombine.high %v7789_v40, %v7797_v45  ;;  %v16672_v10 = vcombine.low %v7789_v40, %v7797_v45  ;;  %v7981_v55 = vld [vmem:[#allocation6 + $0xa20] sm:$0xff] }
 0x686   :  { %14435 = vmatpush2.bf16.msra.mxu1 %v17534_v19  ;;  %v8037_v19 = vld [vmem:[#allocation6 + $0xbe0] sm:$0xff]  ;;  %v16865_v45 = vcombine.high %v7981_v55, %v7989_v58 }
 0x687   :  { %14476 = vmatpush2.bf16.msra.mxu0 %v16768_v29  ;;  %14436 = vmatprep.subr.bf16.mxu1 %v17519_v30  ;;  %v8285_v29 = vld [vmem:[#allocation6 + $0x13a0] sm:$0xff]  ;;  %v16913_v60 = vcombine.high %v8029_v50, %v8037_v19 }
 0x688   :  { %14477 = vmatprep.subr.bf16.mxu0 %v16753_v48  ;;  %v8293_v30 = vld [vmem:[#allocation6 + $0x13e0] sm:$0xff]  ;;  %v17438_v48 = vcombine.low %v8556_v37, %v8564_v34  ;;  %v16880_v37 = vcombine.low %v7997_v23, %v8005_v43 }
 0x689   :  { %v17169_v61 = vcombine.high %v8285_v29, %v8293_v30  ;;  %v17168_v9 = vcombine.low %v8285_v29, %v8293_v30 }
 0x68a   :  { %14437 = vmatpush2.bf16.msra.mxu1 %v17518_v7  ;;  %v8021_v7 = vld [vmem:[#allocation6 + $0xb60] sm:$0xff] }
 0x68b   :  { %14478 = vmatpush2.bf16.msra.mxu0 %v16752_v28  ;;  %14438 = vmatprep.subr.bf16.mxu1 %v17503_v57  ;;  %v16912_v28 = vcombine.low %v8029_v50, %v8037_v19  ;;  %v8269_v57 = vld [vmem:[#allocation6 + $0x1320] sm:$0xff]  ;;  %v16897_v13 = vcombine.high %v8013_v17, %v8021_v7  ;;  %v16896_v24 = vcombine.low %v8013_v17, %v8021_v7 }
 0x68c   :  { %14479 = vmatprep.subr.bf16.mxu0 %v16737_v14  ;;  %v8277_v14 = vld [vmem:[#allocation6 + $0x1360] sm:$0xff]  ;;  %v16864_v19 = vcombine.low %v7981_v55, %v7989_v58 }
 0x68d   :  { %v8229_v50 = vld [vmem:[#allocation6 + $0x11e0] sm:$0xff] }
 0x68e   :  { %14439 = vmatpush2.bf16.msra.mxu1 %v17502_v21  ;;  %v8213_v17 = vld [vmem:[#allocation6 + $0x1160] sm:$0xff] }
 0x68f   :  { %14480 = vmatpush2.bf16.msra.mxu0 %v16736_v31  ;;  %14440 = vmatprep.subr.bf16.mxu1 %v17487_v11  ;;  %v17153_v31 = vcombine.high %v8269_v57, %v8277_v14  ;;  %v8253_v11 = vld [vmem:[#allocation6 + $0x12a0] sm:$0xff] }
 0x690   :  { %14481 = vmatprep.subr.bf16.mxu0 %v16721_v49  ;;  %v8261_v49 = vld [vmem:[#allocation6 + $0x12e0] sm:$0xff] }
 0x691   :  { %v17136_v40 = vcombine.low %v8253_v11, %v8261_v49  ;;  %v8165_v55 = vld [vmem:[#allocation6 + $0xfe0] sm:$0xff] }
 0x692   :  { %14441 = vmatpush2.bf16.msra.mxu1 %v17486_v12  ;;  %v17152_v12 = vcombine.low %v8269_v57, %v8277_v14  ;;  %v8413_v58 = vld [vmem:[#allocation6 + $0x17a0] sm:$0xff] }
 0x693   :  { %14482 = vmatpush2.bf16.msra.mxu0 %v16720_v63  ;;  %14442 = vmatprep.subr.bf16.mxu1 %v17471_v15  ;;  %v16881_v63 = vcombine.high %v7997_v23, %v8005_v43  ;;  %v8189_v23 = vld [vmem:[#allocation6 + $0x10a0] sm:$0xff] }
 0x694   :  { %14483 = vmatprep.subr.bf16.mxu0 %v16705_v44  ;;  %v8197_v43 = vld [vmem:[#allocation6 + $0x10e0] sm:$0xff] }
 0x696   :  { %14443 = vmatpush2.bf16.msra.mxu1 %v17470_v56  ;;  %v8237_v56 = vld [vmem:[#allocation6 + $0x1220] sm:$0xff] }
 0x697   :  { %14484 = vmatpush2.bf16.msra.mxu0 %v16704_v3  ;;  %14444 = vmatprep.subr.bf16.mxu1 %v17455_v25  ;;  %v8245_v3 = vld [vmem:[#allocation6 + $0x1260] sm:$0xff] }
 0x698   :  { %14485 = vmatprep.subr.bf16.mxu0 %v16689_v47  ;;  %v17120_v29 = vcombine.low %v8237_v56, %v8245_v3 }
 0x69a   :  { %14445 = vmatpush2.bf16.msra.mxu1 %v17454_v8  ;;  %v17121_v8 = vcombine.high %v8237_v56, %v8245_v3 }
 0x69b   :  { %14486 = vmatpush2.bf16.msra.mxu0 %v16688_v59  ;;  %14446 = vmatprep.subr.bf16.mxu1 %v17439_v54  ;;  %v7965_v59 = vld [vmem:[#allocation6 + $0x9a0] sm:$0xff] }
 0x69c   :  { %14487 = vmatprep.subr.bf16.mxu0 %v16673_v16  ;;  %v7973_v54 = vld [vmem:[#allocation6 + $0x9e0] sm:$0xff] }
 0x69d   :  { %v8221_v16 = vld [vmem:[#allocation6 + $0x11a0] sm:$0xff]  ;;  %v16849_v30 = vcombine.high %v7965_v59, %v7973_v54  ;;  %v16848_v7 = vcombine.low %v7965_v59, %v7973_v54 }
 0x69e   :  { %14447 = vmatpush2.bf16.msra.mxu1 %v17438_v48  ;;  %v17105_v48 = vcombine.high %v8221_v16, %v8229_v50 }
 0x69f   :  { %14488 = vmatpush2.bf16.msra.mxu0 %v16672_v10  ;;  %14498 = vmatprep.subr.bf16.mxu1 %v16913_v60  ;;  %v7949_v10 = vld [vmem:[#allocation6 + $0x920] sm:$0xff] }
 0x6a0   :  { %14539 = vmatprep.subr.bf16.mxu0 %v17169_v61  ;;  %v7957_v60 = vld [vmem:[#allocation6 + $0x960] sm:$0xff] }
 0x6a1   :  { %v14204_v21 = vpop.f32.mrf.mxu1  ;;  %14449 = vmatmul.mubr.bf16.vlgmr.msra.gmra.mxu1 %v18132_v5  ;;  %v8205_v61 = vld [vmem:[#allocation6 + $0x1120] sm:$0xff]  ;;  %v16833_v57 = vcombine.high %v7949_v10, %v7957_v60 }
 0x6a2   :  { %v14205_v4 = vadd.f32 %v14204_v21, %v18188_v52  ;;  %v14245_v51 = vpop.f32.mrf.mxu0  ;;  %14490 = vmatmul.mubr.bf16.vlgmr.msra.gmra.mxu0 %v18058_v22  ;;  %14499 = vmatpush1.bf16.msra.mxu1 %v16912_v28  ;;  %v17137_v52 = vcombine.high %v8253_v11, %v8261_v49  ;;  %v17104_v28 = vcombine.low %v8221_v16, %v8229_v50  ;;  %v8125_v50 = vld [vmem:[#allocation6 + $0xea0] sm:$0xff] }
 0x6a3   :  { %14530 = vmatprep.mubr.bf16.mxu1 %v18077_v41  ;;  %14540 = vmatpush1.bf16.msra.mxu0 %v17168_v9  ;;  %v14206_v38 = vpop.f32.mrf.mxu1  ;;  %v17089_v14 = vcombine.high %v8205_v61, %v8213_v17  ;;  %v7933_v9 = vld [vmem:[#allocation6 + $0x8a0] sm:$0xff]  ;;  %v16832_v21 = vcombine.low %v7949_v10, %v7957_v60  ;;  %v17073_v49 = vcombine.high %v8189_v23, %v8197_v43 }
 0x6a4   :  { %v18202_v15 = vadd.f32 %v14245_v51, %v14205_v4  ;;  %14571 = vmatprep.mubr.bf16.mxu0 %v18111_v35  ;;  %v14207_v44 = vadd.f32 %v14206_v38, %v18196_v6  ;;  %v14247_v26 = vpop.f32.mrf.mxu0  ;;  %14500 = vmatprep.subr.bf16.mxu1 %v16897_v13  ;;  %v7941_v13 = vld [vmem:[#allocation6 + $0x8e0] sm:$0xff] }
 0x6a5   :  { %v14208_v53 = vpop.f32.mrf.mxu1  ;;  %14541 = vmatprep.subr.bf16.mxu0 %v17153_v31  ;;  %v17088_v31 = vcombine.low %v8205_v61, %v8213_v17  ;;  %v16817_v11 = vcombine.high %v7933_v9, %v7941_v13  ;;  %v7917_v4 = vld [vmem:[#allocation6 + $0x820] sm:$0xff] }
 0x6a6   :  { %v18206_v25 = vadd.f32 %v14247_v26, %v14207_v44  ;;  %v14249_v47 = vpop.f32.mrf.mxu0  ;;  %14501 = vmatpush1.bf16.msra.mxu1 %v16896_v24  ;;  %v7925_v51 = vld [vmem:[#allocation6 + $0x860] sm:$0xff] }
 0x6a7   :  { %14542 = vmatpush1.bf16.msra.mxu0 %v17152_v12  ;;  %v14209_v34 = vpop.f32.mrf.mxu1  ;;  %14502 = vmatprep.subr.bf16.mxu1 %v16881_v63  ;;  %v8173_v24 = vld [vmem:[#allocation6 + $0x1020] sm:$0xff]  ;;  %v16816_v12 = vcombine.low %v7933_v9, %v7941_v13  ;;  %v17072_v63 = vcombine.low %v8189_v23, %v8197_v43  ;;  %v16801_v44 = vcombine.high %v7917_v4, %v7925_v51 }
 0x6a8   :  { %v14250_v6 = vpop.f32.mrf.mxu0  ;;  %14543 = vmatprep.subr.bf16.mxu0 %v17137_v52  ;;  %v8181_v38 = vld [vmem:[#allocation6 + $0x1060] sm:$0xff]  ;;  %v16800_v56 = vcombine.low %v7917_v4, %v7925_v51 }
 0x6a9   :  { %v17057_v26 = vcombine.high %v8173_v24, %v8181_v38  ;;  %v8157_v52 = vld [vmem:[#allocation6 + $0xfa0] sm:$0xff]  ;;  %v17056_v3 = vcombine.low %v8173_v24, %v8181_v38 }
 0x6aa   :  { %14503 = vmatpush1.bf16.msra.mxu1 %v16880_v37  ;;  %v8421_v53 = vld [vmem:[#allocation6 + $0x17e0] sm:$0xff]  ;;  %v17041_v47 = vcombine.high %v8157_v52, %v8165_v55 }
 0x6ab   :  { %14544 = vmatpush1.bf16.msra.mxu0 %v17136_v40  ;;  %14504 = vmatprep.subr.bf16.mxu1 %v16865_v45  ;;  %v17297_v37 = vcombine.high %v8413_v58, %v8421_v53  ;;  %v8141_v34 = vld [vmem:[#allocation6 + $0xf20] sm:$0xff]  ;;  %v17296_v59 = vcombine.low %v8413_v58, %v8421_v53 }
 0x6ac   :  { %14545 = vmatprep.subr.bf16.mxu0 %v17121_v8  ;;  %v8149_v40 = vld [vmem:[#allocation6 + $0xf60] sm:$0xff]  ;;  %v17040_v8 = vcombine.low %v8157_v52, %v8165_v55 }
 0x6ad   :  { %v8397_v45 = vld [vmem:[#allocation6 + $0x1720] sm:$0xff]  ;;  %v17025_v54 = vcombine.high %v8141_v34, %v8149_v40 }
 0x6ae   :  { %14505 = vmatpush1.bf16.msra.mxu1 %v16864_v19  ;;  %v8405_v6 = vld [vmem:[#allocation6 + $0x1760] sm:$0xff] }
 0x6af   :  { %14546 = vmatpush1.bf16.msra.mxu0 %v17120_v29  ;;  %14506 = vmatprep.subr.bf16.mxu1 %v16849_v30  ;;  %v17281_v16 = vcombine.high %v8397_v45, %v8405_v6  ;;  %v8133_v19 = vld [vmem:[#allocation6 + $0xee0] sm:$0xff]  ;;  %v17280_v10 = vcombine.low %v8397_v45, %v8405_v6 }
 0x6b0   :  { %14547 = vmatprep.subr.bf16.mxu0 %v17105_v48  ;;  %v8381_v29 = vld [vmem:[#allocation6 + $0x16a0] sm:$0xff]  ;;  %v17024_v48 = vcombine.low %v8141_v34, %v8149_v40  ;;  %v17009_v60 = vcombine.high %v8125_v50, %v8133_v19 }
 0x6b1   :  { %v8389_v30 = vld [vmem:[#allocation6 + $0x16e0] sm:$0xff] }
 0x6b2   :  { %14507 = vmatpush1.bf16.msra.mxu1 %v16848_v7  ;;  %v17265_v61 = vcombine.high %v8381_v29, %v8389_v30  ;;  %v8109_v17 = vld [vmem:[#allocation6 + $0xe20] sm:$0xff]  ;;  %v17264_v9 = vcombine.low %v8381_v29, %v8389_v30 }
 0x6b3   :  { %14548 = vmatpush1.bf16.msra.mxu0 %v17104_v28  ;;  %14508 = vmatprep.subr.bf16.mxu1 %v16833_v57  ;;  %v8117_v7 = vld [vmem:[#allocation6 + $0xe60] sm:$0xff] }
 0x6b4   :  { %14549 = vmatprep.subr.bf16.mxu0 %v17089_v14  ;;  %v8365_v28 = vld [vmem:[#allocation6 + $0x1620] sm:$0xff]  ;;  %v17008_v14 = vcombine.low %v8125_v50, %v8133_v19  ;;  %v16993_v13 = vcombine.high %v8109_v17, %v8117_v7 }
 0x6b5   :  { %v8373_v57 = vld [vmem:[#allocation6 + $0x1660] sm:$0xff] }
 0x6b6   :  { %14509 = vmatpush1.bf16.msra.mxu1 %v16832_v21  ;;  %v17249_v23 = vcombine.high %v8365_v28, %v8373_v57  ;;  %v8093_v43 = vld [vmem:[#allocation6 + $0xda0] sm:$0xff]  ;;  %v17248_v4 = vcombine.low %v8365_v28, %v8373_v57 }
 0x6b7   :  { %14550 = vmatpush1.bf16.msra.mxu0 %v17088_v31  ;;  %14510 = vmatprep.subr.bf16.mxu1 %v16817_v11  ;;  %v8101_v21 = vld [vmem:[#allocation6 + $0xde0] sm:$0xff] }
 0x6b8   :  { %14551 = vmatprep.subr.bf16.mxu0 %v17073_v49  ;;  %v8349_v31 = vld [vmem:[#allocation6 + $0x15a0] sm:$0xff]  ;;  %v16992_v49 = vcombine.low %v8109_v17, %v8117_v7  ;;  %v16977_v51 = vcombine.high %v8093_v43, %v8101_v21 }
 0x6b9   :  { %v8357_v11 = vld [vmem:[#allocation6 + $0x15e0] sm:$0xff] }
 0x6ba   :  { %14511 = vmatpush1.bf16.msra.mxu1 %v16816_v12  ;;  %v17233_v24 = vcombine.high %v8349_v31, %v8357_v11  ;;  %v8077_v38 = vld [vmem:[#allocation6 + $0xd20] sm:$0xff]  ;;  %v17232_v52 = vcombine.low %v8349_v31, %v8357_v11 }
 0x6bb   :  { %14552 = vmatpush1.bf16.msra.mxu0 %v17072_v63  ;;  %14512 = vmatprep.subr.bf16.mxu1 %v16801_v44  ;;  %v8085_v12 = vld [vmem:[#allocation6 + $0xd60] sm:$0xff] }
 0x6bc   :  { %14553 = vmatprep.subr.bf16.mxu0 %v17057_v26  ;;  %v8333_v63 = vld [vmem:[#allocation6 + $0x1520] sm:$0xff]  ;;  %v16976_v26 = vcombine.low %v8093_v43, %v8101_v21  ;;  %v16961_v55 = vcombine.high %v8077_v38, %v8085_v12 }
 0x6bd   :  { %v8341_v44 = vld [vmem:[#allocation6 + $0x1560] sm:$0xff] }
 0x6be   :  { %14513 = vmatpush1.bf16.msra.mxu1 %v16800_v56  ;;  %v17217_v58 = vcombine.high %v8333_v63, %v8341_v44  ;;  %v8061_v53 = vld [vmem:[#allocation6 + $0xca0] sm:$0xff]  ;;  %v17216_v34 = vcombine.low %v8333_v63, %v8341_v44 }
 0x6bf   :  { %14554 = vmatpush1.bf16.msra.mxu0 %v17056_v3  ;;  %14514 = vmatprep.subr.bf16.mxu1 %v17041_v47  ;;  %v8069_v56 = vld [vmem:[#allocation6 + $0xce0] sm:$0xff] }
 0x6c0   :  { %14555 = vmatprep.subr.bf16.mxu0 %v17297_v37  ;;  %v8317_v3 = vld [vmem:[#allocation6 + $0x14a0] sm:$0xff]  ;;  %v16960_v37 = vcombine.low %v8077_v38, %v8085_v12  ;;  %v16945_v40 = vcombine.high %v8061_v53, %v8069_v56 }
 0x6c1   :  { %v8325_v47 = vld [vmem:[#allocation6 + $0x14e0] sm:$0xff] }
 0x6c2   :  { %14515 = vmatpush2.bf16.msra.mxu1 %v17040_v8  ;;  %v17201_v45 = vcombine.high %v8317_v3, %v8325_v47  ;;  %v8045_v6 = vld [vmem:[#allocation6 + $0xc20] sm:$0xff]  ;;  %v17200_v50 = vcombine.low %v8317_v3, %v8325_v47 }
 0x6c3   :  { %14556 = vmatpush2.bf16.msra.mxu0 %v17296_v59  ;;  %14516 = vmatprep.subr.bf16.mxu1 %v17025_v54  ;;  %v8053_v8 = vld [vmem:[#allocation6 + $0xc60] sm:$0xff] }
 0x6c4   :  { %14557 = vmatprep.subr.bf16.mxu0 %v17281_v16  ;;  %v8301_v59 = vld [vmem:[#allocation6 + $0x1420] sm:$0xff]  ;;  %v16944_v16 = vcombine.low %v8061_v53, %v8069_v56  ;;  %v16929_v19 = vcombine.high %v8045_v6, %v8053_v8 }
 0x6c5   :  { %v8309_v54 = vld [vmem:[#allocation6 + $0x1460] sm:$0xff] }
 0x6c6   :  { %14517 = vmatpush2.bf16.msra.mxu1 %v17024_v48  ;;  %v17185_v29 = vcombine.high %v8301_v59, %v8309_v54  ;;  %v8541_v30 = vld [vmem:[#allocation6 + $0x1ba0] sm:$0xff]  ;;  %v17184_v17 = vcombine.low %v8301_v59, %v8309_v54 }
 0x6c7   :  { %14558 = vmatpush2.bf16.msra.mxu0 %v17280_v10  ;;  %14518 = vmatprep.subr.bf16.mxu1 %v17009_v60  ;;  %v8549_v48 = vld [vmem:[#allocation6 + $0x1be0] sm:$0xff]  ;;  %v7774_v10 = vld [vmem:[#allocation6 + $0x3a8] sm:$0xff] }
 0x6c8   :  { %14559 = vmatprep.subr.bf16.mxu0 %v17265_v61  ;;  %v7782_v60 = vld [vmem:[#allocation6 + $0x3e8] sm:$0xff]  ;;  %v16928_v61 = vcombine.low %v8045_v6, %v8053_v8  ;;  %v17425_v7 = vcombine.high %v8541_v30, %v8549_v48  ;;  %v8525_v57 = vld [vmem:[#allocation6 + $0x1b20] sm:$0xff] }
 0x6c9   :  { %v16659_v28 = vcombine.high %v7774_v10, %v7782_v60  ;;  %v16658_v43 = vcombine.low %v7774_v10, %v7782_v60  ;;  %v8509_v31 = vld [vmem:[#allocation6 + $0x1aa0] sm:$0xff] }
 0x6ca   :  { %14519 = vmatpush2.bf16.msra.mxu1 %v17008_v14  ;;  %v8533_v14 = vld [vmem:[#allocation6 + $0x1b60] sm:$0xff] }
 0x6cb   :  { %14560 = vmatpush2.bf16.msra.mxu0 %v17264_v9  ;;  %14520 = vmatprep.subr.bf16.mxu1 %v16993_v13  ;;  %v17424_v9 = vcombine.low %v8541_v30, %v8549_v48  ;;  %v7758_v13 = vld [vmem:[#allocation6 + $0x328] sm:$0xff]  ;;  %v17409_v21 = vcombine.high %v8525_v57, %v8533_v14  ;;  %v8517_v11 = vld [vmem:[#allocation6 + $0x1ae0] sm:$0xff]  ;;  %v17408_v63 = vcombine.low %v8525_v57, %v8533_v14 }
 0x6cc   :  { %14561 = vmatprep.subr.bf16.mxu0 %v17249_v23  ;;  %v7766_v23 = vld [vmem:[#allocation6 + $0x368] sm:$0xff]  ;;  %v8493_v56 = vld [vmem:[#allocation6 + $0x1a20] sm:$0xff]  ;;  %v17392_v6 = vcombine.low %v8509_v31, %v8517_v11 }
 0x6cd   :  { %v8501_v3 = vld [vmem:[#allocation6 + $0x1a60] sm:$0xff]  ;;  %v7718_v30 = vld [vmem:[#allocation6 + $0x1e8] sm:$0xff] }
 0x6ce   :  { %14521 = vmatpush2.bf16.msra.mxu1 %v16992_v49  ;;  %v17377_v59 = vcombine.high %v8493_v56, %v8501_v3  ;;  %v17376_v48 = vcombine.low %v8493_v56, %v8501_v3  ;;  %v7702_v57 = vld [vmem:[#allocation6 + $0x168] sm:$0xff] }
 0x6cf   :  { %14562 = vmatpush2.bf16.msra.mxu0 %v17248_v4  ;;  %14522 = vmatprep.subr.bf16.mxu1 %v16977_v51  ;;  %v16643_v4 = vcombine.high %v7758_v13, %v7766_v23  ;;  %v7742_v51 = vld [vmem:[#allocation6 + $0x2a8] sm:$0xff] }
 0x6d0   :  { %14563 = vmatprep.subr.bf16.mxu0 %v17233_v24  ;;  %v7750_v24 = vld [vmem:[#allocation6 + $0x2e8] sm:$0xff] }
 0x6d1   :  { %v16627_v53 = vcombine.high %v7742_v51, %v7750_v24 }
 0x6d2   :  { %14523 = vmatpush2.bf16.msra.mxu1 %v16976_v26  ;;  %v16642_v26 = vcombine.low %v7758_v13, %v7766_v23 }
 0x6d3   :  { %14564 = vmatpush2.bf16.msra.mxu0 %v17232_v52  ;;  %14524 = vmatprep.subr.bf16.mxu1 %v16961_v55  ;;  %v17393_v52 = vcombine.high %v8509_v31, %v8517_v11  ;;  %v7678_v31 = vld [vmem:[#allocation6 + $0xa8] sm:$0xff] }
 0x6d4   :  { %14565 = vmatprep.subr.bf16.mxu0 %v17217_v58  ;;  %v7686_v11 = vld [vmem:[#allocation6 + $0xe8] sm:$0xff] }
 0x6d5   :  { %v16562_v56 = vcombine.low %v7678_v31, %v7686_v11 }
 0x6d6   :  { %14525 = vmatpush2.bf16.msra.mxu1 %v16960_v37  ;;  %v7726_v37 = vld [vmem:[#allocation6 + $0x228] sm:$0xff] }
 0x6d7   :  { %14566 = vmatpush2.bf16.msra.mxu0 %v17216_v34  ;;  %14526 = vmatprep.subr.bf16.mxu1 %v16945_v40  ;;  %v7734_v34 = vld [vmem:[#allocation6 + $0x268] sm:$0xff] }
 0x6d8   :  { %14567 = vmatprep.subr.bf16.mxu0 %v17201_v45  ;;  %v16610_v10 = vcombine.low %v7726_v37, %v7734_v34 }
 0x6da   :  { %14527 = vmatpush2.bf16.msra.mxu1 %v16944_v16  ;;  %v16611_v16 = vcombine.high %v7726_v37, %v7734_v34  ;;  %v8669_v37 = vld [vmem:[#allocation6 + $0x1fa0] sm:$0xff] }
 0x6db   :  { %14568 = vmatpush2.bf16.msra.mxu0 %v17200_v50  ;;  %14528 = vmatprep.subr.bf16.mxu1 %v16929_v19  ;;  %v8477_v50 = vld [vmem:[#allocation6 + $0x19a0] sm:$0xff] }
 0x6dc   :  { %14569 = vmatprep.subr.bf16.mxu0 %v17185_v29  ;;  %v8485_v19 = vld [vmem:[#allocation6 + $0x19e0] sm:$0xff]  ;;  %v7710_v29 = vld [vmem:[#allocation6 + $0x1a8] sm:$0xff] }
 0x6dd   :  { %v17361_v60 = vcombine.high %v8477_v50, %v8485_v19  ;;  %v17360_v14 = vcombine.low %v8477_v50, %v8485_v19  ;;  %v8677_v34 = vld [vmem:[#allocation6 + $0x1fe0] sm:$0xff]  ;;  %v7886_v19 = vld [vmem:[#allocation6 + $0x728] sm:$0xff] }
 0x6de   :  { %14529 = vmatpush2.bf16.msra.mxu1 %v16928_v61  ;;  %v16595_v61 = vcombine.high %v7710_v29, %v7718_v30  ;;  %v8661_v50 = vld [vmem:[#allocation6 + $0x1f60] sm:$0xff] }
 0x6df   :  { %14570 = vmatpush2.bf16.msra.mxu0 %v17184_v17  ;;  %14580 = vmatprep.subr.bf16.mxu1 %v17425_v7  ;;  %v8461_v17 = vld [vmem:[#allocation6 + $0x1920] sm:$0xff] }
 0x6e0   :  { %14621 = vmatprep.subr.bf16.mxu0 %v16659_v28  ;;  %v8469_v7 = vld [vmem:[#allocation6 + $0x1960] sm:$0xff]  ;;  %v7694_v28 = vld [vmem:[#allocation6 + $0x128] sm:$0xff] }
 0x6e1   :  { %v14286_v49 = vpop.f32.mrf.mxu1  ;;  %14531 = vmatmul.mubr.bf16.vlgmr.msra.gmra.mxu1 %v18085_v2  ;;  %v17345_v13 = vcombine.high %v8461_v17, %v8469_v7  ;;  %v16579_v23 = vcombine.high %v7694_v28, %v7702_v57 }
 0x6e2   :  { %v18210_v38 = vadd.f32 %v14286_v49, %v18202_v15  ;;  %v18212_v12 = vpop.f32.mrf.mxu0  ;;  %14572 = vmatmul.mubr.bf16.vlgmr.msra.gmra.mxu0 %v18115_v20  ;;  %14581 = vmatpush1.bf16.msra.mxu1 %v17424_v9  ;;  %v16594_v9 = vcombine.low %v7710_v29, %v7718_v30  ;;  %v17344_v49 = vcombine.low %v8461_v17, %v8469_v7  ;;  %v7894_v29 = vld [vmem:[#allocation6 + $0x768] sm:$0xff]  ;;  %v8645_v17 = vld [vmem:[#allocation6 + $0x1ee0] sm:$0xff] }
 0x6e3   :  { %14612 = vmatprep.mubr.bf16.mxu1 %v18130_v18  ;;  %14622 = vmatpush1.bf16.msra.mxu0 %v16658_v43  ;;  %v14288_v44 = vpop.f32.mrf.mxu1  ;;  %v8445_v43 = vld [vmem:[#allocation6 + $0x18a0] sm:$0xff]  ;;  %v17552_v30 = vcombine.low %v8669_v37, %v8677_v34  ;;  %v7870_v7 = vld [vmem:[#allocation6 + $0x6a8] sm:$0xff] }
 0x6e4   :  { %v15113_v55 = vmax.f32 %v18165_v62, %v18210_v38  ;;  %14653 = vmatprep.mubr.bf16.mxu0 %v18044_v1  ;;  %v18220_v15 = vadd.f32 %v14288_v44, %v18206_v25  ;;  %v18222_v58 = vpop.f32.mrf.mxu0  ;;  %14582 = vmatprep.subr.bf16.mxu1 %v17409_v21  ;;  %v16626_v25 = vcombine.low %v7742_v51, %v7750_v24  ;;  %v8453_v21 = vld [vmem:[#allocation6 + $0x18e0] sm:$0xff]  ;;  %v17677_v62 = vld [vmem:[#allocation9 + $0x88] sm:$0xff]  }
 0x6e5   :  { %v14290_v47 = vpop.f32.mrf.mxu1  ;;  %14623 = vmatprep.subr.bf16.mxu0 %v16643_v4  ;;  %v16578_v4 = vcombine.low %v7694_v28, %v7702_v57  ;;  %v17329_v51 = vcombine.high %v8445_v43, %v8453_v21  ;;  %v16563_v24 = vcombine.high %v7678_v31, %v7686_v11  ;;  %v8437_v44 = vld [vmem:[#allocation6 + $0x1860] sm:$0xff]  ;;  %v7878_v28 = vld [vmem:[#allocation6 + $0x6e8] sm:$0xff] }
 0x6e6   :  { %v15114_v40 = vmax.f32 %v18172_v0, %v18220_v15  ;;  %v14331_v45 = vpop.f32.mrf.mxu0  ;;  %14583 = vmatpush1.bf16.msra.mxu1 %v17408_v63  ;;  %v8429_v63 = vld [vmem:[#allocation6 + $0x1820] sm:$0xff]  ;;  %v7862_v31 = vld [vmem:[#allocation6 + $0x668] sm:$0xff] }
 0x6e7   :  { %14624 = vmatpush1.bf16.msra.mxu0 %v16642_v26  ;;  %v14291_v8 = vpop.f32.mrf.mxu1  ;;  %14584 = vmatprep.subr.bf16.mxu1 %v17393_v52  ;;  %v7662_v26 = vld [vmem:[#allocation6 + $0x28] sm:$0xff]  ;;  %v17313_v3 = vcombine.high %v8429_v63, %v8437_v44 }
 0x6e8   :  { %v14332_v54 = vpop.f32.mrf.mxu0  ;;  %14625 = vmatprep.subr.bf16.mxu0 %v16627_v53  ;;  %v7670_v52 = vld [vmem:[#allocation6 + $0x68] sm:$0xff]  ;;  %v17328_v53 = vcombine.low %v8445_v43, %v8453_v21  ;;  %v17312_v8 = vcombine.low %v8429_v63, %v8437_v44  ;;  %v8629_v43 = vld [vmem:[#allocation6 + $0x1e60] sm:$0xff] }
 0x6e9   :  { %v16547_v47 = vcombine.high %v7662_v26, %v7670_v52  ;;  %v7902_v45 = vld [vmem:[#allocation6 + $0x7a8] sm:$0xff]  ;;  %v8613_v63 = vld [vmem:[#allocation6 + $0x1de0] sm:$0xff] }
 0x6ea   :  { %14585 = vmatpush1.bf16.msra.mxu1 %v17392_v6  ;;  %v7910_v6 = vld [vmem:[#allocation6 + $0x7e8] sm:$0xff] }
 0x6eb   :  { %14626 = vmatpush1.bf16.msra.mxu0 %v16626_v25  ;;  %14586 = vmatprep.subr.bf16.mxu1 %v17377_v59  ;;  %v16546_v25 = vcombine.low %v7662_v26, %v7670_v52  ;;  %v17553_v59 = vcombine.high %v8669_v37, %v8677_v34  ;;  %v16787_v54 = vcombine.high %v7902_v45, %v7910_v6  ;;  %v7854_v21 = vld [vmem:[#allocation6 + $0x628] sm:$0xff]  ;;  %v8597_v37 = vld [vmem:[#allocation6 + $0x1d60] sm:$0xff] }
 0x6ec   :  { %14627 = vmatprep.subr.bf16.mxu0 %v16611_v16  ;;  %v8653_v16 = vld [vmem:[#allocation6 + $0x1f20] sm:$0xff]  ;;  %v7838_v44 = vld [vmem:[#allocation6 + $0x5a8] sm:$0xff] }
 0x6ed   :  { %v17536_v57 = vcombine.low %v8653_v16, %v8661_v50  ;;  %v7846_v26 = vld [vmem:[#allocation6 + $0x5e8] sm:$0xff] }
 0x6ee   :  { %14587 = vmatpush1.bf16.msra.mxu1 %v17376_v48  ;;  %v16786_v48 = vcombine.low %v7902_v45, %v7910_v6  ;;  %v7822_v34 = vld [vmem:[#allocation6 + $0x528] sm:$0xff] }
 0x6ef   :  { %14628 = vmatpush1.bf16.msra.mxu0 %v16610_v10  ;;  %14588 = vmatprep.subr.bf16.mxu1 %v17361_v60  ;;  %v17537_v10 = vcombine.high %v8653_v16, %v8661_v50  ;;  %v16771_v60 = vcombine.high %v7886_v19, %v7894_v29  ;;  %v7830_v45 = vld [vmem:[#allocation6 + $0x568] sm:$0xff]  ;;  %v8581_v16 = vld [vmem:[#allocation6 + $0x1ce0] sm:$0xff] }
 0x6f0   :  { %14629 = vmatprep.subr.bf16.mxu0 %v16595_v61  ;;  %v8637_v61 = vld [vmem:[#allocation6 + $0x1ea0] sm:$0xff]  ;;  %v7806_v50 = vld [vmem:[#allocation6 + $0x4a8] sm:$0xff] }
 0x6f1   :  { %v17520_v11 = vcombine.low %v8637_v61, %v8645_v17 }
 0x6f2   :  { %14589 = vmatpush1.bf16.msra.mxu1 %v17360_v14  ;;  %v16770_v14 = vcombine.low %v7886_v19, %v7894_v29  ;;  %v7814_v19 = vld [vmem:[#allocation6 + $0x4e8] sm:$0xff] }
 0x6f3   :  { %14630 = vmatpush1.bf16.msra.mxu0 %v16594_v9  ;;  %14590 = vmatprep.subr.bf16.mxu1 %v17345_v13  ;;  %v17521_v9 = vcombine.high %v8637_v61, %v8645_v17  ;;  %v16755_v13 = vcombine.high %v7870_v7, %v7878_v28  ;;  %v8565_v61 = vld [vmem:[#allocation6 + $0x1c60] sm:$0xff]  ;;  %v7790_v17 = vld [vmem:[#allocation6 + $0x428] sm:$0xff] }
 0x6f4   :  { %14631 = vmatprep.subr.bf16.mxu0 %v16579_v23  ;;  %v8621_v23 = vld [vmem:[#allocation6 + $0x1e20] sm:$0xff] }
 0x6f5   :  { %v17504_v52 = vcombine.low %v8621_v23, %v8629_v43 }
 0x6f6   :  { %14591 = vmatpush1.bf16.msra.mxu1 %v17344_v49  ;;  %v16754_v49 = vcombine.low %v7870_v7, %v7878_v28  ;;  %v7798_v7 = vld [vmem:[#allocation6 + $0x468] sm:$0xff] }
 0x6f7   :  { %14632 = vmatpush1.bf16.msra.mxu0 %v16578_v4  ;;  %14592 = vmatprep.subr.bf16.mxu1 %v17329_v51  ;;  %v17505_v4 = vcombine.high %v8621_v23, %v8629_v43  ;;  %v16739_v51 = vcombine.high %v7854_v21, %v7862_v31  ;;  %v8038_v23 = vld [vmem:[#allocation6 + $0xbe8] sm:$0xff] }
 0x6f8   :  { %14633 = vmatprep.subr.bf16.mxu0 %v16563_v24  ;;  %v8605_v24 = vld [vmem:[#allocation6 + $0x1da0] sm:$0xff]  ;;  %v8286_v43 = vld [vmem:[#allocation6 + $0x13a8] sm:$0xff] }
 0x6f9   :  { %v17488_v6 = vcombine.low %v8605_v24, %v8613_v63 }
 0x6fa   :  { %14593 = vmatpush1.bf16.msra.mxu1 %v17328_v53  ;;  %v16738_v53 = vcombine.low %v7854_v21, %v7862_v31  ;;  %v8294_v21 = vld [vmem:[#allocation6 + $0x13e8] sm:$0xff] }
 0x6fb   :  { %14634 = vmatpush1.bf16.msra.mxu0 %v16562_v56  ;;  %14594 = vmatprep.subr.bf16.mxu1 %v17313_v3  ;;  %v17489_v56 = vcombine.high %v8605_v24, %v8613_v63  ;;  %v16723_v3 = vcombine.high %v7838_v44, %v7846_v26  ;;  %v8022_v24 = vld [vmem:[#allocation6 + $0xb68] sm:$0xff] }
 0x6fc   :  { %14635 = vmatprep.subr.bf16.mxu0 %v16547_v47  ;;  %v8589_v47 = vld [vmem:[#allocation6 + $0x1d20] sm:$0xff] }
 0x6fd   :  { %v17472_v29 = vcombine.low %v8589_v47, %v8597_v37 }
 0x6fe   :  { %14595 = vmatpush1.bf16.msra.mxu1 %v17312_v8  ;;  %v16722_v8 = vcombine.low %v7838_v44, %v7846_v26  ;;  %v8270_v44 = vld [vmem:[#allocation6 + $0x1328] sm:$0xff] }
 0x6ff   :  { %14636 = vmatpush1.bf16.msra.mxu0 %v16546_v25  ;;  %14596 = vmatprep.subr.bf16.mxu1 %v17553_v59  ;;  %v17473_v25 = vcombine.high %v8589_v47, %v8597_v37  ;;  %v16707_v59 = vcombine.high %v7822_v34, %v7830_v45  ;;  %v8278_v26 = vld [vmem:[#allocation6 + $0x1368] sm:$0xff] }
 0x700   :  { %14637 = vmatprep.subr.bf16.mxu0 %v16787_v54  ;;  %v8573_v54 = vld [vmem:[#allocation6 + $0x1ca0] sm:$0xff]  ;;  %v17155_v37 = vcombine.high %v8270_v44, %v8278_v26 }
 0x701   :  { %v17456_v28 = vcombine.low %v8573_v54, %v8581_v16 }
 0x702   :  { %14597 = vmatpush2.bf16.msra.mxu1 %v17552_v30  ;;  %v16706_v30 = vcombine.low %v7822_v34, %v7830_v45  ;;  %v8254_v34 = vld [vmem:[#allocation6 + $0x12a8] sm:$0xff] }
 0x703   :  { %14638 = vmatpush2.bf16.msra.mxu0 %v16786_v48  ;;  %14598 = vmatprep.subr.bf16.mxu1 %v17537_v10  ;;  %v17457_v48 = vcombine.high %v8573_v54, %v8581_v16  ;;  %v16691_v10 = vcombine.high %v7806_v50, %v7814_v19  ;;  %v8262_v45 = vld [vmem:[#allocation6 + $0x12e8] sm:$0xff]  ;;  %v17154_v54 = vcombine.low %v8270_v44, %v8278_v26 }
 0x704   :  { %14639 = vmatprep.subr.bf16.mxu0 %v16771_v60  ;;  %v8557_v60 = vld [vmem:[#allocation6 + $0x1c20] sm:$0xff]  ;;  %v8206_v44 = vld [vmem:[#allocation6 + $0x1128] sm:$0xff] }
 0x705   :  { %v17440_v31 = vcombine.low %v8557_v60, %v8565_v61  ;;  %v8214_v26 = vld [vmem:[#allocation6 + $0x1168] sm:$0xff] }
 0x706   :  { %14599 = vmatpush2.bf16.msra.mxu1 %v17536_v57  ;;  %v16690_v57 = vcombine.low %v7806_v50, %v7814_v19 }
 0x707   :  { %14640 = vmatpush2.bf16.msra.mxu0 %v16770_v14  ;;  %14600 = vmatprep.subr.bf16.mxu1 %v17521_v9  ;;  %v17441_v14 = vcombine.high %v8557_v60, %v8565_v61  ;;  %v16675_v9 = vcombine.high %v7790_v17, %v7798_v7  ;;  %v8238_v60 = vld [vmem:[#allocation6 + $0x1228] sm:$0xff] }
 0x708   :  { %14641 = vmatprep.subr.bf16.mxu0 %v16755_v13  ;;  %v8030_v13 = vld [vmem:[#allocation6 + $0xba8] sm:$0xff] }
 0x709   :  { %v16914_v63 = vcombine.low %v8030_v13, %v8038_v23  ;;  %v8246_v61 = vld [vmem:[#allocation6 + $0x1268] sm:$0xff] }
 0x70a   :  { %14601 = vmatpush2.bf16.msra.mxu1 %v17520_v11  ;;  %v16674_v11 = vcombine.low %v7790_v17, %v7798_v7 }
 0x70b   :  { %14642 = vmatpush2.bf16.msra.mxu0 %v16754_v49  ;;  %14602 = vmatprep.subr.bf16.mxu1 %v17505_v4  ;;  %v16915_v49 = vcombine.high %v8030_v13, %v8038_v23  ;;  %v17171_v4 = vcombine.high %v8286_v43, %v8294_v21  ;;  %v17123_v13 = vcombine.high %v8238_v60, %v8246_v61  ;;  %v7966_v23 = vld [vmem:[#allocation6 + $0x9a8] sm:$0xff] }
 0x70c   :  { %14643 = vmatprep.subr.bf16.mxu0 %v16739_v51  ;;  %v8014_v51 = vld [vmem:[#allocation6 + $0xb28] sm:$0xff] }
 0x70e   :  { %14603 = vmatpush2.bf16.msra.mxu1 %v17504_v52  ;;  %v17170_v52 = vcombine.low %v8286_v43, %v8294_v21  ;;  %v7974_v43 = vld [vmem:[#allocation6 + $0x9e8] sm:$0xff] }
 0x70f   :  { %14644 = vmatpush2.bf16.msra.mxu0 %v16738_v53  ;;  %14604 = vmatprep.subr.bf16.mxu1 %v17489_v56  ;;  %v16899_v53 = vcombine.high %v8014_v51, %v8022_v24  ;;  %v7998_v56 = vld [vmem:[#allocation6 + $0xaa8] sm:$0xff] }
 0x710   :  { %14645 = vmatprep.subr.bf16.mxu0 %v16723_v3  ;;  %v8006_v3 = vld [vmem:[#allocation6 + $0xae8] sm:$0xff] }
 0x711   :  { %v16883_v16 = vcombine.high %v7998_v56, %v8006_v3  ;;  %v8222_v21 = vld [vmem:[#allocation6 + $0x11a8] sm:$0xff] }
 0x712   :  { %14605 = vmatpush2.bf16.msra.mxu1 %v17488_v6 }
 0x713   :  { %14646 = vmatpush2.bf16.msra.mxu0 %v16722_v8  ;;  %14606 = vmatprep.subr.bf16.mxu1 %v17473_v25  ;;  %v16898_v25 = vcombine.low %v8014_v51, %v8022_v24  ;;  %v7950_v24 = vld [vmem:[#allocation6 + $0x928] sm:$0xff] }
 0x714   :  { %14647 = vmatprep.subr.bf16.mxu0 %v16707_v59 }
 0x716   :  { %14607 = vmatpush2.bf16.msra.mxu1 %v17472_v29 }
 0x717   :  { %14648 = vmatpush2.bf16.msra.mxu0 %v16706_v30  ;;  %14608 = vmatprep.subr.bf16.mxu1 %v17457_v48  ;;  %v7982_v30 = vld [vmem:[#allocation6 + $0xa28] sm:$0xff] }
 0x718   :  { %14649 = vmatprep.subr.bf16.mxu0 %v16691_v10  ;;  %v7990_v48 = vld [vmem:[#allocation6 + $0xa68] sm:$0xff] }
 0x71a   :  { %14609 = vmatpush2.bf16.msra.mxu1 %v17456_v28  ;;  %v16882_v28 = vcombine.low %v7998_v56, %v8006_v3  ;;  %v17091_v3 = vcombine.high %v8206_v44, %v8214_v26 }
 0x71b   :  { %14650 = vmatpush2.bf16.msra.mxu0 %v16690_v57  ;;  %14610 = vmatprep.subr.bf16.mxu1 %v17441_v14  ;;  %v17138_v14 = vcombine.low %v8254_v34, %v8262_v45 }
 0x71c   :  { %14651 = vmatprep.subr.bf16.mxu0 %v16675_v9  ;;  %v16867_v9 = vcombine.high %v7982_v30, %v7990_v48 }
 0x71e   :  { %14611 = vmatpush2.bf16.msra.mxu1 %v17440_v31  ;;  %v8230_v31 = vld [vmem:[#allocation6 + $0x11e8] sm:$0xff] }
 0x71f   :  { %14652 = vmatpush2.bf16.msra.mxu0 %v16674_v11  ;;  %14662 = vmatprep.subr.bf16.mxu1 %v16915_v49  ;;  %v16866_v11 = vcombine.low %v7982_v30, %v7990_v48  ;;  %v17122_v49 = vcombine.low %v8238_v60, %v8246_v61  ;;  %v17107_v51 = vcombine.high %v8222_v21, %v8230_v31  ;;  %v8158_v60 = vld [vmem:[#allocation6 + $0xfa8] sm:$0xff] }
 0x720   :  { %14703 = vmatprep.subr.bf16.mxu0 %v17171_v4  ;;  %v16851_v4 = vcombine.high %v7966_v23, %v7974_v43  ;;  %v8166_v61 = vld [vmem:[#allocation6 + $0xfe8] sm:$0xff] }
 0x721   :  { %v14368_v47 = vpop.f32.mrf.mxu1  ;;  %14613 = vmatmul.mubr.bf16.vlgmr.msra.gmra.mxu1 %v18132_v5 }
 0x722   :  { %v14369_v6 = vadd.f32 %v14368_v47, %v18212_v12  ;;  %v14409_v8 = vpop.f32.mrf.mxu0  ;;  %14654 = vmatmul.mubr.bf16.vlgmr.msra.gmra.mxu0 %v18058_v22  ;;  %14663 = vmatpush1.bf16.msra.mxu1 %v16914_v63  ;;  %v17139_v12 = vcombine.high %v8254_v34, %v8262_v45  ;;  %v7958_v63 = vld [vmem:[#allocation6 + $0x968] sm:$0xff] }
 0x723   :  { %14694 = vmatprep.mubr.bf16.mxu1 %v18077_v41  ;;  %14704 = vmatpush1.bf16.msra.mxu0 %v17170_v52  ;;  %v14370_v59 = vpop.f32.mrf.mxu1  ;;  %v16850_v52 = vcombine.low %v7966_v23, %v7974_v43  ;;  %v16835_v56 = vcombine.high %v7950_v24, %v7958_v63  ;;  %v7934_v47 = vld [vmem:[#allocation6 + $0x8a8] sm:$0xff] }
 0x724   :  { %v18230_v50 = vadd.f32 %v14409_v8, %v14369_v6  ;;  %14735 = vmatprep.mubr.bf16.mxu0 %v18111_v35  ;;  %v14371_v19 = vadd.f32 %v14370_v59, %v18222_v58  ;;  %v14411_v29 = vpop.f32.mrf.mxu0  ;;  %14664 = vmatprep.subr.bf16.mxu1 %v16899_v53  ;;  %v17106_v53 = vcombine.low %v8222_v21, %v8230_v31  ;;  %v8190_v34 = vld [vmem:[#allocation6 + $0x10a8] sm:$0xff] }
 0x725   :  { %v14372_v10 = vpop.f32.mrf.mxu1  ;;  %14705 = vmatprep.subr.bf16.mxu0 %v17155_v37  ;;  %v7942_v37 = vld [vmem:[#allocation6 + $0x8e8] sm:$0xff]  ;;  %v16834_v6 = vcombine.low %v7950_v24, %v7958_v63  ;;  %v17090_v8 = vcombine.low %v8206_v44, %v8214_v26  ;;  %v17042_v31 = vcombine.low %v8158_v60, %v8166_v61 }
 0x726   :  { %v18234_v17 = vadd.f32 %v14411_v29, %v14371_v19  ;;  %v14413_v7 = vpop.f32.mrf.mxu0  ;;  %14665 = vmatpush1.bf16.msra.mxu1 %v16898_v25  ;;  %v8198_v45 = vld [vmem:[#allocation6 + $0x10e8] sm:$0xff]  ;;  %v16819_v25 = vcombine.high %v7934_v47, %v7942_v37 }
 0x727   :  { %14706 = vmatpush1.bf16.msra.mxu0 %v17154_v54  ;;  %v14373_v57 = vpop.f32.mrf.mxu1  ;;  %14666 = vmatprep.subr.bf16.mxu1 %v16883_v16  ;;  %v17075_v59 = vcombine.high %v8190_v34, %v8198_v45  ;;  %v7918_v54 = vld [vmem:[#allocation6 + $0x828] sm:$0xff]  ;;  %v17074_v30 = vcombine.low %v8190_v34, %v8198_v45 }
 0x728   :  { %v14414_v58 = vpop.f32.mrf.mxu0  ;;  %14707 = vmatprep.subr.bf16.mxu0 %v17139_v12  ;;  %v7926_v16 = vld [vmem:[#allocation6 + $0x868] sm:$0xff]  ;;  %v16818_v12 = vcombine.low %v7934_v47, %v7942_v37 }
 0x729   :  { %v8174_v19 = vld [vmem:[#allocation6 + $0x1028] sm:$0xff]  ;;  %v16803_v48 = vcombine.high %v7918_v54, %v7926_v16  ;;  %v16802_v57 = vcombine.low %v7918_v54, %v7926_v16 }
 0x72a   :  { %14667 = vmatpush1.bf16.msra.mxu1 %v16882_v28  ;;  %v8182_v29 = vld [vmem:[#allocation6 + $0x1068] sm:$0xff] }
 0x72b   :  { %14708 = vmatpush1.bf16.msra.mxu0 %v17138_v14  ;;  %14668 = vmatprep.subr.bf16.mxu1 %v16867_v9  ;;  %v17059_v10 = vcombine.high %v8174_v19, %v8182_v29  ;;  %v8414_v7 = vld [vmem:[#allocation6 + $0x17a8] sm:$0xff]  ;;  %v17058_v14 = vcombine.low %v8174_v19, %v8182_v29  ;;  %v17043_v9 = vcombine.high %v8158_v60, %v8166_v61 }
 0x72c   :  { %14709 = vmatprep.subr.bf16.mxu0 %v17123_v13  ;;  %v8422_v28 = vld [vmem:[#allocation6 + $0x17e8] sm:$0xff] }
 0x72d   :  { %v17299_v58 = vcombine.high %v8414_v7, %v8422_v28  ;;  %v8142_v13 = vld [vmem:[#allocation6 + $0xf28] sm:$0xff] }
 0x72e   :  { %14669 = vmatpush1.bf16.msra.mxu1 %v16866_v11  ;;  %v8150_v23 = vld [vmem:[#allocation6 + $0xf68] sm:$0xff]  ;;  %v17298_v11 = vcombine.low %v8414_v7, %v8422_v28 }
 0x72f   :  { %14710 = vmatpush1.bf16.msra.mxu0 %v17122_v49  ;;  %14670 = vmatprep.subr.bf16.mxu1 %v16851_v4  ;;  %v8398_v43 = vld [vmem:[#allocation6 + $0x1728] sm:$0xff]  ;;  %v17027_v49 = vcombine.high %v8142_v13, %v8150_v23  ;;  %v17026_v26 = vcombine.low %v8142_v13, %v8150_v23 }
 0x730   :  { %14711 = vmatprep.subr.bf16.mxu0 %v17107_v51  ;;  %v8406_v21 = vld [vmem:[#allocation6 + $0x1768] sm:$0xff] }
 0x731   :  { %v17283_v4 = vcombine.high %v8398_v43, %v8406_v21  ;;  %v8126_v51 = vld [vmem:[#allocation6 + $0xea8] sm:$0xff] }
 0x732   :  { %14671 = vmatpush1.bf16.msra.mxu1 %v16850_v52  ;;  %v8134_v24 = vld [vmem:[#allocation6 + $0xee8] sm:$0xff]  ;;  %v17282_v52 = vcombine.low %v8398_v43, %v8406_v21 }
 0x733   :  { %14712 = vmatpush1.bf16.msra.mxu0 %v17106_v53  ;;  %14672 = vmatprep.subr.bf16.mxu1 %v16835_v56  ;;  %v8382_v63 = vld [vmem:[#allocation6 + $0x16a8] sm:$0xff]  ;;  %v17011_v53 = vcombine.high %v8126_v51, %v8134_v24  ;;  %v17010_v45 = vcombine.low %v8126_v51, %v8134_v24 }
 0x734   :  { %14713 = vmatprep.subr.bf16.mxu0 %v17091_v3  ;;  %v8390_v44 = vld [vmem:[#allocation6 + $0x16e8] sm:$0xff] }
 0x735   :  { %v17267_v56 = vcombine.high %v8382_v63, %v8390_v44  ;;  %v8110_v3 = vld [vmem:[#allocation6 + $0xe28] sm:$0xff] }
 0x736   :  { %14673 = vmatpush1.bf16.msra.mxu1 %v16834_v6  ;;  %v8118_v47 = vld [vmem:[#allocation6 + $0xe68] sm:$0xff]  ;;  %v17266_v6 = vcombine.low %v8382_v63, %v8390_v44 }
 0x737   :  { %14714 = vmatpush1.bf16.msra.mxu0 %v17090_v8  ;;  %14674 = vmatprep.subr.bf16.mxu1 %v16819_v25  ;;  %v8366_v37 = vld [vmem:[#allocation6 + $0x1628] sm:$0xff]  ;;  %v16995_v8 = vcombine.high %v8110_v3, %v8118_v47  ;;  %v16994_v29 = vcombine.low %v8110_v3, %v8118_v47  ;;  %v7775_v47 = vld [vmem:[#allocation6 + $0x3b0] sm:$0xff] }
 0x738   :  { %14715 = vmatprep.subr.bf16.mxu0 %v17075_v59  ;;  %v8374_v34 = vld [vmem:[#allocation6 + $0x1668] sm:$0xff] }
 0x739   :  { %v17251_v25 = vcombine.high %v8366_v37, %v8374_v34  ;;  %v8094_v59 = vld [vmem:[#allocation6 + $0xda8] sm:$0xff] }
 0x73a   :  { %14675 = vmatpush1.bf16.msra.mxu1 %v16818_v12  ;;  %v8102_v54 = vld [vmem:[#allocation6 + $0xde8] sm:$0xff]  ;;  %v17250_v12 = vcombine.low %v8366_v37, %v8374_v34  ;;  %v7783_v37 = vld [vmem:[#allocation6 + $0x3f0] sm:$0xff] }
 0x73b   :  { %14716 = vmatpush1.bf16.msra.mxu0 %v17074_v30  ;;  %14676 = vmatprep.subr.bf16.mxu1 %v16803_v48  ;;  %v8350_v16 = vld [vmem:[#allocation6 + $0x15a8] sm:$0xff]  ;;  %v16979_v30 = vcombine.high %v8094_v59, %v8102_v54  ;;  %v16978_v28 = vcombine.low %v8094_v59, %v8102_v54 }
 0x73c   :  { %14717 = vmatprep.subr.bf16.mxu0 %v17059_v10  ;;  %v8358_v19 = vld [vmem:[#allocation6 + $0x15e8] sm:$0xff] }
 0x73d   :  { %v17235_v48 = vcombine.high %v8350_v16, %v8358_v19  ;;  %v8078_v10 = vld [vmem:[#allocation6 + $0xd28] sm:$0xff] }
 0x73e   :  { %14677 = vmatpush1.bf16.msra.mxu1 %v16802_v57  ;;  %v8086_v60 = vld [vmem:[#allocation6 + $0xd68] sm:$0xff]  ;;  %v17234_v57 = vcombine.low %v8350_v16, %v8358_v19  ;;  %v7759_v16 = vld [vmem:[#allocation6 + $0x330] sm:$0xff] }
 0x73f   :  { %14718 = vmatpush1.bf16.msra.mxu0 %v17058_v14  ;;  %14678 = vmatprep.subr.bf16.mxu1 %v17043_v9  ;;  %v8334_v61 = vld [vmem:[#allocation6 + $0x1528] sm:$0xff]  ;;  %v16963_v14 = vcombine.high %v8078_v10, %v8086_v60  ;;  %v16962_v21 = vcombine.low %v8078_v10, %v8086_v60  ;;  %v7767_v19 = vld [vmem:[#allocation6 + $0x370] sm:$0xff] }
 0x740   :  { %14719 = vmatprep.subr.bf16.mxu0 %v17299_v58  ;;  %v8342_v7 = vld [vmem:[#allocation6 + $0x1568] sm:$0xff]  ;;  %v16645_v60 = vcombine.high %v7759_v16, %v7767_v19 }
 0x741   :  { %v17219_v9 = vcombine.high %v8334_v61, %v8342_v7  ;;  %v8062_v58 = vld [vmem:[#allocation6 + $0xca8] sm:$0xff] }
 0x742   :  { %14679 = vmatpush2.bf16.msra.mxu1 %v17042_v31  ;;  %v8070_v13 = vld [vmem:[#allocation6 + $0xce8] sm:$0xff]  ;;  %v17218_v31 = vcombine.low %v8334_v61, %v8342_v7  ;;  %v7743_v61 = vld [vmem:[#allocation6 + $0x2b0] sm:$0xff] }
 0x743   :  { %14720 = vmatpush2.bf16.msra.mxu0 %v17298_v11  ;;  %14680 = vmatprep.subr.bf16.mxu1 %v17027_v49  ;;  %v8318_v23 = vld [vmem:[#allocation6 + $0x14a8] sm:$0xff]  ;;  %v16947_v11 = vcombine.high %v8062_v58, %v8070_v13  ;;  %v16946_v44 = vcombine.low %v8062_v58, %v8070_v13  ;;  %v7751_v7 = vld [vmem:[#allocation6 + $0x2f0] sm:$0xff]  ;;  %v16644_v58 = vcombine.low %v7759_v16, %v7767_v19 }
 0x744   :  { %14721 = vmatprep.subr.bf16.mxu0 %v17283_v4  ;;  %v8326_v43 = vld [vmem:[#allocation6 + $0x14e8] sm:$0xff]  ;;  %v7695_v16 = vld [vmem:[#allocation6 + $0x130] sm:$0xff] }
 0x745   :  { %v17203_v49 = vcombine.high %v8318_v23, %v8326_v43  ;;  %v8046_v4 = vld [vmem:[#allocation6 + $0xc28] sm:$0xff]  ;;  %v7703_v19 = vld [vmem:[#allocation6 + $0x170] sm:$0xff] }
 0x746   :  { %14681 = vmatpush2.bf16.msra.mxu1 %v17026_v26  ;;  %v8054_v51 = vld [vmem:[#allocation6 + $0xc68] sm:$0xff]  ;;  %v17202_v26 = vcombine.low %v8318_v23, %v8326_v43 }
 0x747   :  { %14722 = vmatpush2.bf16.msra.mxu0 %v17282_v52  ;;  %14682 = vmatprep.subr.bf16.mxu1 %v17011_v53  ;;  %v8302_v24 = vld [vmem:[#allocation6 + $0x1428] sm:$0xff]  ;;  %v16931_v52 = vcombine.high %v8046_v4, %v8054_v51  ;;  %v16930_v34 = vcombine.low %v8046_v4, %v8054_v51  ;;  %v7727_v4 = vld [vmem:[#allocation6 + $0x230] sm:$0xff] }
 0x748   :  { %14723 = vmatprep.subr.bf16.mxu0 %v17267_v56  ;;  %v8310_v63 = vld [vmem:[#allocation6 + $0x1468] sm:$0xff]  ;;  %v7735_v51 = vld [vmem:[#allocation6 + $0x270] sm:$0xff] }
 0x749   :  { %v17187_v53 = vcombine.high %v8302_v24, %v8310_v63  ;;  %v8542_v56 = vld [vmem:[#allocation6 + $0x1ba8] sm:$0xff] }
 0x74a   :  { %14683 = vmatpush2.bf16.msra.mxu1 %v17010_v45  ;;  %v8550_v3 = vld [vmem:[#allocation6 + $0x1be8] sm:$0xff]  ;;  %v17186_v45 = vcombine.low %v8302_v24, %v8310_v63 }
 0x74b   :  { %14724 = vmatpush2.bf16.msra.mxu0 %v17266_v6  ;;  %14684 = vmatprep.subr.bf16.mxu1 %v16995_v8  ;;  %v17427_v6 = vcombine.high %v8542_v56, %v8550_v3  ;;  %v16661_v8 = vcombine.high %v7775_v47, %v7783_v37  ;;  %v8534_v59 = vld [vmem:[#allocation6 + $0x1b68] sm:$0xff]  ;;  %v17426_v54 = vcombine.low %v8542_v56, %v8550_v3 }
 0x74c   :  { %14725 = vmatprep.subr.bf16.mxu0 %v17251_v25  ;;  %v8526_v25 = vld [vmem:[#allocation6 + $0x1b28] sm:$0xff]  ;;  %v16613_v56 = vcombine.high %v7727_v4, %v7735_v51 }
 0x74d   :  { %v8478_v3 = vld [vmem:[#allocation6 + $0x19a8] sm:$0xff] }
 0x74e   :  { %14685 = vmatpush2.bf16.msra.mxu1 %v16994_v29  ;;  %v16660_v29 = vcombine.low %v7775_v47, %v7783_v37  ;;  %v8486_v47 = vld [vmem:[#allocation6 + $0x19e8] sm:$0xff]  ;;  %v7711_v37 = vld [vmem:[#allocation6 + $0x1b0] sm:$0xff] }
 0x74f   :  { %14726 = vmatpush2.bf16.msra.mxu0 %v17250_v12  ;;  %14686 = vmatprep.subr.bf16.mxu1 %v16979_v30  ;;  %v17411_v12 = vcombine.high %v8526_v25, %v8534_v59  ;;  %v8510_v30 = vld [vmem:[#allocation6 + $0x1aa8] sm:$0xff] }
 0x750   :  { %14727 = vmatprep.subr.bf16.mxu0 %v17235_v48  ;;  %v8518_v48 = vld [vmem:[#allocation6 + $0x1ae8] sm:$0xff] }
 0x751   :  { %v17395_v13 = vcombine.high %v8510_v30, %v8518_v48 }
 0x752   :  { %14687 = vmatpush2.bf16.msra.mxu1 %v16978_v28 }
 0x753   :  { %14728 = vmatpush2.bf16.msra.mxu0 %v17234_v57  ;;  %14688 = vmatprep.subr.bf16.mxu1 %v16963_v14  ;;  %v17410_v14 = vcombine.low %v8526_v25, %v8534_v59  ;;  %v8462_v59 = vld [vmem:[#allocation6 + $0x1928] sm:$0xff] }
 0x754   :  { %14729 = vmatprep.subr.bf16.mxu0 %v17219_v9 }
 0x756   :  { %14689 = vmatpush2.bf16.msra.mxu1 %v16962_v21  ;;  %v16629_v21 = vcombine.high %v7743_v61, %v7751_v7 }
 0x757   :  { %14730 = vmatpush2.bf16.msra.mxu0 %v17218_v31  ;;  %14690 = vmatprep.subr.bf16.mxu1 %v16947_v11  ;;  %v8494_v31 = vld [vmem:[#allocation6 + $0x1a28] sm:$0xff] }
 0x758   :  { %14731 = vmatprep.subr.bf16.mxu0 %v17203_v49  ;;  %v8502_v11 = vld [vmem:[#allocation6 + $0x1a68] sm:$0xff] }
 0x75a   :  { %14691 = vmatpush2.bf16.msra.mxu1 %v16946_v44  ;;  %v17394_v44 = vcombine.low %v8510_v30, %v8518_v48  ;;  %v16581_v48 = vcombine.high %v7695_v16, %v7703_v19 }
 0x75b   :  { %14732 = vmatpush2.bf16.msra.mxu0 %v17202_v26  ;;  %14692 = vmatprep.subr.bf16.mxu1 %v16931_v52  ;;  %v17379_v52 = vcombine.high %v8494_v31, %v8502_v11 }
 0x75c   :  { %14733 = vmatprep.subr.bf16.mxu0 %v17187_v53 }
 0x75e   :  { %14693 = vmatpush2.bf16.msra.mxu1 %v16930_v34  ;;  %v7719_v34 = vld [vmem:[#allocation6 + $0x1f0] sm:$0xff] }
 0x75f   :  { %14734 = vmatpush2.bf16.msra.mxu0 %v17186_v45  ;;  %14744 = vmatprep.subr.bf16.mxu1 %v17427_v6  ;;  %v17378_v45 = vcombine.low %v8494_v31, %v8502_v11  ;;  %v16612_v6 = vcombine.low %v7727_v4, %v7735_v51  ;;  %v16597_v25 = vcombine.high %v7711_v37, %v7719_v34  ;;  %v8438_v31 = vld [vmem:[#allocation6 + $0x1868] sm:$0xff]  ;;  %v7663_v11 = vld [vmem:[#allocation6 + $0x30] sm:$0xff] }
 0x760   :  { %14785 = vmatprep.subr.bf16.mxu0 %v16661_v8  ;;  %v17363_v8 = vcombine.high %v8478_v3, %v8486_v47 }
 0x761   :  { %v14450_v10 = vpop.f32.mrf.mxu1  ;;  %14695 = vmatmul.mubr.bf16.vlgmr.msra.gmra.mxu1 %v18085_v2 }
 0x762   :  { %v18238_v28 = vadd.f32 %v14450_v10, %v18230_v50  ;;  %v18240_v57 = vpop.f32.mrf.mxu0  ;;  %14736 = vmatmul.mubr.bf16.vlgmr.msra.gmra.mxu0 %v18115_v20  ;;  %14745 = vmatpush1.bf16.msra.mxu1 %v17426_v54  ;;  %v8470_v54 = vld [vmem:[#allocation6 + $0x1968] sm:$0xff] }
 0x763   :  { %14776 = vmatprep.mubr.bf16.mxu1 %v18130_v18  ;;  %14786 = vmatpush1.bf16.msra.mxu0 %v16660_v29  ;;  %v14452_v9 = vpop.f32.mrf.mxu1  ;;  %v17362_v29 = vcombine.low %v8478_v3, %v8486_v47  ;;  %v17347_v30 = vcombine.high %v8462_v59, %v8470_v54  ;;  %v8446_v10 = vld [vmem:[#allocation6 + $0x18a8] sm:$0xff] }
 0x764   :  { %v15115_v23 = vmax.f32 %v18186_v39, %v18238_v28  ;;  %14817 = vmatprep.mubr.bf16.mxu0 %v18044_v1  ;;  %v18248_v50 = vadd.f32 %v14452_v9, %v18234_v17  ;;  %v18250_v43 = vpop.f32.mrf.mxu0  ;;  %14746 = vmatprep.subr.bf16.mxu1 %v17411_v12  ;;  %v16628_v17 = vcombine.low %v7743_v61, %v7751_v7  ;;  %v7679_v61 = vld [vmem:[#allocation6 + $0xb0] sm:$0xff] }
 0x765   :  { %v14454_v49 = vpop.f32.mrf.mxu1  ;;  %14787 = vmatprep.subr.bf16.mxu0 %v16645_v60  ;;  %v16596_v12 = vcombine.low %v7711_v37, %v7719_v34  ;;  %v8454_v60 = vld [vmem:[#allocation6 + $0x18e8] sm:$0xff]  ;;  %v7687_v7 = vld [vmem:[#allocation6 + $0xf0] sm:$0xff]  ;;  %v16580_v9 = vcombine.low %v7695_v16, %v7703_v19 }
 0x766   :  { %v15116_v24 = vmax.f32 %v18194_v32, %v18248_v50  ;;  %v14495_v63 = vpop.f32.mrf.mxu0  ;;  %14747 = vmatpush1.bf16.msra.mxu1 %v17410_v14  ;;  %v17346_v14 = vcombine.low %v8462_v59, %v8470_v54  ;;  %v7671_v49 = vld [vmem:[#allocation6 + $0x70] sm:$0xff]  ;;  %v17330_v4 = vcombine.low %v8446_v10, %v8454_v60  ;;  %v16564_v51 = vcombine.low %v7679_v61, %v7687_v7  ;;  %v8654_v34 = vld [vmem:[#allocation6 + $0x1f28] sm:$0xff] }
 0x767   :  { %14788 = vmatpush1.bf16.msra.mxu0 %v16644_v58  ;;  %v14455_v26 = vpop.f32.mrf.mxu1  ;;  %14748 = vmatprep.subr.bf16.mxu1 %v17395_v13  ;;  %v17331_v58 = vcombine.high %v8446_v10, %v8454_v60  ;;  %v16565_v13 = vcombine.high %v7679_v61, %v7687_v7  ;;  %v16548_v3 = vcombine.low %v7663_v11, %v7671_v49  ;;  %v8638_v19 = vld [vmem:[#allocation6 + $0x1ea8] sm:$0xff] }
 0x768   :  { %v14496_v53 = vpop.f32.mrf.mxu0  ;;  %14789 = vmatprep.subr.bf16.mxu0 %v16629_v21  ;;  %v8430_v21 = vld [vmem:[#allocation6 + $0x1828] sm:$0xff] }
 0x769   :  { %v17315_v63 = vcombine.high %v8430_v21, %v8438_v31  ;;  %v8670_v26 = vld [vmem:[#allocation6 + $0x1fa8] sm:$0xff]  ;;  %v7911_v53 = vld [vmem:[#allocation6 + $0x7f0] sm:$0xff] }
 0x76a   :  { %14749 = vmatpush1.bf16.msra.mxu1 %v17394_v44  ;;  %v16549_v44 = vcombine.high %v7663_v11, %v7671_v49  ;;  %v8622_v7 = vld [vmem:[#allocation6 + $0x1e28] sm:$0xff] }
 0x76b   :  { %14790 = vmatpush1.bf16.msra.mxu0 %v16628_v17  ;;  %14750 = vmatprep.subr.bf16.mxu1 %v17379_v52  ;;  %v8678_v17 = vld [vmem:[#allocation6 + $0x1fe8] sm:$0xff]  ;;  %v7903_v52 = vld [vmem:[#allocation6 + $0x7b0] sm:$0xff] }
 0x76c   :  { %14791 = vmatprep.subr.bf16.mxu0 %v16613_v56  ;;  %v17314_v56 = vcombine.low %v8430_v21, %v8438_v31  ;;  %v17555_v47 = vcombine.high %v8670_v26, %v8678_v17  ;;  %v16789_v37 = vcombine.high %v7903_v52, %v7911_v53  ;;  %v16788_v59 = vcombine.low %v7903_v52, %v7911_v53  ;;  %v8606_v49 = vld [vmem:[#allocation6 + $0x1da8] sm:$0xff] }
 0x76d   :  { %v8590_v53 = vld [vmem:[#allocation6 + $0x1d28] sm:$0xff] }
 0x76e   :  { %14751 = vmatpush1.bf16.msra.mxu1 %v17378_v45  ;;  %v8662_v45 = vld [vmem:[#allocation6 + $0x1f68] sm:$0xff] }
 0x76f   :  { %14792 = vmatpush1.bf16.msra.mxu0 %v16612_v6  ;;  %14752 = vmatprep.subr.bf16.mxu1 %v17363_v8  ;;  %v7887_v6 = vld [vmem:[#allocation6 + $0x730] sm:$0xff]  ;;  %v17539_v54 = vcombine.high %v8654_v34, %v8662_v45 }
 0x770   :  { %14793 = vmatprep.subr.bf16.mxu0 %v16597_v25  ;;  %v7895_v8 = vld [vmem:[#allocation6 + $0x770] sm:$0xff]  ;;  %v17554_v25 = vcombine.low %v8670_v26, %v8678_v17 }
 0x771   :  { %v16773_v16 = vcombine.high %v7887_v6, %v7895_v8  ;;  %v16772_v10 = vcombine.low %v7887_v6, %v7895_v8  ;;  %v8574_v8 = vld [vmem:[#allocation6 + $0x1ca8] sm:$0xff] }
 0x772   :  { %14753 = vmatpush1.bf16.msra.mxu1 %v17362_v29  ;;  %v8646_v29 = vld [vmem:[#allocation6 + $0x1ee8] sm:$0xff] }
 0x773   :  { %14794 = vmatpush1.bf16.msra.mxu0 %v16596_v12  ;;  %14754 = vmatprep.subr.bf16.mxu1 %v17347_v30  ;;  %v7871_v12 = vld [vmem:[#allocation6 + $0x6b0] sm:$0xff]  ;;  %v17523_v60 = vcombine.high %v8638_v19, %v8646_v29 }
 0x774   :  { %14795 = vmatprep.subr.bf16.mxu0 %v16581_v48  ;;  %v7879_v30 = vld [vmem:[#allocation6 + $0x6f0] sm:$0xff]  ;;  %v17538_v48 = vcombine.low %v8654_v34, %v8662_v45 }
 0x775   :  { %v16757_v61 = vcombine.high %v7871_v12, %v7879_v30  ;;  %v16756_v21 = vcombine.low %v7871_v12, %v7879_v30  ;;  %v8558_v30 = vld [vmem:[#allocation6 + $0x1c28] sm:$0xff] }
 0x776   :  { %14755 = vmatpush1.bf16.msra.mxu1 %v17346_v14  ;;  %v8630_v14 = vld [vmem:[#allocation6 + $0x1e68] sm:$0xff] }
 0x777   :  { %14796 = vmatpush1.bf16.msra.mxu0 %v16580_v9  ;;  %14756 = vmatprep.subr.bf16.mxu1 %v17331_v58  ;;  %v7855_v9 = vld [vmem:[#allocation6 + $0x630] sm:$0xff]  ;;  %v17507_v31 = vcombine.high %v8622_v7, %v8630_v14 }
 0x778   :  { %14797 = vmatprep.subr.bf16.mxu0 %v16565_v13  ;;  %v7863_v58 = vld [vmem:[#allocation6 + $0x670] sm:$0xff]  ;;  %v17522_v13 = vcombine.low %v8638_v19, %v8646_v29 }
 0x779   :  { %v16741_v11 = vcombine.high %v7855_v9, %v7863_v58  ;;  %v16740_v26 = vcombine.low %v7855_v9, %v7863_v58  ;;  %v8031_v58 = vld [vmem:[#allocation6 + $0xbb0] sm:$0xff] }
 0x77a   :  { %14757 = vmatpush1.bf16.msra.mxu1 %v17330_v4  ;;  %v8614_v4 = vld [vmem:[#allocation6 + $0x1de8] sm:$0xff] }
 0x77b   :  { %14798 = vmatpush1.bf16.msra.mxu0 %v16564_v51  ;;  %14758 = vmatprep.subr.bf16.mxu1 %v17315_v63  ;;  %v7839_v51 = vld [vmem:[#allocation6 + $0x5b0] sm:$0xff]  ;;  %v17491_v17 = vcombine.high %v8606_v49, %v8614_v4 }
 0x77c   :  { %14799 = vmatprep.subr.bf16.mxu0 %v16549_v44  ;;  %v7847_v63 = vld [vmem:[#allocation6 + $0x5f0] sm:$0xff]  ;;  %v17506_v44 = vcombine.low %v8622_v7, %v8630_v14 }
 0x77d   :  { %v16725_v52 = vcombine.high %v7839_v51, %v7847_v63  ;;  %v16724_v34 = vcombine.low %v7839_v51, %v7847_v63  ;;  %v8015_v63 = vld [vmem:[#allocation6 + $0xb30] sm:$0xff] }
 0x77e   :  { %14759 = vmatpush1.bf16.msra.mxu1 %v17314_v56  ;;  %v8598_v56 = vld [vmem:[#allocation6 + $0x1d68] sm:$0xff] }
 0x77f   :  { %14800 = vmatpush1.bf16.msra.mxu0 %v16548_v3  ;;  %14760 = vmatprep.subr.bf16.mxu1 %v17555_v47  ;;  %v7823_v3 = vld [vmem:[#allocation6 + $0x530] sm:$0xff]  ;;  %v17475_v45 = vcombine.high %v8590_v53, %v8598_v56 }
 0x780   :  { %14801 = vmatprep.subr.bf16.mxu0 %v16789_v37  ;;  %v7831_v47 = vld [vmem:[#allocation6 + $0x570] sm:$0xff]  ;;  %v17490_v37 = vcombine.low %v8606_v49, %v8614_v4 }
 0x781   :  { %v16709_v6 = vcombine.high %v7823_v3, %v7831_v47  ;;  %v16708_v19 = vcombine.low %v7823_v3, %v7831_v47  ;;  %v7999_v3 = vld [vmem:[#allocation6 + $0xab0] sm:$0xff] }
 0x782   :  { %14761 = vmatpush2.bf16.msra.mxu1 %v17554_v25  ;;  %v8582_v25 = vld [vmem:[#allocation6 + $0x1ce8] sm:$0xff]  ;;  %v8007_v47 = vld [vmem:[#allocation6 + $0xaf0] sm:$0xff] }
 0x783   :  { %14802 = vmatpush2.bf16.msra.mxu0 %v16788_v59  ;;  %14762 = vmatprep.subr.bf16.mxu1 %v17539_v54  ;;  %v7807_v59 = vld [vmem:[#allocation6 + $0x4b0] sm:$0xff]  ;;  %v17459_v29 = vcombine.high %v8574_v8, %v8582_v25 }
 0x784   :  { %14803 = vmatprep.subr.bf16.mxu0 %v16773_v16  ;;  %v7815_v54 = vld [vmem:[#allocation6 + $0x4f0] sm:$0xff]  ;;  %v17474_v16 = vcombine.low %v8590_v53, %v8598_v56 }
 0x785   :  { %v16693_v12 = vcombine.high %v7807_v59, %v7815_v54  ;;  %v16692_v7 = vcombine.low %v7807_v59, %v7815_v54 }
 0x786   :  { %14763 = vmatpush2.bf16.msra.mxu1 %v17538_v48  ;;  %v8566_v48 = vld [vmem:[#allocation6 + $0x1c68] sm:$0xff] }
 0x787   :  { %14804 = vmatpush2.bf16.msra.mxu0 %v16772_v10  ;;  %14764 = vmatprep.subr.bf16.mxu1 %v17523_v60  ;;  %v7791_v10 = vld [vmem:[#allocation6 + $0x430] sm:$0xff]  ;;  %v17443_v14 = vcombine.high %v8558_v30, %v8566_v48 }
 0x788   :  { %14805 = vmatprep.subr.bf16.mxu0 %v16757_v61  ;;  %v7799_v60 = vld [vmem:[#allocation6 + $0x470] sm:$0xff]  ;;  %v17458_v61 = vcombine.low %v8574_v8, %v8582_v25 }
 0x789   :  { %v16677_v9 = vcombine.high %v7791_v10, %v7799_v60  ;;  %v16676_v49 = vcombine.low %v7791_v10, %v7799_v60  ;;  %v7991_v10 = vld [vmem:[#allocation6 + $0xa70] sm:$0xff] }
 0x78a   :  { %14765 = vmatpush2.bf16.msra.mxu1 %v17522_v13  ;;  %v8039_v13 = vld [vmem:[#allocation6 + $0xbf0] sm:$0xff] }
 0x78b   :  { %14806 = vmatpush2.bf16.msra.mxu0 %v16756_v21  ;;  %14766 = vmatprep.subr.bf16.mxu1 %v17507_v31  ;;  %v8287_v21 = vld [vmem:[#allocation6 + $0x13b0] sm:$0xff]  ;;  %v16917_v4 = vcombine.high %v8031_v58, %v8039_v13 }
 0x78c   :  { %14807 = vmatprep.subr.bf16.mxu0 %v16741_v11  ;;  %v8295_v31 = vld [vmem:[#allocation6 + $0x13f0] sm:$0xff]  ;;  %v17442_v11 = vcombine.low %v8558_v30, %v8566_v48 }
 0x78d   :  { %v17173_v51 = vcombine.high %v8287_v21, %v8295_v31  ;;  %v17172_v53 = vcombine.low %v8287_v21, %v8295_v31  ;;  %v7983_v48 = vld [vmem:[#allocation6 + $0xa30] sm:$0xff] }
 0x78e   :  { %14767 = vmatpush2.bf16.msra.mxu1 %v17506_v44  ;;  %v8023_v44 = vld [vmem:[#allocation6 + $0xb70] sm:$0xff]  ;;  %v16869_v31 = vcombine.high %v7983_v48, %v7991_v10 }
 0x78f   :  { %14808 = vmatpush2.bf16.msra.mxu0 %v16740_v26  ;;  %14768 = vmatprep.subr.bf16.mxu1 %v17491_v17  ;;  %v16916_v26 = vcombine.low %v8031_v58, %v8039_v13  ;;  %v8271_v17 = vld [vmem:[#allocation6 + $0x1330] sm:$0xff]  ;;  %v16901_v56 = vcombine.high %v8015_v63, %v8023_v44  ;;  %v16900_v59 = vcombine.low %v8015_v63, %v8023_v44 }
 0x790   :  { %14809 = vmatprep.subr.bf16.mxu0 %v16725_v52  ;;  %v8279_v52 = vld [vmem:[#allocation6 + $0x1370] sm:$0xff]  ;;  %v16884_v58 = vcombine.low %v7999_v3, %v8007_v47  ;;  %v16868_v44 = vcombine.low %v7983_v48, %v7991_v10 }
 0x791   :  { %v8231_v63 = vld [vmem:[#allocation6 + $0x11f0] sm:$0xff] }
 0x792   :  { %14769 = vmatpush2.bf16.msra.mxu1 %v17490_v37  ;;  %v7927_v48 = vld [vmem:[#allocation6 + $0x870] sm:$0xff] }
 0x793   :  { %14810 = vmatpush2.bf16.msra.mxu0 %v16724_v34  ;;  %14770 = vmatprep.subr.bf16.mxu1 %v17475_v45  ;;  %v17157_v34 = vcombine.high %v8271_v17, %v8279_v52  ;;  %v8255_v45 = vld [vmem:[#allocation6 + $0x12b0] sm:$0xff] }
 0x794   :  { %14811 = vmatprep.subr.bf16.mxu0 %v16709_v6  ;;  %v8263_v6 = vld [vmem:[#allocation6 + $0x12f0] sm:$0xff] }
 0x795   :  { %v17140_v21 = vcombine.low %v8255_v45, %v8263_v6  ;;  %v8175_v10 = vld [vmem:[#allocation6 + $0x1030] sm:$0xff] }
 0x796   :  { %14771 = vmatpush2.bf16.msra.mxu1 %v17474_v16  ;;  %v17156_v16 = vcombine.low %v8271_v17, %v8279_v52 }
 0x797   :  { %14812 = vmatpush2.bf16.msra.mxu0 %v16708_v19  ;;  %14772 = vmatprep.subr.bf16.mxu1 %v17459_v29  ;;  %v16885_v19 = vcombine.high %v7999_v3, %v8007_v47  ;;  %v8207_v3 = vld [vmem:[#allocation6 + $0x1130] sm:$0xff] }
 0x798   :  { %14813 = vmatprep.subr.bf16.mxu0 %v16693_v12  ;;  %v8215_v47 = vld [vmem:[#allocation6 + $0x1170] sm:$0xff] }
 0x79a   :  { %14773 = vmatpush2.bf16.msra.mxu1 %v17458_v61  ;;  %v8239_v61 = vld [vmem:[#allocation6 + $0x1230] sm:$0xff] }
 0x79b   :  { %14814 = vmatpush2.bf16.msra.mxu0 %v16692_v7  ;;  %14774 = vmatprep.subr.bf16.mxu1 %v17443_v14  ;;  %v8247_v7 = vld [vmem:[#allocation6 + $0x1270] sm:$0xff] }
 0x79c   :  { %14815 = vmatprep.subr.bf16.mxu0 %v16677_v9 }
 0x79e   :  { %14775 = vmatpush2.bf16.msra.mxu1 %v17442_v11  ;;  %v17125_v11 = vcombine.high %v8239_v61, %v8247_v7 }
 0x79f   :  { %14816 = vmatpush2.bf16.msra.mxu0 %v16676_v49  ;;  %14826 = vmatprep.subr.bf16.mxu1 %v16917_v4  ;;  %v7967_v49 = vld [vmem:[#allocation6 + $0x9b0] sm:$0xff] }
 0x7a0   :  { %14867 = vmatprep.subr.bf16.mxu0 %v17173_v51  ;;  %v7975_v4 = vld [vmem:[#allocation6 + $0x9f0] sm:$0xff] }
 0x7a1   :  { %v14532_v37 = vpop.f32.mrf.mxu1  ;;  %14777 = vmatmul.mubr.bf16.vlgmr.msra.gmra.mxu1 %v18132_v5  ;;  %v8223_v51 = vld [vmem:[#allocation6 + $0x11b0] sm:$0xff]  ;;  %v16853_v17 = vcombine.high %v7967_v49, %v7975_v4 }
 0x7a2   :  { %v14533_v8 = vadd.f32 %v14532_v37, %v18240_v57  ;;  %v14573_v25 = vpop.f32.mrf.mxu0  ;;  %14818 = vmatmul.mubr.bf16.vlgmr.msra.gmra.mxu0 %v18058_v22  ;;  %14827 = vmatpush1.bf16.msra.mxu1 %v16916_v26  ;;  %v17141_v57 = vcombine.high %v8255_v45, %v8263_v6  ;;  %v17124_v26 = vcombine.low %v8239_v61, %v8247_v7 }
 0x7a3   :  { %14858 = vmatprep.mubr.bf16.mxu1 %v18077_v41  ;;  %14868 = vmatpush1.bf16.msra.mxu0 %v17172_v53  ;;  %v14534_v54 = vpop.f32.mrf.mxu1  ;;  %v17109_v52 = vcombine.high %v8223_v51, %v8231_v63  ;;  %v7951_v53 = vld [vmem:[#allocation6 + $0x930] sm:$0xff]  ;;  %v16852_v37 = vcombine.low %v7967_v49, %v7975_v4  ;;  %v17093_v6 = vcombine.high %v8207_v3, %v8215_v47 }
 0x7a4   :  { %v18258_v29 = vadd.f32 %v14573_v25, %v14533_v8  ;;  %14899 = vmatprep.mubr.bf16.mxu0 %v18111_v35  ;;  %v14535_v12 = vadd.f32 %v14534_v54, %v18250_v43  ;;  %v14575_v30 = vpop.f32.mrf.mxu0  ;;  %14828 = vmatprep.subr.bf16.mxu1 %v16901_v56  ;;  %v7959_v56 = vld [vmem:[#allocation6 + $0x970] sm:$0xff] }
 0x7a5   :  { %v14536_v60 = vpop.f32.mrf.mxu1  ;;  %14869 = vmatprep.subr.bf16.mxu0 %v17157_v34  ;;  %v17108_v34 = vcombine.low %v8223_v51, %v8231_v63  ;;  %v16837_v45 = vcombine.high %v7951_v53, %v7959_v56  ;;  %v7935_v8 = vld [vmem:[#allocation6 + $0x8b0] sm:$0xff] }
 0x7a6   :  { %v18262_v14 = vadd.f32 %v14575_v30, %v14535_v12  ;;  %v14577_v9 = vpop.f32.mrf.mxu0  ;;  %14829 = vmatpush1.bf16.msra.mxu1 %v16900_v59  ;;  %v7943_v25 = vld [vmem:[#allocation6 + $0x8f0] sm:$0xff] }
 0x7a7   :  { %14870 = vmatpush1.bf16.msra.mxu0 %v17156_v16  ;;  %v14537_v13 = vpop.f32.mrf.mxu1  ;;  %14830 = vmatprep.subr.bf16.mxu1 %v16885_v19  ;;  %v8191_v59 = vld [vmem:[#allocation6 + $0x10b0] sm:$0xff]  ;;  %v16836_v16 = vcombine.low %v7951_v53, %v7959_v56  ;;  %v17092_v19 = vcombine.low %v8207_v3, %v8215_v47  ;;  %v16821_v12 = vcombine.high %v7935_v8, %v7943_v25 }
 0x7a8   :  { %v14578_v43 = vpop.f32.mrf.mxu0  ;;  %14871 = vmatprep.subr.bf16.mxu0 %v17141_v57  ;;  %v8199_v54 = vld [vmem:[#allocation6 + $0x10f0] sm:$0xff]  ;;  %v16820_v61 = vcombine.low %v7935_v8, %v7943_v25 }
 0x7a9   :  { %v17077_v30 = vcombine.high %v8191_v59, %v8199_v54  ;;  %v7919_v57 = vld [vmem:[#allocation6 + $0x830] sm:$0xff]  ;;  %v17076_v7 = vcombine.low %v8191_v59, %v8199_v54 }
 0x7aa   :  { %14831 = vmatpush1.bf16.msra.mxu1 %v16884_v58  ;;  %v8183_v60 = vld [vmem:[#allocation6 + $0x1070] sm:$0xff]  ;;  %v16805_v9 = vcombine.high %v7919_v57, %v7927_v48 }
 0x7ab   :  { %14872 = vmatpush1.bf16.msra.mxu0 %v17140_v21  ;;  %14832 = vmatprep.subr.bf16.mxu1 %v16869_v31  ;;  %v17061_v58 = vcombine.high %v8175_v10, %v8183_v60  ;;  %v8159_v13 = vld [vmem:[#allocation6 + $0xfb0] sm:$0xff]  ;;  %v17060_v49 = vcombine.low %v8175_v10, %v8183_v60 }
 0x7ac   :  { %14873 = vmatprep.subr.bf16.mxu0 %v17125_v11  ;;  %v8167_v21 = vld [vmem:[#allocation6 + $0xff0] sm:$0xff]  ;;  %v16804_v11 = vcombine.low %v7919_v57, %v7927_v48 }
 0x7ad   :  { %v8415_v31 = vld [vmem:[#allocation6 + $0x17b0] sm:$0xff]  ;;  %v17045_v4 = vcombine.high %v8159_v13, %v8167_v21 }
 0x7ae   :  { %14833 = vmatpush1.bf16.msra.mxu1 %v16868_v44  ;;  %v8423_v43 = vld [vmem:[#allocation6 + $0x17f0] sm:$0xff] }
 0x7af   :  { %14874 = vmatpush1.bf16.msra.mxu0 %v17124_v26  ;;  %14834 = vmatprep.subr.bf16.mxu1 %v16853_v17  ;;  %v17301_v51 = vcombine.high %v8415_v31, %v8423_v43  ;;  %v8143_v63 = vld [vmem:[#allocation6 + $0xf30] sm:$0xff]  ;;  %v17300_v53 = vcombine.low %v8415_v31, %v8423_v43 }
 0x7b0   :  { %14875 = vmatprep.subr.bf16.mxu0 %v17109_v52  ;;  %v8151_v44 = vld [vmem:[#allocation6 + $0xf70] sm:$0xff]  ;;  %v17044_v52 = vcombine.low %v8159_v13, %v8167_v21 }
 0x7b1   :  { %v8399_v26 = vld [vmem:[#allocation6 + $0x1730] sm:$0xff]  ;;  %v17029_v56 = vcombine.high %v8143_v63, %v8151_v44 }
 0x7b2   :  { %14835 = vmatpush1.bf16.msra.mxu1 %v16852_v37  ;;  %v8407_v17 = vld [vmem:[#allocation6 + $0x1770] sm:$0xff] }
 0x7b3   :  { %14876 = vmatpush1.bf16.msra.mxu0 %v17108_v34  ;;  %14836 = vmatprep.subr.bf16.mxu1 %v16837_v45  ;;  %v17285_v3 = vcombine.high %v8399_v26, %v8407_v17  ;;  %v8127_v47 = vld [vmem:[#allocation6 + $0xeb0] sm:$0xff]  ;;  %v17284_v8 = vcombine.low %v8399_v26, %v8407_v17 }
 0x7b4   :  { %14877 = vmatprep.subr.bf16.mxu0 %v17093_v6  ;;  %v8135_v37 = vld [vmem:[#allocation6 + $0xef0] sm:$0xff]  ;;  %v17028_v6 = vcombine.low %v8143_v63, %v8151_v44 }
 0x7b5   :  { %v8383_v34 = vld [vmem:[#allocation6 + $0x16b0] sm:$0xff]  ;;  %v17013_v25 = vcombine.high %v8127_v47, %v8135_v37 }
 0x7b6   :  { %14837 = vmatpush1.bf16.msra.mxu1 %v16836_v16  ;;  %v8391_v45 = vld [vmem:[#allocation6 + $0x16f0] sm:$0xff] }
 0x7b7   :  { %14878 = vmatpush1.bf16.msra.mxu0 %v17092_v19  ;;  %14838 = vmatprep.subr.bf16.mxu1 %v16821_v12  ;;  %v17269_v59 = vcombine.high %v8383_v34, %v8391_v45  ;;  %v8111_v54 = vld [vmem:[#allocation6 + $0xe30] sm:$0xff]  ;;  %v17268_v57 = vcombine.low %v8383_v34, %v8391_v45 }
 0x7b8   :  { %14879 = vmatprep.subr.bf16.mxu0 %v17077_v30  ;;  %v8119_v16 = vld [vmem:[#allocation6 + $0xe70] sm:$0xff]  ;;  %v17012_v30 = vcombine.low %v8127_v47, %v8135_v37 }
 0x7b9   :  { %v8367_v19 = vld [vmem:[#allocation6 + $0x1630] sm:$0xff]  ;;  %v16997_v48 = vcombine.high %v8111_v54, %v8119_v16 }
 0x7ba   :  { %14839 = vmatpush1.bf16.msra.mxu1 %v16820_v61  ;;  %v8375_v12 = vld [vmem:[#allocation6 + $0x1670] sm:$0xff] }
 0x7bb   :  { %14880 = vmatpush1.bf16.msra.mxu0 %v17076_v7  ;;  %14840 = vmatprep.subr.bf16.mxu1 %v16805_v9  ;;  %v17253_v10 = vcombine.high %v8367_v19, %v8375_v12  ;;  %v8095_v60 = vld [vmem:[#allocation6 + $0xdb0] sm:$0xff]  ;;  %v17252_v13 = vcombine.low %v8367_v19, %v8375_v12 }
 0x7bc   :  { %14881 = vmatprep.subr.bf16.mxu0 %v17061_v58  ;;  %v8103_v61 = vld [vmem:[#allocation6 + $0xdf0] sm:$0xff]  ;;  %v16996_v58 = vcombine.low %v8111_v54, %v8119_v16 }
 0x7bd   :  { %v8351_v7 = vld [vmem:[#allocation6 + $0x15b0] sm:$0xff]  ;;  %v16981_v21 = vcombine.high %v8095_v60, %v8103_v61 }
 0x7be   :  { %14841 = vmatpush1.bf16.msra.mxu1 %v16804_v11  ;;  %v8359_v9 = vld [vmem:[#allocation6 + $0x15f0] sm:$0xff] }
 0x7bf   :  { %14882 = vmatpush1.bf16.msra.mxu0 %v17060_v49  ;;  %14842 = vmatprep.subr.bf16.mxu1 %v17045_v4  ;;  %v17237_v31 = vcombine.high %v8351_v7, %v8359_v9  ;;  %v8079_v43 = vld [vmem:[#allocation6 + $0xd30] sm:$0xff]  ;;  %v17236_v63 = vcombine.low %v8351_v7, %v8359_v9 }
 0x7c0   :  { %14883 = vmatprep.subr.bf16.mxu0 %v17301_v51  ;;  %v8087_v11 = vld [vmem:[#allocation6 + $0xd70] sm:$0xff]  ;;  %v16980_v51 = vcombine.low %v8095_v60, %v8103_v61 }
 0x7c1   :  { %v8335_v49 = vld [vmem:[#allocation6 + $0x1530] sm:$0xff]  ;;  %v16965_v44 = vcombine.high %v8079_v43, %v8087_v11 }
 0x7c2   :  { %14843 = vmatpush2.bf16.msra.mxu1 %v17044_v52  ;;  %v8343_v4 = vld [vmem:[#allocation6 + $0x1570] sm:$0xff] }
 0x7c3   :  { %14884 = vmatpush2.bf16.msra.mxu0 %v17300_v53  ;;  %14844 = vmatprep.subr.bf16.mxu1 %v17029_v56  ;;  %v17221_v26 = vcombine.high %v8335_v49, %v8343_v4  ;;  %v8063_v17 = vld [vmem:[#allocation6 + $0xcb0] sm:$0xff]  ;;  %v17220_v47 = vcombine.low %v8335_v49, %v8343_v4 }
 0x7c4   :  { %14885 = vmatprep.subr.bf16.mxu0 %v17285_v3  ;;  %v8071_v52 = vld [vmem:[#allocation6 + $0xcf0] sm:$0xff]  ;;  %v16964_v3 = vcombine.low %v8079_v43, %v8087_v11 }
 0x7c5   :  { %v8319_v53 = vld [vmem:[#allocation6 + $0x14b0] sm:$0xff]  ;;  %v16949_v37 = vcombine.high %v8063_v17, %v8071_v52 }
 0x7c6   :  { %14845 = vmatpush2.bf16.msra.mxu1 %v17028_v6  ;;  %v8327_v56 = vld [vmem:[#allocation6 + $0x14f0] sm:$0xff] }
 0x7c7   :  { %14886 = vmatpush2.bf16.msra.mxu0 %v17284_v8  ;;  %14846 = vmatprep.subr.bf16.mxu1 %v17013_v25  ;;  %v17205_v34 = vcombine.high %v8319_v53, %v8327_v56  ;;  %v8047_v45 = vld [vmem:[#allocation6 + $0xc30] sm:$0xff]  ;;  %v17204_v54 = vcombine.low %v8319_v53, %v8327_v56 }
 0x7c8   :  { %14887 = vmatprep.subr.bf16.mxu0 %v17269_v59  ;;  %v8055_v6 = vld [vmem:[#allocation6 + $0xc70] sm:$0xff]  ;;  %v16948_v59 = vcombine.low %v8063_v17, %v8071_v52 }
 0x7c9   :  { %v8303_v8 = vld [vmem:[#allocation6 + $0x1430] sm:$0xff]  ;;  %v16933_v16 = vcombine.high %v8047_v45, %v8055_v6 }
 0x7ca   :  { %14847 = vmatpush2.bf16.msra.mxu1 %v17012_v30  ;;  %v8311_v25 = vld [vmem:[#allocation6 + $0x1470] sm:$0xff] }
 0x7cb   :  { %14888 = vmatpush2.bf16.msra.mxu0 %v17268_v57  ;;  %14848 = vmatprep.subr.bf16.mxu1 %v16997_v48  ;;  %v17189_v19 = vcombine.high %v8303_v8, %v8311_v25  ;;  %v8543_v12 = vld [vmem:[#allocation6 + $0x1bb0] sm:$0xff]  ;;  %v7776_v57 = vld [vmem:[#allocation6 + $0x3b8] sm:$0xff]  ;;  %v17188_v60 = vcombine.low %v8303_v8, %v8311_v25 }
 0x7cc   :  { %14889 = vmatprep.subr.bf16.mxu0 %v17253_v10  ;;  %v8551_v30 = vld [vmem:[#allocation6 + $0x1bf0] sm:$0xff]  ;;  %v7784_v48 = vld [vmem:[#allocation6 + $0x3f8] sm:$0xff]  ;;  %v16932_v10 = vcombine.low %v8047_v45, %v8055_v6 }
 0x7cd   :  { %v17429_v61 = vcombine.high %v8543_v12, %v8551_v30  ;;  %v16663_v7 = vcombine.high %v7776_v57, %v7784_v48  ;;  %v8527_v9 = vld [vmem:[#allocation6 + $0x1b30] sm:$0xff]  ;;  %v16662_v43 = vcombine.low %v7776_v57, %v7784_v48  ;;  %v7728_v25 = vld [vmem:[#allocation6 + $0x238] sm:$0xff] }
 0x7ce   :  { %14849 = vmatpush2.bf16.msra.mxu1 %v16996_v58  ;;  %v8535_v58 = vld [vmem:[#allocation6 + $0x1b70] sm:$0xff] }
 0x7cf   :  { %14890 = vmatpush2.bf16.msra.mxu0 %v17252_v13  ;;  %14850 = vmatprep.subr.bf16.mxu1 %v16981_v21  ;;  %v17428_v13 = vcombine.low %v8543_v12, %v8551_v30  ;;  %v7760_v21 = vld [vmem:[#allocation6 + $0x338] sm:$0xff]  ;;  %v17413_v11 = vcombine.high %v8527_v9, %v8535_v58  ;;  %v8511_v49 = vld [vmem:[#allocation6 + $0x1ab0] sm:$0xff]  ;;  %v17412_v53 = vcombine.low %v8527_v9, %v8535_v58 }
 0x7d0   :  { %14891 = vmatprep.subr.bf16.mxu0 %v17237_v31  ;;  %v7768_v31 = vld [vmem:[#allocation6 + $0x378] sm:$0xff]  ;;  %v8519_v4 = vld [vmem:[#allocation6 + $0x1af0] sm:$0xff] }
 0x7d1   :  { %v8495_v45 = vld [vmem:[#allocation6 + $0x1a30] sm:$0xff] }
 0x7d2   :  { %14851 = vmatpush2.bf16.msra.mxu1 %v16980_v51  ;;  %v8503_v6 = vld [vmem:[#allocation6 + $0x1a70] sm:$0xff] }
 0x7d3   :  { %14892 = vmatpush2.bf16.msra.mxu0 %v17236_v63  ;;  %14852 = vmatprep.subr.bf16.mxu1 %v16965_v44  ;;  %v16647_v63 = vcombine.high %v7760_v21, %v7768_v31  ;;  %v7744_v44 = vld [vmem:[#allocation6 + $0x2b8] sm:$0xff]  ;;  %v17381_v12 = vcombine.high %v8495_v45, %v8503_v6  ;;  %v8479_v57 = vld [vmem:[#allocation6 + $0x19b0] sm:$0xff] }
 0x7d4   :  { %14893 = vmatprep.subr.bf16.mxu0 %v17221_v26  ;;  %v7752_v26 = vld [vmem:[#allocation6 + $0x2f8] sm:$0xff]  ;;  %v8487_v48 = vld [vmem:[#allocation6 + $0x19f0] sm:$0xff] }
 0x7d5   :  { %v17365_v9 = vcombine.high %v8479_v57, %v8487_v48 }
 0x7d6   :  { %14853 = vmatpush2.bf16.msra.mxu1 %v16964_v3  ;;  %v16646_v3 = vcombine.low %v7760_v21, %v7768_v31  ;;  %v8471_v21 = vld [vmem:[#allocation6 + $0x1970] sm:$0xff]  ;;  %v7696_v31 = vld [vmem:[#allocation6 + $0x138] sm:$0xff] }
 0x7d7   :  { %14894 = vmatpush2.bf16.msra.mxu0 %v17220_v47  ;;  %14854 = vmatprep.subr.bf16.mxu1 %v16949_v37  ;;  %v17397_v47 = vcombine.high %v8511_v49, %v8519_v4 }
 0x7d8   :  { %14895 = vmatprep.subr.bf16.mxu0 %v17205_v34 }
 0x7da   :  { %14855 = vmatpush2.bf16.msra.mxu1 %v16948_v59  ;;  %v7736_v59 = vld [vmem:[#allocation6 + $0x278] sm:$0xff] }
 0x7db   :  { %14896 = vmatpush2.bf16.msra.mxu0 %v17204_v54  ;;  %14856 = vmatprep.subr.bf16.mxu1 %v16933_v16  ;;  %v17396_v16 = vcombine.low %v8511_v49, %v8519_v4  ;;  %v16615_v30 = vcombine.high %v7728_v25, %v7736_v59 }
 0x7dc   :  { %14897 = vmatprep.subr.bf16.mxu0 %v17189_v19 }
 0x7de   :  { %14857 = vmatpush2.bf16.msra.mxu1 %v16932_v10  ;;  %v7712_v10 = vld [vmem:[#allocation6 + $0x1b8] sm:$0xff] }
 0x7df   :  { %14898 = vmatpush2.bf16.msra.mxu0 %v17188_v60  ;;  %14908 = vmatprep.subr.bf16.mxu1 %v17429_v61  ;;  %v7720_v60 = vld [vmem:[#allocation6 + $0x1f8] sm:$0xff]  ;;  %v17380_v61 = vcombine.low %v8495_v45, %v8503_v6  ;;  %v8431_v45 = vld [vmem:[#allocation6 + $0x1830] sm:$0xff] }
 0x7e0   :  { %14949 = vmatprep.subr.bf16.mxu0 %v16663_v7  ;;  %v16614_v7 = vcombine.low %v7728_v25, %v7736_v59  ;;  %v16599_v58 = vcombine.high %v7712_v10, %v7720_v60  ;;  %v16598_v49 = vcombine.low %v7712_v10, %v7720_v60  ;;  %v8439_v6 = vld [vmem:[#allocation6 + $0x1870] sm:$0xff]  ;;  %v7672_v25 = vld [vmem:[#allocation6 + $0x78] sm:$0xff] }
 0x7e1   :  { %v14614_v51 = vpop.f32.mrf.mxu1  ;;  %14859 = vmatmul.mubr.bf16.vlgmr.msra.gmra.mxu1 %v18085_v2 }
 0x7e2   :  { %v18266_v17 = vadd.f32 %v14614_v51, %v18258_v29  ;;  %v18268_v52 = vpop.f32.mrf.mxu0  ;;  %14900 = vmatmul.mubr.bf16.vlgmr.msra.gmra.mxu0 %v18115_v20  ;;  %14909 = vmatpush1.bf16.msra.mxu1 %v17428_v13  ;;  %v16631_v29 = vcombine.high %v7744_v44, %v7752_v26  ;;  %v8463_v13 = vld [vmem:[#allocation6 + $0x1930] sm:$0xff] }
 0x7e3   :  { %14940 = vmatprep.mubr.bf16.mxu1 %v18130_v18  ;;  %14950 = vmatpush1.bf16.msra.mxu0 %v16662_v43  ;;  %v14616_v56 = vpop.f32.mrf.mxu1  ;;  %v7704_v43 = vld [vmem:[#allocation6 + $0x178] sm:$0xff]  ;;  %v17349_v4 = vcombine.high %v8463_v13, %v8471_v21 }
 0x7e4   :  { %14981 = vmatprep.mubr.bf16.mxu0 %v18044_v1  ;;  %v18274_v37 = vadd.f32 %v14616_v56, %v18262_v14  ;;  %v18276_v34 = vpop.f32.mrf.mxu0  ;;  %14910 = vmatprep.subr.bf16.mxu1 %v17413_v11  ;;  %v16630_v1 = vcombine.low %v7744_v44, %v7752_v26  ;;  %v17364_v11 = vcombine.low %v8479_v57, %v8487_v48  ;;  %v8455_v44 = vld [vmem:[#allocation6 + $0x18f0] sm:$0xff]  ;;  %v7680_v26 = vld [vmem:[#allocation6 + $0xb8] sm:$0xff] }
 0x7e5   :  { %v14618_v8 = vpop.f32.mrf.mxu1  ;;  %14951 = vmatprep.subr.bf16.mxu0 %v16647_v63  ;;  %v16583_v51 = vcombine.high %v7696_v31, %v7704_v43  ;;  %v8447_v63 = vld [vmem:[#allocation6 + $0x18b0] sm:$0xff]  ;;  %v17348_v56 = vcombine.low %v8463_v13, %v8471_v21  ;;  %v17316_v57 = vcombine.low %v8431_v45, %v8439_v6 }
 0x7e6   :  { %v14659_v54 = vpop.f32.mrf.mxu0  ;;  %14911 = vmatpush1.bf16.msra.mxu1 %v17412_v53  ;;  %v7688_v53 = vld [vmem:[#allocation6 + $0xf8] sm:$0xff]  ;;  %v17332_v59 = vcombine.low %v8447_v63, %v8455_v44 }
 0x7e7   :  { %14952 = vmatpush1.bf16.msra.mxu0 %v16646_v3  ;;  %v14619_v19 = vpop.f32.mrf.mxu1  ;;  %14912 = vmatprep.subr.bf16.mxu1 %v17397_v47  ;;  %v16582_v3 = vcombine.low %v7696_v31, %v7704_v43  ;;  %v17333_v47 = vcombine.high %v8447_v63, %v8455_v44  ;;  %v7664_v8 = vld [vmem:[#allocation6 + $0x38] sm:$0xff]  ;;  %v16566_v54 = vcombine.low %v7680_v26, %v7688_v53 }
 0x7e8   :  { %v14660_v14 = vpop.f32.mrf.mxu0  ;;  %14953 = vmatprep.subr.bf16.mxu0 %v16631_v29  ;;  %v16567_v29 = vcombine.high %v7680_v26, %v7688_v53  ;;  %v16551_v19 = vcombine.high %v7664_v8, %v7672_v25  ;;  %v16550_v48 = vcombine.low %v7664_v8, %v7672_v25 }
 0x7e9   :  { %v7904_v14 = vld [vmem:[#allocation6 + $0x7b8] sm:$0xff] }
 0x7ea   :  { %14913 = vmatpush1.bf16.msra.mxu1 %v17396_v16  ;;  %v17317_v16 = vcombine.high %v8431_v45, %v8439_v6 }
 0x7eb   :  { %14954 = vmatpush1.bf16.msra.mxu0 %v16630_v1  ;;  %14914 = vmatprep.subr.bf16.mxu1 %v17381_v12  ;;  %v8671_v1 = vld [vmem:[#allocation6 + $0x1fb0] sm:$0xff] }
 0x7ec   :  { %14955 = vmatprep.subr.bf16.mxu0 %v16615_v30  ;;  %v8679_v12 = vld [vmem:[#allocation6 + $0x1ff0] sm:$0xff]  ;;  %v7912_v30 = vld [vmem:[#allocation6 + $0x7f8] sm:$0xff] }
 0x7ed   :  { %v17557_v10 = vcombine.high %v8671_v1, %v8679_v12  ;;  %v16791_v60 = vcombine.high %v7904_v14, %v7912_v30  ;;  %v17556_v13 = vcombine.low %v8671_v1, %v8679_v12  ;;  %v16790_v21 = vcombine.low %v7904_v14, %v7912_v30 }
 0x7ee   :  { %14915 = vmatpush1.bf16.msra.mxu1 %v17380_v61  ;;  %v8655_v61 = vld [vmem:[#allocation6 + $0x1f30] sm:$0xff] }
 0x7ef   :  { %14956 = vmatpush1.bf16.msra.mxu0 %v16614_v7  ;;  %14916 = vmatprep.subr.bf16.mxu1 %v17365_v9  ;;  %v8663_v7 = vld [vmem:[#allocation6 + $0x1f70] sm:$0xff]  ;;  %v7888_v9 = vld [vmem:[#allocation6 + $0x738] sm:$0xff] }
 0x7f0   :  { %14957 = vmatprep.subr.bf16.mxu0 %v16599_v58  ;;  %v7896_v58 = vld [vmem:[#allocation6 + $0x778] sm:$0xff]  ;;  %v17541_v31 = vcombine.high %v8655_v61, %v8663_v7  ;;  %v17540_v63 = vcombine.low %v8655_v61, %v8663_v7 }
 0x7f1   :  { %v16775_v43 = vcombine.high %v7888_v9, %v7896_v58  ;;  %v16774_v44 = vcombine.low %v7888_v9, %v7896_v58 }
 0x7f2   :  { %14917 = vmatpush1.bf16.msra.mxu1 %v17364_v11  ;;  %v8639_v11 = vld [vmem:[#allocation6 + $0x1eb0] sm:$0xff] }
 0x7f3   :  { %14958 = vmatpush1.bf16.msra.mxu0 %v16598_v49  ;;  %14918 = vmatprep.subr.bf16.mxu1 %v17349_v4  ;;  %v8647_v49 = vld [vmem:[#allocation6 + $0x1ef0] sm:$0xff]  ;;  %v7872_v4 = vld [vmem:[#allocation6 + $0x6b8] sm:$0xff] }
 0x7f4   :  { %14959 = vmatprep.subr.bf16.mxu0 %v16583_v51  ;;  %v7880_v51 = vld [vmem:[#allocation6 + $0x6f8] sm:$0xff]  ;;  %v17525_v26 = vcombine.high %v8639_v11, %v8647_v49  ;;  %v17524_v45 = vcombine.low %v8639_v11, %v8647_v49 }
 0x7f5   :  { %v16759_v53 = vcombine.high %v7872_v4, %v7880_v51  ;;  %v16758_v6 = vcombine.low %v7872_v4, %v7880_v51 }
 0x7f6   :  { %14919 = vmatpush1.bf16.msra.mxu1 %v17348_v56  ;;  %v8623_v56 = vld [vmem:[#allocation6 + $0x1e30] sm:$0xff] }
 0x7f7   :  { %14960 = vmatpush1.bf16.msra.mxu0 %v16582_v3  ;;  %14920 = vmatprep.subr.bf16.mxu1 %v17333_v47  ;;  %v8631_v3 = vld [vmem:[#allocation6 + $0x1e70] sm:$0xff]  ;;  %v7856_v47 = vld [vmem:[#allocation6 + $0x638] sm:$0xff] }
 0x7f8   :  { %14961 = vmatprep.subr.bf16.mxu0 %v16567_v29  ;;  %v7864_v29 = vld [vmem:[#allocation6 + $0x678] sm:$0xff]  ;;  %v17509_v8 = vcombine.high %v8623_v56, %v8631_v3  ;;  %v17508_v1 = vcombine.low %v8623_v56, %v8631_v3 }
 0x7f9   :  { %v16743_v25 = vcombine.high %v7856_v47, %v7864_v29  ;;  %v16742_v12 = vcombine.low %v7856_v47, %v7864_v29 }
 0x7fa   :  { %14921 = vmatpush1.bf16.msra.mxu1 %v17332_v59  ;;  %v8607_v59 = vld [vmem:[#allocation6 + $0x1db0] sm:$0xff] }
 0x7fb   :  { %14962 = vmatpush1.bf16.msra.mxu0 %v16566_v54  ;;  %14922 = vmatprep.subr.bf16.mxu1 %v17317_v16  ;;  %v8615_v54 = vld [vmem:[#allocation6 + $0x1df0] sm:$0xff]  ;;  %v7840_v16 = vld [vmem:[#allocation6 + $0x5b8] sm:$0xff] }
 0x7fc   :  { %14963 = vmatprep.subr.bf16.mxu0 %v16551_v19  ;;  %v7848_v19 = vld [vmem:[#allocation6 + $0x5f8] sm:$0xff]  ;;  %v17493_v14 = vcombine.high %v8607_v59, %v8615_v54  ;;  %v17492_v61 = vcombine.low %v8607_v59, %v8615_v54 }
 0x7fd   :  { %v16727_v30 = vcombine.high %v7840_v16, %v7848_v19  ;;  %v16726_v7 = vcombine.low %v7840_v16, %v7848_v19 }
 0x7fe   :  { %14923 = vmatpush1.bf16.msra.mxu1 %v17316_v57  ;;  %v8591_v57 = vld [vmem:[#allocation6 + $0x1d30] sm:$0xff] }
 0x7ff   :  { %14964 = vmatpush1.bf16.msra.mxu0 %v16550_v48  ;;  %14924 = vmatprep.subr.bf16.mxu1 %v17557_v10  ;;  %v8599_v48 = vld [vmem:[#allocation6 + $0x1d70] sm:$0xff]  ;;  %v7824_v10 = vld [vmem:[#allocation6 + $0x538] sm:$0xff] }
 0x800   :  { %14965 = vmatprep.subr.bf16.mxu0 %v16791_v60  ;;  %v7832_v60 = vld [vmem:[#allocation6 + $0x578] sm:$0xff]  ;;  %v17477_v9 = vcombine.high %v8591_v57, %v8599_v48  ;;  %v17476_v11 = vcombine.low %v8591_v57, %v8599_v48 }
 0x801   :  { %v16711_v58 = vcombine.high %v7824_v10, %v7832_v60  ;;  %v16710_v49 = vcombine.low %v7824_v10, %v7832_v60  ;;  %v8280_v57 = vld [vmem:[#allocation6 + $0x1378] sm:$0xff] }
 0x802   :  { %14925 = vmatpush2.bf16.msra.mxu1 %v17556_v13  ;;  %v8575_v13 = vld [vmem:[#allocation6 + $0x1cb0] sm:$0xff]  ;;  %v8000_v60 = vld [vmem:[#allocation6 + $0xab8] sm:$0xff] }
 0x803   :  { %14966 = vmatpush2.bf16.msra.mxu0 %v16790_v21  ;;  %14926 = vmatprep.subr.bf16.mxu1 %v17541_v31  ;;  %v8583_v21 = vld [vmem:[#allocation6 + $0x1cf0] sm:$0xff]  ;;  %v7808_v31 = vld [vmem:[#allocation6 + $0x4b8] sm:$0xff] }
 0x804   :  { %14967 = vmatprep.subr.bf16.mxu0 %v16775_v43  ;;  %v7816_v43 = vld [vmem:[#allocation6 + $0x4f8] sm:$0xff]  ;;  %v17461_v4 = vcombine.high %v8575_v13, %v8583_v21  ;;  %v17460_v56 = vcombine.low %v8575_v13, %v8583_v21 }
 0x805   :  { %v16695_v51 = vcombine.high %v7808_v31, %v7816_v43  ;;  %v16694_v3 = vcombine.low %v7808_v31, %v7816_v43  ;;  %v8264_v13 = vld [vmem:[#allocation6 + $0x12f8] sm:$0xff] }
 0x806   :  { %14927 = vmatpush2.bf16.msra.mxu1 %v17540_v63  ;;  %v8559_v63 = vld [vmem:[#allocation6 + $0x1c30] sm:$0xff] }
 0x807   :  { %14968 = vmatpush2.bf16.msra.mxu0 %v16774_v44  ;;  %14928 = vmatprep.subr.bf16.mxu1 %v17525_v26  ;;  %v8567_v44 = vld [vmem:[#allocation6 + $0x1c70] sm:$0xff]  ;;  %v7792_v26 = vld [vmem:[#allocation6 + $0x438] sm:$0xff] }
 0x808   :  { %14969 = vmatprep.subr.bf16.mxu0 %v16759_v53  ;;  %v7800_v53 = vld [vmem:[#allocation6 + $0x478] sm:$0xff]  ;;  %v17445_v47 = vcombine.high %v8559_v63, %v8567_v44  ;;  %v17444_v59 = vcombine.low %v8559_v63, %v8567_v44 }
 0x809   :  { %v16679_v29 = vcombine.high %v7792_v26, %v7800_v53  ;;  %v16678_v54 = vcombine.low %v7792_v26, %v7800_v53  ;;  %v7984_v26 = vld [vmem:[#allocation6 + $0xa38] sm:$0xff] }
 0x80a   :  { %14929 = vmatpush2.bf16.msra.mxu1 %v17524_v45  ;;  %v8032_v45 = vld [vmem:[#allocation6 + $0xbb8] sm:$0xff] }
 0x80b   :  { %14970 = vmatpush2.bf16.msra.mxu0 %v16758_v6  ;;  %14930 = vmatprep.subr.bf16.mxu1 %v17509_v8  ;;  %v8040_v6 = vld [vmem:[#allocation6 + $0xbf8] sm:$0xff] }
 0x80c   :  { %14971 = vmatprep.subr.bf16.mxu0 %v16743_v25  ;;  %v8288_v8 = vld [vmem:[#allocation6 + $0x13b8] sm:$0xff]  ;;  %v16919_v16 = vcombine.high %v8032_v45, %v8040_v6 }
 0x80d   :  { %v8296_v25 = vld [vmem:[#allocation6 + $0x13f8] sm:$0xff] }
 0x80e   :  { %14931 = vmatpush2.bf16.msra.mxu1 %v17508_v1  ;;  %v17175_v19 = vcombine.high %v8288_v8, %v8296_v25  ;;  %v8016_v1 = vld [vmem:[#allocation6 + $0xb38] sm:$0xff]  ;;  %v17174_v48 = vcombine.low %v8288_v8, %v8296_v25 }
 0x80f   :  { %14972 = vmatpush2.bf16.msra.mxu0 %v16742_v12  ;;  %14932 = vmatprep.subr.bf16.mxu1 %v17493_v14  ;;  %v8024_v12 = vld [vmem:[#allocation6 + $0xb78] sm:$0xff]  ;;  %v16918_v14 = vcombine.low %v8032_v45, %v8040_v6 }
 0x810   :  { %14973 = vmatprep.subr.bf16.mxu0 %v16727_v30  ;;  %v8272_v30 = vld [vmem:[#allocation6 + $0x1338] sm:$0xff]  ;;  %v16903_v10 = vcombine.high %v8016_v1, %v8024_v12  ;;  %v16902_v43 = vcombine.low %v8016_v1, %v8024_v12 }
 0x811   :  { %v7992_v53 = vld [vmem:[#allocation6 + $0xa78] sm:$0xff] }
 0x812   :  { %14933 = vmatpush2.bf16.msra.mxu1 %v17492_v61  ;;  %v8008_v61 = vld [vmem:[#allocation6 + $0xaf8] sm:$0xff]  ;;  %v16871_v6 = vcombine.high %v7984_v26, %v7992_v53 }
 0x813   :  { %14974 = vmatpush2.bf16.msra.mxu0 %v16726_v7  ;;  %14934 = vmatprep.subr.bf16.mxu1 %v17477_v9  ;;  %v17159_v9 = vcombine.high %v8272_v30, %v8280_v57  ;;  %v7968_v25 = vld [vmem:[#allocation6 + $0x9b8] sm:$0xff] }
 0x814   :  { %14975 = vmatprep.subr.bf16.mxu0 %v16711_v58  ;;  %v8256_v58 = vld [vmem:[#allocation6 + $0x12b8] sm:$0xff] }
 0x816   :  { %14935 = vmatpush2.bf16.msra.mxu1 %v17476_v11 }
 0x817   :  { %14976 = vmatpush2.bf16.msra.mxu0 %v16710_v49  ;;  %14936 = vmatprep.subr.bf16.mxu1 %v17461_v4  ;;  %v17158_v49 = vcombine.low %v8272_v30, %v8280_v57  ;;  %v16887_v4 = vcombine.high %v8000_v60, %v8008_v61  ;;  %v7952_v30 = vld [vmem:[#allocation6 + $0x938] sm:$0xff] }
 0x818   :  { %14977 = vmatprep.subr.bf16.mxu0 %v16695_v51  ;;  %v7960_v57 = vld [vmem:[#allocation6 + $0x978] sm:$0xff] }
 0x81a   :  { %14937 = vmatpush2.bf16.msra.mxu1 %v17460_v56  ;;  %v8240_v56 = vld [vmem:[#allocation6 + $0x1238] sm:$0xff] }
 0x81b   :  { %14978 = vmatpush2.bf16.msra.mxu0 %v16694_v3  ;;  %14938 = vmatprep.subr.bf16.mxu1 %v17445_v47  ;;  %v8248_v3 = vld [vmem:[#allocation6 + $0x1278] sm:$0xff] }
 0x81c   :  { %14979 = vmatprep.subr.bf16.mxu0 %v16679_v29  ;;  %v16886_v29 = vcombine.low %v8000_v60, %v8008_v61  ;;  %v17127_v8 = vcombine.high %v8240_v56, %v8248_v3  ;;  %v17126_v1 = vcombine.low %v8240_v56, %v8248_v3 }
 0x81e   :  { %14939 = vmatpush2.bf16.msra.mxu1 %v17444_v59  ;;  %v7976_v59 = vld [vmem:[#allocation6 + $0x9f8] sm:$0xff] }
 0x81f   :  { %14980 = vmatpush2.bf16.msra.mxu0 %v16678_v54  ;;  %14990 = vmatprep.subr.bf16.mxu1 %v16919_v16  ;;  %v8224_v54 = vld [vmem:[#allocation6 + $0x11b8] sm:$0xff]  ;;  %v16855_v12 = vcombine.high %v7968_v25, %v7976_v59  ;;  %v16854_v60 = vcombine.low %v7968_v25, %v7976_v59 }
 0x820   :  { %15031 = vmatprep.subr.bf16.mxu0 %v17175_v19  ;;  %v8232_v16 = vld [vmem:[#allocation6 + $0x11f8] sm:$0xff]  ;;  %v16870_v19 = vcombine.low %v7984_v26, %v7992_v53 }
 0x821   :  { %v14696_v7 = vpop.f32.mrf.mxu1  ;;  %14941 = vmatmul.mubr.bf16.vlgmr.msra.gmra.mxu1 %v18132_v5  ;;  %v17110_v61 = vcombine.low %v8224_v54, %v8232_v16  ;;  %v8184_v26 = vld [vmem:[#allocation6 + $0x1078] sm:$0xff] }
 0x822   :  { %v14697_v21 = vadd.f32 %v14696_v7, %v18268_v52  ;;  %v14737_v31 = vpop.f32.mrf.mxu0  ;;  %14982 = vmatmul.mubr.bf16.vlgmr.msra.gmra.mxu0 %v18058_v22  ;;  %14991 = vmatpush1.bf16.msra.mxu1 %v16918_v14  ;;  %v17143_v52 = vcombine.high %v8256_v58, %v8264_v13  ;;  %v17111_v14 = vcombine.high %v8224_v54, %v8232_v16  ;;  %v8144_v59 = vld [vmem:[#allocation6 + $0xf38] sm:$0xff] }
 0x823   :  { %15022 = vmatprep.mubr.bf16.mxu1 %v18077_v41  ;;  %15032 = vmatpush1.bf16.msra.mxu0 %v17174_v48  ;;  %v14698_v11 = vpop.f32.mrf.mxu1  ;;  %v8208_v48 = vld [vmem:[#allocation6 + $0x1138] sm:$0xff]  ;;  %v16839_v7 = vcombine.high %v7952_v30, %v7960_v57 }
 0x824   :  { %v18282_v51 = vadd.f32 %v14737_v31, %v14697_v21  ;;  %15063 = vmatprep.mubr.bf16.mxu0 %v18111_v35  ;;  %v14699_v63 = vadd.f32 %v14698_v11, %v18276_v34  ;;  %v14739_v44 = vpop.f32.mrf.mxu0  ;;  %14992 = vmatprep.subr.bf16.mxu1 %v16903_v10  ;;  %v17142_v35 = vcombine.low %v8256_v58, %v8264_v13  ;;  %v8216_v10 = vld [vmem:[#allocation6 + $0x1178] sm:$0xff] }
 0x825   :  { %v14700_v22 = vpop.f32.mrf.mxu1  ;;  %15033 = vmatprep.subr.bf16.mxu0 %v17159_v9  ;;  %v17095_v9 = vcombine.high %v8208_v48, %v8216_v10  ;;  %v7936_v58 = vld [vmem:[#allocation6 + $0x8b8] sm:$0xff]  ;;  %v17094_v11 = vcombine.low %v8208_v48, %v8216_v10 }
 0x826   :  { %v18286_v41 = vadd.f32 %v14739_v44, %v14699_v63  ;;  %v14741_v47 = vpop.f32.mrf.mxu0  ;;  %14993 = vmatpush1.bf16.msra.mxu1 %v16902_v43  ;;  %v7944_v13 = vld [vmem:[#allocation6 + $0x8f8] sm:$0xff]  ;;  %v16838_v43 = vcombine.low %v7952_v30, %v7960_v57 }
 0x827   :  { %15034 = vmatpush1.bf16.msra.mxu0 %v17158_v49  ;;  %v14701_v45 = vpop.f32.mrf.mxu1  ;;  %14994 = vmatprep.subr.bf16.mxu1 %v16887_v4  ;;  %v8192_v21 = vld [vmem:[#allocation6 + $0x10b8] sm:$0xff]  ;;  %v16823_v49 = vcombine.high %v7936_v58, %v7944_v13  ;;  %v16822_v53 = vcombine.low %v7936_v58, %v7944_v13 }
 0x828   :  { %v14742_v34 = vpop.f32.mrf.mxu0  ;;  %15035 = vmatprep.subr.bf16.mxu0 %v17143_v52  ;;  %v8200_v31 = vld [vmem:[#allocation6 + $0x10f8] sm:$0xff] }
 0x829   :  { %v17079_v4 = vcombine.high %v8192_v21, %v8200_v31  ;;  %v7920_v63 = vld [vmem:[#allocation6 + $0x838] sm:$0xff]  ;;  %v17078_v22 = vcombine.low %v8192_v21, %v8200_v31 }
 0x82a   :  { %14995 = vmatpush1.bf16.msra.mxu1 %v16886_v29  ;;  %v7928_v44 = vld [vmem:[#allocation6 + $0x878] sm:$0xff] }
 0x82b   :  { %15036 = vmatpush1.bf16.msra.mxu0 %v17142_v35  ;;  %14996 = vmatprep.subr.bf16.mxu1 %v16871_v6  ;;  %v8176_v52 = vld [vmem:[#allocation6 + $0x1038] sm:$0xff]  ;;  %v16807_v56 = vcombine.high %v7920_v63, %v7928_v44  ;;  %v16806_v6 = vcombine.low %v7920_v63, %v7928_v44 }
 0x82c   :  { %15037 = vmatprep.subr.bf16.mxu0 %v17127_v8  ;;  %v17063_v3 = vcombine.high %v8176_v52, %v8184_v26  ;;  %v8160_v47 = vld [vmem:[#allocation6 + $0xfb8] sm:$0xff]  ;;  %v17062_v34 = vcombine.low %v8176_v52, %v8184_v26 }
 0x82d   :  { %v8168_v29 = vld [vmem:[#allocation6 + $0xff8] sm:$0xff] }
 0x82e   :  { %14997 = vmatpush1.bf16.msra.mxu1 %v16870_v19  ;;  %v8416_v45 = vld [vmem:[#allocation6 + $0x17b8] sm:$0xff]  ;;  %v17047_v8 = vcombine.high %v8160_v47, %v8168_v29 }
 0x82f   :  { %15038 = vmatpush1.bf16.msra.mxu0 %v17126_v1  ;;  %14998 = vmatprep.subr.bf16.mxu1 %v16855_v12  ;;  %v8424_v35 = vld [vmem:[#allocation6 + $0x17f8] sm:$0xff]  ;;  %v17046_v1 = vcombine.low %v8160_v47, %v8168_v29 }
 0x830   :  { %15039 = vmatprep.subr.bf16.mxu0 %v17111_v14  ;;  %v17303_v25 = vcombine.high %v8416_v45, %v8424_v35  ;;  %v8152_v54 = vld [vmem:[#allocation6 + $0xf78] sm:$0xff]  ;;  %v17302_v12 = vcombine.low %v8416_v45, %v8424_v35 }
 0x831   :  { %v8400_v16 = vld [vmem:[#allocation6 + $0x1738] sm:$0xff]  ;;  %v17031_v14 = vcombine.high %v8144_v59, %v8152_v54 }
 0x832   :  { %14999 = vmatpush1.bf16.msra.mxu1 %v16854_v60  ;;  %v8408_v19 = vld [vmem:[#allocation6 + $0x1778] sm:$0xff] }
 0x833   :  { %15040 = vmatpush1.bf16.msra.mxu0 %v17110_v61  ;;  %15000 = vmatprep.subr.bf16.mxu1 %v16839_v7  ;;  %v17287_v30 = vcombine.high %v8400_v16, %v8408_v19  ;;  %v8128_v57 = vld [vmem:[#allocation6 + $0xeb8] sm:$0xff]  ;;  %v17030_v61 = vcombine.low %v8144_v59, %v8152_v54  ;;  %v17286_v7 = vcombine.low %v8400_v16, %v8408_v19 }
 0x834   :  { %15041 = vmatprep.subr.bf16.mxu0 %v17095_v9  ;;  %v8136_v48 = vld [vmem:[#allocation6 + $0xef8] sm:$0xff] }
 0x835   :  { %v8384_v10 = vld [vmem:[#allocation6 + $0x16b8] sm:$0xff]  ;;  %v17015_v9 = vcombine.high %v8128_v57, %v8136_v48 }
 0x836   :  { %15001 = vmatpush1.bf16.msra.mxu1 %v16838_v43  ;;  %v8392_v60 = vld [vmem:[#allocation6 + $0x16f8] sm:$0xff] }
 0x837   :  { %15042 = vmatpush1.bf16.msra.mxu0 %v17094_v11  ;;  %15002 = vmatprep.subr.bf16.mxu1 %v16823_v49  ;;  %v17271_v58 = vcombine.high %v8384_v10, %v8392_v60  ;;  %v8112_v13 = vld [vmem:[#allocation6 + $0xe38] sm:$0xff]  ;;  %v17014_v11 = vcombine.low %v8128_v57, %v8136_v48  ;;  %v17270_v49 = vcombine.low %v8384_v10, %v8392_v60 }
 0x838   :  { %15043 = vmatprep.subr.bf16.mxu0 %v17079_v4  ;;  %v8120_v21 = vld [vmem:[#allocation6 + $0xe78] sm:$0xff] }
 0x839   :  { %v8368_v31 = vld [vmem:[#allocation6 + $0x1638] sm:$0xff]  ;;  %v16999_v4 = vcombine.high %v8112_v13, %v8120_v21 }
 0x83a   :  { %15003 = vmatpush1.bf16.msra.mxu1 %v16822_v53  ;;  %v8376_v43 = vld [vmem:[#allocation6 + $0x1678] sm:$0xff] }
 0x83b   :  { %15044 = vmatpush1.bf16.msra.mxu0 %v17078_v22  ;;  %15004 = vmatprep.subr.bf16.mxu1 %v16807_v56  ;;  %v17255_v63 = vcombine.high %v8368_v31, %v8376_v43  ;;  %v8096_v44 = vld [vmem:[#allocation6 + $0xdb8] sm:$0xff]  ;;  %v16998_v22 = vcombine.low %v8112_v13, %v8120_v21  ;;  %v17254_v56 = vcombine.low %v8368_v31, %v8376_v43 }
 0x83c   :  { %15045 = vmatprep.subr.bf16.mxu0 %v17063_v3  ;;  %v8104_v52 = vld [vmem:[#allocation6 + $0xdf8] sm:$0xff] }
 0x83d   :  { %v8352_v26 = vld [vmem:[#allocation6 + $0x15b8] sm:$0xff]  ;;  %v16983_v3 = vcombine.high %v8096_v44, %v8104_v52 }
 0x83e   :  { %15005 = vmatpush1.bf16.msra.mxu1 %v16806_v6  ;;  %v8360_v53 = vld [vmem:[#allocation6 + $0x15f8] sm:$0xff] }
 0x83f   :  { %15046 = vmatpush1.bf16.msra.mxu0 %v17062_v34  ;;  %15006 = vmatprep.subr.bf16.mxu1 %v17047_v8  ;;  %v17239_v47 = vcombine.high %v8352_v26, %v8360_v53  ;;  %v8080_v29 = vld [vmem:[#allocation6 + $0xd38] sm:$0xff]  ;;  %v16982_v34 = vcombine.low %v8096_v44, %v8104_v52  ;;  %v17238_v8 = vcombine.low %v8352_v26, %v8360_v53 }
 0x840   :  { %15047 = vmatprep.subr.bf16.mxu0 %v17303_v25  ;;  %v8088_v45 = vld [vmem:[#allocation6 + $0xd78] sm:$0xff] }
 0x841   :  { %v8336_v35 = vld [vmem:[#allocation6 + $0x1538] sm:$0xff]  ;;  %v16967_v25 = vcombine.high %v8080_v29, %v8088_v45 }
 0x842   :  { %15007 = vmatpush2.bf16.msra.mxu1 %v17046_v1  ;;  %v8344_v6 = vld [vmem:[#allocation6 + $0x1578] sm:$0xff] }
 0x843   :  { %15048 = vmatpush2.bf16.msra.mxu0 %v17302_v12  ;;  %15008 = vmatprep.subr.bf16.mxu1 %v17031_v14  ;;  %v17223_v59 = vcombine.high %v8336_v35, %v8344_v6  ;;  %v8064_v54 = vld [vmem:[#allocation6 + $0xcb8] sm:$0xff]  ;;  %v16966_v12 = vcombine.low %v8080_v29, %v8088_v45  ;;  %v17222_v14 = vcombine.low %v8336_v35, %v8344_v6 }
 0x844   :  { %15049 = vmatprep.subr.bf16.mxu0 %v17287_v30  ;;  %v8072_v16 = vld [vmem:[#allocation6 + $0xcf8] sm:$0xff] }
 0x845   :  { %v8320_v19 = vld [vmem:[#allocation6 + $0x14b8] sm:$0xff]  ;;  %v16951_v30 = vcombine.high %v8064_v54, %v8072_v16 }
 0x846   :  { %15009 = vmatpush2.bf16.msra.mxu1 %v17030_v61  ;;  %v8328_v1 = vld [vmem:[#allocation6 + $0x14f8] sm:$0xff] }
 0x847   :  { %15050 = vmatpush2.bf16.msra.mxu0 %v17286_v7  ;;  %15010 = vmatprep.subr.bf16.mxu1 %v17015_v9  ;;  %v17207_v57 = vcombine.high %v8320_v19, %v8328_v1  ;;  %v8048_v48 = vld [vmem:[#allocation6 + $0xc38] sm:$0xff]  ;;  %v16950_v7 = vcombine.low %v8064_v54, %v8072_v16  ;;  %v17206_v9 = vcombine.low %v8320_v19, %v8328_v1  ;;  %v17652_v16 = vld [vmem:[#allocation9 + $0x68] sm:$0xff]  }
 0x848   :  { %15051 = vmatprep.subr.bf16.mxu0 %v17271_v58  ;;  %v8056_v10 = vld [vmem:[#allocation6 + $0xc78] sm:$0xff] }
 0x849   :  { %v8304_v60 = vld [vmem:[#allocation6 + $0x1438] sm:$0xff]  ;;  %v16935_v58 = vcombine.high %v8048_v48, %v8056_v10  ;;  %v16934_v43 = vcombine.low %v8048_v48, %v8056_v10 }
 0x84a   :  { %15011 = vmatpush2.bf16.msra.mxu1 %v17014_v11  ;;  %v8312_v61 = vld [vmem:[#allocation6 + $0x1478] sm:$0xff] }
 0x84b   :  { %15052 = vmatpush2.bf16.msra.mxu0 %v17270_v49  ;;  %15012 = vmatprep.subr.bf16.mxu1 %v16999_v4  ;;  %v17191_v13 = vcombine.high %v8304_v60, %v8312_v61  ;;  %v8544_v21 = vld [vmem:[#allocation6 + $0x1bb8] sm:$0xff]  ;;  %v17190_v11 = vcombine.low %v8304_v60, %v8312_v61 }
 0x84c   :  { %15053 = vmatprep.subr.bf16.mxu0 %v17255_v63  ;;  %v8552_v31 = vld [vmem:[#allocation6 + $0x1bf8] sm:$0xff] }
 0x84d   :  { %v17431_v49 = vcombine.high %v8544_v21, %v8552_v31  ;;  %v8528_v4 = vld [vmem:[#allocation6 + $0x1b38] sm:$0xff]  ;;  %v17430_v52 = vcombine.low %v8544_v21, %v8552_v31 }
 0x84e   :  { %15013 = vmatpush2.bf16.msra.mxu1 %v16998_v22  ;;  %v8536_v63 = vld [vmem:[#allocation6 + $0x1b78] sm:$0xff] }
 0x84f   :  { %15054 = vmatpush2.bf16.msra.mxu0 %v17254_v56  ;;  %15014 = vmatprep.subr.bf16.mxu1 %v16983_v3  ;;  %v17648_v44 = vld [vmem:[#allocation9 + $0x78] sm:$0xff]   ;;  %v17415_v26 = vcombine.high %v8528_v4, %v8536_v63  ;;  %v17414_v35 = vcombine.low %v8528_v4, %v8536_v63 }
 0x850   :  { %15055 = vmatprep.subr.bf16.mxu0 %v17239_v47  ;;  %v8512_v53 = vld [vmem:[#allocation6 + $0x1ab8] sm:$0xff] }
 0x851   :  { %v8520_v22 = vld [vmem:[#allocation6 + $0x1af8] sm:$0xff] }
 0x852   :  { %15015 = vmatpush2.bf16.msra.mxu1 %v16982_v34  ;;  %v17649_v56 = vld [vmem:[#allocation9 + $0x38] sm:$0xff]   ;;  %v17650_v47 = vld [vmem:[#allocation9 + $0x70] sm:$0xff]   ;;  %v17399_v34 = vcombine.high %v8512_v53, %v8520_v22  ;;  %v17398_v19 = vcombine.low %v8512_v53, %v8520_v22 }
 0x853   :  { %15056 = vmatpush2.bf16.msra.mxu0 %v17238_v8  ;;  %15016 = vmatprep.subr.bf16.mxu1 %v16967_v25  ;;  %v8464_v60 = vld [vmem:[#allocation6 + $0x1938] sm:$0xff] }
 0x854   :  { %15057 = vmatprep.subr.bf16.mxu0 %v17223_v59  ;;  %v8504_v59 = vld [vmem:[#allocation6 + $0x1a78] sm:$0xff] }
 0x855   :  { %v8472_v61 = vld [vmem:[#allocation6 + $0x1978] sm:$0xff] }
 0x856   :  { %15017 = vmatpush2.bf16.msra.mxu1 %v16966_v12  ;;  %v8448_v21 = vld [vmem:[#allocation6 + $0x18b8] sm:$0xff] }
 0x857   :  { %15058 = vmatpush2.bf16.msra.mxu0 %v17222_v14  ;;  %15018 = vmatprep.subr.bf16.mxu1 %v16951_v30  ;;  %v8480_v14 = vld [vmem:[#allocation6 + $0x19b8] sm:$0xff] }
 0x858   :  { %15059 = vmatprep.subr.bf16.mxu0 %v17207_v57  ;;  %v8488_v30 = vld [vmem:[#allocation6 + $0x19f8] sm:$0xff]  ;;  %v17654_v57 = vld [vmem:[#allocation9 + $0x60] sm:$0xff]  }
 0x859   :  { %v17367_v10 = vcombine.high %v8480_v14, %v8488_v30  ;;  %v8456_v31 = vld [vmem:[#allocation6 + $0x18f8] sm:$0xff] }
 0x85a   :  { %15019 = vmatpush2.bf16.msra.mxu1 %v16950_v7  ;;  %v17655_v7 = vld [vmem:[#allocation9 + $0x20] sm:$0xff]   ;;  %v17335_v4 = vcombine.high %v8448_v21, %v8456_v31  ;;  %v8432_v63 = vld [vmem:[#allocation6 + $0x1838] sm:$0xff]  ;;  %v17334_v53 = vcombine.low %v8448_v21, %v8456_v31 }
 0x85b   :  { %15060 = vmatpush2.bf16.msra.mxu0 %v17206_v9  ;;  %15020 = vmatprep.subr.bf16.mxu1 %v16935_v58  ;;  %v17656_v9 = vld [vmem:[#allocation9 + $0x58] sm:$0xff]   ;;  %v17366_v58 = vcombine.low %v8480_v14, %v8488_v30 }
 0x85c   :  { %15061 = vmatprep.subr.bf16.mxu0 %v17191_v13  ;;  %v17351_v13 = vcombine.high %v8464_v60, %v8472_v61  ;;  %v8632_v14 = vld [vmem:[#allocation6 + $0x1e78] sm:$0xff] }
 0x85d   :  { %v8584_v21 = vld [vmem:[#allocation6 + $0x1cf8] sm:$0xff] }
 0x85e   :  { %15021 = vmatpush2.bf16.msra.mxu1 %v16934_v43  ;;  %v17657_v43 = vld [vmem:[#allocation9 + $0x18] sm:$0xff]  }
 0x85f   :  { %15062 = vmatpush2.bf16.msra.mxu0 %v17190_v11  ;;  %15072 = vmatprep.subr.bf16.mxu1 %v17431_v49  ;;  %v17658_v11 = vld [vmem:[#allocation9 + $0x50] sm:$0xff]   ;;  %v17350_v49 = vcombine.low %v8464_v60, %v8472_v61 }
 0x860   :  { %17593 = vmatprep.subr.bf16.mxu0 %v17648_v44  ;;  %v8440_v44 = vld [vmem:[#allocation6 + $0x1878] sm:$0xff] }
 0x861   :  { %v14778_v3 = vpop.f32.mrf.mxu1  ;;  %15023 = vmatmul.mubr.bf16.vlgmr.msra.gmra.mxu1 %v18085_v2  ;;  %v8496_v2 = vld [vmem:[#allocation6 + $0x1a38] sm:$0xff]  ;;  %v17319_v22 = vcombine.high %v8432_v63, %v8440_v44 }
 0x862   :  { %v18290_v29 = vadd.f32 %v14778_v3, %v18282_v51  ;;  %v18292_v45 = vpop.f32.mrf.mxu0  ;;  %15064 = vmatmul.mubr.bf16.vlgmr.msra.gmra.mxu0 %v18115_v20  ;;  %15073 = vmatpush1.bf16.msra.mxu1 %v17430_v52  ;;  %v17651_v51 = vld [vmem:[#allocation9 + $0x30] sm:$0xff]   ;;  %v17382_v48 = vcombine.low %v8496_v2, %v8504_v59 }
 0x863   :  { %15104 = vmatprep.mubr.bf16.mxu1 %v18130_v18  ;;  %v14780_v6 = vpop.f32.mrf.mxu1  ;;  %15074 = vmatprep.subr.bf16.mxu1 %v17415_v26  ;;  %v17383_v18 = vcombine.high %v8496_v2, %v8504_v59  ;;  %v17659_v52 = vld [vmem:[#allocation9 + $0x10] sm:$0xff]   ;;  %v17660_v26 = vld [vmem:[#allocation9 + $0x48] sm:$0xff]  }
 0x864   :  { %v18297_v8 = vadd.f32 %v14780_v6, %v18286_v41  ;;  %v18299_v25 = vpop.f32.mrf.mxu0  ;;  %17594 = vmatpush3.bf16.msra.mxu0 %v17649_v56  ;;  %v17653_v41 = vld [vmem:[#allocation9 + $0x28] sm:$0xff]   ;;  %v8672_v56 = vld [vmem:[#allocation6 + $0x1fb8] sm:$0xff]  ;;  %v17318_v6 = vcombine.low %v8432_v63, %v8440_v44 }
 0x865   :  { %v14782_v54 = vpop.f32.mrf.mxu1  ;;  %17595 = vmatprep.subr.bf16.mxu0 %v17650_v47  ;;  %v8680_v3 = vld [vmem:[#allocation6 + $0x1ff8] sm:$0xff]  ;;  %v17661_v47 = vld [vmem:[#allocation9 + $0x8] sm:$0xff]  }
 0x866   :  { %v14823_v20 = vpop.f32.mrf.mxu0  ;;  %15075 = vmatpush1.bf16.msra.mxu1 %v17414_v35  ;;  %v17662_v35 = vld [vmem:[#allocation9 + $0x40] sm:$0xff]   ;;  %v8656_v2 = vld [vmem:[#allocation6 + $0x1f38] sm:$0xff]  ;;  %v17558_v54 = vcombine.low %v8672_v56, %v8680_v3 }
 0x867   :  { %v14783_v1 = vpop.f32.mrf.mxu1  ;;  %15076 = vmatprep.subr.bf16.mxu1 %v17399_v34  ;;  %v17559_v34 = vcombine.high %v8672_v56, %v8680_v3  ;;  %v8664_v59 = vld [vmem:[#allocation6 + $0x1f78] sm:$0xff] }
 0x868   :  { %v14824_v12 = vpop.f32.mrf.mxu0  ;;  %17596 = vmatpush3.bf16.msra.mxu0 %v17651_v51  ;;  %v17663_v51 = vld [vmem:[#allocation9] sm:$0xff]   ;;  %v8640_v20 = vld [vmem:[#allocation6 + $0x1eb8] sm:$0xff]  ;;  %v17542_v1 = vcombine.low %v8656_v2, %v8664_v59 }
 0x869   :  { %17597 = vmatprep.subr.bf16.mxu0 %v17652_v16  ;;  %v17543_v16 = vcombine.high %v8656_v2, %v8664_v59  ;;  %v8624_v12 = vld [vmem:[#allocation6 + $0x1e38] sm:$0xff] }
 0x86a   :  { %15077 = vmatpush1.bf16.msra.mxu1 %v17398_v19  ;;  %v8648_v19 = vld [vmem:[#allocation6 + $0x1ef8] sm:$0xff] }
 0x86b   :  { %15078 = vmatprep.subr.bf16.mxu1 %v17383_v18  ;;  %v17527_v18 = vcombine.high %v8640_v20, %v8648_v19  ;;  %v17526_v30 = vcombine.low %v8640_v20, %v8648_v19  ;;  %v8592_v61 = vld [vmem:[#allocation6 + $0x1d38] sm:$0xff]  ;;  %v17671_v20 = vld [vmem:[#allocation9 + $0xa0] sm:$0xff]  }
 0x86c   :  { %17598 = vmatpush3.bf16.msra.mxu0 %v17653_v41  ;;  %v17511_v41 = vcombine.high %v8624_v12, %v8632_v14  ;;  %v17664_v2 = vld [vmem:[#allocation9 + $0xf8] sm:$0xff]  }
 0x86d   :  { %17599 = vmatprep.subr.bf16.mxu0 %v17654_v57  ;;  %v8608_v57 = vld [vmem:[#allocation6 + $0x1db8] sm:$0xff] }
 0x86e   :  { %15079 = vmatpush1.bf16.msra.mxu1 %v17382_v48  ;;  %v8616_v48 = vld [vmem:[#allocation6 + $0x1df8] sm:$0xff] }
 0x86f   :  { %15080 = vmatprep.subr.bf16.mxu1 %v17367_v10  ;;  %v17510_v10 = vcombine.low %v8624_v12, %v8632_v14  ;;  %v17495_v60 = vcombine.high %v8608_v57, %v8616_v48  ;;  %v17665_v59 = vld [vmem:[#allocation9 + $0xb8] sm:$0xff]  }
 0x870   :  { %17600 = vmatpush3.bf16.msra.mxu0 %v17655_v7  ;;  %v8600_v7 = vld [vmem:[#allocation6 + $0x1d78] sm:$0xff] }
 0x871   :  { %17601 = vmatprep.subr.bf16.mxu0 %v17656_v9  ;;  %v17494_v9 = vcombine.low %v8608_v57, %v8616_v48  ;;  %v17478_v31 = vcombine.low %v8592_v61, %v8600_v7  ;;  %v17672_v12 = vld [vmem:[#allocation9 + $0xd8] sm:$0xff]  }
 0x872   :  { %15081 = vmatpush1.bf16.msra.mxu1 %v17366_v58  ;;  %v17479_v58 = vcombine.high %v8592_v61, %v8600_v7  ;;  %v17673_v57 = vld [vmem:[#allocation9 + $0x98] sm:$0xff]  }
 0x873   :  { %15082 = vmatprep.subr.bf16.mxu1 %v17351_v13  ;;  %v8576_v13 = vld [vmem:[#allocation6 + $0x1cb8] sm:$0xff] }
 0x874   :  { %17602 = vmatpush3.bf16.msra.mxu0 %v17657_v43  ;;  %v17463_v43 = vcombine.high %v8576_v13, %v8584_v21 }
 0x875   :  { %17603 = vmatprep.subr.bf16.mxu0 %v17658_v11  ;;  %v8560_v11 = vld [vmem:[#allocation6 + $0x1c38] sm:$0xff] }
 0x876   :  { %15083 = vmatpush1.bf16.msra.mxu1 %v17350_v49  ;;  %v8568_v49 = vld [vmem:[#allocation6 + $0x1c78] sm:$0xff] }
 0x877   :  { %15084 = vmatprep.subr.bf16.mxu1 %v17335_v4  ;;  %v17462_v4 = vcombine.low %v8576_v13, %v8584_v21  ;;  %v17447_v63 = vcombine.high %v8560_v11, %v8568_v49  ;;  %v17446_v44 = vcombine.low %v8560_v11, %v8568_v49 }
 0x878   :  { %17604 = vmatpush3.bf16.msra.mxu0 %v17659_v52 }
 0x879   :  { %17605 = vmatprep.subr.bf16.mxu0 %v17660_v26 }
 0x87a   :  { %15085 = vmatpush1.bf16.msra.mxu1 %v17334_v53 }
 0x87b   :  { %15086 = vmatprep.subr.bf16.mxu1 %v17319_v22 }
 0x87c   :  { %17606 = vmatpush3.bf16.msra.mxu0 %v17661_v47 }
 0x87d   :  { %17607 = vmatprep.subr.bf16.mxu0 %v17662_v35 }
 0x87e   :  { %15087 = vmatpush1.bf16.msra.mxu1 %v17318_v6 }
 0x87f   :  { %15088 = vmatprep.subr.bf16.mxu1 %v17559_v34 }
 0x880   :  { %17608 = vmatpush3.bf16.msra.mxu0 %v17663_v51  ;;  %v17666_v51 = vld [vmem:[#allocation9 + $0xf0] sm:$0xff]  }
 0x882   :  { %15089 = vmatpush2.bf16.msra.mxu1 %v17558_v54  ;;  %v17667_v54 = vld [vmem:[#allocation9 + $0xb0] sm:$0xff]  }
 0x883   :  { %15090 = vmatprep.subr.bf16.mxu1 %v17543_v16  ;;  %v17668_v16 = vld [vmem:[#allocation9 + $0xe8] sm:$0xff]  }
 0x886   :  { %15091 = vmatpush2.bf16.msra.mxu1 %v17542_v1 }
 0x887   :  { %15092 = vmatprep.subr.bf16.mxu1 %v17527_v18  ;;  %v15125_v18 = vld [vmem:[#allocation7] sm:$0xf] }
 0x88a   :  { %15093 = vmatpush2.bf16.msra.mxu1 %v17526_v30 }
 0x88b   :  { %15094 = vmatprep.subr.bf16.mxu1 %v17511_v41 }
 0x88e   :  { %15095 = vmatpush2.bf16.msra.mxu1 %v17510_v10 }
 0x88f   :  { %15096 = vmatprep.subr.bf16.mxu1 %v17495_v60  ;;  %v15130_v60 = vrot.slane %v15125_v18, %v7595_v33 }
 0x892   :  { %15097 = vmatpush2.bf16.msra.mxu1 %v17494_v9 }
 0x893   :  { %15098 = vmatprep.subr.bf16.mxu1 %v17479_v58  ;;  %v17674_v58 = vld [vmem:[#allocation9 + $0xd0] sm:$0xff]  }
 0x896   :  { %15099 = vmatpush2.bf16.msra.mxu1 %v17478_v31  ;;  %v15134_v31 = vrot.slane %v15125_v18, %v7599_v36 }
 0x897   :  { %15100 = vmatprep.subr.bf16.mxu1 %v17463_v43  ;;  %v17675_v43 = vld [vmem:[#allocation9 + $0x90] sm:$0xff]  }
 0x89a   :  { %15101 = vmatpush2.bf16.msra.mxu1 %v17462_v4  ;;  %v17676_v4 = vld [vmem:[#allocation9 + $0xc8] sm:$0xff]  }
 0x89b   :  { %15102 = vmatprep.subr.bf16.mxu1 %v17447_v63 }
 0x89e   :  { %15103 = vmatpush2.bf16.msra.mxu1 %v17446_v44  ;;  %v17679_v44 = vld [vmem:[#allocation9 + $0x80] sm:$0xff]  }
 0x89f   :  { %17615 = vmatprep.subr.bf16.mxu1 %v17664_v2 }
 0x8a1   :  { %v14860_v52 = vpop.f32.mrf.mxu1  ;;  %15105 = vmatmul.mubr.bf16.vlgmr.msra.gmra.mxu1 %v18132_v5  ;;  %v17669_v5 = vld [vmem:[#allocation9 + $0xa8] sm:$0xff]  }
 0x8a2   :  { %v14861_v26 = vadd.f32 %v14860_v52, %v18292_v45  ;;  %v14901_v53 = vpop.f32.mrf.mxu0  ;;  %17616 = vmatpush3.bf16.msra.mxu1 %v17665_v59  ;;  %v17670_v45 = vld [vmem:[#allocation9 + $0xe0] sm:$0xff]  }
 0x8a3   :  { %v14862_v22 = vpop.f32.mrf.mxu1  ;;  %17617 = vmatprep.subr.bf16.mxu1 %v17666_v51 }
 0x8a4   :  { %v14902_v56 = vadd.f32 %v14901_v53, %v14861_v26  ;;  %v14903_v3 = vpop.f32.mrf.mxu0  ;;  %v14863_v19 = vadd.f32 %v14862_v22, %v18299_v25 }
 0x8a5   :  { %v14864_v47 = vpop.f32.mrf.mxu1 }
 0x8a6   :  { %v14905_v35 = vpop.f32.mrf.mxu0  ;;  %17618 = vmatpush3.bf16.msra.mxu1 %v17667_v54  ;;  %v14904_v14 = vadd.f32 %v14903_v3, %v14863_v19 }
 0x8a7   :  { %v14865_v6 = vpop.f32.mrf.mxu1  ;;  %17619 = vmatprep.subr.bf16.mxu1 %v17668_v16  ;;  %v15138_v16 = vrot.slane %v15125_v18, %v7603_v42 }
 0x8a8   :  { %v14906_v34 = vpop.f32.mrf.mxu0 }
 0x8aa   :  { %17620 = vmatpush3.bf16.msra.mxu1 %v17669_v5 }
 0x8ab   :  { %17621 = vmatprep.subr.bf16.mxu1 %v17670_v45 }
 0x8ae   :  { %17622 = vmatpush3.bf16.msra.mxu1 %v17671_v20 }
 0x8af   :  { %17623 = vmatprep.subr.bf16.mxu1 %v17672_v12 }
 0x8b2   :  { %17624 = vmatpush3.bf16.msra.mxu1 %v17673_v57 }
 0x8b3   :  { %17625 = vmatprep.subr.bf16.mxu1 %v17674_v58 }
 0x8b6   :  { %17626 = vmatpush3.bf16.msra.mxu1 %v17675_v43 }
 0x8b7   :  { %17627 = vmatprep.subr.bf16.mxu1 %v17676_v4 }
 0x8ba   :  { %17628 = vmatpush3.bf16.msra.mxu1 %v17677_v62 }
 0x8e1   :  { %v14942_v1 = vpop.f32.mrf.mxu1 }
 0x8e2   :  { %v14943_v30 = vadd.f32 %v14942_v1, %v14902_v56  ;;  %v14983_v41 = vpop.f32.mrf.mxu0  ;;  %v15142_v1 = vrot.slane %v15125_v18, %v7607_v46 }
 0x8e3   :  { %v14944_v48 = vpop.f32.mrf.mxu1 }
 0x8e4   :  { %v15117_v10 = vmax.f32 %v18266_v17, %v14943_v30  ;;  %v14945_v61 = vadd.f32 %v14944_v48, %v14904_v14  ;;  %v14985_v7 = vpop.f32.mrf.mxu0 }
 0x8e5   :  { %v14946_v9 = vpop.f32.mrf.mxu1 }
 0x8e6   :  { %v15121_v25 = vmax.f32 %v15113_v55, %v15117_v10  ;;  %v15118_v13 = vmax.f32 %v18274_v37, %v14945_v61  ;;  %v14987_v21 = vpop.f32.mrf.mxu0  ;;  %v17678_v37 = vld [vmem:[#allocation9 + $0xc0] sm:$0xff]  }
 0x8e7   :  { %v14947_v17 = vpop.f32.mrf.mxu1  ;;  %17629 = vmatprep.subr.bf16.mxu1 %v17678_v37 }
 0x8e8   :  { %v15147_v11 = vadd.f32 %v15130_v60, %v15121_v25  ;;  %v15122_v33 = vmax.f32 %v15114_v40, %v15118_v13  ;;  %v14988_v49 = vpop.f32.mrf.mxu0  ;;  %17630 = vmatpush3.bf16.msra.mxu1 %v17679_v44  ;;  %v17592_v60 = vld [vmem:[#allocation10] ss:$0 sm:$0xff] }
 0x8ea   :  { %v15148_v63 = vadd.f32 %v15134_v31, %v15122_v33  ;;  %v15151_v38 = vmax.f32 %v15147_v11, 0.0 }
 0x8ec   :  { %v15152_v55 = vmax.f32 %v15148_v63, 0.0  ;;  %v15155_v52 = vpack.c.bf16 %v15151_v38, %v15151_v38 }
 0x8ee   :  { %v15156_v36 = vpack.c.bf16 %v15152_v55, %v15152_v55 }
 0x8f0   :  { %15448 = vmatprep.mubr.bf16.mxu0 %v15156_v36 }
 0x8f1   :  { %15449 = vmatmul.mubr.bf16.vlgmr.msra.gmra.mxu0 %v15155_v52 }
 0x921   :  { %v15024_v26 = vpop.f32.mrf.mxu1 }
 0x922   :  { %v15025_v0 = vadd.f32 %v15024_v26, %v14983_v41  ;;  %v15065_v15 = vpop.f32.mrf.mxu0 }
 0x923   :  { %v15026_v40 = vpop.f32.mrf.mxu1 }
 0x924   :  { %v15066_v53 = vadd.f32 %v15065_v15, %v15025_v0  ;;  %v15067_v22 = vpop.f32.mrf.mxu0  ;;  %v15027_v6 = vadd.f32 %v15026_v40, %v14985_v7 }
 0x925   :  { %v15028_v56 = vpop.f32.mrf.mxu1 }
 0x926   :  { %v15069_v3 = vpop.f32.mrf.mxu0  ;;  %v15068_v2 = vadd.f32 %v15067_v22, %v15027_v6 }
 0x927   :  { %v15029_v47 = vpop.f32.mrf.mxu1 }
 0x928   :  { %v15070_v35 = vpop.f32.mrf.mxu0 }
 0x961   :  { %v15106_v34 = vpop.f32.mrf.mxu1 }
 0x962   :  { %v15107_v59 = vadd.f32 %v15106_v34, %v15066_v53 }
 0x963   :  { %v15108_v51 = vpop.f32.mrf.mxu1 }
 0x964   :  { %v15119_v54 = vmax.f32 %v18290_v29, %v15107_v59  ;;  %v15109_v5 = vadd.f32 %v15108_v51, %v15068_v2 }
 0x965   :  { %v15110_v45 = vpop.f32.mrf.mxu1 }
 0x966   :  { %v15123_v20 = vmax.f32 %v15115_v23, %v15119_v54  ;;  %v15120_v19 = vmax.f32 %v18297_v8, %v15109_v5 }
 0x967   :  { %v15111_v12 = vpop.f32.mrf.mxu1 }
 0x968   :  { %v15149_v14 = vadd.f32 %v15138_v16, %v15123_v20  ;;  %v15124_v29 = vmax.f32 %v15116_v24, %v15120_v19 }
 0x96a   :  { %v15150_v30 = vadd.f32 %v15142_v1, %v15124_v29  ;;  %v15153_v41 = vmax.f32 %v15149_v14, 0.0 }
 0x96c   :  { %v15154_v42 = vmax.f32 %v15150_v30, 0.0  ;;  %v15157_v48 = vpack.c.bf16 %v15153_v41, %v15153_v41 }
 0x96e   :  { %v15158_v57 = vpack.c.bf16 %v15154_v42, %v15154_v42 }
 0x970   :  { %15488 = vmatprep.mubr.bf16.mxu1 %v15158_v57 }
 0x971   :  { %15489 = vmatmul.mubr.bf16.vlgmr.msra.gmra.mxu1 %v15157_v48 }
 0x9b1   :  { %v17609_v39 = vpop.f32.mrf.mxu0 }
 0x9b3   :  { %v17610_v28 = vpop.f32.mrf.mxu0 }
 0x9b4   :  { %v17611_v23 = vadd.f32 %v17610_v28, %v17609_v39 }
 0x9b5   :  { %v17612_v8 = vpop.f32.mrf.mxu0 }
 0x9b7   :  { %v17613_v10 = vpop.f32.mrf.mxu0 }
 0xa31   :  { %v17631_v27 = vpop.f32.mrf.mxu1 }
 0xa33   :  { %v17632_v46 = vpop.f32.mrf.mxu1 }
 0xa34   :  { %v17633_v18 = vadd.f32 %v17632_v46, %v17631_v27 }
 0xa35   :  { %v17634_v61 = vpop.f32.mrf.mxu1 }
 0xa36   :  { %v15491_v7 = vadd.f32 %v17633_v18, %v17611_v23 }
 0xa37   :  { %v17635_v32 = vpop.f32.mrf.mxu1 }
 0xa38   :  { %v15502_v50 = vadd.f32 %v17592_v60, %v15491_v7 }
 0xa3a   :  { %15503 = vst [vmem:[%s18338_s7] sm:$0xff] %v15502_v50 }
 0xa3b   :  { %15508 = vsyncpa [#allocation3], 1 }
 0xa3c   :  { %15509 = vsyncpa [#allocation5], 1 }
 0xa3d   :  { %15510 = vsyncpa [#allocation8], 1 }
 0xa3e   :  { %15511 = vsyncpa [#allocation11], 1 }

</bundles_post_ra>
